<compile_context>
chip_gen: v5e
topology: v5e:2x2
jax: 0.10.0
libtpu: 0.0.40
codegen_flags: <defaults>
</compile_context>

<pallas_src>
import functools

import jax
import jax.numpy as jnp
from jax.experimental import pallas as pl
from jax.experimental.pallas import tpu as pltpu

EPS = 1e-3
CDTYPE = jnp.bfloat16  # storage/matmul dtype for activations & weights


# ---------------------------------------------------------------------------
# Pallas kernel 1: tap-accumulated spatial conv + fused BN affine + ReLU.
# One grid step = one (b, t) frame.  Taps are static row offsets into the
# pre-padded, flattened input block -> every dot is a plain 2-D MXU matmul.
# ---------------------------------------------------------------------------
def _tap_conv_kernel(x_ref, w_ref, s_ref, b_ref, o_ref, *, offsets, r_out):
    cout = o_ref.shape[-1]
    acc = jnp.zeros((r_out, cout), jnp.float32)
    for t, off in enumerate(offsets):            # static python loop (unrolled)
        acc = acc + jnp.dot(x_ref[0, off:off + r_out, :], w_ref[t],
                            preferred_element_type=jnp.float32)
    y = jnp.maximum(acc * s_ref[...] + b_ref[...], 0.0)   # BN + ReLU in f32
    o_ref[0] = y.astype(o_ref.dtype)


def tap_conv(x, w, scale, bias, offsets, r_out, out_dtype=CDTYPE):
    """x: (N, S, Cin), w: (n_taps, Cin, Cout), scale/bias: (Cout,).
    Returns (N, r_out, Cout) with out[n, r] = relu(s * sum_t x[n, r+off_t] @ w[t] + b)."""
    N, S, Cin = x.shape
    n_taps, _, Cout = w.shape
    kern = functools.partial(_tap_conv_kernel, offsets=tuple(offsets), r_out=r_out)
    return pl.pallas_call(
        kern,
        out_shape=jax.ShapeDtypeStruct((N, r_out, Cout), out_dtype),
        grid=(N,),
        in_specs=[
            pl.BlockSpec((1, S, Cin), lambda i: (i, 0, 0)),
            pl.BlockSpec((n_taps, Cin, Cout), lambda i: (0, 0, 0)),
            pl.BlockSpec((1, Cout), lambda i: (0, 0)),
            pl.BlockSpec((1, Cout), lambda i: (0, 0)),
        ],
        out_specs=pl.BlockSpec((1, r_out, Cout), lambda i: (i, 0, 0)),
        compiler_params=pltpu.CompilerParams(dimension_semantics=("parallel",)),
    )(x.astype(CDTYPE), w.astype(CDTYPE),
      scale.reshape(1, Cout).astype(jnp.float32),
      bias.reshape(1, Cout).astype(jnp.float32))


# ---------------------------------------------------------------------------
# Pallas kernel 2: fused temporal 5-tap conv + BN + ReLU
#                + branch-add pointwise conv + BN + ReLU
#                [+ per-frame global max pool for block3].
# One grid step = one batch element.
# ---------------------------------------------------------------------------
def _temporal_pw_kernel(x_ref, wt_ref, st_ref, bt_ref, wp_ref, sp_ref, bp_ref,
                        o_ref, *, hw, t_len, pool):
    c2 = x_ref.shape[-1]
    r_out = t_len * hw
    acc = jnp.zeros((r_out, c2), jnp.float32)
    for dt in range(5):                                     # static unroll
        off = dt * hw
        acc = acc + jnp.dot(x_ref[0, off:off + r_out, :], wt_ref[dt],
                            preferred_element_type=jnp.float32)
    # temporal BN + ReLU (f32), cast to bf16 for the MXU pointwise matmul
    yt = jnp.maximum(acc * st_ref[...] + bt_ref[...], 0.0).astype(x_ref.dtype)
    y = jnp.dot(yt, wp_ref[0], preferred_element_type=jnp.float32)
    y = jnp.maximum(y * sp_ref[...] + bp_ref[...], 0.0)     # (t_len*hw, Co) f32
    if pool:
        for t in range(t_len):                              # static unroll
            o_ref[0, t:t + 1, :] = jnp.max(
                y[t * hw:(t + 1) * hw, :], axis=0, keepdims=True).astype(o_ref.dtype)
    else:
        o_ref[0] = y.astype(o_ref.dtype)


def temporal_pw(y, p, *, pool):
    """y: (B, T, Ho, Wo, 2*Co). Fused temporal conv + pointwise (+ pool).
    Returns (B, T, Ho, Wo, Co) bf16, or (B, T, Co) f32 if pool=True."""
    B, T, Ho, Wo, c2 = y.shape
    hw = Ho * Wo
    co = p["w_pw"].shape[-1]
    yt = jnp.pad(y, ((0, 0), (2, 2), (0, 0), (0, 0), (0, 0)))
    yt = yt.reshape(B, (T + 4) * hw, c2)
    kern = functools.partial(_temporal_pw_kernel, hw=hw, t_len=T, pool=pool)
    if pool:
        out_shape = jax.ShapeDtypeStruct((B, T, co), jnp.float32)
        out_spec = pl.BlockSpec((1, T, co), lambda i: (i, 0, 0))
    else:
        out_shape = jax.ShapeDtypeStruct((B, T * hw, co), CDTYPE)
        out_spec = pl.BlockSpec((1, T * hw, co), lambda i: (i, 0, 0))
    out = pl.pallas_call(
        kern,
        out_shape=out_shape,
        grid=(B,),
        in_specs=[
            pl.BlockSpec((1, (T + 4) * hw, c2), lambda i: (i, 0, 0)),
            pl.BlockSpec((5, c2, c2), lambda i: (0, 0, 0)),
            pl.BlockSpec((1, c2), lambda i: (0, 0)),
            pl.BlockSpec((1, c2), lambda i: (0, 0)),
            pl.BlockSpec((1, c2, co), lambda i: (0, 0, 0)),
            pl.BlockSpec((1, co), lambda i: (0, 0)),
            pl.BlockSpec((1, co), lambda i: (0, 0)),
        ],
        out_specs=out_spec,
        compiler_params=pltpu.CompilerParams(dimension_semantics=("parallel",)),
    )(yt.astype(CDTYPE), p["w_temporal"].astype(CDTYPE),
      p["sc_t"].reshape(1, c2).astype(jnp.float32),
      p["bi_t"].reshape(1, c2).astype(jnp.float32),
      p["w_pw"].astype(CDTYPE),
      p["sc_pw"].reshape(1, co).astype(jnp.float32),
      p["bi_pw"].reshape(1, co).astype(jnp.float32))
    if pool:
        return out
    return out.reshape(B, T, Ho, Wo, co)


# ---------------------------------------------------------------------------
# MaxPool3d (1,3,3), stride (1,2,2), pad (0,1,1): 9 shifted maxima on the
# un-expanded tensor (no 9x materialization).  Zero padding is exact because
# the input is post-ReLU (>= 0).
# TODO(synk): left in plain JAX; a dedicated Pallas pooling kernel would need
# strided sublane loads which add lowering risk for little gain.
# ---------------------------------------------------------------------------
def maxpool_3x3_s2(x):
    B, T, H, W, C = x.shape
    Ho, Wo = (H - 1) // 2 + 1, (W - 1) // 2 + 1
    xp = jnp.pad(x, ((0, 0), (0, 0), (1, 1), (1, 1), (0, 0)))
    y = None
    for dh in range(3):
        for dw in range(3):
            v = xp[:, :, dh:dh + 2 * (Ho - 1) + 1:2, dw:dw + 2 * (Wo - 1) + 1:2, :]
            y = v if y is None else jnp.maximum(y, v)
    return y


# ---------------------------------------------------------------------------
# Fused spatial conv (s_3 & s_5 branches of one Visual_Block)
# ---------------------------------------------------------------------------
def spatial_conv(x, p, is_down):
    """x: (B, T, H, W, Cin) -> (B, T, Ho, Wo, 2*Co)."""
    B, T, H, W, Cin = x.shape
    co2 = p["w_spatial"].shape[-1]                    # 2*Co
    if is_down:
        assert H % 2 == 0 and W % 2 == 0, "stride-2 path assumes even H, W"
        Ho, Wo, K = H // 2, W // 2, 3
        xp = jnp.pad(x, ((0, 0), (0, 0), (2, 2), (2, 2), (0, 0)))
        # space-to-depth: stride-2 5x5 conv == stride-1 3x3 conv over 4*Cin ch.
        z = jnp.concatenate(
            [xp[:, :, ph::2, pw::2, :] for ph in (0, 1) for pw in (0, 1)], axis=-1)
        z = jnp.pad(z, ((0, 0), (0, 0), (0, 1), (0, 0), (0, 0)))  # one halo row
        cin_k = 4 * Cin
    else:
        Ho, Wo, K = H, W, 5
        z = jnp.pad(x, ((0, 0), (0, 0), (2, 3), (2, 2), (0, 0)))
        cin_k = Cin
    Hp, Wp = Ho + K, Wo + K - 1
    zf = z.reshape(B * T, Hp * Wp, cin_k)
    offsets = tuple(dh * Wp + dw for dh in range(K) for dw in range(K))
    y = tap_conv(zf, p["w_spatial"], p["sc_sp"], p["bi_sp"], offsets, Ho * Wp)
    # drop the (Wp - Wo) wrap-around columns
    return y.reshape(B * T, Ho, Wp, co2)[:, :, :Wo, :].reshape(B, T, Ho, Wo, co2)


def visual_encoder_forward(x, prep):
    """x: (B, 1, T, H, W) (PyTorch NCDHW) -> (B, T, 128)."""
    x = jnp.transpose(x, (0, 2, 3, 4, 1)).astype(CDTYPE)   # channels-last
    p1, p2, p3 = prep["block1"], prep["block2"], prep["block3"]

    # block1 (down) + pool1
    y = spatial_conv(x, p1, is_down=True)
    y = temporal_pw(y, p1, pool=False)
    y = maxpool_3x3_s2(y)

    # block2 + pool2
    y = spatial_conv(y, p2, is_down=False)
    y = temporal_pw(y, p2, pool=False)
    y = maxpool_3x3_s2(y)

    # block3 + fused pointwise conv + AdaptiveMaxPool2d((1,1))
    y = spatial_conv(y, p3, is_down=False)
    return temporal_pw(y, p3, pool=True)                    # (B, T, 128) f32


# ---------------------------------------------------------------------------
# Parameter init (PyTorch-like) and one-time prep: BN folding + branch fusion.
# ---------------------------------------------------------------------------
def _kaiming(key, shape):
    co, ci, kd, kh, kw = shape
    fan_in = ci * kd * kh * kw
    return jax.random.normal(key, shape, jnp.float32) * (2.0 / fan_in) ** 0.5


def _bn_params(c):
    return dict(gamma=jnp.ones((c,), jnp.float32), beta=jnp.zeros((c,), jnp.float32),
                mean=jnp.zeros((c,), jnp.float32), var=jnp.ones((c,), jnp.float32))


def init_block_params(key, cin, cout):
    ks = jax.random.split(key, 5)
    return dict(
        s_3=_kaiming(ks[0], (cout, cin, 1, 3, 3)), bn_s_3=_bn_params(cout),
        t_3=_kaiming(ks[1], (cout, cout, 3, 1, 1)), bn_t_3=_bn_params(cout),
        s_5=_kaiming(ks[2], (cout, cin, 1, 5, 5)), bn_s_5=_bn_params(cout),
        t_5=_kaiming(ks[3], (cout, cout, 5, 1, 1)), bn_t_5=_bn_params(cout),
        last=_kaiming(ks[4], (cout, cout, 1, 1, 1)), bn_last=_bn_params(cout),
    )


def init_params(key):
    k1, k2, k3 = jax.random.split(key, 3)
    return dict(block1=init_block_params(k1, 1, 32),
                block2=init_block_params(k2, 32, 64),
                block3=init_block_params(k3, 64, 128))


def _fold_bn(bn):
    scale = bn["gamma"] / jnp.sqrt(bn["var"] + EPS)
    return scale, bn["beta"] - bn["mean"] * scale


def _spatial_w(w):   # (Co, Cin, 1, kh, kw) -> (kh, kw, Cin, Co)
    return jnp.transpose(w[:, :, 0], (2, 3, 1, 0))


def _temporal_w(w):  # (Co, Cin, kt, 1, 1) -> (kt, Cin, Co)
    return jnp.transpose(w[:, :, :, 0, 0], (2, 1, 0))


def prepare_block(p, is_down):
    co, cin = p["s_3"].shape[0], p["s_3"].shape[1]

    # spatial: zero-pad 3x3 -> 5x5 and concat with 5x5 along Cout
    w3 = jnp.pad(_spatial_w(p["s_3"]), ((1, 1), (1, 1), (0, 0), (0, 0)))
    w_sp = jnp.concatenate([w3, _spatial_w(p["s_5"])], axis=-1)     # (5,5,cin,2co)
    if is_down:
        # stride-2 conv -> space-to-depth weight: 3x3 taps over 4*cin channels
        w_eff = jnp.zeros((3, 3, 4 * cin, 2 * co), w_sp.dtype)
        for qh in range(3):
            for qw in range(3):
                for ph in range(2):
                    for pw in range(2):
                        dh, dw = 2 * qh + ph, 2 * qw + pw
                        if dh < 5 and dw < 5:
                            c0 = (ph * 2 + pw) * cin
                            w_eff = w_eff.at[qh, qw, c0:c0 + cin, :].set(w_sp[dh, dw])
        w_spatial = w_eff.reshape(9, 4 * cin, 2 * co)
    else:
        w_spatial = w_sp.reshape(25, cin, 2 * co)
    s3s, s3b = _fold_bn(p["bn_s_3"]); s5s, s5b = _fold_bn(p["bn_s_5"])

    # temporal: block-diagonal 5-tap weight over 2co channels
    t3 = jnp.pad(_temporal_w(p["t_3"]), ((1, 1), (0, 0), (0, 0)))   # (5,co,co)
    t5 = _temporal_w(p["t_5"])                                      # (5,co,co)
    w_t = jnp.zeros((5, 2 * co, 2 * co), t3.dtype)
    w_t = w_t.at[:, :co, :co].set(t3).at[:, co:, co:].set(t5)
    t3s, t3b = _fold_bn(p["bn_t_3"]); t5s, t5b = _fold_bn(p["bn_t_5"])

    # pointwise: fold the (x3 + x5) add into a stacked (2co, co) weight
    wl = jnp.transpose(p["last"][:, :, 0, 0, 0], (1, 0))            # (co, co)
    w_pw = jnp.concatenate([wl, wl], axis=0)[None]                  # (1, 2co, co)
    ls, lb = _fold_bn(p["bn_last"])

    return dict(
        w_spatial=w_spatial.astype(CDTYPE),
        sc_sp=jnp.concatenate([s3s, s5s]), bi_sp=jnp.concatenate([s3b, s5b]),
        w_temporal=w_t.astype(CDTYPE),
        sc_t=jnp.concatenate([t3s, t5s]), bi_t=jnp.concatenate([t3b, t5b]),
        w_pw=w_pw.astype(CDTYPE), sc_pw=ls, bi_pw=lb,
    )


def prepare_params(params):
    return dict(block1=prepare_block(params["block1"], is_down=True),
                block2=prepare_block(params["block2"], is_down=False),
                block3=prepare_block(params["block3"], is_down=False))


if __name__ == "__main__":
    key = jax.random.PRNGKey(0)
    k_param, k_data = jax.random.split(key)
    params = init_params(k_param)
    prep = prepare_params(params)     # one-time BN folding + branch fusion

    # PyTorch input layout: (B, C=1, T, H, W)
    B, C, T, H, W = 2, 1, 4, 16, 16
    x = jax.random.normal(k_data, (B, C, T, H, W), dtype=jnp.float32)

    fwd = jax.jit(visual_encoder_forward)
    out = jax.block_until_ready(fwd(x, prep))

    assert out.shape == (B, T, 128), out.shape
    assert bool(jnp.all(jnp.isfinite(out)))
    print("KERNEL_OK")
</pallas_src>

<mosaic_0001>
module attributes {stable_mosaic.version = 11 : i64} {
  func.func @_tap_conv_kernel(%arg0: i32, %arg1: memref<1x110x4xbf16, #tpu.memory_space<vmem>>, %arg2: memref<9x4x64xbf16, #tpu.memory_space<vmem>>, %arg3: memref<1x64xf32, #tpu.memory_space<vmem>>, %arg4: memref<1x64xf32, #tpu.memory_space<vmem>>, %arg5: memref<1x80x64xbf16, #tpu.memory_space<vmem>>) attributes {dimension_semantics = [#tpu.dimension_semantics<parallel>], iteration_bounds = array<i64: 8>, scalar_prefetch = 0 : i64, scratch_operands = 0 : i64, tpu.core_type = #tpu.core_type<tc>, window_params = [{transform_indices = @transform_0, window_bounds = array<i64: 1, 110, 4>}, {pipeline_mode = #tpu.pipeline_mode<synchronous>, transform_indices = @transform_1, window_bounds = array<i64: 9, 4, 64>}, {pipeline_mode = #tpu.pipeline_mode<synchronous>, transform_indices = @transform_2, window_bounds = array<i64: 1, 64>}, {pipeline_mode = #tpu.pipeline_mode<synchronous>, transform_indices = @transform_3, window_bounds = array<i64: 1, 64>}, {transform_indices = @transform_4, window_bounds = array<i64: 1, 80, 64>}]} {
    %cst = arith.constant 0.000000e+00 : f32
    %0 = vector.broadcast %cst : f32 to vector<80x64xf32>
    %c0 = arith.constant 0 : index
    %c0_0 = arith.constant 0 : index
    %c0_1 = arith.constant 0 : index
    %1 = vector.load %arg1[%c0, %c0_0, %c0_1] : memref<1x110x4xbf16, #tpu.memory_space<vmem>>, vector<1x80x4xbf16>
    %2 = vector.shape_cast %1 : vector<1x80x4xbf16> to vector<80x4xbf16>
    %c0_2 = arith.constant 0 : index
    %c0_3 = arith.constant 0 : index
    %c0_4 = arith.constant 0 : index
    %3 = vector.load %arg2[%c0_2, %c0_3, %c0_4] : memref<9x4x64xbf16, #tpu.memory_space<vmem>>, vector<1x4x64xbf16>
    %4 = vector.shape_cast %3 : vector<1x4x64xbf16> to vector<4x64xbf16>
    %cst_5 = arith.constant dense<0.000000e+00> : vector<80x64xf32>
    %5 = tpu.matmul %2, %4, %cst_5 {dimension_numbers = #tpu.dot_dimension_numbers<[1], [0], [0], [1], [0, 0, 1, 1], [], []>} : vector<80x4xbf16>, vector<4x64xbf16>, vector<80x64xf32> -> vector<80x64xf32>
    %6 = arith.addf %0, %5 : vector<80x64xf32>
    %c0_6 = arith.constant 0 : index
    %c1 = arith.constant 1 : index
    %c0_7 = arith.constant 0 : index
    %7 = vector.load %arg1[%c0_6, %c1, %c0_7] : memref<1x110x4xbf16, #tpu.memory_space<vmem>>, vector<1x80x4xbf16>
    %8 = vector.shape_cast %7 : vector<1x80x4xbf16> to vector<80x4xbf16>
    %c1_8 = arith.constant 1 : index
    %c0_9 = arith.constant 0 : index
    %c0_10 = arith.constant 0 : index
    %9 = vector.load %arg2[%c1_8, %c0_9, %c0_10] : memref<9x4x64xbf16, #tpu.memory_space<vmem>>, vector<1x4x64xbf16>
    %10 = vector.shape_cast %9 : vector<1x4x64xbf16> to vector<4x64xbf16>
    %cst_11 = arith.constant dense<0.000000e+00> : vector<80x64xf32>
    %11 = tpu.matmul %8, %10, %cst_11 {dimension_numbers = #tpu.dot_dimension_numbers<[1], [0], [0], [1], [0, 0, 1, 1], [], []>} : vector<80x4xbf16>, vector<4x64xbf16>, vector<80x64xf32> -> vector<80x64xf32>
    %12 = arith.addf %6, %11 : vector<80x64xf32>
    %c0_12 = arith.constant 0 : index
    %c2 = arith.constant 2 : index
    %c0_13 = arith.constant 0 : index
    %13 = vector.load %arg1[%c0_12, %c2, %c0_13] : memref<1x110x4xbf16, #tpu.memory_space<vmem>>, vector<1x80x4xbf16>
    %14 = vector.shape_cast %13 : vector<1x80x4xbf16> to vector<80x4xbf16>
    %c2_14 = arith.constant 2 : index
    %c0_15 = arith.constant 0 : index
    %c0_16 = arith.constant 0 : index
    %15 = vector.load %arg2[%c2_14, %c0_15, %c0_16] : memref<9x4x64xbf16, #tpu.memory_space<vmem>>, vector<1x4x64xbf16>
    %16 = vector.shape_cast %15 : vector<1x4x64xbf16> to vector<4x64xbf16>
    %cst_17 = arith.constant dense<0.000000e+00> : vector<80x64xf32>
    %17 = tpu.matmul %14, %16, %cst_17 {dimension_numbers = #tpu.dot_dimension_numbers<[1], [0], [0], [1], [0, 0, 1, 1], [], []>} : vector<80x4xbf16>, vector<4x64xbf16>, vector<80x64xf32> -> vector<80x64xf32>
    %18 = arith.addf %12, %17 : vector<80x64xf32>
    %c0_18 = arith.constant 0 : index
    %c10 = arith.constant 10 : index
    %c0_19 = arith.constant 0 : index
    %19 = vector.load %arg1[%c0_18, %c10, %c0_19] : memref<1x110x4xbf16, #tpu.memory_space<vmem>>, vector<1x80x4xbf16>
    %20 = vector.shape_cast %19 : vector<1x80x4xbf16> to vector<80x4xbf16>
    %c3 = arith.constant 3 : index
    %c0_20 = arith.constant 0 : index
    %c0_21 = arith.constant 0 : index
    %21 = vector.load %arg2[%c3, %c0_20, %c0_21] : memref<9x4x64xbf16, #tpu.memory_space<vmem>>, vector<1x4x64xbf16>
    %22 = vector.shape_cast %21 : vector<1x4x64xbf16> to vector<4x64xbf16>
    %cst_22 = arith.constant dense<0.000000e+00> : vector<80x64xf32>
    %23 = tpu.matmul %20, %22, %cst_22 {dimension_numbers = #tpu.dot_dimension_numbers<[1], [0], [0], [1], [0, 0, 1, 1], [], []>} : vector<80x4xbf16>, vector<4x64xbf16>, vector<80x64xf32> -> vector<80x64xf32>
    %24 = arith.addf %18, %23 : vector<80x64xf32>
    %c0_23 = arith.constant 0 : index
    %c11 = arith.constant 11 : index
    %c0_24 = arith.constant 0 : index
    %25 = vector.load %arg1[%c0_23, %c11, %c0_24] : memref<1x110x4xbf16, #tpu.memory_space<vmem>>, vector<1x80x4xbf16>
    %26 = vector.shape_cast %25 : vector<1x80x4xbf16> to vector<80x4xbf16>
    %c4 = arith.constant 4 : index
    %c0_25 = arith.constant 0 : index
    %c0_26 = arith.constant 0 : index
    %27 = vector.load %arg2[%c4, %c0_25, %c0_26] : memref<9x4x64xbf16, #tpu.memory_space<vmem>>, vector<1x4x64xbf16>
    %28 = vector.shape_cast %27 : vector<1x4x64xbf16> to vector<4x64xbf16>
    %cst_27 = arith.constant dense<0.000000e+00> : vector<80x64xf32>
    %29 = tpu.matmul %26, %28, %cst_27 {dimension_numbers = #tpu.dot_dimension_numbers<[1], [0], [0], [1], [0, 0, 1, 1], [], []>} : vector<80x4xbf16>, vector<4x64xbf16>, vector<80x64xf32> -> vector<80x64xf32>
    %30 = arith.addf %24, %29 : vector<80x64xf32>
    %c0_28 = arith.constant 0 : index
    %c12 = arith.constant 12 : index
    %c0_29 = arith.constant 0 : index
    %31 = vector.load %arg1[%c0_28, %c12, %c0_29] : memref<1x110x4xbf16, #tpu.memory_space<vmem>>, vector<1x80x4xbf16>
    %32 = vector.shape_cast %31 : vector<1x80x4xbf16> to vector<80x4xbf16>
    %c5 = arith.constant 5 : index
    %c0_30 = arith.constant 0 : index
    %c0_31 = arith.constant 0 : index
    %33 = vector.load %arg2[%c5, %c0_30, %c0_31] : memref<9x4x64xbf16, #tpu.memory_space<vmem>>, vector<1x4x64xbf16>
    %34 = vector.shape_cast %33 : vector<1x4x64xbf16> to vector<4x64xbf16>
    %cst_32 = arith.constant dense<0.000000e+00> : vector<80x64xf32>
    %35 = tpu.matmul %32, %34, %cst_32 {dimension_numbers = #tpu.dot_dimension_numbers<[1], [0], [0], [1], [0, 0, 1, 1], [], []>} : vector<80x4xbf16>, vector<4x64xbf16>, vector<80x64xf32> -> vector<80x64xf32>
    %36 = arith.addf %30, %35 : vector<80x64xf32>
    %c0_33 = arith.constant 0 : index
    %c20 = arith.constant 20 : index
    %c0_34 = arith.constant 0 : index
    %37 = vector.load %arg1[%c0_33, %c20, %c0_34] : memref<1x110x4xbf16, #tpu.memory_space<vmem>>, vector<1x80x4xbf16>
    %38 = vector.shape_cast %37 : vector<1x80x4xbf16> to vector<80x4xbf16>
    %c6 = arith.constant 6 : index
    %c0_35 = arith.constant 0 : index
    %c0_36 = arith.constant 0 : index
    %39 = vector.load %arg2[%c6, %c0_35, %c0_36] : memref<9x4x64xbf16, #tpu.memory_space<vmem>>, vector<1x4x64xbf16>
    %40 = vector.shape_cast %39 : vector<1x4x64xbf16> to vector<4x64xbf16>
    %cst_37 = arith.constant dense<0.000000e+00> : vector<80x64xf32>
    %41 = tpu.matmul %38, %40, %cst_37 {dimension_numbers = #tpu.dot_dimension_numbers<[1], [0], [0], [1], [0, 0, 1, 1], [], []>} : vector<80x4xbf16>, vector<4x64xbf16>, vector<80x64xf32> -> vector<80x64xf32>
    %42 = arith.addf %36, %41 : vector<80x64xf32>
    %c0_38 = arith.constant 0 : index
    %c21 = arith.constant 21 : index
    %c0_39 = arith.constant 0 : index
    %43 = vector.load %arg1[%c0_38, %c21, %c0_39] : memref<1x110x4xbf16, #tpu.memory_space<vmem>>, vector<1x80x4xbf16>
    %44 = vector.shape_cast %43 : vector<1x80x4xbf16> to vector<80x4xbf16>
    %c7 = arith.constant 7 : index
    %c0_40 = arith.constant 0 : index
    %c0_41 = arith.constant 0 : index
    %45 = vector.load %arg2[%c7, %c0_40, %c0_41] : memref<9x4x64xbf16, #tpu.memory_space<vmem>>, vector<1x4x64xbf16>
    %46 = vector.shape_cast %45 : vector<1x4x64xbf16> to vector<4x64xbf16>
    %cst_42 = arith.constant dense<0.000000e+00> : vector<80x64xf32>
    %47 = tpu.matmul %44, %46, %cst_42 {dimension_numbers = #tpu.dot_dimension_numbers<[1], [0], [0], [1], [0, 0, 1, 1], [], []>} : vector<80x4xbf16>, vector<4x64xbf16>, vector<80x64xf32> -> vector<80x64xf32>
    %48 = arith.addf %42, %47 : vector<80x64xf32>
    %c0_43 = arith.constant 0 : index
    %c22 = arith.constant 22 : index
    %c0_44 = arith.constant 0 : index
    %49 = vector.load %arg1[%c0_43, %c22, %c0_44] : memref<1x110x4xbf16, #tpu.memory_space<vmem>>, vector<1x80x4xbf16>
    %50 = vector.shape_cast %49 : vector<1x80x4xbf16> to vector<80x4xbf16>
    %c8 = arith.constant 8 : index
    %c0_45 = arith.constant 0 : index
    %c0_46 = arith.constant 0 : index
    %51 = vector.load %arg2[%c8, %c0_45, %c0_46] : memref<9x4x64xbf16, #tpu.memory_space<vmem>>, vector<1x4x64xbf16>
    %52 = vector.shape_cast %51 : vector<1x4x64xbf16> to vector<4x64xbf16>
    %cst_47 = arith.constant dense<0.000000e+00> : vector<80x64xf32>
    %53 = tpu.matmul %50, %52, %cst_47 {dimension_numbers = #tpu.dot_dimension_numbers<[1], [0], [0], [1], [0, 0, 1, 1], [], []>} : vector<80x4xbf16>, vector<4x64xbf16>, vector<80x64xf32> -> vector<80x64xf32>
    %54 = arith.addf %48, %53 : vector<80x64xf32>
    %c0_48 = arith.constant 0 : index
    %c0_49 = arith.constant 0 : index
    %55 = vector.load %arg3[%c0_48, %c0_49] : memref<1x64xf32, #tpu.memory_space<vmem>>, vector<1x64xf32>
    %56 = vector.broadcast %55 : vector<1x64xf32> to vector<80x64xf32>
    %57 = arith.mulf %54, %56 : vector<80x64xf32>
    %c0_50 = arith.constant 0 : index
    %c0_51 = arith.constant 0 : index
    %58 = vector.load %arg4[%c0_50, %c0_51] : memref<1x64xf32, #tpu.memory_space<vmem>>, vector<1x64xf32>
    %59 = vector.broadcast %58 : vector<1x64xf32> to vector<80x64xf32>
    %60 = arith.addf %57, %59 : vector<80x64xf32>
    %cst_52 = arith.constant 0.000000e+00 : f32
    %61 = vector.broadcast %cst_52 : f32 to vector<80x64xf32>
    %62 = arith.maximumf %60, %61 : vector<80x64xf32>
    %63 = arith.truncf %62 : vector<80x64xf32> to vector<80x64xbf16>
    %c0_53 = arith.constant 0 : index
    %c0_54 = arith.constant 0 : index
    %c0_55 = arith.constant 0 : index
    %64 = vector.load %arg5[%c0_53, %c0_54, %c0_55] : memref<1x80x64xbf16, #tpu.memory_space<vmem>>, vector<1x80x64xbf16>
    %65 = vector.shape_cast %64 : vector<1x80x64xbf16> to vector<80x64xbf16>
    %66 = vector.shape_cast %63 : vector<80x64xbf16> to vector<1x80x64xbf16>
    tpu.vector_store %arg5[%c0_53, %c0_54, %c0_55], %66 {strides = array<i32>} : memref<1x80x64xbf16, #tpu.memory_space<vmem>>, vector<1x80x64xbf16>,
    return
  }
  func.func @transform_0(%arg0: i32) -> (i32, i32, i32) {
    %c0_i32 = arith.constant 0 : i32
    %c0_i32_0 = arith.constant 0 : i32
    %c0_i32_1 = arith.constant 0 : i32
    return %arg0, %c0_i32, %c0_i32_0 : i32, i32, i32
  }
  func.func @transform_1(%arg0: i32) -> (i32, i32, i32) {
    %c0_i32 = arith.constant 0 : i32
    %c0_i32_0 = arith.constant 0 : i32
    %c0_i32_1 = arith.constant 0 : i32
    %c0_i32_2 = arith.constant 0 : i32
    return %c0_i32, %c0_i32_0, %c0_i32_1 : i32, i32, i32
  }
  func.func @transform_2(%arg0: i32) -> (i32, i32) {
    %c0_i32 = arith.constant 0 : i32
    %c0_i32_0 = arith.constant 0 : i32
    %c0_i32_1 = arith.constant 0 : i32
    return %c0_i32, %c0_i32_0 : i32, i32
  }
  func.func @transform_3(%arg0: i32) -> (i32, i32) {
    %c0_i32 = arith.constant 0 : i32
    %c0_i32_0 = arith.constant 0 : i32
    %c0_i32_1 = arith.constant 0 : i32
    return %c0_i32, %c0_i32_0 : i32, i32
  }
  func.func @transform_4(%arg0: i32) -> (i32, i32, i32) {
    %c0_i32 = arith.constant 0 : i32
    %c0_i32_0 = arith.constant 0 : i32
    %c0_i32_1 = arith.constant 0 : i32
    return %arg0, %c0_i32, %c0_i32_0 : i32, i32, i32
  }
}

module attributes {stable_mosaic.version = 11 : i64} {
  func.func @_temporal_pw_kernel(%arg0: i32, %arg1: memref<1x512x64xbf16, #tpu.memory_space<vmem>>, %arg2: memref<5x64x64xbf16, #tpu.memory_space<vmem>>, %arg3: memref<1x64xf32, #tpu.memory_space<vmem>>, %arg4: memref<1x64xf32, #tpu.memory_space<vmem>>, %arg5: memref<1x64x32xbf16, #tpu.memory_space<vmem>>, %arg6: memref<1x32xf32, #tpu.memory_space<vmem>>, %arg7: memref<1x32xf32, #tpu.memory_space<vmem>>, %arg8: memref<1x256x32xbf16, #tpu.memory_space<vmem>>) attributes {dimension_semantics = [#tpu.dimension_semantics<parallel>], iteration_bounds = array<i64: 2>, scalar_prefetch = 0 : i64, scratch_operands = 0 : i64, tpu.core_type = #tpu.core_type<tc>, window_params = [{transform_indices = @transform_0, window_bounds = array<i64: 1, 512, 64>}, {pipeline_mode = #tpu.pipeline_mode<synchronous>, transform_indices = @transform_1, window_bounds = array<i64: 5, 64, 64>}, {pipeline_mode = #tpu.pipeline_mode<synchronous>, transform_indices = @transform_2, window_bounds = array<i64: 1, 64>}, {pipeline_mode = #tpu.pipeline_mode<synchronous>, transform_indices = @transform_3, window_bounds = array<i64: 1, 64>}, {pipeline_mode = #tpu.pipeline_mode<synchronous>, transform_indices = @transform_4, window_bounds = array<i64: 1, 64, 32>}, {pipeline_mode = #tpu.pipeline_mode<synchronous>, transform_indices = @transform_5, window_bounds = array<i64: 1, 32>}, {pipeline_mode = #tpu.pipeline_mode<synchronous>, transform_indices = @transform_6, window_bounds = array<i64: 1, 32>}, {transform_indices = @transform_7, window_bounds = array<i64: 1, 256, 32>}]} {
    %cst = arith.constant 0.000000e+00 : f32
    %0 = vector.broadcast %cst : f32 to vector<256x64xf32>
    %c0 = arith.constant 0 : index
    %c0_0 = arith.constant 0 : index
    %c0_1 = arith.constant 0 : index
    %1 = vector.load %arg1[%c0, %c0_0, %c0_1] : memref<1x512x64xbf16, #tpu.memory_space<vmem>>, vector<1x256x64xbf16>
    %2 = vector.shape_cast %1 : vector<1x256x64xbf16> to vector<256x64xbf16>
    %c0_2 = arith.constant 0 : index
    %c0_3 = arith.constant 0 : index
    %c0_4 = arith.constant 0 : index
    %3 = vector.load %arg2[%c0_2, %c0_3, %c0_4] : memref<5x64x64xbf16, #tpu.memory_space<vmem>>, vector<1x64x64xbf16>
    %4 = vector.shape_cast %3 : vector<1x64x64xbf16> to vector<64x64xbf16>
    %cst_5 = arith.constant dense<0.000000e+00> : vector<256x64xf32>
    %5 = tpu.matmul %2, %4, %cst_5 {dimension_numbers = #tpu.dot_dimension_numbers<[1], [0], [0], [1], [0, 0, 1, 1], [], []>} : vector<256x64xbf16>, vector<64x64xbf16>, vector<256x64xf32> -> vector<256x64xf32>
    %6 = arith.addf %0, %5 : vector<256x64xf32>
    %c0_6 = arith.constant 0 : index
    %c64 = arith.constant 64 : index
    %c0_7 = arith.constant 0 : index
    %7 = vector.load %arg1[%c0_6, %c64, %c0_7] : memref<1x512x64xbf16, #tpu.memory_space<vmem>>, vector<1x256x64xbf16>
    %8 = vector.shape_cast %7 : vector<1x256x64xbf16> to vector<256x64xbf16>
    %c1 = arith.constant 1 : index
    %c0_8 = arith.constant 0 : index
    %c0_9 = arith.constant 0 : index
    %9 = vector.load %arg2[%c1, %c0_8, %c0_9] : memref<5x64x64xbf16, #tpu.memory_space<vmem>>, vector<1x64x64xbf16>
    %10 = vector.shape_cast %9 : vector<1x64x64xbf16> to vector<64x64xbf16>
    %cst_10 = arith.constant dense<0.000000e+00> : vector<256x64xf32>
    %11 = tpu.matmul %8, %10, %cst_10 {dimension_numbers = #tpu.dot_dimension_numbers<[1], [0], [0], [1], [0, 0, 1, 1], [], []>} : vector<256x64xbf16>, vector<64x64xbf16>, vector<256x64xf32> -> vector<256x64xf32>
    %12 = arith.addf %6, %11 : vector<256x64xf32>
    %c0_11 = arith.constant 0 : index
    %c128 = arith.constant 128 : index
    %c0_12 = arith.constant 0 : index
    %13 = vector.load %arg1[%c0_11, %c128, %c0_12] : memref<1x512x64xbf16, #tpu.memory_space<vmem>>, vector<1x256x64xbf16>
    %14 = vector.shape_cast %13 : vector<1x256x64xbf16> to vector<256x64xbf16>
    %c2 = arith.constant 2 : index
    %c0_13 = arith.constant 0 : index
    %c0_14 = arith.constant 0 : index
    %15 = vector.load %arg2[%c2, %c0_13, %c0_14] : memref<5x64x64xbf16, #tpu.memory_space<vmem>>, vector<1x64x64xbf16>
    %16 = vector.shape_cast %15 : vector<1x64x64xbf16> to vector<64x64xbf16>
    %cst_15 = arith.constant dense<0.000000e+00> : vector<256x64xf32>
    %17 = tpu.matmul %14, %16, %cst_15 {dimension_numbers = #tpu.dot_dimension_numbers<[1], [0], [0], [1], [0, 0, 1, 1], [], []>} : vector<256x64xbf16>, vector<64x64xbf16>, vector<256x64xf32> -> vector<256x64xf32>
    %18 = arith.addf %12, %17 : vector<256x64xf32>
    %c0_16 = arith.constant 0 : index
    %c192 = arith.constant 192 : index
    %c0_17 = arith.constant 0 : index
    %19 = vector.load %arg1[%c0_16, %c192, %c0_17] : memref<1x512x64xbf16, #tpu.memory_space<vmem>>, vector<1x256x64xbf16>
    %20 = vector.shape_cast %19 : vector<1x256x64xbf16> to vector<256x64xbf16>
    %c3 = arith.constant 3 : index
    %c0_18 = arith.constant 0 : index
    %c0_19 = arith.constant 0 : index
    %21 = vector.load %arg2[%c3, %c0_18, %c0_19] : memref<5x64x64xbf16, #tpu.memory_space<vmem>>, vector<1x64x64xbf16>
    %22 = vector.shape_cast %21 : vector<1x64x64xbf16> to vector<64x64xbf16>
    %cst_20 = arith.constant dense<0.000000e+00> : vector<256x64xf32>
    %23 = tpu.matmul %20, %22, %cst_20 {dimension_numbers = #tpu.dot_dimension_numbers<[1], [0], [0], [1], [0, 0, 1, 1], [], []>} : vector<256x64xbf16>, vector<64x64xbf16>, vector<256x64xf32> -> vector<256x64xf32>
    %24 = arith.addf %18, %23 : vector<256x64xf32>
    %c0_21 = arith.constant 0 : index
    %c256 = arith.constant 256 : index
    %c0_22 = arith.constant 0 : index
    %25 = vector.load %arg1[%c0_21, %c256, %c0_22] : memref<1x512x64xbf16, #tpu.memory_space<vmem>>, vector<1x256x64xbf16>
    %26 = vector.shape_cast %25 : vector<1x256x64xbf16> to vector<256x64xbf16>
    %c4 = arith.constant 4 : index
    %c0_23 = arith.constant 0 : index
    %c0_24 = arith.constant 0 : index
    %27 = vector.load %arg2[%c4, %c0_23, %c0_24] : memref<5x64x64xbf16, #tpu.memory_space<vmem>>, vector<1x64x64xbf16>
    %28 = vector.shape_cast %27 : vector<1x64x64xbf16> to vector<64x64xbf16>
    %cst_25 = arith.constant dense<0.000000e+00> : vector<256x64xf32>
    %29 = tpu.matmul %26, %28, %cst_25 {dimension_numbers = #tpu.dot_dimension_numbers<[1], [0], [0], [1], [0, 0, 1, 1], [], []>} : vector<256x64xbf16>, vector<64x64xbf16>, vector<256x64xf32> -> vector<256x64xf32>
    %30 = arith.addf %24, %29 : vector<256x64xf32>
    %c0_26 = arith.constant 0 : index
    %c0_27 = arith.constant 0 : index
    %31 = vector.load %arg3[%c0_26, %c0_27] : memref<1x64xf32, #tpu.memory_space<vmem>>, vector<1x64xf32>
    %32 = vector.broadcast %31 : vector<1x64xf32> to vector<256x64xf32>
    %33 = arith.mulf %30, %32 : vector<256x64xf32>
    %c0_28 = arith.constant 0 : index
    %c0_29 = arith.constant 0 : index
    %34 = vector.load %arg4[%c0_28, %c0_29] : memref<1x64xf32, #tpu.memory_space<vmem>>, vector<1x64xf32>
    %35 = vector.broadcast %34 : vector<1x64xf32> to vector<256x64xf32>
    %36 = arith.addf %33, %35 : vector<256x64xf32>
    %cst_30 = arith.constant 0.000000e+00 : f32
    %37 = vector.broadcast %cst_30 : f32 to vector<256x64xf32>
    %38 = arith.maximumf %36, %37 : vector<256x64xf32>
    %39 = arith.truncf %38 : vector<256x64xf32> to vector<256x64xbf16>
    %c0_31 = arith.constant 0 : index
    %c0_32 = arith.constant 0 : index
    %c0_33 = arith.constant 0 : index
    %40 = vector.load %arg5[%c0_31, %c0_32, %c0_33] : memref<1x64x32xbf16, #tpu.memory_space<vmem>>, vector<1x64x32xbf16>
    %41 = vector.shape_cast %40 : vector<1x64x32xbf16> to vector<64x32xbf16>
    %cst_34 = arith.constant dense<0.000000e+00> : vector<256x32xf32>
    %42 = tpu.matmul %39, %41, %cst_34 {dimension_numbers = #tpu.dot_dimension_numbers<[1], [0], [0], [1], [0, 0, 1, 1], [], []>} : vector<256x64xbf16>, vector<64x32xbf16>, vector<256x32xf32> -> vector<256x32xf32>
    %c0_35 = arith.constant 0 : index
    %c0_36 = arith.constant 0 : index
    %43 = vector.load %arg6[%c0_35, %c0_36] : memref<1x32xf32, #tpu.memory_space<vmem>>, vector<1x32xf32>
    %44 = vector.broadcast %43 : vector<1x32xf32> to vector<256x32xf32>
    %45 = arith.mulf %42, %44 : vector<256x32xf32>
    %c0_37 = arith.constant 0 : index
    %c0_38 = arith.constant 0 : index
    %46 = vector.load %arg7[%c0_37, %c0_38] : memref<1x32xf32, #tpu.memory_space<vmem>>, vector<1x32xf32>
    %47 = vector.broadcast %46 : vector<1x32xf32> to vector<256x32xf32>
    %48 = arith.addf %45, %47 : vector<256x32xf32>
    %cst_39 = arith.constant 0.000000e+00 : f32
    %49 = vector.broadcast %cst_39 : f32 to vector<256x32xf32>
    %50 = arith.maximumf %48, %49 : vector<256x32xf32>
    %51 = arith.truncf %50 : vector<256x32xf32> to vector<256x32xbf16>
    %c0_40 = arith.constant 0 : index
    %c0_41 = arith.constant 0 : index
    %c0_42 = arith.constant 0 : index
    %52 = vector.load %arg8[%c0_40, %c0_41, %c0_42] : memref<1x256x32xbf16, #tpu.memory_space<vmem>>, vector<1x256x32xbf16>
    %53 = vector.shape_cast %52 : vector<1x256x32xbf16> to vector<256x32xbf16>
    %54 = vector.shape_cast %51 : vector<256x32xbf16> to vector<1x256x32xbf16>
    tpu.vector_store %arg8[%c0_40, %c0_41, %c0_42], %54 {strides = array<i32>} : memref<1x256x32xbf16, #tpu.memory_space<vmem>>, vector<1x256x32xbf16>,
    return
  }
  func.func @transform_0(%arg0: i32) -> (i32, i32, i32) {
    %c0_i32 = arith.constant 0 : i32
    %c0_i32_0 = arith.constant 0 : i32
    %c0_i32_1 = arith.constant 0 : i32
    return %arg0, %c0_i32, %c0_i32_0 : i32, i32, i32
  }
  func.func @transform_1(%arg0: i32) -> (i32, i32, i32) {
    %c0_i32 = arith.constant 0 : i32
    %c0_i32_0 = arith.constant 0 : i32
    %c0_i32_1 = arith.constant 0 : i32
    %c0_i32_2 = arith.constant 0 : i32
    return %c0_i32, %c0_i32_0, %c0_i32_1 : i32, i32, i32
  }
  func.func @transform_2(%arg0: i32) -> (i32, i32) {
    %c0_i32 = arith.constant 0 : i32
    %c0_i32_0 = arith.constant 0 : i32
    %c0_i32_1 = arith.constant 0 : i32
    return %c0_i32, %c0_i32_0 : i32, i32
  }
  func.func @transform_3(%arg0: i32) -> (i32, i32) {
    %c0_i32 = arith.constant 0 : i32
    %c0_i32_0 = arith.constant 0 : i32
    %c0_i32_1 = arith.constant 0 : i32
    return %c0_i32, %c0_i32_0 : i32, i32
  }
  func.func @transform_4(%arg0: i32) -> (i32, i32, i32) {
    %c0_i32 = arith.constant 0 : i32
    %c0_i32_0 = arith.constant 0 : i32
    %c0_i32_1 = arith.constant 0 : i32
    %c0_i32_2 = arith.constant 0 : i32
    return %c0_i32, %c0_i32_0, %c0_i32_1 : i32, i32, i32
  }
  func.func @transform_5(%arg0: i32) -> (i32, i32) {
    %c0_i32 = arith.constant 0 : i32
    %c0_i32_0 = arith.constant 0 : i32
    %c0_i32_1 = arith.constant 0 : i32
    return %c0_i32, %c0_i32_0 : i32, i32
  }
  func.func @transform_6(%arg0: i32) -> (i32, i32) {
    %c0_i32 = arith.constant 0 : i32
    %c0_i32_0 = arith.constant 0 : i32
    %c0_i32_1 = arith.constant 0 : i32
    return %c0_i32, %c0_i32_0 : i32, i32
  }
  func.func @transform_7(%arg0: i32) -> (i32, i32, i32) {
    %c0_i32 = arith.constant 0 : i32
    %c0_i32_0 = arith.constant 0 : i32
    %c0_i32_1 = arith.constant 0 : i32
    return %arg0, %c0_i32, %c0_i32_0 : i32, i32, i32
  }
}

module attributes {stable_mosaic.version = 11 : i64} {
  func.func @_temporal_pw_kernel(%arg0: i32, %arg1: memref<1x128x128xbf16, #tpu.memory_space<vmem>>, %arg2: memref<5x128x128xbf16, #tpu.memory_space<vmem>>, %arg3: memref<1x128xf32, #tpu.memory_space<vmem>>, %arg4: memref<1x128xf32, #tpu.memory_space<vmem>>, %arg5: memref<1x128x64xbf16, #tpu.memory_space<vmem>>, %arg6: memref<1x64xf32, #tpu.memory_space<vmem>>, %arg7: memref<1x64xf32, #tpu.memory_space<vmem>>, %arg8: memref<1x64x64xbf16, #tpu.memory_space<vmem>>) attributes {dimension_semantics = [#tpu.dimension_semantics<parallel>], iteration_bounds = array<i64: 2>, scalar_prefetch = 0 : i64, scratch_operands = 0 : i64, tpu.core_type = #tpu.core_type<tc>, window_params = [{transform_indices = @transform_0, window_bounds = array<i64: 1, 128, 128>}, {pipeline_mode = #tpu.pipeline_mode<synchronous>, transform_indices = @transform_1, window_bounds = array<i64: 5, 128, 128>}, {pipeline_mode = #tpu.pipeline_mode<synchronous>, transform_indices = @transform_2, window_bounds = array<i64: 1, 128>}, {pipeline_mode = #tpu.pipeline_mode<synchronous>, transform_indices = @transform_3, window_bounds = array<i64: 1, 128>}, {pipeline_mode = #tpu.pipeline_mode<synchronous>, transform_indices = @transform_4, window_bounds = array<i64: 1, 128, 64>}, {pipeline_mode = #tpu.pipeline_mode<synchronous>, transform_indices = @transform_5, window_bounds = array<i64: 1, 64>}, {pipeline_mode = #tpu.pipeline_mode<synchronous>, transform_indices = @transform_6, window_bounds = array<i64: 1, 64>}, {transform_indices = @transform_7, window_bounds = array<i64: 1, 64, 64>}]} {
    %cst = arith.constant 0.000000e+00 : f32
    %0 = vector.broadcast %cst : f32 to vector<64x128xf32>
    %c0 = arith.constant 0 : index
    %c0_0 = arith.constant 0 : index
    %c0_1 = arith.constant 0 : index
    %1 = vector.load %arg1[%c0, %c0_0, %c0_1] : memref<1x128x128xbf16, #tpu.memory_space<vmem>>, vector<1x64x128xbf16>
    %2 = vector.shape_cast %1 : vector<1x64x128xbf16> to vector<64x128xbf16>
    %c0_2 = arith.constant 0 : index
    %c0_3 = arith.constant 0 : index
    %c0_4 = arith.constant 0 : index
    %3 = vector.load %arg2[%c0_2, %c0_3, %c0_4] : memref<5x128x128xbf16, #tpu.memory_space<vmem>>, vector<1x128x128xbf16>
    %4 = vector.shape_cast %3 : vector<1x128x128xbf16> to vector<128x128xbf16>
    %cst_5 = arith.constant dense<0.000000e+00> : vector<64x128xf32>
    %5 = tpu.matmul %2, %4, %cst_5 {dimension_numbers = #tpu.dot_dimension_numbers<[1], [0], [0], [1], [0, 0, 1, 1], [], []>} : vector<64x128xbf16>, vector<128x128xbf16>, vector<64x128xf32> -> vector<64x128xf32>
    %6 = arith.addf %0, %5 : vector<64x128xf32>
    %c0_6 = arith.constant 0 : index
    %c16 = arith.constant 16 : index
    %c0_7 = arith.constant 0 : index
    %7 = vector.load %arg1[%c0_6, %c16, %c0_7] : memref<1x128x128xbf16, #tpu.memory_space<vmem>>, vector<1x64x128xbf16>
    %8 = vector.shape_cast %7 : vector<1x64x128xbf16> to vector<64x128xbf16>
    %c1 = arith.constant 1 : index
    %c0_8 = arith.constant 0 : index
    %c0_9 = arith.constant 0 : index
    %9 = vector.load %arg2[%c1, %c0_8, %c0_9] : memref<5x128x128xbf16, #tpu.memory_space<vmem>>, vector<1x128x128xbf16>
    %10 = vector.shape_cast %9 : vector<1x128x128xbf16> to vector<128x128xbf16>
    %cst_10 = arith.constant dense<0.000000e+00> : vector<64x128xf32>
    %11 = tpu.matmul %8, %10, %cst_10 {dimension_numbers = #tpu.dot_dimension_numbers<[1], [0], [0], [1], [0, 0, 1, 1], [], []>} : vector<64x128xbf16>, vector<128x128xbf16>, vector<64x128xf32> -> vector<64x128xf32>
    %12 = arith.addf %6, %11 : vector<64x128xf32>
    %c0_11 = arith.constant 0 : index
    %c32 = arith.constant 32 : index
    %c0_12 = arith.constant 0 : index
    %13 = vector.load %arg1[%c0_11, %c32, %c0_12] : memref<1x128x128xbf16, #tpu.memory_space<vmem>>, vector<1x64x128xbf16>
    %14 = vector.shape_cast %13 : vector<1x64x128xbf16> to vector<64x128xbf16>
    %c2 = arith.constant 2 : index
    %c0_13 = arith.constant 0 : index
    %c0_14 = arith.constant 0 : index
    %15 = vector.load %arg2[%c2, %c0_13, %c0_14] : memref<5x128x128xbf16, #tpu.memory_space<vmem>>, vector<1x128x128xbf16>
    %16 = vector.shape_cast %15 : vector<1x128x128xbf16> to vector<128x128xbf16>
    %cst_15 = arith.constant dense<0.000000e+00> : vector<64x128xf32>
    %17 = tpu.matmul %14, %16, %cst_15 {dimension_numbers = #tpu.dot_dimension_numbers<[1], [0], [0], [1], [0, 0, 1, 1], [], []>} : vector<64x128xbf16>, vector<128x128xbf16>, vector<64x128xf32> -> vector<64x128xf32>
    %18 = arith.addf %12, %17 : vector<64x128xf32>
    %c0_16 = arith.constant 0 : index
    %c48 = arith.constant 48 : index
    %c0_17 = arith.constant 0 : index
    %19 = vector.load %arg1[%c0_16, %c48, %c0_17] : memref<1x128x128xbf16, #tpu.memory_space<vmem>>, vector<1x64x128xbf16>
    %20 = vector.shape_cast %19 : vector<1x64x128xbf16> to vector<64x128xbf16>
    %c3 = arith.constant 3 : index
    %c0_18 = arith.constant 0 : index
    %c0_19 = arith.constant 0 : index
    %21 = vector.load %arg2[%c3, %c0_18, %c0_19] : memref<5x128x128xbf16, #tpu.memory_space<vmem>>, vector<1x128x128xbf16>
    %22 = vector.shape_cast %21 : vector<1x128x128xbf16> to vector<128x128xbf16>
    %cst_20 = arith.constant dense<0.000000e+00> : vector<64x128xf32>
    %23 = tpu.matmul %20, %22, %cst_20 {dimension_numbers = #tpu.dot_dimension_numbers<[1], [0], [0], [1], [0, 0, 1, 1], [], []>} : vector<64x128xbf16>, vector<128x128xbf16>, vector<64x128xf32> -> vector<64x128xf32>
    %24 = arith.addf %18, %23 : vector<64x128xf32>
    %c0_21 = arith.constant 0 : index
    %c64 = arith.constant 64 : index
    %c0_22 = arith.constant 0 : index
    %25 = vector.load %arg1[%c0_21, %c64, %c0_22] : memref<1x128x128xbf16, #tpu.memory_space<vmem>>, vector<1x64x128xbf16>
    %26 = vector.shape_cast %25 : vector<1x64x128xbf16> to vector<64x128xbf16>
    %c4 = arith.constant 4 : index
    %c0_23 = arith.constant 0 : index
    %c0_24 = arith.constant 0 : index
    %27 = vector.load %arg2[%c4, %c0_23, %c0_24] : memref<5x128x128xbf16, #tpu.memory_space<vmem>>, vector<1x128x128xbf16>
    %28 = vector.shape_cast %27 : vector<1x128x128xbf16> to vector<128x128xbf16>
    %cst_25 = arith.constant dense<0.000000e+00> : vector<64x128xf32>
    %29 = tpu.matmul %26, %28, %cst_25 {dimension_numbers = #tpu.dot_dimension_numbers<[1], [0], [0], [1], [0, 0, 1, 1], [], []>} : vector<64x128xbf16>, vector<128x128xbf16>, vector<64x128xf32> -> vector<64x128xf32>
    %30 = arith.addf %24, %29 : vector<64x128xf32>
    %c0_26 = arith.constant 0 : index
    %c0_27 = arith.constant 0 : index
    %31 = vector.load %arg3[%c0_26, %c0_27] : memref<1x128xf32, #tpu.memory_space<vmem>>, vector<1x128xf32>
    %32 = vector.broadcast %31 : vector<1x128xf32> to vector<64x128xf32>
    %33 = arith.mulf %30, %32 : vector<64x128xf32>
    %c0_28 = arith.constant 0 : index
    %c0_29 = arith.constant 0 : index
    %34 = vector.load %arg4[%c0_28, %c0_29] : memref<1x128xf32, #tpu.memory_space<vmem>>, vector<1x128xf32>
    %35 = vector.broadcast %34 : vector<1x128xf32> to vector<64x128xf32>
    %36 = arith.addf %33, %35 : vector<64x128xf32>
    %cst_30 = arith.constant 0.000000e+00 : f32
    %37 = vector.broadcast %cst_30 : f32 to vector<64x128xf32>
    %38 = arith.maximumf %36, %37 : vector<64x128xf32>
    %39 = arith.truncf %38 : vector<64x128xf32> to vector<64x128xbf16>
    %c0_31 = arith.constant 0 : index
    %c0_32 = arith.constant 0 : index
    %c0_33 = arith.constant 0 : index
    %40 = vector.load %arg5[%c0_31, %c0_32, %c0_33] : memref<1x128x64xbf16, #tpu.memory_space<vmem>>, vector<1x128x64xbf16>
    %41 = vector.shape_cast %40 : vector<1x128x64xbf16> to vector<128x64xbf16>
    %cst_34 = arith.constant dense<0.000000e+00> : vector<64x64xf32>
    %42 = tpu.matmul %39, %41, %cst_34 {dimension_numbers = #tpu.dot_dimension_numbers<[1], [0], [0], [1], [0, 0, 1, 1], [], []>} : vector<64x128xbf16>, vector<128x64xbf16>, vector<64x64xf32> -> vector<64x64xf32>
    %c0_35 = arith.constant 0 : index
    %c0_36 = arith.constant 0 : index
    %43 = vector.load %arg6[%c0_35, %c0_36] : memref<1x64xf32, #tpu.memory_space<vmem>>, vector<1x64xf32>
    %44 = vector.broadcast %43 : vector<1x64xf32> to vector<64x64xf32>
    %45 = arith.mulf %42, %44 : vector<64x64xf32>
    %c0_37 = arith.constant 0 : index
    %c0_38 = arith.constant 0 : index
    %46 = vector.load %arg7[%c0_37, %c0_38] : memref<1x64xf32, #tpu.memory_space<vmem>>, vector<1x64xf32>
    %47 = vector.broadcast %46 : vector<1x64xf32> to vector<64x64xf32>
    %48 = arith.addf %45, %47 : vector<64x64xf32>
    %cst_39 = arith.constant 0.000000e+00 : f32
    %49 = vector.broadcast %cst_39 : f32 to vector<64x64xf32>
    %50 = arith.maximumf %48, %49 : vector<64x64xf32>
    %51 = arith.truncf %50 : vector<64x64xf32> to vector<64x64xbf16>
    %c0_40 = arith.constant 0 : index
    %c0_41 = arith.constant 0 : index
    %c0_42 = arith.constant 0 : index
    %52 = vector.load %arg8[%c0_40, %c0_41, %c0_42] : memref<1x64x64xbf16, #tpu.memory_space<vmem>>, vector<1x64x64xbf16>
    %53 = vector.shape_cast %52 : vector<1x64x64xbf16> to vector<64x64xbf16>
    %54 = vector.shape_cast %51 : vector<64x64xbf16> to vector<1x64x64xbf16>
    tpu.vector_store %arg8[%c0_40, %c0_41, %c0_42], %54 {strides = array<i32>} : memref<1x64x64xbf16, #tpu.memory_space<vmem>>, vector<1x64x64xbf16>,
    return
  }
  func.func @transform_0(%arg0: i32) -> (i32, i32, i32) {
    %c0_i32 = arith.constant 0 : i32
    %c0_i32_0 = arith.constant 0 : i32
    %c0_i32_1 = arith.constant 0 : i32
    return %arg0, %c0_i32, %c0_i32_0 : i32, i32, i32
  }
  func.func @transform_1(%arg0: i32) -> (i32, i32, i32) {
    %c0_i32 = arith.constant 0 : i32
    %c0_i32_0 = arith.constant 0 : i32
    %c0_i32_1 = arith.constant 0 : i32
    %c0_i32_2 = arith.constant 0 : i32
    return %c0_i32, %c0_i32_0, %c0_i32_1 : i32, i32, i32
  }
  func.func @transform_2(%arg0: i32) -> (i32, i32) {
    %c0_i32 = arith.constant 0 : i32
    %c0_i32_0 = arith.constant 0 : i32
    %c0_i32_1 = arith.constant 0 : i32
    return %c0_i32, %c0_i32_0 : i32, i32
  }
  func.func @transform_3(%arg0: i32) -> (i32, i32) {
    %c0_i32 = arith.constant 0 : i32
    %c0_i32_0 = arith.constant 0 : i32
    %c0_i32_1 = arith.constant 0 : i32
    return %c0_i32, %c0_i32_0 : i32, i32
  }
  func.func @transform_4(%arg0: i32) -> (i32, i32, i32) {
    %c0_i32 = arith.constant 0 : i32
    %c0_i32_0 = arith.constant 0 : i32
    %c0_i32_1 = arith.constant 0 : i32
    %c0_i32_2 = arith.constant 0 : i32
    return %c0_i32, %c0_i32_0, %c0_i32_1 : i32, i32, i32
  }
  func.func @transform_5(%arg0: i32) -> (i32, i32) {
    %c0_i32 = arith.constant 0 : i32
    %c0_i32_0 = arith.constant 0 : i32
    %c0_i32_1 = arith.constant 0 : i32
    return %c0_i32, %c0_i32_0 : i32, i32
  }
  func.func @transform_6(%arg0: i32) -> (i32, i32) {
    %c0_i32 = arith.constant 0 : i32
    %c0_i32_0 = arith.constant 0 : i32
    %c0_i32_1 = arith.constant 0 : i32
    return %c0_i32, %c0_i32_0 : i32, i32
  }
  func.func @transform_7(%arg0: i32) -> (i32, i32, i32) {
    %c0_i32 = arith.constant 0 : i32
    %c0_i32_0 = arith.constant 0 : i32
    %c0_i32_1 = arith.constant 0 : i32
    return %arg0, %c0_i32, %c0_i32_0 : i32, i32, i32
  }
}

module attributes {stable_mosaic.version = 11 : i64} {
  func.func @_tap_conv_kernel(%arg0: i32, %arg1: memref<1x72x32xbf16, #tpu.memory_space<vmem>>, %arg2: memref<25x32x128xbf16, #tpu.memory_space<vmem>>, %arg3: memref<1x128xf32, #tpu.memory_space<vmem>>, %arg4: memref<1x128xf32, #tpu.memory_space<vmem>>, %arg5: memref<1x32x128xbf16, #tpu.memory_space<vmem>>) attributes {dimension_semantics = [#tpu.dimension_semantics<parallel>], iteration_bounds = array<i64: 8>, scalar_prefetch = 0 : i64, scratch_operands = 0 : i64, tpu.core_type = #tpu.core_type<tc>, window_params = [{transform_indices = @transform_0, window_bounds = array<i64: 1, 72, 32>}, {pipeline_mode = #tpu.pipeline_mode<synchronous>, transform_indices = @transform_1, window_bounds = array<i64: 25, 32, 128>}, {pipeline_mode = #tpu.pipeline_mode<synchronous>, transform_indices = @transform_2, window_bounds = array<i64: 1, 128>}, {pipeline_mode = #tpu.pipeline_mode<synchronous>, transform_indices = @transform_3, window_bounds = array<i64: 1, 128>}, {transform_indices = @transform_4, window_bounds = array<i64: 1, 32, 128>}]} {
    %cst = arith.constant 0.000000e+00 : f32
    %0 = vector.broadcast %cst : f32 to vector<32x128xf32>
    %c0 = arith.constant 0 : index
    %c0_0 = arith.constant 0 : index
    %c0_1 = arith.constant 0 : index
    %1 = vector.load %arg1[%c0, %c0_0, %c0_1] : memref<1x72x32xbf16, #tpu.memory_space<vmem>>, vector<1x32x32xbf16>
    %2 = vector.shape_cast %1 : vector<1x32x32xbf16> to vector<32x32xbf16>
    %c0_2 = arith.constant 0 : index
    %c0_3 = arith.constant 0 : index
    %c0_4 = arith.constant 0 : index
    %3 = vector.load %arg2[%c0_2, %c0_3, %c0_4] : memref<25x32x128xbf16, #tpu.memory_space<vmem>>, vector<1x32x128xbf16>
    %4 = vector.shape_cast %3 : vector<1x32x128xbf16> to vector<32x128xbf16>
    %cst_5 = arith.constant dense<0.000000e+00> : vector<32x128xf32>
    %5 = tpu.matmul %2, %4, %cst_5 {dimension_numbers = #tpu.dot_dimension_numbers<[1], [0], [0], [1], [0, 0, 1, 1], [], []>} : vector<32x32xbf16>, vector<32x128xbf16>, vector<32x128xf32> -> vector<32x128xf32>
    %6 = arith.addf %0, %5 : vector<32x128xf32>
    %c0_6 = arith.constant 0 : index
    %c1 = arith.constant 1 : index
    %c0_7 = arith.constant 0 : index
    %7 = vector.load %arg1[%c0_6, %c1, %c0_7] : memref<1x72x32xbf16, #tpu.memory_space<vmem>>, vector<1x32x32xbf16>
    %8 = vector.shape_cast %7 : vector<1x32x32xbf16> to vector<32x32xbf16>
    %c1_8 = arith.constant 1 : index
    %c0_9 = arith.constant 0 : index
    %c0_10 = arith.constant 0 : index
    %9 = vector.load %arg2[%c1_8, %c0_9, %c0_10] : memref<25x32x128xbf16, #tpu.memory_space<vmem>>, vector<1x32x128xbf16>
    %10 = vector.shape_cast %9 : vector<1x32x128xbf16> to vector<32x128xbf16>
    %cst_11 = arith.constant dense<0.000000e+00> : vector<32x128xf32>
    %11 = tpu.matmul %8, %10, %cst_11 {dimension_numbers = #tpu.dot_dimension_numbers<[1], [0], [0], [1], [0, 0, 1, 1], [], []>} : vector<32x32xbf16>, vector<32x128xbf16>, vector<32x128xf32> -> vector<32x128xf32>
    %12 = arith.addf %6, %11 : vector<32x128xf32>
    %c0_12 = arith.constant 0 : index
    %c2 = arith.constant 2 : index
    %c0_13 = arith.constant 0 : index
    %13 = vector.load %arg1[%c0_12, %c2, %c0_13] : memref<1x72x32xbf16, #tpu.memory_space<vmem>>, vector<1x32x32xbf16>
    %14 = vector.shape_cast %13 : vector<1x32x32xbf16> to vector<32x32xbf16>
    %c2_14 = arith.constant 2 : index
    %c0_15 = arith.constant 0 : index
    %c0_16 = arith.constant 0 : index
    %15 = vector.load %arg2[%c2_14, %c0_15, %c0_16] : memref<25x32x128xbf16, #tpu.memory_space<vmem>>, vector<1x32x128xbf16>
    %16 = vector.shape_cast %15 : vector<1x32x128xbf16> to vector<32x128xbf16>
    %cst_17 = arith.constant dense<0.000000e+00> : vector<32x128xf32>
    %17 = tpu.matmul %14, %16, %cst_17 {dimension_numbers = #tpu.dot_dimension_numbers<[1], [0], [0], [1], [0, 0, 1, 1], [], []>} : vector<32x32xbf16>, vector<32x128xbf16>, vector<32x128xf32> -> vector<32x128xf32>
    %18 = arith.addf %12, %17 : vector<32x128xf32>
    %c0_18 = arith.constant 0 : index
    %c3 = arith.constant 3 : index
    %c0_19 = arith.constant 0 : index
    %19 = vector.load %arg1[%c0_18, %c3, %c0_19] : memref<1x72x32xbf16, #tpu.memory_space<vmem>>, vector<1x32x32xbf16>
    %20 = vector.shape_cast %19 : vector<1x32x32xbf16> to vector<32x32xbf16>
    %c3_20 = arith.constant 3 : index
    %c0_21 = arith.constant 0 : index
    %c0_22 = arith.constant 0 : index
    %21 = vector.load %arg2[%c3_20, %c0_21, %c0_22] : memref<25x32x128xbf16, #tpu.memory_space<vmem>>, vector<1x32x128xbf16>
    %22 = vector.shape_cast %21 : vector<1x32x128xbf16> to vector<32x128xbf16>
    %cst_23 = arith.constant dense<0.000000e+00> : vector<32x128xf32>
    %23 = tpu.matmul %20, %22, %cst_23 {dimension_numbers = #tpu.dot_dimension_numbers<[1], [0], [0], [1], [0, 0, 1, 1], [], []>} : vector<32x32xbf16>, vector<32x128xbf16>, vector<32x128xf32> -> vector<32x128xf32>
    %24 = arith.addf %18, %23 : vector<32x128xf32>
    %c0_24 = arith.constant 0 : index
    %c4 = arith.constant 4 : index
    %c0_25 = arith.constant 0 : index
    %25 = vector.load %arg1[%c0_24, %c4, %c0_25] : memref<1x72x32xbf16, #tpu.memory_space<vmem>>, vector<1x32x32xbf16>
    %26 = vector.shape_cast %25 : vector<1x32x32xbf16> to vector<32x32xbf16>
    %c4_26 = arith.constant 4 : index
    %c0_27 = arith.constant 0 : index
    %c0_28 = arith.constant 0 : index
    %27 = vector.load %arg2[%c4_26, %c0_27, %c0_28] : memref<25x32x128xbf16, #tpu.memory_space<vmem>>, vector<1x32x128xbf16>
    %28 = vector.shape_cast %27 : vector<1x32x128xbf16> to vector<32x128xbf16>
    %cst_29 = arith.constant dense<0.000000e+00> : vector<32x128xf32>
    %29 = tpu.matmul %26, %28, %cst_29 {dimension_numbers = #tpu.dot_dimension_numbers<[1], [0], [0], [1], [0, 0, 1, 1], [], []>} : vector<32x32xbf16>, vector<32x128xbf16>, vector<32x128xf32> -> vector<32x128xf32>
    %30 = arith.addf %24, %29 : vector<32x128xf32>
    %c0_30 = arith.constant 0 : index
    %c8 = arith.constant 8 : index
    %c0_31 = arith.constant 0 : index
    %31 = vector.load %arg1[%c0_30, %c8, %c0_31] : memref<1x72x32xbf16, #tpu.memory_space<vmem>>, vector<1x32x32xbf16>
    %32 = vector.shape_cast %31 : vector<1x32x32xbf16> to vector<32x32xbf16>
    %c5 = arith.constant 5 : index
    %c0_32 = arith.constant 0 : index
    %c0_33 = arith.constant 0 : index
    %33 = vector.load %arg2[%c5, %c0_32, %c0_33] : memref<25x32x128xbf16, #tpu.memory_space<vmem>>, vector<1x32x128xbf16>
    %34 = vector.shape_cast %33 : vector<1x32x128xbf16> to vector<32x128xbf16>
    %cst_34 = arith.constant dense<0.000000e+00> : vector<32x128xf32>
    %35 = tpu.matmul %32, %34, %cst_34 {dimension_numbers = #tpu.dot_dimension_numbers<[1], [0], [0], [1], [0, 0, 1, 1], [], []>} : vector<32x32xbf16>, vector<32x128xbf16>, vector<32x128xf32> -> vector<32x128xf32>
    %36 = arith.addf %30, %35 : vector<32x128xf32>
    %c0_35 = arith.constant 0 : index
    %c9 = arith.constant 9 : index
    %c0_36 = arith.constant 0 : index
    %37 = vector.load %arg1[%c0_35, %c9, %c0_36] : memref<1x72x32xbf16, #tpu.memory_space<vmem>>, vector<1x32x32xbf16>
    %38 = vector.shape_cast %37 : vector<1x32x32xbf16> to vector<32x32xbf16>
    %c6 = arith.constant 6 : index
    %c0_37 = arith.constant 0 : index
    %c0_38 = arith.constant 0 : index
    %39 = vector.load %arg2[%c6, %c0_37, %c0_38] : memref<25x32x128xbf16, #tpu.memory_space<vmem>>, vector<1x32x128xbf16>
    %40 = vector.shape_cast %39 : vector<1x32x128xbf16> to vector<32x128xbf16>
    %cst_39 = arith.constant dense<0.000000e+00> : vector<32x128xf32>
    %41 = tpu.matmul %38, %40, %cst_39 {dimension_numbers = #tpu.dot_dimension_numbers<[1], [0], [0], [1], [0, 0, 1, 1], [], []>} : vector<32x32xbf16>, vector<32x128xbf16>, vector<32x128xf32> -> vector<32x128xf32>
    %42 = arith.addf %36, %41 : vector<32x128xf32>
    %c0_40 = arith.constant 0 : index
    %c10 = arith.constant 10 : index
    %c0_41 = arith.constant 0 : index
    %43 = vector.load %arg1[%c0_40, %c10, %c0_41] : memref<1x72x32xbf16, #tpu.memory_space<vmem>>, vector<1x32x32xbf16>
    %44 = vector.shape_cast %43 : vector<1x32x32xbf16> to vector<32x32xbf16>
    %c7 = arith.constant 7 : index
    %c0_42 = arith.constant 0 : index
    %c0_43 = arith.constant 0 : index
    %45 = vector.load %arg2[%c7, %c0_42, %c0_43] : memref<25x32x128xbf16, #tpu.memory_space<vmem>>, vector<1x32x128xbf16>
    %46 = vector.shape_cast %45 : vector<1x32x128xbf16> to vector<32x128xbf16>
    %cst_44 = arith.constant dense<0.000000e+00> : vector<32x128xf32>
    %47 = tpu.matmul %44, %46, %cst_44 {dimension_numbers = #tpu.dot_dimension_numbers<[1], [0], [0], [1], [0, 0, 1, 1], [], []>} : vector<32x32xbf16>, vector<32x128xbf16>, vector<32x128xf32> -> vector<32x128xf32>
    %48 = arith.addf %42, %47 : vector<32x128xf32>
    %c0_45 = arith.constant 0 : index
    %c11 = arith.constant 11 : index
    %c0_46 = arith.constant 0 : index
    %49 = vector.load %arg1[%c0_45, %c11, %c0_46] : memref<1x72x32xbf16, #tpu.memory_space<vmem>>, vector<1x32x32xbf16>
    %50 = vector.shape_cast %49 : vector<1x32x32xbf16> to vector<32x32xbf16>
    %c8_47 = arith.constant 8 : index
    %c0_48 = arith.constant 0 : index
    %c0_49 = arith.constant 0 : index
    %51 = vector.load %arg2[%c8_47, %c0_48, %c0_49] : memref<25x32x128xbf16, #tpu.memory_space<vmem>>, vector<1x32x128xbf16>
    %52 = vector.shape_cast %51 : vector<1x32x128xbf16> to vector<32x128xbf16>
    %cst_50 = arith.constant dense<0.000000e+00> : vector<32x128xf32>
    %53 = tpu.matmul %50, %52, %cst_50 {dimension_numbers = #tpu.dot_dimension_numbers<[1], [0], [0], [1], [0, 0, 1, 1], [], []>} : vector<32x32xbf16>, vector<32x128xbf16>, vector<32x128xf32> -> vector<32x128xf32>
    %54 = arith.addf %48, %53 : vector<32x128xf32>
    %c0_51 = arith.constant 0 : index
    %c12 = arith.constant 12 : index
    %c0_52 = arith.constant 0 : index
    %55 = vector.load %arg1[%c0_51, %c12, %c0_52] : memref<1x72x32xbf16, #tpu.memory_space<vmem>>, vector<1x32x32xbf16>
    %56 = vector.shape_cast %55 : vector<1x32x32xbf16> to vector<32x32xbf16>
    %c9_53 = arith.constant 9 : index
    %c0_54 = arith.constant 0 : index
    %c0_55 = arith.constant 0 : index
    %57 = vector.load %arg2[%c9_53, %c0_54, %c0_55] : memref<25x32x128xbf16, #tpu.memory_space<vmem>>, vector<1x32x128xbf16>
    %58 = vector.shape_cast %57 : vector<1x32x128xbf16> to vector<32x128xbf16>
    %cst_56 = arith.constant dense<0.000000e+00> : vector<32x128xf32>
    %59 = tpu.matmul %56, %58, %cst_56 {dimension_numbers = #tpu.dot_dimension_numbers<[1], [0], [0], [1], [0, 0, 1, 1], [], []>} : vector<32x32xbf16>, vector<32x128xbf16>, vector<32x128xf32> -> vector<32x128xf32>
    %60 = arith.addf %54, %59 : vector<32x128xf32>
    %c0_57 = arith.constant 0 : index
    %c16 = arith.constant 16 : index
    %c0_58 = arith.constant 0 : index
    %61 = vector.load %arg1[%c0_57, %c16, %c0_58] : memref<1x72x32xbf16, #tpu.memory_space<vmem>>, vector<1x32x32xbf16>
    %62 = vector.shape_cast %61 : vector<1x32x32xbf16> to vector<32x32xbf16>
    %c10_59 = arith.constant 10 : index
    %c0_60 = arith.constant 0 : index
    %c0_61 = arith.constant 0 : index
    %63 = vector.load %arg2[%c10_59, %c0_60, %c0_61] : memref<25x32x128xbf16, #tpu.memory_space<vmem>>, vector<1x32x128xbf16>
    %64 = vector.shape_cast %63 : vector<1x32x128xbf16> to vector<32x128xbf16>
    %cst_62 = arith.constant dense<0.000000e+00> : vector<32x128xf32>
    %65 = tpu.matmul %62, %64, %cst_62 {dimension_numbers = #tpu.dot_dimension_numbers<[1], [0], [0], [1], [0, 0, 1, 1], [], []>} : vector<32x32xbf16>, vector<32x128xbf16>, vector<32x128xf32> -> vector<32x128xf32>
    %66 = arith.addf %60, %65 : vector<32x128xf32>
    %c0_63 = arith.constant 0 : index
    %c17 = arith.constant 17 : index
    %c0_64 = arith.constant 0 : index
    %67 = vector.load %arg1[%c0_63, %c17, %c0_64] : memref<1x72x32xbf16, #tpu.memory_space<vmem>>, vector<1x32x32xbf16>
    %68 = vector.shape_cast %67 : vector<1x32x32xbf16> to vector<32x32xbf16>
    %c11_65 = arith.constant 11 : index
    %c0_66 = arith.constant 0 : index
    %c0_67 = arith.constant 0 : index
    %69 = vector.load %arg2[%c11_65, %c0_66, %c0_67] : memref<25x32x128xbf16, #tpu.memory_space<vmem>>, vector<1x32x128xbf16>
    %70 = vector.shape_cast %69 : vector<1x32x128xbf16> to vector<32x128xbf16>
    %cst_68 = arith.constant dense<0.000000e+00> : vector<32x128xf32>
    %71 = tpu.matmul %68, %70, %cst_68 {dimension_numbers = #tpu.dot_dimension_numbers<[1], [0], [0], [1], [0, 0, 1, 1], [], []>} : vector<32x32xbf16>, vector<32x128xbf16>, vector<32x128xf32> -> vector<32x128xf32>
    %72 = arith.addf %66, %71 : vector<32x128xf32>
    %c0_69 = arith.constant 0 : index
    %c18 = arith.constant 18 : index
    %c0_70 = arith.constant 0 : index
    %73 = vector.load %arg1[%c0_69, %c18, %c0_70] : memref<1x72x32xbf16, #tpu.memory_space<vmem>>, vector<1x32x32xbf16>
    %74 = vector.shape_cast %73 : vector<1x32x32xbf16> to vector<32x32xbf16>
    %c12_71 = arith.constant 12 : index
    %c0_72 = arith.constant 0 : index
    %c0_73 = arith.constant 0 : index
    %75 = vector.load %arg2[%c12_71, %c0_72, %c0_73] : memref<25x32x128xbf16, #tpu.memory_space<vmem>>, vector<1x32x128xbf16>
    %76 = vector.shape_cast %75 : vector<1x32x128xbf16> to vector<32x128xbf16>
    %cst_74 = arith.constant dense<0.000000e+00> : vector<32x128xf32>
    %77 = tpu.matmul %74, %76, %cst_74 {dimension_numbers = #tpu.dot_dimension_numbers<[1], [0], [0], [1], [0, 0, 1, 1], [], []>} : vector<32x32xbf16>, vector<32x128xbf16>, vector<32x128xf32> -> vector<32x128xf32>
    %78 = arith.addf %72, %77 : vector<32x128xf32>
    %c0_75 = arith.constant 0 : index
    %c19 = arith.constant 19 : index
    %c0_76 = arith.constant 0 : index
    %79 = vector.load %arg1[%c0_75, %c19, %c0_76] : memref<1x72x32xbf16, #tpu.memory_space<vmem>>, vector<1x32x32xbf16>
    %80 = vector.shape_cast %79 : vector<1x32x32xbf16> to vector<32x32xbf16>
    %c13 = arith.constant 13 : index
    %c0_77 = arith.constant 0 : index
    %c0_78 = arith.constant 0 : index
    %81 = vector.load %arg2[%c13, %c0_77, %c0_78] : memref<25x32x128xbf16, #tpu.memory_space<vmem>>, vector<1x32x128xbf16>
    %82 = vector.shape_cast %81 : vector<1x32x128xbf16> to vector<32x128xbf16>
    %cst_79 = arith.constant dense<0.000000e+00> : vector<32x128xf32>
    %83 = tpu.matmul %80, %82, %cst_79 {dimension_numbers = #tpu.dot_dimension_numbers<[1], [0], [0], [1], [0, 0, 1, 1], [], []>} : vector<32x32xbf16>, vector<32x128xbf16>, vector<32x128xf32> -> vector<32x128xf32>
    %84 = arith.addf %78, %83 : vector<32x128xf32>
    %c0_80 = arith.constant 0 : index
    %c20 = arith.constant 20 : index
    %c0_81 = arith.constant 0 : index
    %85 = vector.load %arg1[%c0_80, %c20, %c0_81] : memref<1x72x32xbf16, #tpu.memory_space<vmem>>, vector<1x32x32xbf16>
    %86 = vector.shape_cast %85 : vector<1x32x32xbf16> to vector<32x32xbf16>
    %c14 = arith.constant 14 : index
    %c0_82 = arith.constant 0 : index
    %c0_83 = arith.constant 0 : index
    %87 = vector.load %arg2[%c14, %c0_82, %c0_83] : memref<25x32x128xbf16, #tpu.memory_space<vmem>>, vector<1x32x128xbf16>
    %88 = vector.shape_cast %87 : vector<1x32x128xbf16> to vector<32x128xbf16>
    %cst_84 = arith.constant dense<0.000000e+00> : vector<32x128xf32>
    %89 = tpu.matmul %86, %88, %cst_84 {dimension_numbers = #tpu.dot_dimension_numbers<[1], [0], [0], [1], [0, 0, 1, 1], [], []>} : vector<32x32xbf16>, vector<32x128xbf16>, vector<32x128xf32> -> vector<32x128xf32>
    %90 = arith.addf %84, %89 : vector<32x128xf32>
    %c0_85 = arith.constant 0 : index
    %c24 = arith.constant 24 : index
    %c0_86 = arith.constant 0 : index
    %91 = vector.load %arg1[%c0_85, %c24, %c0_86] : memref<1x72x32xbf16, #tpu.memory_space<vmem>>, vector<1x32x32xbf16>
    %92 = vector.shape_cast %91 : vector<1x32x32xbf16> to vector<32x32xbf16>
    %c15 = arith.constant 15 : index
    %c0_87 = arith.constant 0 : index
    %c0_88 = arith.constant 0 : index
    %93 = vector.load %arg2[%c15, %c0_87, %c0_88] : memref<25x32x128xbf16, #tpu.memory_space<vmem>>, vector<1x32x128xbf16>
    %94 = vector.shape_cast %93 : vector<1x32x128xbf16> to vector<32x128xbf16>
    %cst_89 = arith.constant dense<0.000000e+00> : vector<32x128xf32>
    %95 = tpu.matmul %92, %94, %cst_89 {dimension_numbers = #tpu.dot_dimension_numbers<[1], [0], [0], [1], [0, 0, 1, 1], [], []>} : vector<32x32xbf16>, vector<32x128xbf16>, vector<32x128xf32> -> vector<32x128xf32>
    %96 = arith.addf %90, %95 : vector<32x128xf32>
    %c0_90 = arith.constant 0 : index
    %c25 = arith.constant 25 : index
    %c0_91 = arith.constant 0 : index
    %97 = vector.load %arg1[%c0_90, %c25, %c0_91] : memref<1x72x32xbf16, #tpu.memory_space<vmem>>, vector<1x32x32xbf16>
    %98 = vector.shape_cast %97 : vector<1x32x32xbf16> to vector<32x32xbf16>
    %c16_92 = arith.constant 16 : index
    %c0_93 = arith.constant 0 : index
    %c0_94 = arith.constant 0 : index
    %99 = vector.load %arg2[%c16_92, %c0_93, %c0_94] : memref<25x32x128xbf16, #tpu.memory_space<vmem>>, vector<1x32x128xbf16>
    %100 = vector.shape_cast %99 : vector<1x32x128xbf16> to vector<32x128xbf16>
    %cst_95 = arith.constant dense<0.000000e+00> : vector<32x128xf32>
    %101 = tpu.matmul %98, %100, %cst_95 {dimension_numbers = #tpu.dot_dimension_numbers<[1], [0], [0], [1], [0, 0, 1, 1], [], []>} : vector<32x32xbf16>, vector<32x128xbf16>, vector<32x128xf32> -> vector<32x128xf32>
    %102 = arith.addf %96, %101 : vector<32x128xf32>
    %c0_96 = arith.constant 0 : index
    %c26 = arith.constant 26 : index
    %c0_97 = arith.constant 0 : index
    %103 = vector.load %arg1[%c0_96, %c26, %c0_97] : memref<1x72x32xbf16, #tpu.memory_space<vmem>>, vector<1x32x32xbf16>
    %104 = vector.shape_cast %103 : vector<1x32x32xbf16> to vector<32x32xbf16>
    %c17_98 = arith.constant 17 : index
    %c0_99 = arith.constant 0 : index
    %c0_100 = arith.constant 0 : index
    %105 = vector.load %arg2[%c17_98, %c0_99, %c0_100] : memref<25x32x128xbf16, #tpu.memory_space<vmem>>, vector<1x32x128xbf16>
    %106 = vector.shape_cast %105 : vector<1x32x128xbf16> to vector<32x128xbf16>
    %cst_101 = arith.constant dense<0.000000e+00> : vector<32x128xf32>
    %107 = tpu.matmul %104, %106, %cst_101 {dimension_numbers = #tpu.dot_dimension_numbers<[1], [0], [0], [1], [0, 0, 1, 1], [], []>} : vector<32x32xbf16>, vector<32x128xbf16>, vector<32x128xf32> -> vector<32x128xf32>
    %108 = arith.addf %102, %107 : vector<32x128xf32>
    %c0_102 = arith.constant 0 : index
    %c27 = arith.constant 27 : index
    %c0_103 = arith.constant 0 : index
    %109 = vector.load %arg1[%c0_102, %c27, %c0_103] : memref<1x72x32xbf16, #tpu.memory_space<vmem>>, vector<1x32x32xbf16>
    %110 = vector.shape_cast %109 : vector<1x32x32xbf16> to vector<32x32xbf16>
    %c18_104 = arith.constant 18 : index
    %c0_105 = arith.constant 0 : index
    %c0_106 = arith.constant 0 : index
    %111 = vector.load %arg2[%c18_104, %c0_105, %c0_106] : memref<25x32x128xbf16, #tpu.memory_space<vmem>>, vector<1x32x128xbf16>
    %112 = vector.shape_cast %111 : vector<1x32x128xbf16> to vector<32x128xbf16>
    %cst_107 = arith.constant dense<0.000000e+00> : vector<32x128xf32>
    %113 = tpu.matmul %110, %112, %cst_107 {dimension_numbers = #tpu.dot_dimension_numbers<[1], [0], [0], [1], [0, 0, 1, 1], [], []>} : vector<32x32xbf16>, vector<32x128xbf16>, vector<32x128xf32> -> vector<32x128xf32>
    %114 = arith.addf %108, %113 : vector<32x128xf32>
    %c0_108 = arith.constant 0 : index
    %c28 = arith.constant 28 : index
    %c0_109 = arith.constant 0 : index
    %115 = vector.load %arg1[%c0_108, %c28, %c0_109] : memref<1x72x32xbf16, #tpu.memory_space<vmem>>, vector<1x32x32xbf16>
    %116 = vector.shape_cast %115 : vector<1x32x32xbf16> to vector<32x32xbf16>
    %c19_110 = arith.constant 19 : index
    %c0_111 = arith.constant 0 : index
    %c0_112 = arith.constant 0 : index
    %117 = vector.load %arg2[%c19_110, %c0_111, %c0_112] : memref<25x32x128xbf16, #tpu.memory_space<vmem>>, vector<1x32x128xbf16>
    %118 = vector.shape_cast %117 : vector<1x32x128xbf16> to vector<32x128xbf16>
    %cst_113 = arith.constant dense<0.000000e+00> : vector<32x128xf32>
    %119 = tpu.matmul %116, %118, %cst_113 {dimension_numbers = #tpu.dot_dimension_numbers<[1], [0], [0], [1], [0, 0, 1, 1], [], []>} : vector<32x32xbf16>, vector<32x128xbf16>, vector<32x128xf32> -> vector<32x128xf32>
    %120 = arith.addf %114, %119 : vector<32x128xf32>
    %c0_114 = arith.constant 0 : index
    %c32 = arith.constant 32 : index
    %c0_115 = arith.constant 0 : index
    %121 = vector.load %arg1[%c0_114, %c32, %c0_115] : memref<1x72x32xbf16, #tpu.memory_space<vmem>>, vector<1x32x32xbf16>
    %122 = vector.shape_cast %121 : vector<1x32x32xbf16> to vector<32x32xbf16>
    %c20_116 = arith.constant 20 : index
    %c0_117 = arith.constant 0 : index
    %c0_118 = arith.constant 0 : index
    %123 = vector.load %arg2[%c20_116, %c0_117, %c0_118] : memref<25x32x128xbf16, #tpu.memory_space<vmem>>, vector<1x32x128xbf16>
    %124 = vector.shape_cast %123 : vector<1x32x128xbf16> to vector<32x128xbf16>
    %cst_119 = arith.constant dense<0.000000e+00> : vector<32x128xf32>
    %125 = tpu.matmul %122, %124, %cst_119 {dimension_numbers = #tpu.dot_dimension_numbers<[1], [0], [0], [1], [0, 0, 1, 1], [], []>} : vector<32x32xbf16>, vector<32x128xbf16>, vector<32x128xf32> -> vector<32x128xf32>
    %126 = arith.addf %120, %125 : vector<32x128xf32>
    %c0_120 = arith.constant 0 : index
    %c33 = arith.constant 33 : index
    %c0_121 = arith.constant 0 : index
    %127 = vector.load %arg1[%c0_120, %c33, %c0_121] : memref<1x72x32xbf16, #tpu.memory_space<vmem>>, vector<1x32x32xbf16>
    %128 = vector.shape_cast %127 : vector<1x32x32xbf16> to vector<32x32xbf16>
    %c21 = arith.constant 21 : index
    %c0_122 = arith.constant 0 : index
    %c0_123 = arith.constant 0 : index
    %129 = vector.load %arg2[%c21, %c0_122, %c0_123] : memref<25x32x128xbf16, #tpu.memory_space<vmem>>, vector<1x32x128xbf16>
    %130 = vector.shape_cast %129 : vector<1x32x128xbf16> to vector<32x128xbf16>
    %cst_124 = arith.constant dense<0.000000e+00> : vector<32x128xf32>
    %131 = tpu.matmul %128, %130, %cst_124 {dimension_numbers = #tpu.dot_dimension_numbers<[1], [0], [0], [1], [0, 0, 1, 1], [], []>} : vector<32x32xbf16>, vector<32x128xbf16>, vector<32x128xf32> -> vector<32x128xf32>
    %132 = arith.addf %126, %131 : vector<32x128xf32>
    %c0_125 = arith.constant 0 : index
    %c34 = arith.constant 34 : index
    %c0_126 = arith.constant 0 : index
    %133 = vector.load %arg1[%c0_125, %c34, %c0_126] : memref<1x72x32xbf16, #tpu.memory_space<vmem>>, vector<1x32x32xbf16>
    %134 = vector.shape_cast %133 : vector<1x32x32xbf16> to vector<32x32xbf16>
    %c22 = arith.constant 22 : index
    %c0_127 = arith.constant 0 : index
    %c0_128 = arith.constant 0 : index
    %135 = vector.load %arg2[%c22, %c0_127, %c0_128] : memref<25x32x128xbf16, #tpu.memory_space<vmem>>, vector<1x32x128xbf16>
    %136 = vector.shape_cast %135 : vector<1x32x128xbf16> to vector<32x128xbf16>
    %cst_129 = arith.constant dense<0.000000e+00> : vector<32x128xf32>
    %137 = tpu.matmul %134, %136, %cst_129 {dimension_numbers = #tpu.dot_dimension_numbers<[1], [0], [0], [1], [0, 0, 1, 1], [], []>} : vector<32x32xbf16>, vector<32x128xbf16>, vector<32x128xf32> -> vector<32x128xf32>
    %138 = arith.addf %132, %137 : vector<32x128xf32>
    %c0_130 = arith.constant 0 : index
    %c35 = arith.constant 35 : index
    %c0_131 = arith.constant 0 : index
    %139 = vector.load %arg1[%c0_130, %c35, %c0_131] : memref<1x72x32xbf16, #tpu.memory_space<vmem>>, vector<1x32x32xbf16>
    %140 = vector.shape_cast %139 : vector<1x32x32xbf16> to vector<32x32xbf16>
    %c23 = arith.constant 23 : index
    %c0_132 = arith.constant 0 : index
    %c0_133 = arith.constant 0 : index
    %141 = vector.load %arg2[%c23, %c0_132, %c0_133] : memref<25x32x128xbf16, #tpu.memory_space<vmem>>, vector<1x32x128xbf16>
    %142 = vector.shape_cast %141 : vector<1x32x128xbf16> to vector<32x128xbf16>
    %cst_134 = arith.constant dense<0.000000e+00> : vector<32x128xf32>
    %143 = tpu.matmul %140, %142, %cst_134 {dimension_numbers = #tpu.dot_dimension_numbers<[1], [0], [0], [1], [0, 0, 1, 1], [], []>} : vector<32x32xbf16>, vector<32x128xbf16>, vector<32x128xf32> -> vector<32x128xf32>
    %144 = arith.addf %138, %143 : vector<32x128xf32>
    %c0_135 = arith.constant 0 : index
    %c36 = arith.constant 36 : index
    %c0_136 = arith.constant 0 : index
    %145 = vector.load %arg1[%c0_135, %c36, %c0_136] : memref<1x72x32xbf16, #tpu.memory_space<vmem>>, vector<1x32x32xbf16>
    %146 = vector.shape_cast %145 : vector<1x32x32xbf16> to vector<32x32xbf16>
    %c24_137 = arith.constant 24 : index
    %c0_138 = arith.constant 0 : index
    %c0_139 = arith.constant 0 : index
    %147 = vector.load %arg2[%c24_137, %c0_138, %c0_139] : memref<25x32x128xbf16, #tpu.memory_space<vmem>>, vector<1x32x128xbf16>
    %148 = vector.shape_cast %147 : vector<1x32x128xbf16> to vector<32x128xbf16>
    %cst_140 = arith.constant dense<0.000000e+00> : vector<32x128xf32>
    %149 = tpu.matmul %146, %148, %cst_140 {dimension_numbers = #tpu.dot_dimension_numbers<[1], [0], [0], [1], [0, 0, 1, 1], [], []>} : vector<32x32xbf16>, vector<32x128xbf16>, vector<32x128xf32> -> vector<32x128xf32>
    %150 = arith.addf %144, %149 : vector<32x128xf32>
    %c0_141 = arith.constant 0 : index
    %c0_142 = arith.constant 0 : index
    %151 = vector.load %arg3[%c0_141, %c0_142] : memref<1x128xf32, #tpu.memory_space<vmem>>, vector<1x128xf32>
    %152 = vector.broadcast %151 : vector<1x128xf32> to vector<32x128xf32>
    %153 = arith.mulf %150, %152 : vector<32x128xf32>
    %c0_143 = arith.constant 0 : index
    %c0_144 = arith.constant 0 : index
    %154 = vector.load %arg4[%c0_143, %c0_144] : memref<1x128xf32, #tpu.memory_space<vmem>>, vector<1x128xf32>
    %155 = vector.broadcast %154 : vector<1x128xf32> to vector<32x128xf32>
    %156 = arith.addf %153, %155 : vector<32x128xf32>
    %cst_145 = arith.constant 0.000000e+00 : f32
    %157 = vector.broadcast %cst_145 : f32 to vector<32x128xf32>
    %158 = arith.maximumf %156, %157 : vector<32x128xf32>
    %159 = arith.truncf %158 : vector<32x128xf32> to vector<32x128xbf16>
    %c0_146 = arith.constant 0 : index
    %c0_147 = arith.constant 0 : index
    %c0_148 = arith.constant 0 : index
    %160 = vector.load %arg5[%c0_146, %c0_147, %c0_148] : memref<1x32x128xbf16, #tpu.memory_space<vmem>>, vector<1x32x128xbf16>
    %161 = vector.shape_cast %160 : vector<1x32x128xbf16> to vector<32x128xbf16>
    %162 = vector.shape_cast %159 : vector<32x128xbf16> to vector<1x32x128xbf16>
    tpu.vector_store %arg5[%c0_146, %c0_147, %c0_148], %162 {strides = array<i32>} : memref<1x32x128xbf16, #tpu.memory_space<vmem>>, vector<1x32x128xbf16>,
    return
  }
  func.func @transform_0(%arg0: i32) -> (i32, i32, i32) {
    %c0_i32 = arith.constant 0 : i32
    %c0_i32_0 = arith.constant 0 : i32
    %c0_i32_1 = arith.constant 0 : i32
    return %arg0, %c0_i32, %c0_i32_0 : i32, i32, i32
  }
  func.func @transform_1(%arg0: i32) -> (i32, i32, i32) {
    %c0_i32 = arith.constant 0 : i32
    %c0_i32_0 = arith.constant 0 : i32
    %c0_i32_1 = arith.constant 0 : i32
    %c0_i32_2 = arith.constant 0 : i32
    return %c0_i32, %c0_i32_0, %c0_i32_1 : i32, i32, i32
  }
  func.func @transform_2(%arg0: i32) -> (i32, i32) {
    %c0_i32 = arith.constant 0 : i32
    %c0_i32_0 = arith.constant 0 : i32
    %c0_i32_1 = arith.constant 0 : i32
    return %c0_i32, %c0_i32_0 : i32, i32
  }
  func.func @transform_3(%arg0: i32) -> (i32, i32) {
    %c0_i32 = arith.constant 0 : i32
    %c0_i32_0 = arith.constant 0 : i32
    %c0_i32_1 = arith.constant 0 : i32
    return %c0_i32, %c0_i32_0 : i32, i32
  }
  func.func @transform_4(%arg0: i32) -> (i32, i32, i32) {
    %c0_i32 = arith.constant 0 : i32
    %c0_i32_0 = arith.constant 0 : i32
    %c0_i32_1 = arith.constant 0 : i32
    return %arg0, %c0_i32, %c0_i32_0 : i32, i32, i32
  }
}

module attributes {stable_mosaic.version = 11 : i64} {
  func.func @_tap_conv_kernel(%arg0: i32, %arg1: memref<1x42x64xbf16, #tpu.memory_space<vmem>>, %arg2: memref<25x64x256xbf16, #tpu.memory_space<vmem>>, %arg3: memref<1x256xf32, #tpu.memory_space<vmem>>, %arg4: memref<1x256xf32, #tpu.memory_space<vmem>>, %arg5: memref<1x12x256xbf16, #tpu.memory_space<vmem>>) attributes {dimension_semantics = [#tpu.dimension_semantics<parallel>], iteration_bounds = array<i64: 8>, scalar_prefetch = 0 : i64, scratch_operands = 0 : i64, tpu.core_type = #tpu.core_type<tc>, window_params = [{transform_indices = @transform_0, window_bounds = array<i64: 1, 42, 64>}, {pipeline_mode = #tpu.pipeline_mode<synchronous>, transform_indices = @transform_1, window_bounds = array<i64: 25, 64, 256>}, {pipeline_mode = #tpu.pipeline_mode<synchronous>, transform_indices = @transform_2, window_bounds = array<i64: 1, 256>}, {pipeline_mode = #tpu.pipeline_mode<synchronous>, transform_indices = @transform_3, window_bounds = array<i64: 1, 256>}, {transform_indices = @transform_4, window_bounds = array<i64: 1, 12, 256>}]} {
    %cst = arith.constant 0.000000e+00 : f32
    %0 = vector.broadcast %cst : f32 to vector<12x256xf32>
    %c0 = arith.constant 0 : index
    %c0_0 = arith.constant 0 : index
    %c0_1 = arith.constant 0 : index
    %1 = vector.load %arg1[%c0, %c0_0, %c0_1] : memref<1x42x64xbf16, #tpu.memory_space<vmem>>, vector<1x12x64xbf16>
    %2 = vector.shape_cast %1 : vector<1x12x64xbf16> to vector<12x64xbf16>
    %c0_2 = arith.constant 0 : index
    %c0_3 = arith.constant 0 : index
    %c0_4 = arith.constant 0 : index
    %3 = vector.load %arg2[%c0_2, %c0_3, %c0_4] : memref<25x64x256xbf16, #tpu.memory_space<vmem>>, vector<1x64x256xbf16>
    %4 = vector.shape_cast %3 : vector<1x64x256xbf16> to vector<64x256xbf16>
    %cst_5 = arith.constant dense<0.000000e+00> : vector<12x256xf32>
    %5 = tpu.matmul %2, %4, %cst_5 {dimension_numbers = #tpu.dot_dimension_numbers<[1], [0], [0], [1], [0, 0, 1, 1], [], []>} : vector<12x64xbf16>, vector<64x256xbf16>, vector<12x256xf32> -> vector<12x256xf32>
    %6 = arith.addf %0, %5 : vector<12x256xf32>
    %c0_6 = arith.constant 0 : index
    %c1 = arith.constant 1 : index
    %c0_7 = arith.constant 0 : index
    %7 = vector.load %arg1[%c0_6, %c1, %c0_7] : memref<1x42x64xbf16, #tpu.memory_space<vmem>>, vector<1x12x64xbf16>
    %8 = vector.shape_cast %7 : vector<1x12x64xbf16> to vector<12x64xbf16>
    %c1_8 = arith.constant 1 : index
    %c0_9 = arith.constant 0 : index
    %c0_10 = arith.constant 0 : index
    %9 = vector.load %arg2[%c1_8, %c0_9, %c0_10] : memref<25x64x256xbf16, #tpu.memory_space<vmem>>, vector<1x64x256xbf16>
    %10 = vector.shape_cast %9 : vector<1x64x256xbf16> to vector<64x256xbf16>
    %cst_11 = arith.constant dense<0.000000e+00> : vector<12x256xf32>
    %11 = tpu.matmul %8, %10, %cst_11 {dimension_numbers = #tpu.dot_dimension_numbers<[1], [0], [0], [1], [0, 0, 1, 1], [], []>} : vector<12x64xbf16>, vector<64x256xbf16>, vector<12x256xf32> -> vector<12x256xf32>
    %12 = arith.addf %6, %11 : vector<12x256xf32>
    %c0_12 = arith.constant 0 : index
    %c2 = arith.constant 2 : index
    %c0_13 = arith.constant 0 : index
    %13 = vector.load %arg1[%c0_12, %c2, %c0_13] : memref<1x42x64xbf16, #tpu.memory_space<vmem>>, vector<1x12x64xbf16>
    %14 = vector.shape_cast %13 : vector<1x12x64xbf16> to vector<12x64xbf16>
    %c2_14 = arith.constant 2 : index
    %c0_15 = arith.constant 0 : index
    %c0_16 = arith.constant 0 : index
    %15 = vector.load %arg2[%c2_14, %c0_15, %c0_16] : memref<25x64x256xbf16, #tpu.memory_space<vmem>>, vector<1x64x256xbf16>
    %16 = vector.shape_cast %15 : vector<1x64x256xbf16> to vector<64x256xbf16>
    %cst_17 = arith.constant dense<0.000000e+00> : vector<12x256xf32>
    %17 = tpu.matmul %14, %16, %cst_17 {dimension_numbers = #tpu.dot_dimension_numbers<[1], [0], [0], [1], [0, 0, 1, 1], [], []>} : vector<12x64xbf16>, vector<64x256xbf16>, vector<12x256xf32> -> vector<12x256xf32>
    %18 = arith.addf %12, %17 : vector<12x256xf32>
    %c0_18 = arith.constant 0 : index
    %c3 = arith.constant 3 : index
    %c0_19 = arith.constant 0 : index
    %19 = vector.load %arg1[%c0_18, %c3, %c0_19] : memref<1x42x64xbf16, #tpu.memory_space<vmem>>, vector<1x12x64xbf16>
    %20 = vector.shape_cast %19 : vector<1x12x64xbf16> to vector<12x64xbf16>
    %c3_20 = arith.constant 3 : index
    %c0_21 = arith.constant 0 : index
    %c0_22 = arith.constant 0 : index
    %21 = vector.load %arg2[%c3_20, %c0_21, %c0_22] : memref<25x64x256xbf16, #tpu.memory_space<vmem>>, vector<1x64x256xbf16>
    %22 = vector.shape_cast %21 : vector<1x64x256xbf16> to vector<64x256xbf16>
    %cst_23 = arith.constant dense<0.000000e+00> : vector<12x256xf32>
    %23 = tpu.matmul %20, %22, %cst_23 {dimension_numbers = #tpu.dot_dimension_numbers<[1], [0], [0], [1], [0, 0, 1, 1], [], []>} : vector<12x64xbf16>, vector<64x256xbf16>, vector<12x256xf32> -> vector<12x256xf32>
    %24 = arith.addf %18, %23 : vector<12x256xf32>
    %c0_24 = arith.constant 0 : index
    %c4 = arith.constant 4 : index
    %c0_25 = arith.constant 0 : index
    %25 = vector.load %arg1[%c0_24, %c4, %c0_25] : memref<1x42x64xbf16, #tpu.memory_space<vmem>>, vector<1x12x64xbf16>
    %26 = vector.shape_cast %25 : vector<1x12x64xbf16> to vector<12x64xbf16>
    %c4_26 = arith.constant 4 : index
    %c0_27 = arith.constant 0 : index
    %c0_28 = arith.constant 0 : index
    %27 = vector.load %arg2[%c4_26, %c0_27, %c0_28] : memref<25x64x256xbf16, #tpu.memory_space<vmem>>, vector<1x64x256xbf16>
    %28 = vector.shape_cast %27 : vector<1x64x256xbf16> to vector<64x256xbf16>
    %cst_29 = arith.constant dense<0.000000e+00> : vector<12x256xf32>
    %29 = tpu.matmul %26, %28, %cst_29 {dimension_numbers = #tpu.dot_dimension_numbers<[1], [0], [0], [1], [0, 0, 1, 1], [], []>} : vector<12x64xbf16>, vector<64x256xbf16>, vector<12x256xf32> -> vector<12x256xf32>
    %30 = arith.addf %24, %29 : vector<12x256xf32>
    %c0_30 = arith.constant 0 : index
    %c6 = arith.constant 6 : index
    %c0_31 = arith.constant 0 : index
    %31 = vector.load %arg1[%c0_30, %c6, %c0_31] : memref<1x42x64xbf16, #tpu.memory_space<vmem>>, vector<1x12x64xbf16>
    %32 = vector.shape_cast %31 : vector<1x12x64xbf16> to vector<12x64xbf16>
    %c5 = arith.constant 5 : index
    %c0_32 = arith.constant 0 : index
    %c0_33 = arith.constant 0 : index
    %33 = vector.load %arg2[%c5, %c0_32, %c0_33] : memref<25x64x256xbf16, #tpu.memory_space<vmem>>, vector<1x64x256xbf16>
    %34 = vector.shape_cast %33 : vector<1x64x256xbf16> to vector<64x256xbf16>
    %cst_34 = arith.constant dense<0.000000e+00> : vector<12x256xf32>
    %35 = tpu.matmul %32, %34, %cst_34 {dimension_numbers = #tpu.dot_dimension_numbers<[1], [0], [0], [1], [0, 0, 1, 1], [], []>} : vector<12x64xbf16>, vector<64x256xbf16>, vector<12x256xf32> -> vector<12x256xf32>
    %36 = arith.addf %30, %35 : vector<12x256xf32>
    %c0_35 = arith.constant 0 : index
    %c7 = arith.constant 7 : index
    %c0_36 = arith.constant 0 : index
    %37 = vector.load %arg1[%c0_35, %c7, %c0_36] : memref<1x42x64xbf16, #tpu.memory_space<vmem>>, vector<1x12x64xbf16>
    %38 = vector.shape_cast %37 : vector<1x12x64xbf16> to vector<12x64xbf16>
    %c6_37 = arith.constant 6 : index
    %c0_38 = arith.constant 0 : index
    %c0_39 = arith.constant 0 : index
    %39 = vector.load %arg2[%c6_37, %c0_38, %c0_39] : memref<25x64x256xbf16, #tpu.memory_space<vmem>>, vector<1x64x256xbf16>
    %40 = vector.shape_cast %39 : vector<1x64x256xbf16> to vector<64x256xbf16>
    %cst_40 = arith.constant dense<0.000000e+00> : vector<12x256xf32>
    %41 = tpu.matmul %38, %40, %cst_40 {dimension_numbers = #tpu.dot_dimension_numbers<[1], [0], [0], [1], [0, 0, 1, 1], [], []>} : vector<12x64xbf16>, vector<64x256xbf16>, vector<12x256xf32> -> vector<12x256xf32>
    %42 = arith.addf %36, %41 : vector<12x256xf32>
    %c0_41 = arith.constant 0 : index
    %c8 = arith.constant 8 : index
    %c0_42 = arith.constant 0 : index
    %43 = vector.load %arg1[%c0_41, %c8, %c0_42] : memref<1x42x64xbf16, #tpu.memory_space<vmem>>, vector<1x12x64xbf16>
    %44 = vector.shape_cast %43 : vector<1x12x64xbf16> to vector<12x64xbf16>
    %c7_43 = arith.constant 7 : index
    %c0_44 = arith.constant 0 : index
    %c0_45 = arith.constant 0 : index
    %45 = vector.load %arg2[%c7_43, %c0_44, %c0_45] : memref<25x64x256xbf16, #tpu.memory_space<vmem>>, vector<1x64x256xbf16>
    %46 = vector.shape_cast %45 : vector<1x64x256xbf16> to vector<64x256xbf16>
    %cst_46 = arith.constant dense<0.000000e+00> : vector<12x256xf32>
    %47 = tpu.matmul %44, %46, %cst_46 {dimension_numbers = #tpu.dot_dimension_numbers<[1], [0], [0], [1], [0, 0, 1, 1], [], []>} : vector<12x64xbf16>, vector<64x256xbf16>, vector<12x256xf32> -> vector<12x256xf32>
    %48 = arith.addf %42, %47 : vector<12x256xf32>
    %c0_47 = arith.constant 0 : index
    %c9 = arith.constant 9 : index
    %c0_48 = arith.constant 0 : index
    %49 = vector.load %arg1[%c0_47, %c9, %c0_48] : memref<1x42x64xbf16, #tpu.memory_space<vmem>>, vector<1x12x64xbf16>
    %50 = vector.shape_cast %49 : vector<1x12x64xbf16> to vector<12x64xbf16>
    %c8_49 = arith.constant 8 : index
    %c0_50 = arith.constant 0 : index
    %c0_51 = arith.constant 0 : index
    %51 = vector.load %arg2[%c8_49, %c0_50, %c0_51] : memref<25x64x256xbf16, #tpu.memory_space<vmem>>, vector<1x64x256xbf16>
    %52 = vector.shape_cast %51 : vector<1x64x256xbf16> to vector<64x256xbf16>
    %cst_52 = arith.constant dense<0.000000e+00> : vector<12x256xf32>
    %53 = tpu.matmul %50, %52, %cst_52 {dimension_numbers = #tpu.dot_dimension_numbers<[1], [0], [0], [1], [0, 0, 1, 1], [], []>} : vector<12x64xbf16>, vector<64x256xbf16>, vector<12x256xf32> -> vector<12x256xf32>
    %54 = arith.addf %48, %53 : vector<12x256xf32>
    %c0_53 = arith.constant 0 : index
    %c10 = arith.constant 10 : index
    %c0_54 = arith.constant 0 : index
    %55 = vector.load %arg1[%c0_53, %c10, %c0_54] : memref<1x42x64xbf16, #tpu.memory_space<vmem>>, vector<1x12x64xbf16>
    %56 = vector.shape_cast %55 : vector<1x12x64xbf16> to vector<12x64xbf16>
    %c9_55 = arith.constant 9 : index
    %c0_56 = arith.constant 0 : index
    %c0_57 = arith.constant 0 : index
    %57 = vector.load %arg2[%c9_55, %c0_56, %c0_57] : memref<25x64x256xbf16, #tpu.memory_space<vmem>>, vector<1x64x256xbf16>
    %58 = vector.shape_cast %57 : vector<1x64x256xbf16> to vector<64x256xbf16>
    %cst_58 = arith.constant dense<0.000000e+00> : vector<12x256xf32>
    %59 = tpu.matmul %56, %58, %cst_58 {dimension_numbers = #tpu.dot_dimension_numbers<[1], [0], [0], [1], [0, 0, 1, 1], [], []>} : vector<12x64xbf16>, vector<64x256xbf16>, vector<12x256xf32> -> vector<12x256xf32>
    %60 = arith.addf %54, %59 : vector<12x256xf32>
    %c0_59 = arith.constant 0 : index
    %c12 = arith.constant 12 : index
    %c0_60 = arith.constant 0 : index
    %61 = vector.load %arg1[%c0_59, %c12, %c0_60] : memref<1x42x64xbf16, #tpu.memory_space<vmem>>, vector<1x12x64xbf16>
    %62 = vector.shape_cast %61 : vector<1x12x64xbf16> to vector<12x64xbf16>
    %c10_61 = arith.constant 10 : index
    %c0_62 = arith.constant 0 : index
    %c0_63 = arith.constant 0 : index
    %63 = vector.load %arg2[%c10_61, %c0_62, %c0_63] : memref<25x64x256xbf16, #tpu.memory_space<vmem>>, vector<1x64x256xbf16>
    %64 = vector.shape_cast %63 : vector<1x64x256xbf16> to vector<64x256xbf16>
    %cst_64 = arith.constant dense<0.000000e+00> : vector<12x256xf32>
    %65 = tpu.matmul %62, %64, %cst_64 {dimension_numbers = #tpu.dot_dimension_numbers<[1], [0], [0], [1], [0, 0, 1, 1], [], []>} : vector<12x64xbf16>, vector<64x256xbf16>, vector<12x256xf32> -> vector<12x256xf32>
    %66 = arith.addf %60, %65 : vector<12x256xf32>
    %c0_65 = arith.constant 0 : index
    %c13 = arith.constant 13 : index
    %c0_66 = arith.constant 0 : index
    %67 = vector.load %arg1[%c0_65, %c13, %c0_66] : memref<1x42x64xbf16, #tpu.memory_space<vmem>>, vector<1x12x64xbf16>
    %68 = vector.shape_cast %67 : vector<1x12x64xbf16> to vector<12x64xbf16>
    %c11 = arith.constant 11 : index
    %c0_67 = arith.constant 0 : index
    %c0_68 = arith.constant 0 : index
    %69 = vector.load %arg2[%c11, %c0_67, %c0_68] : memref<25x64x256xbf16, #tpu.memory_space<vmem>>, vector<1x64x256xbf16>
    %70 = vector.shape_cast %69 : vector<1x64x256xbf16> to vector<64x256xbf16>
    %cst_69 = arith.constant dense<0.000000e+00> : vector<12x256xf32>
    %71 = tpu.matmul %68, %70, %cst_69 {dimension_numbers = #tpu.dot_dimension_numbers<[1], [0], [0], [1], [0, 0, 1, 1], [], []>} : vector<12x64xbf16>, vector<64x256xbf16>, vector<12x256xf32> -> vector<12x256xf32>
    %72 = arith.addf %66, %71 : vector<12x256xf32>
    %c0_70 = arith.constant 0 : index
    %c14 = arith.constant 14 : index
    %c0_71 = arith.constant 0 : index
    %73 = vector.load %arg1[%c0_70, %c14, %c0_71] : memref<1x42x64xbf16, #tpu.memory_space<vmem>>, vector<1x12x64xbf16>
    %74 = vector.shape_cast %73 : vector<1x12x64xbf16> to vector<12x64xbf16>
    %c12_72 = arith.constant 12 : index
    %c0_73 = arith.constant 0 : index
    %c0_74 = arith.constant 0 : index
    %75 = vector.load %arg2[%c12_72, %c0_73, %c0_74] : memref<25x64x256xbf16, #tpu.memory_space<vmem>>, vector<1x64x256xbf16>
    %76 = vector.shape_cast %75 : vector<1x64x256xbf16> to vector<64x256xbf16>
    %cst_75 = arith.constant dense<0.000000e+00> : vector<12x256xf32>
    %77 = tpu.matmul %74, %76, %cst_75 {dimension_numbers = #tpu.dot_dimension_numbers<[1], [0], [0], [1], [0, 0, 1, 1], [], []>} : vector<12x64xbf16>, vector<64x256xbf16>, vector<12x256xf32> -> vector<12x256xf32>
    %78 = arith.addf %72, %77 : vector<12x256xf32>
    %c0_76 = arith.constant 0 : index
    %c15 = arith.constant 15 : index
    %c0_77 = arith.constant 0 : index
    %79 = vector.load %arg1[%c0_76, %c15, %c0_77] : memref<1x42x64xbf16, #tpu.memory_space<vmem>>, vector<1x12x64xbf16>
    %80 = vector.shape_cast %79 : vector<1x12x64xbf16> to vector<12x64xbf16>
    %c13_78 = arith.constant 13 : index
    %c0_79 = arith.constant 0 : index
    %c0_80 = arith.constant 0 : index
    %81 = vector.load %arg2[%c13_78, %c0_79, %c0_80] : memref<25x64x256xbf16, #tpu.memory_space<vmem>>, vector<1x64x256xbf16>
    %82 = vector.shape_cast %81 : vector<1x64x256xbf16> to vector<64x256xbf16>
    %cst_81 = arith.constant dense<0.000000e+00> : vector<12x256xf32>
    %83 = tpu.matmul %80, %82, %cst_81 {dimension_numbers = #tpu.dot_dimension_numbers<[1], [0], [0], [1], [0, 0, 1, 1], [], []>} : vector<12x64xbf16>, vector<64x256xbf16>, vector<12x256xf32> -> vector<12x256xf32>
    %84 = arith.addf %78, %83 : vector<12x256xf32>
    %c0_82 = arith.constant 0 : index
    %c16 = arith.constant 16 : index
    %c0_83 = arith.constant 0 : index
    %85 = vector.load %arg1[%c0_82, %c16, %c0_83] : memref<1x42x64xbf16, #tpu.memory_space<vmem>>, vector<1x12x64xbf16>
    %86 = vector.shape_cast %85 : vector<1x12x64xbf16> to vector<12x64xbf16>
    %c14_84 = arith.constant 14 : index
    %c0_85 = arith.constant 0 : index
    %c0_86 = arith.constant 0 : index
    %87 = vector.load %arg2[%c14_84, %c0_85, %c0_86] : memref<25x64x256xbf16, #tpu.memory_space<vmem>>, vector<1x64x256xbf16>
    %88 = vector.shape_cast %87 : vector<1x64x256xbf16> to vector<64x256xbf16>
    %cst_87 = arith.constant dense<0.000000e+00> : vector<12x256xf32>
    %89 = tpu.matmul %86, %88, %cst_87 {dimension_numbers = #tpu.dot_dimension_numbers<[1], [0], [0], [1], [0, 0, 1, 1], [], []>} : vector<12x64xbf16>, vector<64x256xbf16>, vector<12x256xf32> -> vector<12x256xf32>
    %90 = arith.addf %84, %89 : vector<12x256xf32>
    %c0_88 = arith.constant 0 : index
    %c18 = arith.constant 18 : index
    %c0_89 = arith.constant 0 : index
    %91 = vector.load %arg1[%c0_88, %c18, %c0_89] : memref<1x42x64xbf16, #tpu.memory_space<vmem>>, vector<1x12x64xbf16>
    %92 = vector.shape_cast %91 : vector<1x12x64xbf16> to vector<12x64xbf16>
    %c15_90 = arith.constant 15 : index
    %c0_91 = arith.constant 0 : index
    %c0_92 = arith.constant 0 : index
    %93 = vector.load %arg2[%c15_90, %c0_91, %c0_92] : memref<25x64x256xbf16, #tpu.memory_space<vmem>>, vector<1x64x256xbf16>
    %94 = vector.shape_cast %93 : vector<1x64x256xbf16> to vector<64x256xbf16>
    %cst_93 = arith.constant dense<0.000000e+00> : vector<12x256xf32>
    %95 = tpu.matmul %92, %94, %cst_93 {dimension_numbers = #tpu.dot_dimension_numbers<[1], [0], [0], [1], [0, 0, 1, 1], [], []>} : vector<12x64xbf16>, vector<64x256xbf16>, vector<12x256xf32> -> vector<12x256xf32>
    %96 = arith.addf %90, %95 : vector<12x256xf32>
    %c0_94 = arith.constant 0 : index
    %c19 = arith.constant 19 : index
    %c0_95 = arith.constant 0 : index
    %97 = vector.load %arg1[%c0_94, %c19, %c0_95] : memref<1x42x64xbf16, #tpu.memory_space<vmem>>, vector<1x12x64xbf16>
    %98 = vector.shape_cast %97 : vector<1x12x64xbf16> to vector<12x64xbf16>
    %c16_96 = arith.constant 16 : index
    %c0_97 = arith.constant 0 : index
    %c0_98 = arith.constant 0 : index
    %99 = vector.load %arg2[%c16_96, %c0_97, %c0_98] : memref<25x64x256xbf16, #tpu.memory_space<vmem>>, vector<1x64x256xbf16>
    %100 = vector.shape_cast %99 : vector<1x64x256xbf16> to vector<64x256xbf16>
    %cst_99 = arith.constant dense<0.000000e+00> : vector<12x256xf32>
    %101 = tpu.matmul %98, %100, %cst_99 {dimension_numbers = #tpu.dot_dimension_numbers<[1], [0], [0], [1], [0, 0, 1, 1], [], []>} : vector<12x64xbf16>, vector<64x256xbf16>, vector<12x256xf32> -> vector<12x256xf32>
    %102 = arith.addf %96, %101 : vector<12x256xf32>
    %c0_100 = arith.constant 0 : index
    %c20 = arith.constant 20 : index
    %c0_101 = arith.constant 0 : index
    %103 = vector.load %arg1[%c0_100, %c20, %c0_101] : memref<1x42x64xbf16, #tpu.memory_space<vmem>>, vector<1x12x64xbf16>
    %104 = vector.shape_cast %103 : vector<1x12x64xbf16> to vector<12x64xbf16>
    %c17 = arith.constant 17 : index
    %c0_102 = arith.constant 0 : index
    %c0_103 = arith.constant 0 : index
    %105 = vector.load %arg2[%c17, %c0_102, %c0_103] : memref<25x64x256xbf16, #tpu.memory_space<vmem>>, vector<1x64x256xbf16>
    %106 = vector.shape_cast %105 : vector<1x64x256xbf16> to vector<64x256xbf16>
    %cst_104 = arith.constant dense<0.000000e+00> : vector<12x256xf32>
    %107 = tpu.matmul %104, %106, %cst_104 {dimension_numbers = #tpu.dot_dimension_numbers<[1], [0], [0], [1], [0, 0, 1, 1], [], []>} : vector<12x64xbf16>, vector<64x256xbf16>, vector<12x256xf32> -> vector<12x256xf32>
    %108 = arith.addf %102, %107 : vector<12x256xf32>
    %c0_105 = arith.constant 0 : index
    %c21 = arith.constant 21 : index
    %c0_106 = arith.constant 0 : index
    %109 = vector.load %arg1[%c0_105, %c21, %c0_106] : memref<1x42x64xbf16, #tpu.memory_space<vmem>>, vector<1x12x64xbf16>
    %110 = vector.shape_cast %109 : vector<1x12x64xbf16> to vector<12x64xbf16>
    %c18_107 = arith.constant 18 : index
    %c0_108 = arith.constant 0 : index
    %c0_109 = arith.constant 0 : index
    %111 = vector.load %arg2[%c18_107, %c0_108, %c0_109] : memref<25x64x256xbf16, #tpu.memory_space<vmem>>, vector<1x64x256xbf16>
    %112 = vector.shape_cast %111 : vector<1x64x256xbf16> to vector<64x256xbf16>
    %cst_110 = arith.constant dense<0.000000e+00> : vector<12x256xf32>
    %113 = tpu.matmul %110, %112, %cst_110 {dimension_numbers = #tpu.dot_dimension_numbers<[1], [0], [0], [1], [0, 0, 1, 1], [], []>} : vector<12x64xbf16>, vector<64x256xbf16>, vector<12x256xf32> -> vector<12x256xf32>
    %114 = arith.addf %108, %113 : vector<12x256xf32>
    %c0_111 = arith.constant 0 : index
    %c22 = arith.constant 22 : index
    %c0_112 = arith.constant 0 : index
    %115 = vector.load %arg1[%c0_111, %c22, %c0_112] : memref<1x42x64xbf16, #tpu.memory_space<vmem>>, vector<1x12x64xbf16>
    %116 = vector.shape_cast %115 : vector<1x12x64xbf16> to vector<12x64xbf16>
    %c19_113 = arith.constant 19 : index
    %c0_114 = arith.constant 0 : index
    %c0_115 = arith.constant 0 : index
    %117 = vector.load %arg2[%c19_113, %c0_114, %c0_115] : memref<25x64x256xbf16, #tpu.memory_space<vmem>>, vector<1x64x256xbf16>
    %118 = vector.shape_cast %117 : vector<1x64x256xbf16> to vector<64x256xbf16>
    %cst_116 = arith.constant dense<0.000000e+00> : vector<12x256xf32>
    %119 = tpu.matmul %116, %118, %cst_116 {dimension_numbers = #tpu.dot_dimension_numbers<[1], [0], [0], [1], [0, 0, 1, 1], [], []>} : vector<12x64xbf16>, vector<64x256xbf16>, vector<12x256xf32> -> vector<12x256xf32>
    %120 = arith.addf %114, %119 : vector<12x256xf32>
    %c0_117 = arith.constant 0 : index
    %c24 = arith.constant 24 : index
    %c0_118 = arith.constant 0 : index
    %121 = vector.load %arg1[%c0_117, %c24, %c0_118] : memref<1x42x64xbf16, #tpu.memory_space<vmem>>, vector<1x12x64xbf16>
    %122 = vector.shape_cast %121 : vector<1x12x64xbf16> to vector<12x64xbf16>
    %c20_119 = arith.constant 20 : index
    %c0_120 = arith.constant 0 : index
    %c0_121 = arith.constant 0 : index
    %123 = vector.load %arg2[%c20_119, %c0_120, %c0_121] : memref<25x64x256xbf16, #tpu.memory_space<vmem>>, vector<1x64x256xbf16>
    %124 = vector.shape_cast %123 : vector<1x64x256xbf16> to vector<64x256xbf16>
    %cst_122 = arith.constant dense<0.000000e+00> : vector<12x256xf32>
    %125 = tpu.matmul %122, %124, %cst_122 {dimension_numbers = #tpu.dot_dimension_numbers<[1], [0], [0], [1], [0, 0, 1, 1], [], []>} : vector<12x64xbf16>, vector<64x256xbf16>, vector<12x256xf32> -> vector<12x256xf32>
    %126 = arith.addf %120, %125 : vector<12x256xf32>
    %c0_123 = arith.constant 0 : index
    %c25 = arith.constant 25 : index
    %c0_124 = arith.constant 0 : index
    %127 = vector.load %arg1[%c0_123, %c25, %c0_124] : memref<1x42x64xbf16, #tpu.memory_space<vmem>>, vector<1x12x64xbf16>
    %128 = vector.shape_cast %127 : vector<1x12x64xbf16> to vector<12x64xbf16>
    %c21_125 = arith.constant 21 : index
    %c0_126 = arith.constant 0 : index
    %c0_127 = arith.constant 0 : index
    %129 = vector.load %arg2[%c21_125, %c0_126, %c0_127] : memref<25x64x256xbf16, #tpu.memory_space<vmem>>, vector<1x64x256xbf16>
    %130 = vector.shape_cast %129 : vector<1x64x256xbf16> to vector<64x256xbf16>
    %cst_128 = arith.constant dense<0.000000e+00> : vector<12x256xf32>
    %131 = tpu.matmul %128, %130, %cst_128 {dimension_numbers = #tpu.dot_dimension_numbers<[1], [0], [0], [1], [0, 0, 1, 1], [], []>} : vector<12x64xbf16>, vector<64x256xbf16>, vector<12x256xf32> -> vector<12x256xf32>
    %132 = arith.addf %126, %131 : vector<12x256xf32>
    %c0_129 = arith.constant 0 : index
    %c26 = arith.constant 26 : index
    %c0_130 = arith.constant 0 : index
    %133 = vector.load %arg1[%c0_129, %c26, %c0_130] : memref<1x42x64xbf16, #tpu.memory_space<vmem>>, vector<1x12x64xbf16>
    %134 = vector.shape_cast %133 : vector<1x12x64xbf16> to vector<12x64xbf16>
    %c22_131 = arith.constant 22 : index
    %c0_132 = arith.constant 0 : index
    %c0_133 = arith.constant 0 : index
    %135 = vector.load %arg2[%c22_131, %c0_132, %c0_133] : memref<25x64x256xbf16, #tpu.memory_space<vmem>>, vector<1x64x256xbf16>
    %136 = vector.shape_cast %135 : vector<1x64x256xbf16> to vector<64x256xbf16>
    %cst_134 = arith.constant dense<0.000000e+00> : vector<12x256xf32>
    %137 = tpu.matmul %134, %136, %cst_134 {dimension_numbers = #tpu.dot_dimension_numbers<[1], [0], [0], [1], [0, 0, 1, 1], [], []>} : vector<12x64xbf16>, vector<64x256xbf16>, vector<12x256xf32> -> vector<12x256xf32>
    %138 = arith.addf %132, %137 : vector<12x256xf32>
    %c0_135 = arith.constant 0 : index
    %c27 = arith.constant 27 : index
    %c0_136 = arith.constant 0 : index
    %139 = vector.load %arg1[%c0_135, %c27, %c0_136] : memref<1x42x64xbf16, #tpu.memory_space<vmem>>, vector<1x12x64xbf16>
    %140 = vector.shape_cast %139 : vector<1x12x64xbf16> to vector<12x64xbf16>
    %c23 = arith.constant 23 : index
    %c0_137 = arith.constant 0 : index
    %c0_138 = arith.constant 0 : index
    %141 = vector.load %arg2[%c23, %c0_137, %c0_138] : memref<25x64x256xbf16, #tpu.memory_space<vmem>>, vector<1x64x256xbf16>
    %142 = vector.shape_cast %141 : vector<1x64x256xbf16> to vector<64x256xbf16>
    %cst_139 = arith.constant dense<0.000000e+00> : vector<12x256xf32>
    %143 = tpu.matmul %140, %142, %cst_139 {dimension_numbers = #tpu.dot_dimension_numbers<[1], [0], [0], [1], [0, 0, 1, 1], [], []>} : vector<12x64xbf16>, vector<64x256xbf16>, vector<12x256xf32> -> vector<12x256xf32>
    %144 = arith.addf %138, %143 : vector<12x256xf32>
    %c0_140 = arith.constant 0 : index
    %c28 = arith.constant 28 : index
    %c0_141 = arith.constant 0 : index
    %145 = vector.load %arg1[%c0_140, %c28, %c0_141] : memref<1x42x64xbf16, #tpu.memory_space<vmem>>, vector<1x12x64xbf16>
    %146 = vector.shape_cast %145 : vector<1x12x64xbf16> to vector<12x64xbf16>
    %c24_142 = arith.constant 24 : index
    %c0_143 = arith.constant 0 : index
    %c0_144 = arith.constant 0 : index
    %147 = vector.load %arg2[%c24_142, %c0_143, %c0_144] : memref<25x64x256xbf16, #tpu.memory_space<vmem>>, vector<1x64x256xbf16>
    %148 = vector.shape_cast %147 : vector<1x64x256xbf16> to vector<64x256xbf16>
    %cst_145 = arith.constant dense<0.000000e+00> : vector<12x256xf32>
    %149 = tpu.matmul %146, %148, %cst_145 {dimension_numbers = #tpu.dot_dimension_numbers<[1], [0], [0], [1], [0, 0, 1, 1], [], []>} : vector<12x64xbf16>, vector<64x256xbf16>, vector<12x256xf32> -> vector<12x256xf32>
    %150 = arith.addf %144, %149 : vector<12x256xf32>
    %c0_146 = arith.constant 0 : index
    %c0_147 = arith.constant 0 : index
    %151 = vector.load %arg3[%c0_146, %c0_147] : memref<1x256xf32, #tpu.memory_space<vmem>>, vector<1x256xf32>
    %152 = vector.broadcast %151 : vector<1x256xf32> to vector<12x256xf32>
    %153 = arith.mulf %150, %152 : vector<12x256xf32>
    %c0_148 = arith.constant 0 : index
    %c0_149 = arith.constant 0 : index
    %154 = vector.load %arg4[%c0_148, %c0_149] : memref<1x256xf32, #tpu.memory_space<vmem>>, vector<1x256xf32>
    %155 = vector.broadcast %154 : vector<1x256xf32> to vector<12x256xf32>
    %156 = arith.addf %153, %155 : vector<12x256xf32>
    %cst_150 = arith.constant 0.000000e+00 : f32
    %157 = vector.broadcast %cst_150 : f32 to vector<12x256xf32>
    %158 = arith.maximumf %156, %157 : vector<12x256xf32>
    %159 = arith.truncf %158 : vector<12x256xf32> to vector<12x256xbf16>
    %c0_151 = arith.constant 0 : index
    %c0_152 = arith.constant 0 : index
    %c0_153 = arith.constant 0 : index
    %160 = vector.load %arg5[%c0_151, %c0_152, %c0_153] : memref<1x12x256xbf16, #tpu.memory_space<vmem>>, vector<1x12x256xbf16>
    %161 = vector.shape_cast %160 : vector<1x12x256xbf16> to vector<12x256xbf16>
    %162 = vector.shape_cast %159 : vector<12x256xbf16> to vector<1x12x256xbf16>
    tpu.vector_store %arg5[%c0_151, %c0_152, %c0_153], %162 {strides = array<i32>} : memref<1x12x256xbf16, #tpu.memory_space<vmem>>, vector<1x12x256xbf16>,
    return
  }
  func.func @transform_0(%arg0: i32) -> (i32, i32, i32) {
    %c0_i32 = arith.constant 0 : i32
    %c0_i32_0 = arith.constant 0 : i32
    %c0_i32_1 = arith.constant 0 : i32
    return %arg0, %c0_i32, %c0_i32_0 : i32, i32, i32
  }
  func.func @transform_1(%arg0: i32) -> (i32, i32, i32) {
    %c0_i32 = arith.constant 0 : i32
    %c0_i32_0 = arith.constant 0 : i32
    %c0_i32_1 = arith.constant 0 : i32
    %c0_i32_2 = arith.constant 0 : i32
    return %c0_i32, %c0_i32_0, %c0_i32_1 : i32, i32, i32
  }
  func.func @transform_2(%arg0: i32) -> (i32, i32) {
    %c0_i32 = arith.constant 0 : i32
    %c0_i32_0 = arith.constant 0 : i32
    %c0_i32_1 = arith.constant 0 : i32
    return %c0_i32, %c0_i32_0 : i32, i32
  }
  func.func @transform_3(%arg0: i32) -> (i32, i32) {
    %c0_i32 = arith.constant 0 : i32
    %c0_i32_0 = arith.constant 0 : i32
    %c0_i32_1 = arith.constant 0 : i32
    return %c0_i32, %c0_i32_0 : i32, i32
  }
  func.func @transform_4(%arg0: i32) -> (i32, i32, i32) {
    %c0_i32 = arith.constant 0 : i32
    %c0_i32_0 = arith.constant 0 : i32
    %c0_i32_1 = arith.constant 0 : i32
    return %arg0, %c0_i32, %c0_i32_0 : i32, i32, i32
  }
}

module attributes {stable_mosaic.version = 11 : i64} {
  func.func @_temporal_pw_kernel(%arg0: i32, %arg1: memref<1x32x256xbf16, #tpu.memory_space<vmem>>, %arg2: memref<5x256x256xbf16, #tpu.memory_space<vmem>>, %arg3: memref<1x256xf32, #tpu.memory_space<vmem>>, %arg4: memref<1x256xf32, #tpu.memory_space<vmem>>, %arg5: memref<1x256x128xbf16, #tpu.memory_space<vmem>>, %arg6: memref<1x128xf32, #tpu.memory_space<vmem>>, %arg7: memref<1x128xf32, #tpu.memory_space<vmem>>, %arg8: memref<1x4x128xf32, #tpu.memory_space<vmem>>) attributes {dimension_semantics = [#tpu.dimension_semantics<parallel>], iteration_bounds = array<i64: 2>, scalar_prefetch = 0 : i64, scratch_operands = 0 : i64, tpu.core_type = #tpu.core_type<tc>, window_params = [{transform_indices = @transform_0, window_bounds = array<i64: 1, 32, 256>}, {pipeline_mode = #tpu.pipeline_mode<synchronous>, transform_indices = @transform_1, window_bounds = array<i64: 5, 256, 256>}, {pipeline_mode = #tpu.pipeline_mode<synchronous>, transform_indices = @transform_2, window_bounds = array<i64: 1, 256>}, {pipeline_mode = #tpu.pipeline_mode<synchronous>, transform_indices = @transform_3, window_bounds = array<i64: 1, 256>}, {pipeline_mode = #tpu.pipeline_mode<synchronous>, transform_indices = @transform_4, window_bounds = array<i64: 1, 256, 128>}, {pipeline_mode = #tpu.pipeline_mode<synchronous>, transform_indices = @transform_5, window_bounds = array<i64: 1, 128>}, {pipeline_mode = #tpu.pipeline_mode<synchronous>, transform_indices = @transform_6, window_bounds = array<i64: 1, 128>}, {transform_indices = @transform_7, window_bounds = array<i64: 1, 4, 128>}]} {
    %cst = arith.constant 0.000000e+00 : f32
    %0 = vector.broadcast %cst : f32 to vector<16x256xf32>
    %c0 = arith.constant 0 : index
    %c0_0 = arith.constant 0 : index
    %c0_1 = arith.constant 0 : index
    %1 = vector.load %arg1[%c0, %c0_0, %c0_1] : memref<1x32x256xbf16, #tpu.memory_space<vmem>>, vector<1x16x256xbf16>
    %2 = vector.shape_cast %1 : vector<1x16x256xbf16> to vector<16x256xbf16>
    %c0_2 = arith.constant 0 : index
    %c0_3 = arith.constant 0 : index
    %c0_4 = arith.constant 0 : index
    %3 = vector.load %arg2[%c0_2, %c0_3, %c0_4] : memref<5x256x256xbf16, #tpu.memory_space<vmem>>, vector<1x256x256xbf16>
    %4 = vector.shape_cast %3 : vector<1x256x256xbf16> to vector<256x256xbf16>
    %cst_5 = arith.constant dense<0.000000e+00> : vector<16x256xf32>
    %5 = tpu.matmul %2, %4, %cst_5 {dimension_numbers = #tpu.dot_dimension_numbers<[1], [0], [0], [1], [0, 0, 1, 1], [], []>} : vector<16x256xbf16>, vector<256x256xbf16>, vector<16x256xf32> -> vector<16x256xf32>
    %6 = arith.addf %0, %5 : vector<16x256xf32>
    %c0_6 = arith.constant 0 : index
    %c4 = arith.constant 4 : index
    %c0_7 = arith.constant 0 : index
    %7 = vector.load %arg1[%c0_6, %c4, %c0_7] : memref<1x32x256xbf16, #tpu.memory_space<vmem>>, vector<1x16x256xbf16>
    %8 = vector.shape_cast %7 : vector<1x16x256xbf16> to vector<16x256xbf16>
    %c1 = arith.constant 1 : index
    %c0_8 = arith.constant 0 : index
    %c0_9 = arith.constant 0 : index
    %9 = vector.load %arg2[%c1, %c0_8, %c0_9] : memref<5x256x256xbf16, #tpu.memory_space<vmem>>, vector<1x256x256xbf16>
    %10 = vector.shape_cast %9 : vector<1x256x256xbf16> to vector<256x256xbf16>
    %cst_10 = arith.constant dense<0.000000e+00> : vector<16x256xf32>
    %11 = tpu.matmul %8, %10, %cst_10 {dimension_numbers = #tpu.dot_dimension_numbers<[1], [0], [0], [1], [0, 0, 1, 1], [], []>} : vector<16x256xbf16>, vector<256x256xbf16>, vector<16x256xf32> -> vector<16x256xf32>
    %12 = arith.addf %6, %11 : vector<16x256xf32>
    %c0_11 = arith.constant 0 : index
    %c8 = arith.constant 8 : index
    %c0_12 = arith.constant 0 : index
    %13 = vector.load %arg1[%c0_11, %c8, %c0_12] : memref<1x32x256xbf16, #tpu.memory_space<vmem>>, vector<1x16x256xbf16>
    %14 = vector.shape_cast %13 : vector<1x16x256xbf16> to vector<16x256xbf16>
    %c2 = arith.constant 2 : index
    %c0_13 = arith.constant 0 : index
    %c0_14 = arith.constant 0 : index
    %15 = vector.load %arg2[%c2, %c0_13, %c0_14] : memref<5x256x256xbf16, #tpu.memory_space<vmem>>, vector<1x256x256xbf16>
    %16 = vector.shape_cast %15 : vector<1x256x256xbf16> to vector<256x256xbf16>
    %cst_15 = arith.constant dense<0.000000e+00> : vector<16x256xf32>
    %17 = tpu.matmul %14, %16, %cst_15 {dimension_numbers = #tpu.dot_dimension_numbers<[1], [0], [0], [1], [0, 0, 1, 1], [], []>} : vector<16x256xbf16>, vector<256x256xbf16>, vector<16x256xf32> -> vector<16x256xf32>
    %18 = arith.addf %12, %17 : vector<16x256xf32>
    %c0_16 = arith.constant 0 : index
    %c12 = arith.constant 12 : index
    %c0_17 = arith.constant 0 : index
    %19 = vector.load %arg1[%c0_16, %c12, %c0_17] : memref<1x32x256xbf16, #tpu.memory_space<vmem>>, vector<1x16x256xbf16>
    %20 = vector.shape_cast %19 : vector<1x16x256xbf16> to vector<16x256xbf16>
    %c3 = arith.constant 3 : index
    %c0_18 = arith.constant 0 : index
    %c0_19 = arith.constant 0 : index
    %21 = vector.load %arg2[%c3, %c0_18, %c0_19] : memref<5x256x256xbf16, #tpu.memory_space<vmem>>, vector<1x256x256xbf16>
    %22 = vector.shape_cast %21 : vector<1x256x256xbf16> to vector<256x256xbf16>
    %cst_20 = arith.constant dense<0.000000e+00> : vector<16x256xf32>
    %23 = tpu.matmul %20, %22, %cst_20 {dimension_numbers = #tpu.dot_dimension_numbers<[1], [0], [0], [1], [0, 0, 1, 1], [], []>} : vector<16x256xbf16>, vector<256x256xbf16>, vector<16x256xf32> -> vector<16x256xf32>
    %24 = arith.addf %18, %23 : vector<16x256xf32>
    %c0_21 = arith.constant 0 : index
    %c16 = arith.constant 16 : index
    %c0_22 = arith.constant 0 : index
    %25 = vector.load %arg1[%c0_21, %c16, %c0_22] : memref<1x32x256xbf16, #tpu.memory_space<vmem>>, vector<1x16x256xbf16>
    %26 = vector.shape_cast %25 : vector<1x16x256xbf16> to vector<16x256xbf16>
    %c4_23 = arith.constant 4 : index
    %c0_24 = arith.constant 0 : index
    %c0_25 = arith.constant 0 : index
    %27 = vector.load %arg2[%c4_23, %c0_24, %c0_25] : memref<5x256x256xbf16, #tpu.memory_space<vmem>>, vector<1x256x256xbf16>
    %28 = vector.shape_cast %27 : vector<1x256x256xbf16> to vector<256x256xbf16>
    %cst_26 = arith.constant dense<0.000000e+00> : vector<16x256xf32>
    %29 = tpu.matmul %26, %28, %cst_26 {dimension_numbers = #tpu.dot_dimension_numbers<[1], [0], [0], [1], [0, 0, 1, 1], [], []>} : vector<16x256xbf16>, vector<256x256xbf16>, vector<16x256xf32> -> vector<16x256xf32>
    %30 = arith.addf %24, %29 : vector<16x256xf32>
    %c0_27 = arith.constant 0 : index
    %c0_28 = arith.constant 0 : index
    %31 = vector.load %arg3[%c0_27, %c0_28] : memref<1x256xf32, #tpu.memory_space<vmem>>, vector<1x256xf32>
    %32 = vector.broadcast %31 : vector<1x256xf32> to vector<16x256xf32>
    %33 = arith.mulf %30, %32 : vector<16x256xf32>
    %c0_29 = arith.constant 0 : index
    %c0_30 = arith.constant 0 : index
    %34 = vector.load %arg4[%c0_29, %c0_30] : memref<1x256xf32, #tpu.memory_space<vmem>>, vector<1x256xf32>
    %35 = vector.broadcast %34 : vector<1x256xf32> to vector<16x256xf32>
    %36 = arith.addf %33, %35 : vector<16x256xf32>
    %cst_31 = arith.constant 0.000000e+00 : f32
    %37 = vector.broadcast %cst_31 : f32 to vector<16x256xf32>
    %38 = arith.maximumf %36, %37 : vector<16x256xf32>
    %39 = arith.truncf %38 : vector<16x256xf32> to vector<16x256xbf16>
    %c0_32 = arith.constant 0 : index
    %c0_33 = arith.constant 0 : index
    %c0_34 = arith.constant 0 : index
    %40 = vector.load %arg5[%c0_32, %c0_33, %c0_34] : memref<1x256x128xbf16, #tpu.memory_space<vmem>>, vector<1x256x128xbf16>
    %41 = vector.shape_cast %40 : vector<1x256x128xbf16> to vector<256x128xbf16>
    %cst_35 = arith.constant dense<0.000000e+00> : vector<16x128xf32>
    %42 = tpu.matmul %39, %41, %cst_35 {dimension_numbers = #tpu.dot_dimension_numbers<[1], [0], [0], [1], [0, 0, 1, 1], [], []>} : vector<16x256xbf16>, vector<256x128xbf16>, vector<16x128xf32> -> vector<16x128xf32>
    %c0_36 = arith.constant 0 : index
    %c0_37 = arith.constant 0 : index
    %43 = vector.load %arg6[%c0_36, %c0_37] : memref<1x128xf32, #tpu.memory_space<vmem>>, vector<1x128xf32>
    %44 = vector.broadcast %43 : vector<1x128xf32> to vector<16x128xf32>
    %45 = arith.mulf %42, %44 : vector<16x128xf32>
    %c0_38 = arith.constant 0 : index
    %c0_39 = arith.constant 0 : index
    %46 = vector.load %arg7[%c0_38, %c0_39] : memref<1x128xf32, #tpu.memory_space<vmem>>, vector<1x128xf32>
    %47 = vector.broadcast %46 : vector<1x128xf32> to vector<16x128xf32>
    %48 = arith.addf %45, %47 : vector<16x128xf32>
    %cst_40 = arith.constant 0.000000e+00 : f32
    %49 = vector.broadcast %cst_40 : f32 to vector<16x128xf32>
    %50 = arith.maximumf %48, %49 : vector<16x128xf32>
    %51 = vector.extract_strided_slice %50 {offsets = [0, 0], sizes = [4, 128], strides = [1, 1]} : vector<16x128xf32> to vector<4x128xf32>
    %cst_41 = arith.constant dense<0xFF800000> : vector<128xf32>
    %52 = vector.multi_reduction <maximumf>, %51, %cst_41 [0] : vector<4x128xf32> to vector<128xf32>
    %53 = vector.shape_cast %52 : vector<128xf32> to vector<1x128xf32>
    %c0_42 = arith.constant 0 : index
    %c0_43 = arith.constant 0 : index
    %c0_44 = arith.constant 0 : index
    %54 = vector.load %arg8[%c0_42, %c0_43, %c0_44] : memref<1x4x128xf32, #tpu.memory_space<vmem>>, vector<1x1x128xf32>
    %55 = vector.shape_cast %54 : vector<1x1x128xf32> to vector<1x128xf32>
    %56 = vector.shape_cast %53 : vector<1x128xf32> to vector<1x1x128xf32>
    tpu.vector_store %arg8[%c0_42, %c0_43, %c0_44], %56 {strides = array<i32>} : memref<1x4x128xf32, #tpu.memory_space<vmem>>, vector<1x1x128xf32>,
    %57 = vector.extract_strided_slice %50 {offsets = [4, 0], sizes = [4, 128], strides = [1, 1]} : vector<16x128xf32> to vector<4x128xf32>
    %cst_45 = arith.constant dense<0xFF800000> : vector<128xf32>
    %58 = vector.multi_reduction <maximumf>, %57, %cst_45 [0] : vector<4x128xf32> to vector<128xf32>
    %59 = vector.shape_cast %58 : vector<128xf32> to vector<1x128xf32>
    %c0_46 = arith.constant 0 : index
    %c1_47 = arith.constant 1 : index
    %c0_48 = arith.constant 0 : index
    %60 = vector.load %arg8[%c0_46, %c1_47, %c0_48] : memref<1x4x128xf32, #tpu.memory_space<vmem>>, vector<1x1x128xf32>
    %61 = vector.shape_cast %60 : vector<1x1x128xf32> to vector<1x128xf32>
    %62 = vector.shape_cast %59 : vector<1x128xf32> to vector<1x1x128xf32>
    tpu.vector_store %arg8[%c0_46, %c1_47, %c0_48], %62 {strides = array<i32>} : memref<1x4x128xf32, #tpu.memory_space<vmem>>, vector<1x1x128xf32>,
    %63 = vector.extract_strided_slice %50 {offsets = [8, 0], sizes = [4, 128], strides = [1, 1]} : vector<16x128xf32> to vector<4x128xf32>
    %cst_49 = arith.constant dense<0xFF800000> : vector<128xf32>
    %64 = vector.multi_reduction <maximumf>, %63, %cst_49 [0] : vector<4x128xf32> to vector<128xf32>
    %65 = vector.shape_cast %64 : vector<128xf32> to vector<1x128xf32>
    %c0_50 = arith.constant 0 : index
    %c2_51 = arith.constant 2 : index
    %c0_52 = arith.constant 0 : index
    %66 = vector.load %arg8[%c0_50, %c2_51, %c0_52] : memref<1x4x128xf32, #tpu.memory_space<vmem>>, vector<1x1x128xf32>
    %67 = vector.shape_cast %66 : vector<1x1x128xf32> to vector<1x128xf32>
    %68 = vector.shape_cast %65 : vector<1x128xf32> to vector<1x1x128xf32>
    tpu.vector_store %arg8[%c0_50, %c2_51, %c0_52], %68 {strides = array<i32>} : memref<1x4x128xf32, #tpu.memory_space<vmem>>, vector<1x1x128xf32>,
    %69 = vector.extract_strided_slice %50 {offsets = [12, 0], sizes = [4, 128], strides = [1, 1]} : vector<16x128xf32> to vector<4x128xf32>
    %cst_53 = arith.constant dense<0xFF800000> : vector<128xf32>
    %70 = vector.multi_reduction <maximumf>, %69, %cst_53 [0] : vector<4x128xf32> to vector<128xf32>
    %71 = vector.shape_cast %70 : vector<128xf32> to vector<1x128xf32>
    %c0_54 = arith.constant 0 : index
    %c3_55 = arith.constant 3 : index
    %c0_56 = arith.constant 0 : index
    %72 = vector.load %arg8[%c0_54, %c3_55, %c0_56] : memref<1x4x128xf32, #tpu.memory_space<vmem>>, vector<1x1x128xf32>
    %73 = vector.shape_cast %72 : vector<1x1x128xf32> to vector<1x128xf32>
    %74 = vector.shape_cast %71 : vector<1x128xf32> to vector<1x1x128xf32>
    tpu.vector_store %arg8[%c0_54, %c3_55, %c0_56], %74 {strides = array<i32>} : memref<1x4x128xf32, #tpu.memory_space<vmem>>, vector<1x1x128xf32>,
    return
  }
  func.func @transform_0(%arg0: i32) -> (i32, i32, i32) {
    %c0_i32 = arith.constant 0 : i32
    %c0_i32_0 = arith.constant 0 : i32
    %c0_i32_1 = arith.constant 0 : i32
    return %arg0, %c0_i32, %c0_i32_0 : i32, i32, i32
  }
  func.func @transform_1(%arg0: i32) -> (i32, i32, i32) {
    %c0_i32 = arith.constant 0 : i32
    %c0_i32_0 = arith.constant 0 : i32
    %c0_i32_1 = arith.constant 0 : i32
    %c0_i32_2 = arith.constant 0 : i32
    return %c0_i32, %c0_i32_0, %c0_i32_1 : i32, i32, i32
  }
  func.func @transform_2(%arg0: i32) -> (i32, i32) {
    %c0_i32 = arith.constant 0 : i32
    %c0_i32_0 = arith.constant 0 : i32
    %c0_i32_1 = arith.constant 0 : i32
    return %c0_i32, %c0_i32_0 : i32, i32
  }
  func.func @transform_3(%arg0: i32) -> (i32, i32) {
    %c0_i32 = arith.constant 0 : i32
    %c0_i32_0 = arith.constant 0 : i32
    %c0_i32_1 = arith.constant 0 : i32
    return %c0_i32, %c0_i32_0 : i32, i32
  }
  func.func @transform_4(%arg0: i32) -> (i32, i32, i32) {
    %c0_i32 = arith.constant 0 : i32
    %c0_i32_0 = arith.constant 0 : i32
    %c0_i32_1 = arith.constant 0 : i32
    %c0_i32_2 = arith.constant 0 : i32
    return %c0_i32, %c0_i32_0, %c0_i32_1 : i32, i32, i32
  }
  func.func @transform_5(%arg0: i32) -> (i32, i32) {
    %c0_i32 = arith.constant 0 : i32
    %c0_i32_0 = arith.constant 0 : i32
    %c0_i32_1 = arith.constant 0 : i32
    return %c0_i32, %c0_i32_0 : i32, i32
  }
  func.func @transform_6(%arg0: i32) -> (i32, i32) {
    %c0_i32 = arith.constant 0 : i32
    %c0_i32_0 = arith.constant 0 : i32
    %c0_i32_1 = arith.constant 0 : i32
    return %c0_i32, %c0_i32_0 : i32, i32
  }
  func.func @transform_7(%arg0: i32) -> (i32, i32, i32) {
    %c0_i32 = arith.constant 0 : i32
    %c0_i32_0 = arith.constant 0 : i32
    %c0_i32_1 = arith.constant 0 : i32
    return %arg0, %c0_i32, %c0_i32_0 : i32, i32, i32
  }
}

</mosaic_0001>

<bundles_post_ra>
// kernel: visual_encoder_forward.6
= control target key start
LH: loop header
LB: loop body
LE: loop exit
PB: predicated region body
PF: predicated region fallthrough
CT: control target
= control target key end

     0   :  { %s1390_s15 = smov 0   ;;  %s1742_s0 = inlined_call_operand.vmem [shape: bf16[8,110,4], index: 0, kind: input, shape index: {}]   ;;  %s1743_s1 = inlined_call_operand.vmem [shape: bf16[9,4,64], index: 1, kind: input, shape index: {}]   ;;  %s1744_s2 = inlined_call_operand.vmem [shape: f32[1,64], index: 2, kind: input, shape index: {}]   ;;  %s1745_s3 = inlined_call_operand.vmem [shape: f32[1,64], index: 3, kind: input, shape index: {}]   ;;  %s1746_s4 = inlined_call_operand.vmem [shape: bf16[8,80,64], index: 4, kind: output, shape index: {}]  }
   0x1 LB: > { %s1213_s16 = sadd.s32 4294967295, %s1363_s15   ;;  %p1217_p0 = scmp.ge.s32.totalorder %s1363_s15, 1  ;;  %s1363_s15 = sphi %s1390_s15, %s14_s15  }
   0x2   : > { %p162_p1 = scmp.lt.s32.totalorder %s1363_s15, 9 }
   0x4   : > { %p163_p2 = pnand %p1217_p0, %p162_p1 }
   0x5   : > { %p188_p3 = scmp.lt.s32.totalorder (!%p163_p2), %s1213_s16, 7 }
   0x6   : > { %166 = sbr.rel (%p163_p2) target bundleno = 355 (0x163), region = 36 }
   0xb   : > { %v1220_v0 = vld [vmem:[%s1743_s1 + $0x2] sm:$0x3]  ;;  %vm302_vm0 = vcmask 1041408   ;;  %v1247_v2 = vld [vmem:[%s1743_s1 + $0x4] sm:$0x3]  ;;  %s1748_s16 = smov (!%p188_p3, %s1213_s16), 7 }
   0xc   : > { %v304_v1 = vsel %vm302_vm0, %v1220_v0, 0  ;;  %v209_v3 = vld [vmem:[%s1743_s1] sm:$0x3]  ;;  %v421_v4 = vsel %vm302_vm0, %v1247_v2, 0  ;;  %v1253_v6 = vld [vmem:[%s1743_s1 + $0x6] sm:$0x3] }
   0xd   : > { %1342 = vmatpush.bf16.msra.mxu1 %v304_v1  ;;  %1343 = vmatpush.bf16.msra.mxu2 %v304_v1  ;;  %v351_v5 = vsel %vm302_vm0, %v209_v3, 0  ;;  %v535_v7 = vsel %vm302_vm0, %v1253_v6, 0  ;;  %v1275_v8 = vld [vmem:[%s1743_s1 + $0x8] sm:$0x3]  ;;  %s1345_s27 = smul.u32 56, %s1748_s16  ;;  %vm286_vm2 = vcmask 31744  }
   0xe   : > { %1344 = vmatpush.bf16.msra.mxu3 %v304_v1  ;;  %313 = vmatpush.bf16.msra.mxu0 %v304_v1  ;;  %v657_v9 = vsel %vm302_vm0, %v1275_v8, 0  ;;  %vm241_vm1 = vsmask.f32 7424  ;;  %v1287_v44 = vld [vmem:[%s1743_s1 + $0xc] sm:$0x3]  ;;  %vm393_vm3 = vcmask 1046528  }
   0xf   : > { %s1424_s30 = scalar_lea.vmem %s1742_s0, %s1345_s27  ;;  %v851_v46 = vsel %vm302_vm0, %v1287_v44, 0  ;;  %v1309_v47 = vld [vmem:[%s1743_s1 + $0xe] sm:$0x3]  ;;  %v1281_v51 = vld [vmem:[%s1743_s1 + $0xa] sm:$0x3]  ;;  %vm709_vm5 = vcmask 1045504  }
  0x10   : > { %v1427_v10 = vld [vmem:[%s1424_s30 + $0x8] sm:$0xff]  ;;  %v1430_v11 = vld [vmem:[%s1424_s30 + $0x10] sm:$0xff]  ;;  %v1433_v12 = vld [vmem:[%s1424_s30 + $0x18] sm:$0xff]  ;;  %v973_v57 = vsel %vm302_vm0, %v1309_v47, 0  ;;  %v737_v58 = vsel %vm302_vm0, %v1281_v51, 0  ;;  %vm1025_vm7 = vcmask 1044480  }
  0x11   : > { %430 = vmatpush.bf16.msrb.mxu2 %v421_v4  ;;  %360 = vmatpush.bf16.msrb.mxu1 %v351_v5  ;;  %v1436_v13 = vld [vmem:[%s1424_s30 + $0x20] sm:$0xff]  ;;  %v210_v14 = vld [vmem:[%s1424_s30 + $0x28] sm:$0x1]  ;;  %v250_v15 = vshll.u32 %v1427_v10, 16  ;;  %v254_v16 = vshrl.u32 %v1427_v10, 16  ;;  %v258_v17 = vshll.u32 %v1430_v11, 16 }
  0x12   : > { %544 = vmatpush.bf16.msrb.mxu3 %v535_v7  ;;  %666 = vmatpush.bf16.msrb.mxu0 %v657_v9  ;;  %v262_v18 = vshrl.u32 %v1430_v11, 16  ;;  %v1444_v19 = vld [vmem:[%s1424_s30] sm:$0xff]   ;;  %v266_v20 = vshll.u32 %v1433_v12, 16  ;;  %v234_v21 = vunpack.c.l.b16 %v210_v14  ;;  %v274_v22 = vshll.u32 %v1436_v13, 16  ;;  %v1451_v25 = vld [vmem:[%s1424_s30 + $0x8] sm:$0xff]   ;;  %s1346_s19 = smul.u32 40, %s1748_s16 }
  0x13   : > { %v278_v23 = vshrl.u32 %v1436_v13, 16  ;;  %v467_v24 = vld [vmem:[%s1424_s30 + $0x4] sm:$0xe]  ;;  %v252_v26 = vrot.slane %v250_v15, 1  ;;  %v260_v27 = vrot.slane %v258_v17, 1  ;;  %v243_v28 = vshrl.u32 %v1444_v19, 16 }
  0x14   : > { %v268_v29 = vrot.slane %v266_v20, 1  ;;  %v1454_v30 = vpack.c.b16 %v234_v21, %v234_v21  ;;  %v276_v31 = vrot.slane %v274_v22, 1  ;;  %v245_v32 = vshll.u32 %v1444_v19, 16  ;;  %v1475_v50 = vld [vmem:[%s1424_s30 + $0xc] sm:$0xff]  ;;  %v1339_v9 = vld [vmem:[%s1424_s30] sm:$0xf0]  ;;  %s1691_s22 = scalar_lea.vmem %s1746_s4, %s1346_s19 }
  0x15   : > { %v256_v33 = vor.u32 %v254_v16, %v252_v26  ;;  %v264_v34 = vor.u32 %v262_v18, %v260_v27  ;;  %v491_v35 = vunpack.c.l.b16 %v467_v24  ;;  %v492_v36 = vunpack.c.l.b16 %v1451_v25  ;;  %v1315_v54 = vld [vmem:[%s1743_s1 + $0x10] sm:$0x3]  ;;  %v1340_v14 = vld [vmem:[%s1424_s30] sm:$0xe]  ;;  %v1501_v15 = vld [vmem:[%s1424_s30 + $0x14] sm:$0xff] }
  0x16   : > { %v280_v37 = vor.u32 %v278_v23, %v276_v31  ;;  %v282_v38 = vshll.u32 %v1454_v30, 16  ;;  %v247_v39 = vrot.slane %v245_v32, 1  ;;  %v597_v55 = vshrl.u32 %v1475_v50, 16 }
  0x17   : > { %v261_v40 = vsel %vm241_vm1, %v256_v33, %v260_v27  ;;  %v269_v41 = vsel %vm241_vm1, %v264_v34, %v268_v29  ;;  %v502_v45 = vpack.c.b16 %v492_v36, %v491_v35  ;;  %v600_v56 = vshll.u32 %v1475_v50, 16 }
  0x18   : > { %1238 = vmatmul.msk.bf16.vlgmr.msra.gmra.mxu1 %vm286_vm2, %v261_v40  ;;  %1239 = vmatmul.msk.bf16.vlgmr.msra.gmra.mxu2 %vm286_vm2, %v269_v41  ;;  %v284_v42 = vrot.slane %v282_v38, 1  ;;  %v248_v43 = vor.u32 %v247_v39, %v243_v28  ;;  %v270_v59 = vshrl.u32 %v1433_v12, 16  ;;  %v1053_v60 = vsel %vm302_vm0, %v1315_v54, 0  ;;  %v1531_v41 = vld [vmem:[%s1424_s30 + $0x24] sm:$0xff] }
  0x19   : > { %860 = vmatpush.bf16.msra.mxu2 %v851_v46  ;;  %v589_v52 = vshrl.u32 %v502_v45, 16  ;;  %v592_v53 = vshll.u32 %v502_v45, 16  ;;  %746 = vmatpush.bf16.msra.mxu1 %v737_v58  ;;  %v599_v63 = vrot.slane %v597_v55, 1  ;;  %v602_v0 = vrot.slane %v600_v56, 2 }
  0x1a   : > { %v285_v48 = vsel %vm241_vm1, %v280_v37, %v284_v42  ;;  %v253_v49 = vsel %vm241_vm1, %v248_v43, %v252_v26  ;;  %v272_v1 = vor.u32 %v270_v59, %v268_v29  ;;  %v508_v2 = vrot.slane %v502_v45, 1  ;;  %v1516_v29 = vld [vmem:[%s1424_s30 + $0x1c] sm:$0xff] }
  0x1b   : > { %1241 = vmatmul.msk.bf16.vlgmr.msra.gmra.mxu3 %vm286_vm2, %v285_v48  ;;  %1237 = vmatmul.msk.bf16.vlgmr.msra.gmra.mxu0 %vm286_vm2, %v253_v49  ;;  %v591_v61 = vrot.slane %v589_v52, 1  ;;  %v594_v62 = vrot.slane %v592_v53, 2  ;;  %v509_v3 = vrot.slane %v1475_v50, 1  ;;  %v603_v5 = vor.u32 %v602_v0, %v599_v63  ;;  %v703_v48 = vld [vmem:[%s1424_s30 + $0x4] sm:$0xc] }
  0x1c   : > { %982 = vmatpush.bf16.msra.mxu3 %v973_v57  ;;  %1062 = vmatpush.bf16.msra.mxu0 %v1053_v60  ;;  %v277_v6 = vsel %vm241_vm1, %v272_v1, %v276_v31  ;;  %vm587_vm4 = vsmask.f32 6400  ;;  %v606_v16 = vshrl.u32 %v1501_v15, 16  ;;  %v609_v17 = vshll.u32 %v1501_v15, 16  ;;  %v581_v52 = vld [vmem:[%s1424_s30 + $0x2c] sm:$0x3] }
  0x1d   : > { %v595_v4 = vor.u32 %v594_v62, %v591_v61  ;;  %v510_v7 = vsel %vm393_vm3, %v508_v2, %v509_v3  ;;  %v1341_v18 = vor.u32 %v1340_v14, %v1339_v9  ;;  %v395_v22 = vrot.slane %v1427_v10, 1  ;;  %v477_v62 = vld [vmem:[%s1424_s30 + $0x2c] sm:$0x1] }
  0x1e   : > { %v608_v20 = vrot.slane %v606_v16, 1  ;;  %v511_v23 = vrot.slane %v1501_v15, 1  ;;  %v615_v31 = vshrl.u32 %v1516_v29, 16  ;;  %v618_v32 = vshll.u32 %v1516_v29, 16  ;;  %v1331_v16 = vld [vmem:[%s1424_s30 + $0x10] sm:$0xff] }
  0x1f   : > { %v604_v8 = vsel %vm587_vm4, %v595_v4, %v603_v5  ;;  %v394_v21 = vrot.slane %v1341_v18, 1  ;;  %v513_v35 = vrot.slane %v1516_v29, 1  ;;  %v401_v42 = vrot.slane %v1436_v13, 1 }
  0x20   : > { %v512_v27 = vsel %vm393_vm3, %v509_v3, %v511_v23  ;;  %v617_v33 = vrot.slane %v615_v31, 1  ;;  %v620_v34 = vrot.slane %v618_v32, 2  ;;  %v403_v43 = vrot.slane %v1454_v30, 1 }
  0x21   : > { %v396_v26 = vsel %vm393_vm3, %v394_v21, %v395_v22  ;;  %v514_v39 = vsel %vm393_vm3, %v511_v23, %v513_v35  ;;  %v624_v44 = vshrl.u32 %v1531_v41, 16  ;;  %v399_v49 = vrot.slane %v1433_v12, 1 }
  0x22   : > { %v621_v37 = vor.u32 %v620_v34, %v617_v33  ;;  %v1540_v45 = vsel %vm393_vm3, %v401_v42, %v403_v43  ;;  %v707_v51 = vunpack.c.l.b16 %v703_v48  ;;  %v515_v30 = vrot.slane %v1531_v41, 1 }
  0x23   : > { %v626_v46 = vrot.slane %v624_v44, 1  ;;  %v585_v55 = vunpack.c.l.b16 %v581_v52  ;;  %v711_v58 = vrot.slane %v1475_v50, 2  ;;  %v713_v50 = vrot.slane %v1501_v15, 2 }
  0x24   : > { %v708_v53 = vpack.c.b16 %v492_v36, %v707_v51  ;;  %v516_v36 = vsel %vm393_vm3, %v513_v35, %v515_v30  ;;  %v501_v63 = vunpack.c.l.b16 %v477_v62  ;;  %v808_v9 = vunpack.c.h.b16 %v1451_v25  ;;  %v1593_v51 = vld [vmem:[%s1424_s30 + $0x20] sm:$0xff] }
  0x25   : > { %v1556_v61 = vpack.c.b16 %v585_v55, %v585_v55  ;;  %v714_v1 = vsel %vm709_vm5, %v711_v58, %v713_v50  ;;  %v402_v14 = vsel %vm393_vm3, %v399_v49, %v401_v42  ;;  %v913_v21 = vshrl.u32 %v1331_v16, 16 }
  0x26   : > { %v710_v57 = vrot.slane %v708_v53, 2  ;;  %v507_v2 = vpack.c.b16 %v501_v63, %v501_v63  ;;  %v916_v23 = vshll.u32 %v1331_v16, 16  ;;  %vm903_vm6 = vsmask.f32 5376 }
  0x27   : > { %v636_v0 = vshll.u32 %v1556_v61, 16  ;;  %v931_v52 = vshrl.u32 %v1593_v51, 16  ;;  %v934_v53 = vshll.u32 %v1593_v51, 16  ;;  %v715_v55 = vrot.slane %v1516_v29, 2 }
  0x28   : > { %1240 = vmatmul.msk.bf16.gmra.mxu2 %vm286_vm2, %v277_v6  ;;  %1242 = vmatmul.msk.bf16.vlgmr.msrb.gmra.mxu1 %vm286_vm2, %v1444_v19  ;;  %v611_v19 = vrot.slane %v609_v17, 2  ;;  %v712_v59 = vsel %vm709_vm5, %v710_v57, %v711_v58  ;;  %v517_v6 = vrot.slane %v507_v2, 1  ;;  %v1031_v58 = vrot.slane %v1593_v51, 3 }
  0x29   : > { %v638_v4 = vrot.slane %v636_v0, 2  ;;  %vm1147_vm8 = vcmask 519168  }
  0x2a   : > { %v612_v24 = vor.u32 %v611_v19, %v608_v20  ;;  %v518_v17 = vsel %vm393_vm3, %v515_v30, %v517_v6  ;;  %v1019_v19 = vld [vmem:[%s1424_s30 + $0x8] sm:$0x8]  ;;  %v933_v30 = vrot.slane %v931_v52, 2  ;;  %v717_v6 = vrot.slane %v1531_v41, 2 }
  0x2b   : > { %1270 = vmatmul.msk.bf16.vlgmr.msrb.gmra.mxu3 %vm286_vm2, %v510_v7  ;;  %1276 = vmatmul.msk.bf16.vlgmr.msrb.gmra.mxu0 %vm286_vm2, %v604_v8 }
  0x2c   : > { %v613_v28 = vsel %vm587_vm4, %v603_v5, %v612_v24  ;;  %v622_v40 = vsel %vm587_vm4, %v612_v24, %v621_v37  ;;  %v783_v5 = vld [vmem:[%s1424_s30 + $0x8] sm:$0xc]  ;;  %v1023_v24 = vunpack.c.l.b16 %v1019_v19 }
  0x2d   : > { %v807_v8 = vunpack.c.l.b16 %v783_v5 }
  0x2e   : > { %v1024_v31 = vpack.c.b16 %v808_v9, %v1023_v24 }
  0x2f   : > { %v818_v20 = vpack.c.b16 %v808_v9, %v807_v8  ;;  %v897_v8 = vld [vmem:[%s1424_s30 + $0x30] sm:$0x7] }
  0x30   : > { %v1026_v34 = vrot.slane %v1024_v31, 3 }
  0x31   : > { %v905_v25 = vshrl.u32 %v818_v20, 16  ;;  %v824_v44 = vrot.slane %v818_v20, 2 }
  0x38   : > { %1243 = vmatmul.msk.bf16.gmra.mxu1 %vm286_vm2, %v1427_v10  ;;  %1248 = vmatmul.msk.bf16.vlgmr.msrb.gmra.mxu2 %vm286_vm2, %v396_v26  ;;  %v397_v10 = vrot.slane %v1430_v11, 1  ;;  %v915_v26 = vrot.slane %v913_v21, 2 }
  0x3a   : > { %v398_v38 = vsel %vm393_vm3, %v395_v22, %v397_v10  ;;  %v400_v56 = vsel %vm393_vm3, %v397_v10, %v399_v49  ;;  %v908_v22 = vshll.u32 %v818_v20, 16  ;;  %v1027_v10 = vrot.slane %v1331_v16, 3 }
  0x3b   : > { %1271 = vmatmul.msk.bf16.gmra.mxu3 %vm286_vm2, %v512_v27  ;;  %1277 = vmatmul.msk.bf16.gmra.mxu0 %vm286_vm2, %v613_v28  ;;  %v918_v28 = vrot.slane %v916_v23, 3  ;;  %v718_v20 = vsel %vm709_vm5, %v715_v55, %v717_v6 }
  0x3c   : > { %v910_v27 = vrot.slane %v908_v22, 3 }
  0x3d   : > { %v919_v33 = vor.u32 %v918_v28, %v915_v26 }
  0x48   : > { %1244 = vmatmul.msk.bf16.gmra.mxu1 %vm286_vm2, %v1430_v11  ;;  %1249 = vmatmul.msk.bf16.gmra.mxu2 %vm286_vm2, %v398_v38  ;;  %v627_v11 = vshll.u32 %v1531_v41, 16  ;;  %v1332_v38 = vld [vmem:[%s1424_s30 + $0x18] sm:$0xff] }
  0x4a   : > { %v629_v47 = vrot.slane %v627_v11, 2  ;;  %v825_v11 = vrot.slane %v1331_v16, 2 }
  0x4b   : > { %1272 = vmatmul.msk.bf16.gmra.mxu3 %vm286_vm2, %v514_v39  ;;  %1278 = vmatmul.msk.bf16.gmra.mxu0 %vm286_vm2, %v622_v40  ;;  %v922_v39 = vshrl.u32 %v1332_v38, 16  ;;  %v925_v40 = vshll.u32 %v1332_v38, 16 }
  0x4c   : > { %v630_v54 = vor.u32 %v629_v47, %v626_v46  ;;  %v826_v47 = vsel %vm709_vm5, %v824_v44, %v825_v11 }
  0x4d   : > { %v924_v42 = vrot.slane %v922_v39, 2  ;;  %v927_v43 = vrot.slane %v925_v40, 3 }
  0x4e   : > { %v631_v60 = vsel %vm587_vm4, %v621_v37, %v630_v54  ;;  %v1028_v37 = vsel %vm1025_vm7, %v1026_v34, %v1027_v10 }
  0x4f   : > { %v928_v46 = vor.u32 %v927_v43, %v924_v42 }
  0x51   : > { %v929_v48 = vsel %vm903_vm6, %v919_v33, %v928_v46 }
  0x58   : > { %1245 = vmatmul.msk.bf16.gmra.mxu1 %vm286_vm2, %v1433_v12  ;;  %1250 = vmatmul.msk.bf16.gmra.mxu2 %vm286_vm2, %v400_v56  ;;  %v633_v12 = vshrl.u32 %v1556_v61, 16  ;;  %v827_v56 = vrot.slane %v1332_v38, 2 }
  0x5a   : > { %v635_v3 = vrot.slane %v633_v12, 1  ;;  %v1610_v12 = vld [vmem:[%s1424_s30 + $0x28] sm:$0xff] }
  0x5b   : > { %1273 = vmatmul.msk.bf16.gmra.mxu3 %vm286_vm2, %v516_v36  ;;  %1279 = vmatmul.msk.bf16.gmra.mxu0 %vm286_vm2, %v631_v60  ;;  %v716_v36 = vsel %vm709_vm5, %v713_v50, %v715_v55  ;;  %v828_v60 = vsel %vm709_vm5, %v825_v11, %v827_v56  ;;  %v940_v15 = vshrl.u32 %v1610_v12, 16  ;;  %v943_v50 = vshll.u32 %v1610_v12, 16 }
  0x5c   : > { %v639_v7 = vor.u32 %v638_v4, %v635_v3  ;;  %v1033_v16 = vrot.slane %v1610_v12, 3 }
  0x5d   : > { %v942_v4 = vrot.slane %v940_v15, 2  ;;  %v945_v5 = vrot.slane %v943_v50, 3 }
  0x5e   : > { %v640_v18 = vsel %vm587_vm4, %v630_v54, %v639_v7  ;;  %v936_v54 = vrot.slane %v934_v53, 3  ;;  %v829_v7 = vrot.slane %v1593_v51, 2  ;;  %v1034_v23 = vsel %vm1025_vm7, %v1031_v58, %v1033_v16 }
  0x60   : > { %v937_v57 = vor.u32 %v936_v54, %v933_v30  ;;  %v830_v19 = vsel %vm709_vm5, %v827_v56, %v829_v7 }
  0x62   : > { %v938_v62 = vsel %vm903_vm6, %v928_v46, %v937_v57 }
  0x68   : > { %1246 = vmatmul.msk.bf16.gmra.mxu1 %vm286_vm2, %v1436_v13  ;;  %1251 = vmatmul.msk.bf16.gmra.mxu2 %vm286_vm2, %v402_v14  ;;  %v907_v13 = vrot.slane %v905_v25, 2  ;;  %v946_v14 = vor.u32 %v945_v5, %v942_v4 }
  0x6a   : > { %v911_v32 = vor.u32 %v910_v27, %v907_v13  ;;  %v947_v41 = vsel %vm903_vm6, %v937_v57, %v946_v14 }
  0x6b   : > { %1274 = vmatmul.msk.bf16.gmra.mxu3 %vm286_vm2, %v518_v17  ;;  %1280 = vmatmul.msk.bf16.gmra.mxu0 %vm286_vm2, %v640_v18  ;;  %v901_v17 = vunpack.c.l.b16 %v897_v8 }
  0x6c   : > { %v920_v35 = vsel %vm903_vm6, %v911_v32, %v919_v33 }
  0x6d   : > { %v902_v24 = vpack.c.b16 %v901_v17, %v901_v17 }
  0x6f   : > { %v949_v13 = vshrl.u32 %v902_v24, 16  ;;  %v952_v27 = vshll.u32 %v902_v24, 16  ;;  %v1035_v40 = vrot.slane %v902_v24, 3 }
  0x71   : > { %v951_v34 = vrot.slane %v949_v13, 2 }
  0x78   : > { %1252 = vmatmul.msk.bf16.gmra.mxu2 %vm286_vm2, %v1540_v45  ;;  %1282 = vmatmul.msk.bf16.vlgmr.msra.gmra.mxu1 %vm286_vm2, %v712_v59  ;;  %v1029_v45 = vrot.slane %v1332_v38, 3 }
  0x7a   : > { %v1030_v49 = vsel %vm1025_vm7, %v1027_v10, %v1029_v45  ;;  %v1032_v29 = vsel %vm1025_vm7, %v1029_v45, %v1031_v58  ;;  %v954_v10 = vrot.slane %v952_v27, 3  ;;  %v793_v45 = vld [vmem:[%s1424_s30 + $0x30] sm:$0x3] }
  0x7b   : > { %1310 = vmatmul.msk.bf16.vlgmr.msra.gmra.mxu3 %vm286_vm2, %v920_v35  ;;  %1316 = vmatmul.msk.bf16.vlgmr.msra.gmra.mxu0 %vm286_vm2, %v1028_v37  ;;  %v719_v35 = vrot.slane %v1556_v61, 2  ;;  %v831_v37 = vrot.slane %v1610_v12, 2 }
  0x7c   : > { %v955_v39 = vor.u32 %v954_v10, %v951_v34 }
  0x7d   : > { %v720_v43 = vsel %vm709_vm5, %v717_v6, %v719_v35  ;;  %v832_v44 = vsel %vm709_vm5, %v829_v7, %v831_v37 }
  0x88   : > { %1283 = vmatmul.msk.bf16.gmra.mxu1 %vm286_vm2, %v714_v1  ;;  %1304 = vmatmul.msk.bf16.vlgmr.msra.gmra.mxu2 %vm286_vm2, %v826_v47  ;;  %v956_v47 = vsel %vm903_vm6, %v946_v14, %v955_v39 }
  0x8b   : > { %1311 = vmatmul.msk.bf16.gmra.mxu3 %vm286_vm2, %v929_v48  ;;  %1317 = vmatmul.msk.bf16.gmra.mxu0 %vm286_vm2, %v1030_v49  ;;  %v1036_v48 = vsel %vm1025_vm7, %v1033_v16, %v1035_v40  ;;  %v817_v49 = vunpack.c.l.b16 %v793_v45 }
  0x8d   : > { %v823_v30 = vpack.c.b16 %v817_v49, %v817_v49 }
  0x95   : > { %v320_v59 = vpop.f32.mrf.mxu1 }
  0x98   : > { %1284 = vmatmul.msk.bf16.gmra.mxu1 %vm286_vm2, %v716_v36  ;;  %1305 = vmatmul.msk.bf16.gmra.mxu2 %vm286_vm2, %v828_v60  ;;  %v315_v63 = vpop.f32.mrf.mxu0 }
  0x9b   : > { %v1612_v0 = vpop.f32.mrf.mxu2  ;;  %1312 = vmatmul.msk.bf16.gmra.mxu3 %vm286_vm2, %v938_v62  ;;  %1318 = vmatmul.msk.bf16.gmra.mxu0 %vm286_vm2, %v1032_v29 }
  0x9d   : > { %v322_v1 = vpop.f32.mrf.mxu1 }
  0x9e   : > { %v1618_v2 = vpop.f32.mrf.mxu3 }
  0xa0   : > { %v317_v3 = vpop.f32.mrf.mxu0 }
  0xa3   : > { %v1623_v9 = vpop.f32.mrf.mxu2 }
  0xa5   : > { %v362_v18 = vpop.f32.mrf.mxu1 }
  0xa6   : > { %v363_v21 = vadd.f32 %v362_v18, %v315_v63  ;;  %v1628_v25 = vpop.f32.mrf.mxu3 }
  0xa8   : > { %1285 = vmatmul.msk.bf16.gmra.mxu1 %vm286_vm2, %v718_v20  ;;  %1306 = vmatmul.msk.bf16.gmra.mxu2 %vm286_vm2, %v830_v19  ;;  %v668_v22 = vpop.f32.mrf.mxu0 }
  0xab   : > { %v330_v26 = vpop.f32.mrf.mxu2  ;;  %1313 = vmatmul.msk.bf16.gmra.mxu3 %vm286_vm2, %v947_v41  ;;  %1319 = vmatmul.msk.bf16.gmra.mxu0 %vm286_vm2, %v1034_v23 }
  0xad   : > { %v364_v28 = vpop.f32.mrf.mxu1 }
  0xae   : > { %v365_v31 = vadd.f32 %v364_v28, %v317_v3  ;;  %v546_v32 = vpop.f32.mrf.mxu3 }
  0xb0   : > { %v670_v33 = vpop.f32.mrf.mxu0 }
  0xb3   : > { %v332_v38 = vpop.f32.mrf.mxu2 }
  0xb5   : > { %v367_v42 = vpop.f32.mrf.mxu1 }
  0xb6   : > { %v368_v11 = vadd.f32 %v367_v42, %v320_v59  ;;  %v548_v46 = vpop.f32.mrf.mxu3  ;;  %v833_v59 = vrot.slane %v823_v30, 2 }
  0xb8   : > { %1286 = vmatmul.msk.bf16.gmra.mxu1 %vm286_vm2, %v720_v43  ;;  %1307 = vmatmul.msk.bf16.gmra.mxu2 %vm286_vm2, %v832_v44  ;;  %v673_v61 = vpop.f32.mrf.mxu0  ;;  %v834_v63 = vsel %vm709_vm5, %v831_v37, %v833_v59 }
  0xbb   : > { %v432_v51 = vpop.f32.mrf.mxu2  ;;  %1314 = vmatmul.msk.bf16.gmra.mxu3 %vm286_vm2, %v956_v47  ;;  %1320 = vmatmul.msk.bf16.gmra.mxu0 %vm286_vm2, %v1036_v48 }
  0xbc   : > { %v457_v52 = vadd.f32 %v432_v51, %v363_v21 }
  0xbd   : > { %v369_v53 = vpop.f32.mrf.mxu1 }
  0xbe   : > { %v571_v54 = vadd.f32 %v546_v32, %v457_v52  ;;  %v370_v55 = vadd.f32 %v369_v53, %v322_v1  ;;  %v551_v56 = vpop.f32.mrf.mxu3 }
  0xc0   : > { %v675_v57 = vpop.f32.mrf.mxu0  ;;  %v1647_v58 = vadd.f32 %v668_v22, %v571_v54 }
  0xc3   : > { %v434_v36 = vpop.f32.mrf.mxu2 }
  0xc4   : > { %v458_v60 = vadd.f32 %v434_v36, %v365_v31 }
  0xc5   : > { %v372_v62 = vpop.f32.mrf.mxu1 }
  0xc6   : > { %v572_v29 = vadd.f32 %v548_v46, %v458_v60  ;;  %v373_v12 = vadd.f32 %v372_v62, %v1612_v0  ;;  %v553_v15 = vpop.f32.mrf.mxu3 }
  0xc8   : > { %1308 = vmatmul.msk.bf16.gmra.mxu2 %vm286_vm2, %v834_v63  ;;  %v678_v50 = vpop.f32.mrf.mxu0  ;;  %v1652_v3 = vadd.f32 %v670_v33, %v572_v29 }
  0xcb   : > { %v437_v1 = vpop.f32.mrf.mxu2 }
  0xcc   : > { %v459_v4 = vadd.f32 %v437_v1, %v368_v11 }
  0xcd   : > { %v374_v5 = vpop.f32.mrf.mxu1 }
  0xce   : > { %v573_v6 = vadd.f32 %v551_v56, %v459_v4  ;;  %v375_v7 = vadd.f32 %v374_v5, %v1623_v9  ;;  %v556_v8 = vpop.f32.mrf.mxu3  ;;  %v1677_v5 = vld [vmem:[%s1744_s2] ss:$0 sm:$0xff] }
  0xd0   : > { %v680_v14 = vpop.f32.mrf.mxu0  ;;  %v1655_v16 = vadd.f32 %v673_v61, %v573_v6 }
  0xd3   : > { %v439_v17 = vpop.f32.mrf.mxu2 }
  0xd4   : > { %v460_v18 = vadd.f32 %v439_v17, %v370_v55 }
  0xd5   : > { %v377_v20 = vpop.f32.mrf.mxu1 }
  0xd6   : > { %v574_v0 = vadd.f32 %v553_v15, %v460_v18  ;;  %v378_v19 = vadd.f32 %v377_v20, %v330_v26  ;;  %v558_v21 = vpop.f32.mrf.mxu3 }
  0xd8   : > { %v683_v41 = vpop.f32.mrf.mxu0  ;;  %v1657_v22 = vadd.f32 %v675_v57, %v574_v0 }
  0xdb   : > { %v442_v23 = vpop.f32.mrf.mxu2 }
  0xdc   : > { %v461_v24 = vadd.f32 %v442_v23, %v373_v12 }
  0xdd   : > { %v379_v13 = vpop.f32.mrf.mxu1 }
  0xde   : > { %v575_v27 = vadd.f32 %v556_v8, %v461_v24  ;;  %v380_v28 = vadd.f32 %v379_v13, %v332_v38  ;;  %v561_v31 = vpop.f32.mrf.mxu3  ;;  %v1682_v8 = vld [vmem:[%s1745_s3] ss:$0 sm:$0xff] }
  0xe0   : > { %v685_v9 = vpop.f32.mrf.mxu0  ;;  %v1659_v32 = vadd.f32 %v678_v50, %v575_v27 }
  0xe3   : > { %v444_v33 = vpop.f32.mrf.mxu2 }
  0xe4   : > { %v462_v34 = vadd.f32 %v444_v33, %v375_v7 }
  0xe5   : > { %v382_v10 = vpop.f32.mrf.mxu1 }
  0xe6   : > { %v576_v35 = vadd.f32 %v558_v21, %v462_v34  ;;  %v383_v37 = vadd.f32 %v382_v10, %v1618_v2  ;;  %v563_v26 = vpop.f32.mrf.mxu3 }
  0xe8   : > { %v1662_v39 = vadd.f32 %v680_v14, %v576_v35  ;;  %v688_v40 = vpop.f32.mrf.mxu0 }
  0xeb   : > { %v447_v42 = vpop.f32.mrf.mxu2 }
  0xec   : > { %v463_v43 = vadd.f32 %v447_v42, %v378_v19 }
  0xed   : > { %v384_v44 = vpop.f32.mrf.mxu1 }
  0xee   : > { %v577_v11 = vadd.f32 %v561_v31, %v463_v43  ;;  %v385_v38 = vadd.f32 %v384_v44, %v1628_v25  ;;  %v566_v46 = vpop.f32.mrf.mxu3 }
  0xf0   : > { %v1665_v45 = vadd.f32 %v683_v41, %v577_v11  ;;  %v690_v61 = vpop.f32.mrf.mxu0 }
  0xf3   : > { %v449_v47 = vpop.f32.mrf.mxu2 }
  0xf4   : > { %v464_v48 = vadd.f32 %v449_v47, %v380_v28 }
  0xf5   : > { %v748_v49 = vpop.f32.mrf.mxu1 }
  0xf6   : > { %v578_v51 = vadd.f32 %v563_v26, %v464_v48  ;;  %v568_v52 = vpop.f32.mrf.mxu3  ;;  %v773_v15 = vadd.f32 %v748_v49, %v1647_v58 }
  0xf8   : > { %v1667_v2 = vadd.f32 %v685_v9, %v578_v51  ;;  %v1064_v54 = vpop.f32.mrf.mxu0 }
  0xfb   : > { %v452_v53 = vpop.f32.mrf.mxu2 }
  0xfc   : > { %v465_v30 = vadd.f32 %v452_v53, %v383_v37 }
  0xfd   : > { %v750_v57 = vpop.f32.mrf.mxu1 }
  0xfe   : > { %v579_v55 = vadd.f32 %v566_v46, %v465_v30  ;;  %v984_v56 = vpop.f32.mrf.mxu3  ;;  %v774_v17 = vadd.f32 %v750_v57, %v1652_v3 }
 0x100   : > { %v1669_v59 = vadd.f32 %v688_v40, %v579_v55  ;;  %v1066_v63 = vpop.f32.mrf.mxu0 }
 0x103   : > { %v454_v25 = vpop.f32.mrf.mxu2 }
 0x104   : > { %v466_v36 = vadd.f32 %v454_v25, %v385_v38 }
 0x105   : > { %v753_v12 = vpop.f32.mrf.mxu1 }
 0x106   : > { %v580_v60 = vadd.f32 %v568_v52, %v466_v36  ;;  %v986_v62 = vpop.f32.mrf.mxu3  ;;  %v775_v13 = vadd.f32 %v753_v12, %v1655_v16 }
 0x108   : > { %v1671_v29 = vadd.f32 %v690_v61, %v580_v60  ;;  %v1069_v14 = vpop.f32.mrf.mxu0 }
 0x10b   : > { %v862_v50 = vpop.f32.mrf.mxu2 }
 0x10c   : > { %v887_v1 = vadd.f32 %v862_v50, %v773_v15 }
 0x10d   : > { %v755_v18 = vpop.f32.mrf.mxu1 }
 0x10e   : > { %v1009_v4 = vadd.f32 %v984_v56, %v887_v1  ;;  %v989_v6 = vpop.f32.mrf.mxu3  ;;  %v776_v40 = vadd.f32 %v755_v18, %v1657_v22 }
 0x110   : > { %v1089_v7 = vadd.f32 %v1064_v54, %v1009_v4  ;;  %v1071_v31 = vpop.f32.mrf.mxu0 }
 0x112   : > { %v1103_v58 = vmul.f32 %v1677_v5, %v1089_v7 }
 0x113   : > { %v864_v20 = vpop.f32.mrf.mxu2 }
 0x114   : > { %v1117_v0 = vadd.f32 %v1682_v8, %v1103_v58  ;;  %v888_v19 = vadd.f32 %v864_v20, %v774_v17 }
 0x115   : > { %v758_v34 = vpop.f32.mrf.mxu1 }
 0x116   : > { %v1127_v21 = vmax.f32 %v1117_v0, 0.0  ;;  %v1010_v41 = vadd.f32 %v986_v62, %v888_v19  ;;  %v991_v24 = vpop.f32.mrf.mxu3  ;;  %v777_v51 = vadd.f32 %v758_v34, %v1659_v32 }
 0x118   : > { %v1137_v23 = vpack.c.bf16 %v1127_v21, %v1127_v21  ;;  %v1090_v3 = vadd.f32 %v1066_v63, %v1010_v41  ;;  %v1074_v38 = vpop.f32.mrf.mxu0 }
 0x11a   : > { %1148 = vst.msk [vmem:[%s1691_s22] sm:$0xf] %vm1147_vm8, %v1137_v23  ;;  %v1104_v27 = vmul.f32 %v1677_v5, %v1090_v3 }
 0x11b   : > { %v867_v28 = vpop.f32.mrf.mxu2 }
 0x11c   : > { %v1118_v9 = vadd.f32 %v1682_v8, %v1104_v27  ;;  %v889_v33 = vadd.f32 %v867_v28, %v775_v13 }
 0x11d   : > { %v760_v61 = vpop.f32.mrf.mxu1 }
 0x11e   : > { %v1128_v10 = vmax.f32 %v1118_v9, 0.0  ;;  %v1011_v35 = vadd.f32 %v989_v6, %v889_v33  ;;  %v994_v43 = vpop.f32.mrf.mxu3  ;;  %v778_v62 = vadd.f32 %v760_v61, %v1662_v39 }
 0x120   : > { %v1138_v37 = vpack.c.bf16 %v1128_v10, %v1128_v10  ;;  %v1091_v26 = vadd.f32 %v1069_v14, %v1011_v35  ;;  %v1076_v57 = vpop.f32.mrf.mxu0 }
 0x122   : > { %1149 = vst.msk [vmem:[%s1691_s22 + $0x4] sm:$0xf] %vm1147_vm8, %v1138_v37  ;;  %v1105_v16 = vmul.f32 %v1677_v5, %v1091_v26 }
 0x123   : > { %v869_v42 = vpop.f32.mrf.mxu2 }
 0x124   : > { %v1119_v44 = vadd.f32 %v1682_v8, %v1105_v16  ;;  %v890_v11 = vadd.f32 %v869_v42, %v776_v40 }
 0x125   : > { %v763_v60 = vpop.f32.mrf.mxu1 }
 0x126   : > { %v1129_v46 = vmax.f32 %v1119_v44, 0.0  ;;  %v1012_v47 = vadd.f32 %v991_v24, %v890_v11  ;;  %v996_v54 = vpop.f32.mrf.mxu3  ;;  %v779_v17 = vadd.f32 %v763_v60, %v1665_v45 }
 0x128   : > { %v1139_v48 = vpack.c.bf16 %v1129_v46, %v1129_v46  ;;  %v1092_v49 = vadd.f32 %v1071_v31, %v1012_v47  ;;  %v1079_v14 = vpop.f32.mrf.mxu0 }
 0x12a   : > { %1150 = vst.msk [vmem:[%s1691_s22 + $0x8] sm:$0xf] %vm1147_vm8, %v1139_v48  ;;  %v1106_v22 = vmul.f32 %v1677_v5, %v1092_v49 }
 0x12b   : > { %v872_v52 = vpop.f32.mrf.mxu2 }
 0x12c   : > { %v1120_v53 = vadd.f32 %v1682_v8, %v1106_v22  ;;  %v891_v30 = vadd.f32 %v872_v52, %v777_v51 }
 0x12d   : > { %v765_v58 = vpop.f32.mrf.mxu1 }
 0x12e   : > { %v1130_v55 = vmax.f32 %v1120_v53, 0.0  ;;  %v1013_v56 = vadd.f32 %v994_v43, %v891_v30  ;;  %v999_v4 = vpop.f32.mrf.mxu3  ;;  %v780_v24 = vadd.f32 %v765_v58, %v1667_v2 }
 0x130   : > { %v1140_v25 = vpack.c.bf16 %v1130_v55, %v1130_v55  ;;  %v1093_v36 = vadd.f32 %v1074_v38, %v1013_v56  ;;  %v1081_v13 = vpop.f32.mrf.mxu0 }
 0x132   : > { %1151 = vst.msk [vmem:[%s1691_s22 + $0xc] sm:$0xf] %vm1147_vm8, %v1140_v25  ;;  %v1107_v32 = vmul.f32 %v1677_v5, %v1093_v36 }
 0x133   : > { %v874_v63 = vpop.f32.mrf.mxu2 }
 0x134   : > { %v1121_v12 = vadd.f32 %v1682_v8, %v1107_v32  ;;  %v892_v15 = vadd.f32 %v874_v63, %v778_v62 }
 0x135   : > { %v768_v9 = vpop.f32.mrf.mxu1 }
 0x136   : > { %v1131_v50 = vmax.f32 %v1121_v12, 0.0  ;;  %v1014_v1 = vadd.f32 %v996_v54, %v892_v15  ;;  %v1001_v3 = vpop.f32.mrf.mxu3  ;;  %v781_v37 = vadd.f32 %v768_v9, %v1669_v59 }
 0x138   : > { %v1141_v6 = vpack.c.bf16 %v1131_v50, %v1131_v50  ;;  %v1094_v7 = vadd.f32 %v1076_v57, %v1014_v1  ;;  %v1084_v43 = vpop.f32.mrf.mxu0 }
 0x13a   : > { %1152 = vst.msk [vmem:[%s1691_s22 + $0x10] sm:$0xf] %vm1147_vm8, %v1141_v6  ;;  %v1108_v39 = vmul.f32 %v1677_v5, %v1094_v7 }
 0x13b   : > { %v877_v18 = vpop.f32.mrf.mxu2 }
 0x13c   : > { %v1122_v20 = vadd.f32 %v1682_v8, %v1108_v39  ;;  %v893_v0 = vadd.f32 %v877_v18, %v779_v17 }
 0x13d   : > { %v770_v38 = vpop.f32.mrf.mxu1 }
 0x13e   : > { %v1132_v19 = vmax.f32 %v1122_v20, 0.0  ;;  %v1015_v21 = vadd.f32 %v999_v4, %v893_v0  ;;  %v1004_v26 = vpop.f32.mrf.mxu3  ;;  %v782_v61 = vadd.f32 %v770_v38, %v1671_v29 }
 0x140   : > { %v1142_v41 = vpack.c.bf16 %v1132_v19, %v1132_v19  ;;  %v1095_v23 = vadd.f32 %v1079_v14, %v1015_v21  ;;  %v1086_v30 = vpop.f32.mrf.mxu0 }
 0x142   : > { %1153 = vst.msk [vmem:[%s1691_s22 + $0x14] sm:$0xf] %vm1147_vm8, %v1142_v41  ;;  %v1109_v45 = vmul.f32 %v1677_v5, %v1095_v23 }
 0x143   : > { %v879_v27 = vpop.f32.mrf.mxu2 }
 0x144   : > { %v1123_v28 = vadd.f32 %v1682_v8, %v1109_v45  ;;  %v894_v31 = vadd.f32 %v879_v27, %v780_v24 }
 0x146   : > { %v1133_v33 = vmax.f32 %v1123_v28, 0.0  ;;  %v1016_v34 = vadd.f32 %v1001_v3, %v894_v31  ;;  %v1006_v22 = vpop.f32.mrf.mxu3 }
 0x148   : > { %v1143_v10 = vpack.c.bf16 %v1133_v33, %v1133_v33  ;;  %v1096_v35 = vadd.f32 %v1081_v13, %v1016_v34 }
 0x14a   : > { %1154 = vst.msk [vmem:[%s1691_s22 + $0x18] sm:$0xf] %vm1147_vm8, %v1143_v10  ;;  %v1110_v2 = vmul.f32 %v1677_v5, %v1096_v35 }
 0x14b   : > { %v882_v40 = vpop.f32.mrf.mxu2 }
 0x14c   : > { %v1124_v16 = vadd.f32 %v1682_v8, %v1110_v2  ;;  %v895_v42 = vadd.f32 %v882_v40, %v781_v37 }
 0x14e   : > { %v1134_v44 = vmax.f32 %v1124_v16, 0.0  ;;  %v1017_v11 = vadd.f32 %v1004_v26, %v895_v42 }
 0x150   : > { %v1144_v46 = vpack.c.bf16 %v1134_v44, %v1134_v44  ;;  %v1097_v47 = vadd.f32 %v1084_v43, %v1017_v11 }
 0x152   : > { %1155 = vst.msk [vmem:[%s1691_s22 + $0x1c] sm:$0xf] %vm1147_vm8, %v1144_v46  ;;  %v1111_v59 = vmul.f32 %v1677_v5, %v1097_v47 }
 0x153   : > { %v884_v48 = vpop.f32.mrf.mxu2 }
 0x154   : > { %v1125_v49 = vadd.f32 %v1682_v8, %v1111_v59  ;;  %v896_v51 = vadd.f32 %v884_v48, %v782_v61 }
 0x156   : > { %v1135_v52 = vmax.f32 %v1125_v49, 0.0  ;;  %v1018_v53 = vadd.f32 %v1006_v22, %v896_v51 }
 0x158   : > { %v1145_v54 = vpack.c.bf16 %v1135_v52, %v1135_v52  ;;  %v1098_v55 = vadd.f32 %v1086_v30, %v1018_v53 }
 0x15a   : > { %1156 = vst.msk [vmem:[%s1691_s22 + $0x20] sm:$0xf] %vm1147_vm8, %v1145_v54  ;;  %v1112_v56 = vmul.f32 %v1677_v5, %v1098_v55 }
 0x15c   : > { %v1126_v29 = vadd.f32 %v1682_v8, %v1112_v56 }
 0x15e   : > { %v1136_v57 = vmax.f32 %v1126_v29, 0.0 }
 0x160   : > { %v1146_v25 = vpack.c.bf16 %v1136_v57, %v1136_v57 }
 0x162   : > { %1157 = vst.msk [vmem:[%s1691_s22 + $0x24] sm:$0xf] %vm1147_vm8, %v1146_v25 }
 0x163 PF: > { %s14_s15 = sadd.s32 1, %s1363_s15  }
 0x164   : > { %p11_p4 = scmp.ge.s32.totalorder %s14_s15, 10  }
 0x166   :  { %13 = sbr.rel (!%p11_p4) target bundleno = 1 (0x1), region = 74 }

// kernel: visual_encoder_forward.7
= control target key start
LH: loop header
LB: loop body
LE: loop exit
PB: predicated region body
PF: predicated region fallthrough
CT: control target
= control target key end

     0   :  { %s2848_s24 = smov 0   ;;  %s3417_s0 = inlined_call_operand.vmem [shape: bf16[2,512,64], index: 0, kind: input, shape index: {}]   ;;  %s3418_s1 = inlined_call_operand.vmem [shape: bf16[5,64,64], index: 1, kind: input, shape index: {}]   ;;  %s3419_s2 = inlined_call_operand.vmem [shape: f32[1,64], index: 2, kind: input, shape index: {}]   ;;  %s3420_s3 = inlined_call_operand.vmem [shape: f32[1,64], index: 3, kind: input, shape index: {}]   ;;  %s3421_s4 = inlined_call_operand.vmem [shape: bf16[1,64,32], index: 4, kind: input, shape index: {}]   ;;  %s3422_s5 = inlined_call_operand.vmem [shape: f32[1,32], index: 5, kind: input, shape index: {}]   ;;  %s3423_s6 = inlined_call_operand.vmem [shape: f32[1,32], index: 6, kind: input, shape index: {}]   ;;  %s3424_s7 = inlined_call_operand.vmem [shape: bf16[2,256,32], index: 7, kind: output, shape index: {}]  }
   0x1 LB: > { %s2179_s25 = sadd.s32 4294967295, %s2806_s24   ;;  %p2183_p0 = scmp.ge.s32.totalorder %s2806_s24, 1  ;;  %s2806_s24 = sphi %s2848_s24, %s17_s24  }
   0x2   : > { %p237_p1 = scmp.lt.s32.totalorder %s2806_s24, 3 }
   0x4   : > { %p238_p2 = pnand %p2183_p0, %p237_p1 }
   0x5   : > { %p269_p3 = scmp.lt.s32.totalorder (!%p238_p2), %s2179_s25, 1 }
   0x6   : > { %241 = sbr.rel (%p238_p2) target bundleno = 692 (0x2b4), region = 48 }
   0xb   : > { %v2715_v0 = vld [vmem:[%s3418_s1 + $0x38] sm:$0xff]  ;;  %v2714_v2 = vld [vmem:[%s3418_s1 + $0x30] sm:$0xff]  ;;  %s3426_s25 = smov (!%p269_p3, %s2179_s25), 1  ;;  %v2713_v4 = vld [vmem:[%s3418_s1 + $0x28] sm:$0xff]  ;;  %vm441_vm0 = vcmask 523264   ;;  %vm2091_vm1 = vcmask 257024  }
   0xc   : > { %v2707_v1 = vld [vmem:[%s3418_s1 + $0x18] sm:$0xff]  ;;  %2780 = vmatpush.bf16.msra.mxu2 %v2715_v0  ;;  %v2706_v3 = vld [vmem:[%s3418_s1 + $0x10] sm:$0xff]  ;;  %494 = vmatpush.bf16.msra.mxu0 %v2715_v0  ;;  %v2705_v5 = vld [vmem:[%s3418_s1 + $0x8] sm:$0xff]  ;;  %s2686_s15 = sshll.u32 %s3426_s25, 8  ;;  %s2687_s21 = sshll.u32 %s3426_s25, 7 }
   0xd   : > { %2784 = vmatpush.bf16.msra.mxu3 %v2707_v1  ;;  %639 = vmatpush.bf16.msra.mxu1 %v2707_v1  ;;  %v2712_v6 = vld [vmem:[%s3418_s1 + $0x20] sm:$0xff]  ;;  %s2886_s22 = scalar_lea.vmem %s3417_s0, %s2686_s15  ;;  %v2735_v8 = vld [vmem:[%s3418_s1 + $0x58] sm:$0xff]  ;;  %v2734_v15 = vld [vmem:[%s3418_s1 + $0x50] sm:$0xff]  ;;  %s3239_s27 = scalar_lea.vmem %s3424_s7, %s2687_s21 }
   0xe   : > { %v2704_v7 = vld [vmem:[%s3418_s1] sm:$0xff]  ;;  %v2755_v9 = vld [vmem:[%s3418_s1 + $0x78] sm:$0xff]  ;;  %v2754_v16 = vld [vmem:[%s3418_s1 + $0x70] sm:$0xff] }
   0xf   : > { %v2700_v10 = vld [vmem:[%s2886_s22 + $0x60] sm:$0xff]  ;;  %v2775_v14 = vld [vmem:[%s3418_s1 + $0x98] sm:$0xff]  ;;  %v2774_v17 = vld [vmem:[%s3418_s1 + $0x90] sm:$0xff] }
  0x10   : > { %2781 = vmatpush.bf16.msra.mxu2 %v2714_v2  ;;  %495 = vmatpush.bf16.msra.mxu0 %v2714_v2  ;;  %v2696_v11 = vld [vmem:[%s2886_s22 + $0x40] sm:$0xff]  ;;  %v2701_v18 = vld [vmem:[%s2886_s22 + $0x68] sm:$0xff]  ;;  %v2702_v22 = vld [vmem:[%s2886_s22 + $0x70] sm:$0xff] }
  0x11   : > { %2785 = vmatpush.bf16.msra.mxu3 %v2706_v3  ;;  %640 = vmatpush.bf16.msra.mxu1 %v2706_v3  ;;  %v2692_v12 = vld [vmem:[%s2886_s22 + $0x20] sm:$0xff]  ;;  %v2697_v19 = vld [vmem:[%s2886_s22 + $0x48] sm:$0xff]  ;;  %v2698_v23 = vld [vmem:[%s2886_s22 + $0x50] sm:$0xff] }
  0x12   : > { %v2688_v13 = vld [vmem:[%s2886_s22] sm:$0xff]  ;;  %v2693_v20 = vld [vmem:[%s2886_s22 + $0x28] sm:$0xff]  ;;  %v2694_v24 = vld [vmem:[%s2886_s22 + $0x30] sm:$0xff] }
  0x13   : > { %v2689_v21 = vld [vmem:[%s2886_s22 + $0x8] sm:$0xff]  ;;  %v2690_v25 = vld [vmem:[%s2886_s22 + $0x10] sm:$0xff]  ;;  %v2703_v29 = vld [vmem:[%s2886_s22 + $0x78] sm:$0xff] }
  0x14   : > { %2782 = vmatpush.bf16.msra.mxu2 %v2713_v4  ;;  %496 = vmatpush.bf16.msra.mxu0 %v2713_v4  ;;  %v2733_v26 = vld [vmem:[%s3418_s1 + $0x48] sm:$0xff]  ;;  %v2699_v30 = vld [vmem:[%s2886_s22 + $0x58] sm:$0xff]  ;;  %v2708_v33 = vld [vmem:[%s2886_s22 + $0x80] sm:$0xff] }
  0x15   : > { %2786 = vmatpush.bf16.msra.mxu3 %v2705_v5  ;;  %641 = vmatpush.bf16.msra.mxu1 %v2705_v5  ;;  %v2753_v27 = vld [vmem:[%s3418_s1 + $0x68] sm:$0xff]  ;;  %v2695_v31 = vld [vmem:[%s2886_s22 + $0x38] sm:$0xff]  ;;  %v2732_v34 = vld [vmem:[%s3418_s1 + $0x40] sm:$0xff] }
  0x16   : > { %v2773_v28 = vld [vmem:[%s3418_s1 + $0x88] sm:$0xff]  ;;  %v2691_v32 = vld [vmem:[%s2886_s22 + $0x18] sm:$0xff]  ;;  %v2752_v35 = vld [vmem:[%s3418_s1 + $0x60] sm:$0xff] }
  0x17   : > { %v2772_v36 = vld [vmem:[%s3418_s1 + $0x80] sm:$0xff]  ;;  %v2709_v37 = vld [vmem:[%s2886_s22 + $0x88] sm:$0xff]  ;;  %v2710_v38 = vld [vmem:[%s2886_s22 + $0x90] sm:$0xff] }
  0x18   : > { %2783 = vmatpush.bf16.msra.mxu2 %v2712_v6  ;;  %497 = vmatpush.bf16.msra.mxu0 %v2712_v6  ;;  %v2711_v39 = vld [vmem:[%s2886_s22 + $0x98] sm:$0xff]  ;;  %v2716_v41 = vld [vmem:[%s2886_s22 + $0x40] sm:$0xff]  ;;  %v2717_v52 = vld [vmem:[%s2886_s22 + $0x48] sm:$0xff] }
  0x19   : > { %2787 = vmatpush.bf16.msra.mxu3 %v2704_v7  ;;  %642 = vmatpush.bf16.msra.mxu1 %v2704_v7  ;;  %v2779_v40 = vld [vmem:[%s3421_s4 + $0x18] sm:$0xff]  ;;  %v2736_v42 = vld [vmem:[%s2886_s22 + $0x60] sm:$0xff]  ;;  %v2737_v53 = vld [vmem:[%s2886_s22 + $0x68] sm:$0xff] }
  0x1a   : > { %v2756_v43 = vld [vmem:[%s2886_s22 + $0x80] sm:$0xff]  ;;  %v2757_v54 = vld [vmem:[%s2886_s22 + $0x88] sm:$0xff]  ;;  %v2778_v60 = vld [vmem:[%s3421_s4 + $0x10] sm:$0xff] }
  0x1b   : > { %2284 = vmatmul.msk.bf16.vlgmr.msra.gmra.mxu2 %vm441_vm0, %v2700_v10  ;;  %2276 = vmatmul.msk.bf16.vlgmr.msra.gmra.mxu0 %vm441_vm0, %v2692_v12  ;;  %v2718_v0 = vld [vmem:[%s2886_s22 + $0x50] sm:$0xff] }
  0x1c   : > { %921 = vmatpush.bf16.msrb.mxu2 %v2735_v8  ;;  %2332 = vmatmul.msk.bf16.vlgmr.msra.gmra.mxu3 %vm441_vm0, %v2696_v11  ;;  %v2738_v1 = vld [vmem:[%s2886_s22 + $0x70] sm:$0xff] }
  0x1d   : > { %1235 = vmatpush.bf16.msrb.mxu3 %v2755_v9  ;;  %2324 = vmatmul.msk.bf16.vlgmr.msra.gmra.mxu1 %vm441_vm0, %v2688_v13  ;;  %v2758_v2 = vld [vmem:[%s2886_s22 + $0x90] sm:$0xff]  ;;  %v2759_v13 = vld [vmem:[%s2886_s22 + $0x98] sm:$0xff] }
  0x1e   : > { %1549 = vmatpush.bf16.msrb.mxu0 %v2775_v14  ;;  %1870 = vmatpush.bf16.msrb.mxu1 %v2779_v40 }
  0x20   : > { %922 = vmatpush.bf16.msrb.mxu2 %v2734_v15 }
  0x21   : > { %1236 = vmatpush.bf16.msrb.mxu3 %v2754_v16 }
  0x22   : > { %1550 = vmatpush.bf16.msrb.mxu0 %v2774_v17  ;;  %1871 = vmatpush.bf16.msrb.mxu1 %v2778_v60 }
  0x24   : > { %923 = vmatpush.bf16.msrb.mxu2 %v2733_v26 }
  0x25   : > { %1237 = vmatpush.bf16.msrb.mxu3 %v2753_v27 }
  0x26   : > { %1551 = vmatpush.bf16.msrb.mxu0 %v2773_v28 }
  0x28   : > { %924 = vmatpush.bf16.msrb.mxu2 %v2732_v34  ;;  %v2721_v34 = vld [vmem:[%s2886_s22 + $0x68] sm:$0xff] }
  0x29   : > { %1238 = vmatpush.bf16.msrb.mxu3 %v2752_v35  ;;  %v2741_v35 = vld [vmem:[%s2886_s22 + $0x88] sm:$0xff] }
  0x2a   : > { %1552 = vmatpush.bf16.msrb.mxu0 %v2772_v36  ;;  %v2761_v36 = vld [vmem:[%s2886_s22 + $0xa8] sm:$0xff] }
  0x2b   : > { %2285 = vmatmul.msk.bf16.gmra.mxu2 %vm441_vm0, %v2701_v18  ;;  %2277 = vmatmul.msk.bf16.gmra.mxu0 %vm441_vm0, %v2693_v20 }
  0x2c   : > { %2333 = vmatmul.msk.bf16.gmra.mxu3 %vm441_vm0, %v2697_v19 }
  0x2d   : > { %2325 = vmatmul.msk.bf16.gmra.mxu1 %vm441_vm0, %v2689_v21 }
  0x3b   : > { %2286 = vmatmul.msk.bf16.gmra.mxu2 %vm441_vm0, %v2702_v22  ;;  %2278 = vmatmul.msk.bf16.gmra.mxu0 %vm441_vm0, %v2694_v24 }
  0x3c   : > { %2334 = vmatmul.msk.bf16.gmra.mxu3 %vm441_vm0, %v2698_v23 }
  0x3d   : > { %2326 = vmatmul.msk.bf16.gmra.mxu1 %vm441_vm0, %v2690_v25  ;;  %v2760_v25 = vld [vmem:[%s2886_s22 + $0xa0] sm:$0xff] }
  0x4b   : > { %2287 = vmatmul.msk.bf16.gmra.mxu2 %vm441_vm0, %v2703_v29  ;;  %2279 = vmatmul.msk.bf16.gmra.mxu0 %vm441_vm0, %v2695_v31 }
  0x4c   : > { %2335 = vmatmul.msk.bf16.gmra.mxu3 %vm441_vm0, %v2699_v30 }
  0x4d   : > { %2327 = vmatmul.msk.bf16.gmra.mxu1 %vm441_vm0, %v2691_v32 }
  0x5b   : > { %2288 = vmatmul.msk.bf16.gmra.mxu2 %vm441_vm0, %v2708_v33  ;;  %2280 = vmatmul.msk.bf16.gmra.mxu0 %vm441_vm0, %v2696_v11  ;;  %v2719_v11 = vld [vmem:[%s2886_s22 + $0x58] sm:$0xff] }
  0x5c   : > { %2336 = vmatmul.msk.bf16.gmra.mxu3 %vm441_vm0, %v2700_v10 }
  0x5d   : > { %2328 = vmatmul.msk.bf16.gmra.mxu1 %vm441_vm0, %v2692_v12  ;;  %v2739_v12 = vld [vmem:[%s2886_s22 + $0x78] sm:$0xff] }
  0x6b   : > { %2289 = vmatmul.msk.bf16.gmra.mxu2 %vm441_vm0, %v2709_v37  ;;  %2281 = vmatmul.msk.bf16.gmra.mxu0 %vm441_vm0, %v2697_v19  ;;  %v2777_v19 = vld [vmem:[%s3421_s4 + $0x8] sm:$0xff] }
  0x6c   : > { %2337 = vmatmul.msk.bf16.gmra.mxu3 %vm441_vm0, %v2701_v18  ;;  %1872 = vmatpush.bf16.msrb.mxu1 %v2777_v19 }
  0x6d   : > { %2329 = vmatmul.msk.bf16.gmra.mxu1 %vm441_vm0, %v2693_v20 }
  0x7b   : > { %2290 = vmatmul.msk.bf16.gmra.mxu2 %vm441_vm0, %v2710_v38  ;;  %2282 = vmatmul.msk.bf16.gmra.mxu0 %vm441_vm0, %v2698_v23  ;;  %v2720_v23 = vld [vmem:[%s2886_s22 + $0x60] sm:$0xff] }
  0x7c   : > { %2338 = vmatmul.msk.bf16.gmra.mxu3 %vm441_vm0, %v2702_v22 }
  0x7d   : > { %2330 = vmatmul.msk.bf16.gmra.mxu1 %vm441_vm0, %v2694_v24  ;;  %v2740_v24 = vld [vmem:[%s2886_s22 + $0x80] sm:$0xff] }
  0x8b   : > { %2291 = vmatmul.msk.bf16.gmra.mxu2 %vm441_vm0, %v2711_v39  ;;  %2283 = vmatmul.msk.bf16.gmra.mxu0 %vm441_vm0, %v2699_v30 }
  0x8c   : > { %2339 = vmatmul.msk.bf16.gmra.mxu3 %vm441_vm0, %v2703_v29 }
  0x8d   : > { %2331 = vmatmul.msk.bf16.gmra.mxu1 %vm441_vm0, %v2695_v31 }
  0x98   : > { %v2982_v44 = vpop.f32.mrf.mxu0 }
  0x9b   : > { %2428 = vmatmul.msk.bf16.vlgmr.msrb.gmra.mxu2 %vm441_vm0, %v2716_v41  ;;  %2636 = vmatmul.msk.bf16.vlgmr.msrb.gmra.mxu0 %vm441_vm0, %v2756_v43 }
  0x9c   : > { %2532 = vmatmul.msk.bf16.vlgmr.msrb.gmra.mxu3 %vm441_vm0, %v2736_v42  ;;  %v2776_v42 = vld [vmem:[%s3421_s4] sm:$0xff] }
  0x9d   : > { %1873 = vmatpush.bf16.msrb.mxu1 %v2776_v42 }
  0x9e   : > { %v539_v45 = vpop.f32.mrf.mxu2 }
  0x9f   : > { %v684_v46 = vpop.f32.mrf.mxu3 }
  0xa0   : > { %v2987_v47 = vadd.f32 %v684_v46, %v539_v45  ;;  %v2989_v48 = vpop.f32.mrf.mxu0 }
  0xa6   : > { %v541_v49 = vpop.f32.mrf.mxu2 }
  0xa7   : > { %v686_v50 = vpop.f32.mrf.mxu3 }
  0xa8   : > { %v2991_v51 = vadd.f32 %v686_v50, %v541_v49  ;;  %v2996_v55 = vpop.f32.mrf.mxu0  ;;  %v2722_v49 = vld [vmem:[%s2886_s22 + $0x70] sm:$0xff] }
  0xa9   : > { %v2742_v50 = vld [vmem:[%s2886_s22 + $0x90] sm:$0xff] }
  0xab   : > { %2429 = vmatmul.msk.bf16.gmra.mxu2 %vm441_vm0, %v2717_v52  ;;  %2637 = vmatmul.msk.bf16.gmra.mxu0 %vm441_vm0, %v2757_v54  ;;  %v2762_v52 = vld [vmem:[%s2886_s22 + $0xb0] sm:$0xff]  ;;  %v644_v54 = vpop.f32.mrf.mxu1 }
  0xac   : > { %2533 = vmatmul.msk.bf16.gmra.mxu3 %vm441_vm0, %v2737_v53 }
  0xae   : > { %v544_v56 = vpop.f32.mrf.mxu2 }
  0xaf   : > { %v689_v57 = vpop.f32.mrf.mxu3 }
  0xb0   : > { %v3001_v58 = vadd.f32 %v689_v57, %v544_v56  ;;  %v3003_v59 = vpop.f32.mrf.mxu0 }
  0xb6   : > { %v546_v61 = vpop.f32.mrf.mxu2 }
  0xb7   : > { %v691_v62 = vpop.f32.mrf.mxu3 }
  0xb8   : > { %v3008_v63 = vadd.f32 %v691_v62, %v546_v61  ;;  %v3013_v3 = vpop.f32.mrf.mxu0  ;;  %v646_v62 = vpop.f32.mrf.mxu1 }
  0xb9   : > { %v647_v42 = vadd.f32 %v646_v62, %v2989_v48 }
  0xbb   : > { %2430 = vmatmul.msk.bf16.gmra.mxu2 %vm441_vm0, %v2718_v0  ;;  %2638 = vmatmul.msk.bf16.gmra.mxu0 %vm441_vm0, %v2758_v2 }
  0xbc   : > { %2534 = vmatmul.msk.bf16.gmra.mxu3 %vm441_vm0, %v2738_v1 }
  0xbe   : > { %v549_v4 = vpop.f32.mrf.mxu2 }
  0xbf   : > { %v694_v5 = vpop.f32.mrf.mxu3 }
  0xc0   : > { %v3018_v6 = vadd.f32 %v694_v5, %v549_v4  ;;  %v3020_v7 = vpop.f32.mrf.mxu0  ;;  %v2723_v4 = vld [vmem:[%s2886_s22 + $0x78] sm:$0xff] }
  0xc1   : > { %v2743_v5 = vld [vmem:[%s2886_s22 + $0x98] sm:$0xff] }
  0xc6   : > { %v551_v8 = vpop.f32.mrf.mxu2 }
  0xc7   : > { %v696_v9 = vpop.f32.mrf.mxu3 }
  0xc8   : > { %v3022_v10 = vadd.f32 %v696_v9, %v551_v8  ;;  %v3027_v14 = vpop.f32.mrf.mxu0  ;;  %v2763_v8 = vld [vmem:[%s2886_s22 + $0xb8] sm:$0xff] }
  0xcb   : > { %2431 = vmatmul.msk.bf16.gmra.mxu2 %vm441_vm0, %v2719_v11  ;;  %2639 = vmatmul.msk.bf16.gmra.mxu0 %vm441_vm0, %v2759_v13  ;;  %v649_v13 = vpop.f32.mrf.mxu1 }
  0xcc   : > { %2535 = vmatmul.msk.bf16.gmra.mxu3 %vm441_vm0, %v2739_v12 }
  0xce   : > { %v554_v15 = vpop.f32.mrf.mxu2 }
  0xcf   : > { %v699_v16 = vpop.f32.mrf.mxu3 }
  0xd0   : > { %v3032_v17 = vadd.f32 %v699_v16, %v554_v15  ;;  %v3034_v18 = vpop.f32.mrf.mxu0 }
  0xd6   : > { %v556_v20 = vpop.f32.mrf.mxu2 }
  0xd7   : > { %v701_v21 = vpop.f32.mrf.mxu3 }
  0xd8   : > { %v3039_v22 = vadd.f32 %v701_v21, %v556_v20  ;;  %v3044_v26 = vpop.f32.mrf.mxu0 }
  0xdb   : > { %2432 = vmatmul.msk.bf16.gmra.mxu2 %vm441_vm0, %v2720_v23  ;;  %2640 = vmatmul.msk.bf16.gmra.mxu0 %vm441_vm0, %v2760_v25  ;;  %v2724_v23 = vld [vmem:[%s2886_s22 + $0x80] sm:$0xff] }
  0xdc   : > { %2536 = vmatmul.msk.bf16.gmra.mxu3 %vm441_vm0, %v2740_v24  ;;  %v2744_v24 = vld [vmem:[%s2886_s22 + $0xa0] sm:$0xff] }
  0xdd   : > { %v2764_v25 = vld [vmem:[%s2886_s22 + $0xc0] sm:$0xff] }
  0xde   : > { %v559_v27 = vpop.f32.mrf.mxu2 }
  0xdf   : > { %v704_v28 = vpop.f32.mrf.mxu3 }
  0xe0   : > { %v3049_v29 = vadd.f32 %v704_v28, %v559_v27  ;;  %v3051_v30 = vpop.f32.mrf.mxu0  ;;  %v651_v27 = vpop.f32.mrf.mxu1 }
  0xe6   : > { %v561_v31 = vpop.f32.mrf.mxu2 }
  0xe7   : > { %v706_v32 = vpop.f32.mrf.mxu3 }
  0xe8   : > { %v3053_v33 = vadd.f32 %v706_v32, %v561_v31  ;;  %v3058_v37 = vpop.f32.mrf.mxu0  ;;  %v645_v31 = vadd.f32 %v644_v54, %v2982_v44  ;;  %v2765_v44 = vld [vmem:[%s2886_s22 + $0xc8] sm:$0xff] }
  0xeb   : > { %2433 = vmatmul.msk.bf16.gmra.mxu2 %vm441_vm0, %v2721_v34  ;;  %2641 = vmatmul.msk.bf16.gmra.mxu0 %vm441_vm0, %v2761_v36 }
  0xec   : > { %2537 = vmatmul.msk.bf16.gmra.mxu3 %vm441_vm0, %v2741_v35 }
  0xee   : > { %v564_v38 = vpop.f32.mrf.mxu2 }
  0xef   : > { %v709_v39 = vpop.f32.mrf.mxu3 }
  0xf0   : > { %v3063_v40 = vadd.f32 %v709_v39, %v564_v38  ;;  %v3065_v41 = vpop.f32.mrf.mxu0  ;;  %v654_v39 = vpop.f32.mrf.mxu1 }
  0xf6   : > { %v566_v43 = vpop.f32.mrf.mxu2 }
  0xf7   : > { %v711_v45 = vpop.f32.mrf.mxu3 }
  0xf8   : > { %v3070_v46 = vadd.f32 %v711_v45, %v566_v43  ;;  %v3075_v53 = vpop.f32.mrf.mxu0  ;;  %v3111_v45 = vld [vmem:[%s3419_s2] ss:$0 sm:$0xff] }
  0xfb   : > { %2434 = vmatmul.msk.bf16.gmra.mxu2 %vm441_vm0, %v2722_v49  ;;  %2642 = vmatmul.msk.bf16.gmra.mxu0 %vm441_vm0, %v2762_v52 }
  0xfc   : > { %2538 = vmatmul.msk.bf16.gmra.mxu3 %vm441_vm0, %v2742_v50 }
  0xfe   : > { %v569_v56 = vpop.f32.mrf.mxu2 }
  0xff   : > { %v714_v57 = vpop.f32.mrf.mxu3 }
 0x100   : > { %v3080_v60 = vadd.f32 %v714_v57, %v569_v56  ;;  %v3082_v61 = vpop.f32.mrf.mxu0  ;;  %v2725_v56 = vld [vmem:[%s2886_s22 + $0x88] sm:$0xff] }
 0x101   : > { %v2745_v57 = vld [vmem:[%s2886_s22 + $0xa8] sm:$0xff] }
 0x106   : > { %v571_v0 = vpop.f32.mrf.mxu2 }
 0x107   : > { %v716_v1 = vpop.f32.mrf.mxu3 }
 0x108   : > { %v3084_v2 = vadd.f32 %v716_v1, %v571_v0  ;;  %v3089_v9 = vpop.f32.mrf.mxu0  ;;  %v3120_v0 = vld [vmem:[%s3420_s3] ss:$0 sm:$0xff] }
 0x10b   : > { %2435 = vmatmul.msk.bf16.gmra.mxu2 %vm441_vm0, %v2723_v4  ;;  %2643 = vmatmul.msk.bf16.gmra.mxu0 %vm441_vm0, %v2763_v8  ;;  %v650_v4 = vadd.f32 %v649_v13, %v2996_v55  ;;  %v652_v55 = vadd.f32 %v651_v27, %v3003_v59  ;;  %v655_v59 = vadd.f32 %v654_v39, %v3013_v3 }
 0x10c   : > { %2539 = vmatmul.msk.bf16.gmra.mxu3 %vm441_vm0, %v2743_v5  ;;  %v656_v5 = vpop.f32.mrf.mxu1 }
 0x10d   : > { %v657_v3 = vadd.f32 %v656_v5, %v3020_v7 }
 0x10e   : > { %v574_v11 = vpop.f32.mrf.mxu2 }
 0x10f   : > { %v719_v12 = vpop.f32.mrf.mxu3 }
 0x110   : > { %v3094_v15 = vadd.f32 %v719_v12, %v574_v11  ;;  %v3096_v16 = vpop.f32.mrf.mxu0 }
 0x116   : > { %v576_v19 = vpop.f32.mrf.mxu2 }
 0x117   : > { %v721_v20 = vpop.f32.mrf.mxu3 }
 0x118   : > { %v3098_v21 = vadd.f32 %v721_v20, %v576_v19  ;;  %v1554_v28 = vpop.f32.mrf.mxu0 }
 0x11b   : > { %2436 = vmatmul.msk.bf16.gmra.mxu2 %vm441_vm0, %v2724_v23  ;;  %2644 = vmatmul.msk.bf16.gmra.mxu0 %vm441_vm0, %v2764_v25 }
 0x11c   : > { %2540 = vmatmul.msk.bf16.gmra.mxu3 %vm441_vm0, %v2744_v24 }
 0x11e   : > { %v926_v32 = vpop.f32.mrf.mxu2 }
 0x11f   : > { %v1240_v34 = vpop.f32.mrf.mxu3  ;;  %v1006_v35 = vadd.f32 %v926_v32, %v645_v31 }
 0x120   : > { %v1556_v38 = vpop.f32.mrf.mxu0 }
 0x121   : > { %v1320_v36 = vadd.f32 %v1240_v34, %v1006_v35 }
 0x123   : > { %v1634_v43 = vadd.f32 %v1554_v28, %v1320_v36  ;;  %v659_v36 = vpop.f32.mrf.mxu1 }
 0x124   : > { %v660_v7 = vadd.f32 %v659_v36, %v3027_v14 }
 0x125   : > { %v1670_v54 = vmul.f32 %v3111_v45, %v1634_v43  ;;  %v2746_v43 = vld [vmem:[%s2886_s22 + $0xb0] sm:$0xff] }
 0x126   : > { %v928_v49 = vpop.f32.mrf.mxu2 }
 0x127   : > { %v1242_v50 = vpop.f32.mrf.mxu3  ;;  %v1007_v52 = vadd.f32 %v928_v49, %v647_v42  ;;  %v1706_v8 = vadd.f32 %v3120_v0, %v1670_v54  ;;  %v2726_v42 = vld [vmem:[%s2886_s22 + $0x90] sm:$0xff] }
 0x128   : > { %v1559_v62 = vpop.f32.mrf.mxu0  ;;  %v2766_v49 = vld [vmem:[%s2886_s22 + $0xd0] sm:$0xff] }
 0x129   : > { %v1321_v48 = vadd.f32 %v1242_v50, %v1007_v52  ;;  %v1738_v24 = vmax.f32 %v1706_v8, 0.0 }
 0x12b   : > { %v1635_v1 = vadd.f32 %v1556_v38, %v1321_v48  ;;  %2437 = vmatmul.msk.bf16.gmra.mxu2 %vm441_vm0, %v2725_v56  ;;  %2645 = vmatmul.msk.bf16.gmra.mxu0 %vm441_vm0, %v2765_v44 }
 0x12c   : > { %2541 = vmatmul.msk.bf16.gmra.mxu3 %vm441_vm0, %v2745_v57 }
 0x12d   : > { %v1671_v11 = vmul.f32 %v3111_v45, %v1635_v1 }
 0x12e   : > { %v931_v12 = vpop.f32.mrf.mxu2 }
 0x12f   : > { %v1245_v19 = vpop.f32.mrf.mxu3  ;;  %v1707_v20 = vadd.f32 %v3120_v0, %v1671_v11  ;;  %v1008_v23 = vadd.f32 %v931_v12, %v650_v4  ;;  %v661_v4 = vpop.f32.mrf.mxu1 }
 0x130   : > { %v1561_v31 = vpop.f32.mrf.mxu0 }
 0x131   : > { %v1739_v25 = vmax.f32 %v1707_v20, 0.0  ;;  %v1322_v28 = vadd.f32 %v1245_v19, %v1008_v23 }
 0x133   : > { %v1770_v32 = vpack.c.bf16 %v1739_v25, %v1738_v24  ;;  %v1636_v13 = vadd.f32 %v1559_v62, %v1322_v28  ;;  %v2727_v28 = vld [vmem:[%s2886_s22 + $0x98] sm:$0xff] }
 0x135   : > { %2668 = vmatmul.msk.bf16.vlgmr.msrb.gmra.mxu1 %vm441_vm0, %v1770_v32  ;;  %v1672_v50 = vmul.f32 %v3111_v45, %v1636_v13  ;;  %v2767_v32 = vld [vmem:[%s2886_s22 + $0xd8] sm:$0xff] }
 0x136   : > { %v933_v34 = vpop.f32.mrf.mxu2 }
 0x137   : > { %v1247_v35 = vpop.f32.mrf.mxu3  ;;  %v1009_v38 = vadd.f32 %v933_v34, %v652_v55  ;;  %v1708_v44 = vadd.f32 %v3120_v0, %v1672_v50 }
 0x138   : > { %v1564_v56 = vpop.f32.mrf.mxu0 }
 0x139   : > { %v1323_v52 = vadd.f32 %v1247_v35, %v1009_v38  ;;  %v1740_v12 = vmax.f32 %v1708_v44, 0.0  ;;  %v664_v35 = vpop.f32.mrf.mxu1 }
 0x13b   : > { %v1637_v57 = vadd.f32 %v1561_v31, %v1323_v52  ;;  %2438 = vmatmul.msk.bf16.gmra.mxu2 %vm441_vm0, %v2726_v42  ;;  %2646 = vmatmul.msk.bf16.gmra.mxu0 %vm441_vm0, %v2766_v49  ;;  %v2747_v31 = vld [vmem:[%s2886_s22 + $0xb8] sm:$0xff] }
 0x13c   : > { %2542 = vmatmul.msk.bf16.gmra.mxu3 %vm441_vm0, %v2746_v43 }
 0x13d   : > { %v1673_v27 = vmul.f32 %v3111_v45, %v1637_v57 }
 0x13e   : > { %v936_v54 = vpop.f32.mrf.mxu2 }
 0x13f   : > { %v1250_v48 = vpop.f32.mrf.mxu3  ;;  %v1010_v62 = vadd.f32 %v936_v54, %v655_v59  ;;  %v1709_v1 = vadd.f32 %v3120_v0, %v1673_v27  ;;  %v662_v54 = vadd.f32 %v661_v4, %v3034_v18  ;;  %v665_v18 = vadd.f32 %v664_v35, %v3044_v26 }
 0x140   : > { %v1566_v11 = vpop.f32.mrf.mxu0 }
 0x141   : > { %v1324_v8 = vadd.f32 %v1250_v48, %v1010_v62  ;;  %v1741_v19 = vmax.f32 %v1709_v1, 0.0  ;;  %v666_v14 = vpop.f32.mrf.mxu1 }
 0x142   : > { %v667_v26 = vadd.f32 %v666_v14, %v3051_v30 }
 0x143   : > { %v1771_v20 = vpack.c.bf16 %v1741_v19, %v1740_v12  ;;  %v1638_v39 = vadd.f32 %v1564_v56, %v1324_v8  ;;  %v2728_v8 = vld [vmem:[%s2886_s22 + $0xa0] sm:$0xff] }
 0x144   : > { %v2768_v12 = vld [vmem:[%s2886_s22 + $0xe0] sm:$0xff] }
 0x145   : > { %2669 = vmatmul.msk.bf16.gmra.mxu1 %vm441_vm0, %v1771_v20  ;;  %v1674_v55 = vmul.f32 %v3111_v45, %v1638_v39 }
 0x146   : > { %v938_v23 = vpop.f32.mrf.mxu2 }
 0x147   : > { %v1252_v24 = vpop.f32.mrf.mxu3  ;;  %v1011_v25 = vadd.f32 %v938_v23, %v657_v3  ;;  %v1710_v42 = vadd.f32 %v3120_v0, %v1674_v55 }
 0x148   : > { %v1569_v34 = vpop.f32.mrf.mxu0 }
 0x149   : > { %v1325_v13 = vadd.f32 %v1252_v24, %v1011_v25  ;;  %v1742_v59 = vmax.f32 %v1710_v42, 0.0 }
 0x14b   : > { %v1639_v38 = vadd.f32 %v1566_v11, %v1325_v13  ;;  %2439 = vmatmul.msk.bf16.gmra.mxu2 %vm441_vm0, %v2727_v28  ;;  %2647 = vmatmul.msk.bf16.gmra.mxu0 %vm441_vm0, %v2767_v32  ;;  %v2748_v11 = vld [vmem:[%s2886_s22 + $0xc0] sm:$0xff]  ;;  %v669_v28 = vpop.f32.mrf.mxu1 }
 0x14c   : > { %2543 = vmatmul.msk.bf16.gmra.mxu3 %vm441_vm0, %v2747_v31  ;;  %v670_v30 = vadd.f32 %v669_v28, %v3058_v37  ;;  %v2770_v28 = vld [vmem:[%s2886_s22 + $0xf0] sm:$0xff] }
 0x14d   : > { %v1675_v5 = vmul.f32 %v3111_v45, %v1639_v38 }
 0x14e   : > { %v941_v43 = vpop.f32.mrf.mxu2 }
 0x14f   : > { %v1255_v49 = vpop.f32.mrf.mxu3  ;;  %v1012_v50 = vadd.f32 %v941_v43, %v660_v7  ;;  %v1711_v52 = vadd.f32 %v3120_v0, %v1675_v5 }
 0x150   : > { %v1571_v57 = vpop.f32.mrf.mxu0 }
 0x151   : > { %v1326_v56 = vadd.f32 %v1255_v49, %v1012_v50  ;;  %v1743_v27 = vmax.f32 %v1711_v52, 0.0  ;;  %v2729_v49 = vld [vmem:[%s2886_s22 + $0xa8] sm:$0xff] }
 0x152   : > { %v2749_v50 = vld [vmem:[%s2886_s22 + $0xc8] sm:$0xff] }
 0x153   : > { %v1772_v44 = vpack.c.bf16 %v1743_v27, %v1742_v59  ;;  %v1640_v36 = vadd.f32 %v1569_v34, %v1326_v56  ;;  %v2769_v52 = vld [vmem:[%s2886_s22 + $0xe8] sm:$0xff]  ;;  %v671_v56 = vpop.f32.mrf.mxu1 }
 0x154   : > { %v672_v37 = vadd.f32 %v671_v56, %v3065_v41 }
 0x155   : > { %2670 = vmatmul.msk.bf16.gmra.mxu1 %vm441_vm0, %v1772_v44  ;;  %v1676_v19 = vmul.f32 %v3111_v45, %v1640_v36 }
 0x156   : > { %v943_v48 = vpop.f32.mrf.mxu2 }
 0x157   : > { %v1257_v62 = vpop.f32.mrf.mxu3  ;;  %v1013_v1 = vadd.f32 %v943_v48, %v662_v54  ;;  %v1712_v23 = vadd.f32 %v3120_v0, %v1676_v19 }
 0x158   : > { %v1574_v3 = vpop.f32.mrf.mxu0 }
 0x159   : > { %v1327_v20 = vadd.f32 %v1257_v62, %v1013_v1  ;;  %v1744_v34 = vmax.f32 %v1712_v23, 0.0 }
 0x15b   : > { %v1641_v39 = vadd.f32 %v1571_v57, %v1327_v20  ;;  %2440 = vmatmul.msk.bf16.gmra.mxu2 %vm441_vm0, %v2728_v8  ;;  %2648 = vmatmul.msk.bf16.gmra.mxu0 %vm441_vm0, %v2768_v12  ;;  %v674_v20 = vpop.f32.mrf.mxu1 }
 0x15c   : > { %2544 = vmatmul.msk.bf16.gmra.mxu3 %vm441_vm0, %v2748_v11  ;;  %v675_v41 = vadd.f32 %v674_v20, %v3075_v53 }
 0x15d   : > { %v1677_v4 = vmul.f32 %v3111_v45, %v1641_v39 }
 0x15e   : > { %v946_v24 = vpop.f32.mrf.mxu2 }
 0x15f   : > { %v1260_v25 = vpop.f32.mrf.mxu3  ;;  %v1014_v31 = vadd.f32 %v946_v24, %v665_v18  ;;  %v1713_v32 = vadd.f32 %v3120_v0, %v1677_v4  ;;  %v2730_v24 = vld [vmem:[%s2886_s22 + $0xb0] sm:$0xff] }
 0x160   : > { %v1576_v13 = vpop.f32.mrf.mxu0 }
 0x161   : > { %v1328_v55 = vadd.f32 %v1260_v25, %v1014_v31  ;;  %v1745_v38 = vmax.f32 %v1713_v32, 0.0  ;;  %v2750_v25 = vld [vmem:[%s2886_s22 + $0xd0] sm:$0xff] }
 0x163   : > { %v1773_v7 = vpack.c.bf16 %v1745_v38, %v1744_v34  ;;  %v1642_v35 = vadd.f32 %v1574_v3, %v1328_v55  ;;  %v676_v34 = vpop.f32.mrf.mxu1 }
 0x164   : > { %v677_v53 = vadd.f32 %v676_v34, %v3082_v61 }
 0x165   : > { %2671 = vmatmul.msk.bf16.gmra.mxu1 %vm441_vm0, %v1773_v7  ;;  %v1678_v57 = vmul.f32 %v3111_v45, %v1642_v35 }
 0x166   : > { %v948_v5 = vpop.f32.mrf.mxu2 }
 0x167   : > { %v1262_v42 = vpop.f32.mrf.mxu3  ;;  %v1015_v43 = vadd.f32 %v948_v5, %v667_v26  ;;  %v1714_v54 = vadd.f32 %v3120_v0, %v1678_v57 }
 0x168   : > { %v1579_v27 = vpop.f32.mrf.mxu0 }
 0x169   : > { %v1329_v59 = vadd.f32 %v1262_v42, %v1015_v43  ;;  %v1746_v8 = vmax.f32 %v1714_v54, 0.0  ;;  %v2751_v54 = vld [vmem:[%s2886_s22 + $0xd8] sm:$0xff] }
 0x16b   : > { %v1643_v44 = vadd.f32 %v1576_v13, %v1329_v59  ;;  %2441 = vmatmul.msk.bf16.gmra.mxu2 %vm441_vm0, %v2729_v49  ;;  %2649 = vmatmul.msk.bf16.gmra.mxu0 %vm441_vm0, %v2769_v52 }
 0x16c   : > { %2545 = vmatmul.msk.bf16.gmra.mxu3 %vm441_vm0, %v2749_v50 }
 0x16d   : > { %v1679_v14 = vmul.f32 %v3111_v45, %v1643_v44 }
 0x16e   : > { %v951_v36 = vpop.f32.mrf.mxu2 }
 0x16f   : > { %v1265_v48 = vpop.f32.mrf.mxu3  ;;  %v1715_v62 = vadd.f32 %v3120_v0, %v1679_v14  ;;  %v1016_v1 = vadd.f32 %v951_v36, %v670_v30  ;;  %v2731_v30 = vld [vmem:[%s2886_s22 + $0xb8] sm:$0xff]  ;;  %v679_v14 = vpop.f32.mrf.mxu1 }
 0x170   : > { %v1581_v19 = vpop.f32.mrf.mxu0  ;;  %v2771_v36 = vld [vmem:[%s2886_s22 + $0xf8] sm:$0xff]  ;;  %v680_v61 = vadd.f32 %v679_v14, %v3089_v9 }
 0x171   : > { %v1747_v11 = vmax.f32 %v1715_v62, 0.0  ;;  %v1330_v12 = vadd.f32 %v1265_v48, %v1016_v1 }
 0x173   : > { %v1774_v3 = vpack.c.bf16 %v1747_v11, %v1746_v8  ;;  %v1644_v39 = vadd.f32 %v1579_v27, %v1330_v12 }
 0x175   : > { %2672 = vmatmul.msk.bf16.gmra.mxu1 %vm441_vm0, %v1774_v3  ;;  %v1680_v31 = vmul.f32 %v3111_v45, %v1644_v39 }
 0x176   : > { %v953_v18 = vpop.f32.mrf.mxu2 }
 0x177   : > { %v1267_v4 = vpop.f32.mrf.mxu3  ;;  %v1017_v23 = vadd.f32 %v953_v18, %v672_v37  ;;  %v1716_v38 = vadd.f32 %v3120_v0, %v1680_v31 }
 0x178   : > { %v1584_v55 = vpop.f32.mrf.mxu0 }
 0x179   : > { %v1331_v32 = vadd.f32 %v1267_v4, %v1017_v23  ;;  %v1748_v43 = vmax.f32 %v1716_v38, 0.0 }
 0x17b   : > { %v1645_v13 = vadd.f32 %v1581_v19, %v1331_v32  ;;  %2442 = vmatmul.msk.bf16.gmra.mxu2 %vm441_vm0, %v2730_v24  ;;  %2650 = vmatmul.msk.bf16.gmra.mxu0 %vm441_vm0, %v2770_v28  ;;  %v681_v24 = vpop.f32.mrf.mxu1 }
 0x17c   : > { %2546 = vmatmul.msk.bf16.gmra.mxu3 %vm441_vm0, %v2750_v25  ;;  %v682_v28 = vadd.f32 %v681_v24, %v3096_v16 }
 0x17d   : > { %v1681_v7 = vmul.f32 %v3111_v45, %v1645_v13 }
 0x17e   : > { %v956_v26 = vpop.f32.mrf.mxu2 }
 0x17f   : > { %v1270_v35 = vpop.f32.mrf.mxu3  ;;  %v1717_v5 = vadd.f32 %v3120_v0, %v1681_v7  ;;  %v1018_v42 = vadd.f32 %v956_v26, %v675_v41 }
 0x180   : > { %v1586_v52 = vpop.f32.mrf.mxu0 }
 0x181   : > { %v1749_v49 = vmax.f32 %v1717_v5, 0.0  ;;  %v1332_v50 = vadd.f32 %v1270_v35, %v1018_v42 }
 0x183   : > { %v1775_v56 = vpack.c.bf16 %v1749_v49, %v1748_v43  ;;  %v1646_v57 = vadd.f32 %v1584_v55, %v1332_v50 }
 0x185   : > { %2673 = vmatmul.msk.bf16.gmra.mxu1 %vm441_vm0, %v1775_v56  ;;  %v1682_v48 = vmul.f32 %v3111_v45, %v1646_v57 }
 0x186   : > { %v958_v59 = vpop.f32.mrf.mxu2 }
 0x187   : > { %v1272_v27 = vpop.f32.mrf.mxu3  ;;  %v1019_v44 = vadd.f32 %v958_v59, %v677_v53  ;;  %v1718_v11 = vadd.f32 %v3120_v0, %v1682_v48 }
 0x188   : > { %v1589_v1 = vpop.f32.mrf.mxu0 }
 0x189   : > { %v1333_v62 = vadd.f32 %v1272_v27, %v1019_v44  ;;  %v1750_v39 = vmax.f32 %v1718_v11, 0.0 }
 0x18b   : > { %v1647_v8 = vadd.f32 %v1586_v52, %v1333_v62  ;;  %2443 = vmatmul.msk.bf16.gmra.mxu2 %vm441_vm0, %v2731_v30  ;;  %2651 = vmatmul.msk.bf16.gmra.mxu0 %vm441_vm0, %v2771_v36 }
 0x18c   : > { %2547 = vmatmul.msk.bf16.gmra.mxu3 %vm441_vm0, %v2751_v54 }
 0x18d   : > { %v1683_v12 = vmul.f32 %v3111_v45, %v1647_v8 }
 0x18e   : > { %v961_v19 = vpop.f32.mrf.mxu2 }
 0x18f   : > { %v1275_v20 = vpop.f32.mrf.mxu3  ;;  %v1719_v3 = vadd.f32 %v3120_v0, %v1683_v12  ;;  %v1020_v37 = vadd.f32 %v961_v19, %v680_v61 }
 0x190   : > { %v1591_v23 = vpop.f32.mrf.mxu0 }
 0x191   : > { %v1751_v18 = vmax.f32 %v1719_v3, 0.0  ;;  %v1334_v4 = vadd.f32 %v1275_v20, %v1020_v37  ;;  %v3229_v20 = vld [vmem:[%s3423_s6] ss:$0 sm:$0xff] }
 0x193   : > { %v1776_v25 = vpack.c.bf16 %v1751_v18, %v1750_v39  ;;  %v1648_v31 = vadd.f32 %v1589_v1, %v1334_v4 }
 0x195   : > { %2674 = vmatmul.msk.bf16.gmra.mxu1 %vm441_vm0, %v1776_v25  ;;  %v1684_v13 = vmul.f32 %v3111_v45, %v1648_v31 }
 0x196   : > { %v963_v9 = vpop.f32.mrf.mxu2 }
 0x197   : > { %v1277_v32 = vpop.f32.mrf.mxu3  ;;  %v1021_v55 = vadd.f32 %v963_v9, %v682_v28  ;;  %v1720_v7 = vadd.f32 %v3120_v0, %v1684_v13 }
 0x198   : > { %v1594_v34 = vpop.f32.mrf.mxu0 }
 0x199   : > { %v1335_v41 = vadd.f32 %v1277_v32, %v1021_v55  ;;  %v1752_v43 = vmax.f32 %v1720_v7, 0.0 }
 0x19b   : > { %v1649_v38 = vadd.f32 %v1591_v23, %v1335_v41 }
 0x19d   : > { %v1685_v26 = vmul.f32 %v3111_v45, %v1649_v38 }
 0x19e   : > { %v966_v35 = vpop.f32.mrf.mxu2 }
 0x19f   : > { %v1280_v5 = vpop.f32.mrf.mxu3  ;;  %v1721_v42 = vadd.f32 %v3120_v0, %v1685_v26  ;;  %v1022_v16 = vadd.f32 %v966_v35, %v2987_v47 }
 0x1a0   : > { %v1596_v52 = vpop.f32.mrf.mxu0 }
 0x1a1   : > { %v1753_v49 = vmax.f32 %v1721_v42, 0.0  ;;  %v1336_v50 = vadd.f32 %v1280_v5, %v1022_v16 }
 0x1a3   : > { %v1777_v56 = vpack.c.bf16 %v1753_v49, %v1752_v43  ;;  %v1650_v53 = vadd.f32 %v1594_v34, %v1336_v50 }
 0x1a5   : > { %2675 = vmatmul.msk.bf16.gmra.mxu1 %vm441_vm0, %v1777_v56  ;;  %v1686_v44 = vmul.f32 %v3111_v45, %v1650_v53 }
 0x1a6   : > { %v968_v57 = vpop.f32.mrf.mxu2 }
 0x1a7   : > { %v1282_v59 = vpop.f32.mrf.mxu3  ;;  %v1023_v27 = vadd.f32 %v968_v57, %v2991_v51  ;;  %v1722_v36 = vadd.f32 %v3120_v0, %v1686_v44  ;;  %v3224_v51 = vld [vmem:[%s3422_s5] ss:$0 sm:$0xff] }
 0x1a8   : > { %v1599_v54 = vpop.f32.mrf.mxu0 }
 0x1a9   : > { %v1337_v30 = vadd.f32 %v1282_v59, %v1023_v27  ;;  %v1754_v61 = vmax.f32 %v1722_v36, 0.0 }
 0x1ab   : > { %v1651_v14 = vadd.f32 %v1596_v52, %v1337_v30 }
 0x1ad   : > { %v1687_v47 = vmul.f32 %v3111_v45, %v1651_v14 }
 0x1ae   : > { %v971_v48 = vpop.f32.mrf.mxu2 }
 0x1af   : > { %v1285_v62 = vpop.f32.mrf.mxu3  ;;  %v1723_v1 = vadd.f32 %v3120_v0, %v1687_v47  ;;  %v1024_v8 = vadd.f32 %v971_v48, %v3001_v58 }
 0x1b0   : > { %v1601_v19 = vpop.f32.mrf.mxu0 }
 0x1b1   : > { %v1755_v11 = vmax.f32 %v1723_v1, 0.0  ;;  %v1338_v12 = vadd.f32 %v1285_v62, %v1024_v8 }
 0x1b2   : > { %v1875_v3 = vpop.f32.mrf.mxu1 }
 0x1b3   : > { %v1959_v37 = vmul.f32 %v3224_v51, %v1875_v3  ;;  %v1778_v39 = vpack.c.bf16 %v1755_v11, %v1754_v61  ;;  %v1652_v18 = vadd.f32 %v1599_v54, %v1338_v12 }
 0x1b5   : > { %v1995_v58 = vadd.f32 %v3229_v20, %v1959_v37  ;;  %2676 = vmatmul.msk.bf16.gmra.mxu1 %vm441_vm0, %v1778_v39  ;;  %v1688_v28 = vmul.f32 %v3111_v45, %v1652_v18 }
 0x1b6   : > { %v973_v4 = vpop.f32.mrf.mxu2 }
 0x1b7   : > { %v1287_v23 = vpop.f32.mrf.mxu3  ;;  %v2027_v24 = vmax.f32 %v1995_v58, 0.0  ;;  %v1025_v25 = vadd.f32 %v973_v4, %v3008_v63  ;;  %v1724_v63 = vadd.f32 %v3120_v0, %v1688_v28 }
 0x1b8   : > { %v1604_v32 = vpop.f32.mrf.mxu0 }
 0x1b9   : > { %v2059_v31 = vpack.c.bf16 %v2027_v24, %v2027_v24  ;;  %v1339_v9 = vadd.f32 %v1287_v23, %v1025_v25  ;;  %v1756_v16 = vmax.f32 %v1724_v63, 0.0 }
 0x1ba   : > { %v1877_v55 = vpop.f32.mrf.mxu1 }
 0x1bb   : > { %2092 = vst.msk [vmem:[%s3239_s27] sm:$0xf] %vm2091_vm1, %v2059_v31  ;;  %v1653_v13 = vadd.f32 %v1601_v19, %v1339_v9  ;;  %v1960_v41 = vmul.f32 %v3224_v51, %v1877_v55 }
 0x1bd   : > { %v1689_v34 = vmul.f32 %v3111_v45, %v1653_v13  ;;  %v1996_v38 = vadd.f32 %v3229_v20, %v1960_v41 }
 0x1be   : > { %v976_v7 = vpop.f32.mrf.mxu2 }
 0x1bf   : > { %v1290_v26 = vpop.f32.mrf.mxu3  ;;  %v1725_v35 = vadd.f32 %v3120_v0, %v1689_v34  ;;  %v2028_v5 = vmax.f32 %v1996_v38, 0.0  ;;  %v1026_v42 = vadd.f32 %v976_v7, %v3018_v6 }
 0x1c0   : > { %v1606_v52 = vpop.f32.mrf.mxu0 }
 0x1c1   : > { %v1757_v43 = vmax.f32 %v1725_v35, 0.0  ;;  %v2060_v49 = vpack.c.bf16 %v2028_v5, %v2028_v5  ;;  %v1340_v50 = vadd.f32 %v1290_v26, %v1026_v42 }
 0x1c2   : > { %v1880_v56 = vpop.f32.mrf.mxu1 }
 0x1c3   : > { %2093 = vst.msk [vmem:[%s3239_s27 + $0x4] sm:$0xf] %vm2091_vm1, %v2060_v49  ;;  %v1961_v53 = vmul.f32 %v3224_v51, %v1880_v56  ;;  %v1779_v57 = vpack.c.bf16 %v1757_v43, %v1756_v16  ;;  %v1654_v59 = vadd.f32 %v1604_v32, %v1340_v50 }
 0x1c5   : > { %v1997_v27 = vadd.f32 %v3229_v20, %v1961_v53  ;;  %2677 = vmatmul.msk.bf16.gmra.mxu1 %vm441_vm0, %v1779_v57  ;;  %v1690_v14 = vmul.f32 %v3111_v45, %v1654_v59 }
 0x1c6   : > { %v978_v44 = vpop.f32.mrf.mxu2 }
 0x1c7   : > { %v1292_v30 = vpop.f32.mrf.mxu3  ;;  %v2029_v6 = vmax.f32 %v1997_v27, 0.0  ;;  %v1027_v54 = vadd.f32 %v978_v44, %v3022_v10  ;;  %v1726_v61 = vadd.f32 %v3120_v0, %v1690_v14 }
 0x1c8   : > { %v1609_v48 = vpop.f32.mrf.mxu0 }
 0x1c9   : > { %v2061_v36 = vpack.c.bf16 %v2029_v6, %v2029_v6  ;;  %v1341_v47 = vadd.f32 %v1292_v30, %v1027_v54  ;;  %v1758_v18 = vmax.f32 %v1726_v61, 0.0 }
 0x1ca   : > { %v1882_v62 = vpop.f32.mrf.mxu1 }
 0x1cb   : > { %2094 = vst.msk [vmem:[%s3239_s27 + $0x8] sm:$0xf] %vm2091_vm1, %v2061_v36  ;;  %v1655_v1 = vadd.f32 %v1606_v52, %v1341_v47  ;;  %v1962_v8 = vmul.f32 %v3224_v51, %v1882_v62 }
 0x1cd   : > { %v1691_v11 = vmul.f32 %v3111_v45, %v1655_v1  ;;  %v1998_v12 = vadd.f32 %v3229_v20, %v1962_v8 }
 0x1ce   : > { %v981_v19 = vpop.f32.mrf.mxu2 }
 0x1cf   : > { %v1295_v10 = vpop.f32.mrf.mxu3  ;;  %v1727_v3 = vadd.f32 %v3120_v0, %v1691_v11  ;;  %v2030_v37 = vmax.f32 %v1998_v12, 0.0  ;;  %v1028_v39 = vadd.f32 %v981_v19, %v3032_v17 }
 0x1d0   : > { %v1611_v24 = vpop.f32.mrf.mxu0 }
 0x1d1   : > { %v1759_v58 = vmax.f32 %v1727_v3, 0.0  ;;  %v2062_v4 = vpack.c.bf16 %v2030_v37, %v2030_v37  ;;  %v1342_v23 = vadd.f32 %v1295_v10, %v1028_v39 }
 0x1d2   : > { %v1885_v25 = vpop.f32.mrf.mxu1 }
 0x1d3   : > { %2095 = vst.msk [vmem:[%s3239_s27 + $0xc] sm:$0xf] %vm2091_vm1, %v2062_v4  ;;  %v1963_v28 = vmul.f32 %v3224_v51, %v1885_v25  ;;  %v1780_v31 = vpack.c.bf16 %v1759_v58, %v1758_v18  ;;  %v1656_v9 = vadd.f32 %v1609_v48, %v1342_v23 }
 0x1d5   : > { %v1999_v32 = vadd.f32 %v3229_v20, %v1963_v28  ;;  %2678 = vmatmul.msk.bf16.gmra.mxu1 %vm441_vm0, %v1780_v31  ;;  %v1692_v63 = vmul.f32 %v3111_v45, %v1656_v9 }
 0x1d6   : > { %v983_v55 = vpop.f32.mrf.mxu2 }
 0x1d7   : > { %v1297_v13 = vpop.f32.mrf.mxu3  ;;  %v2031_v17 = vmax.f32 %v1999_v32, 0.0  ;;  %v1029_v41 = vadd.f32 %v983_v55, %v3039_v22  ;;  %v1728_v42 = vadd.f32 %v3120_v0, %v1692_v63 }
 0x1d8   : > { %v1614_v7 = vpop.f32.mrf.mxu0 }
 0x1d9   : > { %v2063_v34 = vpack.c.bf16 %v2031_v17, %v2031_v17  ;;  %v1343_v38 = vadd.f32 %v1297_v13, %v1029_v41  ;;  %v1760_v53 = vmax.f32 %v1728_v42, 0.0 }
 0x1da   : > { %v1887_v26 = vpop.f32.mrf.mxu1 }
 0x1db   : > { %2096 = vst.msk [vmem:[%s3239_s27 + $0x10] sm:$0xf] %vm2091_vm1, %v2063_v34  ;;  %v1657_v35 = vadd.f32 %v1611_v24, %v1343_v38  ;;  %v1964_v5 = vmul.f32 %v3224_v51, %v1887_v26 }
 0x1dd   : > { %v1693_v16 = vmul.f32 %v3111_v45, %v1657_v35  ;;  %v2000_v43 = vadd.f32 %v3229_v20, %v1964_v5 }
 0x1de   : > { %v986_v49 = vpop.f32.mrf.mxu2 }
 0x1df   : > { %v1300_v22 = vpop.f32.mrf.mxu3  ;;  %v1729_v50 = vadd.f32 %v3120_v0, %v1693_v16  ;;  %v2032_v52 = vmax.f32 %v2000_v43, 0.0  ;;  %v1030_v56 = vadd.f32 %v986_v49, %v3049_v29 }
 0x1e0   : > { %v1616_v44 = vpop.f32.mrf.mxu0 }
 0x1e1   : > { %v1761_v57 = vmax.f32 %v1729_v50, 0.0  ;;  %v2064_v59 = vpack.c.bf16 %v2032_v52, %v2032_v52  ;;  %v1344_v27 = vadd.f32 %v1300_v22, %v1030_v56 }
 0x1e2   : > { %v1890_v30 = vpop.f32.mrf.mxu1 }
 0x1e3   : > { %2097 = vst.msk [vmem:[%s3239_s27 + $0x14] sm:$0xf] %vm2091_vm1, %v2064_v59  ;;  %v1965_v6 = vmul.f32 %v3224_v51, %v1890_v30  ;;  %v1781_v54 = vpack.c.bf16 %v1761_v57, %v1760_v53  ;;  %v1658_v14 = vadd.f32 %v1614_v7, %v1344_v27 }
 0x1e5   : > { %v2001_v36 = vadd.f32 %v3229_v20, %v1965_v6  ;;  %2679 = vmatmul.msk.bf16.gmra.mxu1 %vm441_vm0, %v1781_v54  ;;  %v1694_v1 = vmul.f32 %v3111_v45, %v1658_v14 }
 0x1e6   : > { %v988_v47 = vpop.f32.mrf.mxu2 }
 0x1e7   : > { %v1302_v48 = vpop.f32.mrf.mxu3  ;;  %v2033_v29 = vmax.f32 %v2001_v36, 0.0  ;;  %v1031_v62 = vadd.f32 %v988_v47, %v3053_v33  ;;  %v1730_v3 = vadd.f32 %v3120_v0, %v1694_v1 }
 0x1e8   : > { %v1619_v11 = vpop.f32.mrf.mxu0 }
 0x1e9   : > { %v2065_v8 = vpack.c.bf16 %v2033_v29, %v2033_v29  ;;  %v1345_v61 = vadd.f32 %v1302_v48, %v1031_v62  ;;  %v1762_v24 = vmax.f32 %v1730_v3, 0.0 }
 0x1ea   : > { %v1892_v12 = vpop.f32.mrf.mxu1 }
 0x1eb   : > { %2098 = vst.msk [vmem:[%s3239_s27 + $0x18] sm:$0xf] %vm2091_vm1, %v2065_v8  ;;  %v1659_v19 = vadd.f32 %v1616_v44, %v1345_v61  ;;  %v1966_v10 = vmul.f32 %v3224_v51, %v1892_v12 }
 0x1ed   : > { %v1695_v37 = vmul.f32 %v3111_v45, %v1659_v19  ;;  %v2002_v39 = vadd.f32 %v3229_v20, %v1966_v10 }
 0x1ee   : > { %v991_v18 = vpop.f32.mrf.mxu2 }
 0x1ef   : > { %v1305_v33 = vpop.f32.mrf.mxu3  ;;  %v1731_v58 = vadd.f32 %v3120_v0, %v1695_v37  ;;  %v2034_v4 = vmax.f32 %v2002_v39, 0.0  ;;  %v1032_v23 = vadd.f32 %v991_v18, %v3063_v40 }
 0x1f0   : > { %v1621_v9 = vpop.f32.mrf.mxu0 }
 0x1f1   : > { %v1763_v25 = vmax.f32 %v1731_v58, 0.0  ;;  %v2066_v28 = vpack.c.bf16 %v2034_v4, %v2034_v4  ;;  %v1346_v31 = vadd.f32 %v1305_v33, %v1032_v23 }
 0x1f2   : > { %v1895_v32 = vpop.f32.mrf.mxu1 }
 0x1f3   : > { %2099 = vst.msk [vmem:[%s3239_s27 + $0x1c] sm:$0xf] %vm2091_vm1, %v2066_v28  ;;  %v1967_v55 = vmul.f32 %v3224_v51, %v1895_v32  ;;  %v1782_v13 = vpack.c.bf16 %v1763_v25, %v1762_v24  ;;  %v1660_v17 = vadd.f32 %v1619_v11, %v1346_v31 }
 0x1f5   : > { %v2003_v41 = vadd.f32 %v3229_v20, %v1967_v55  ;;  %2680 = vmatmul.msk.bf16.gmra.mxu1 %vm441_vm0, %v1782_v13  ;;  %v1696_v7 = vmul.f32 %v3111_v45, %v1660_v17 }
 0x1f6   : > { %v993_v63 = vpop.f32.mrf.mxu2 }
 0x1f7   : > { %v1307_v34 = vpop.f32.mrf.mxu3  ;;  %v2035_v40 = vmax.f32 %v2003_v41, 0.0  ;;  %v1033_v38 = vadd.f32 %v993_v63, %v3070_v46  ;;  %v1732_v49 = vadd.f32 %v3120_v0, %v1696_v7 }
 0x1f8   : > { %v1624_v16 = vpop.f32.mrf.mxu0 }
 0x1f9   : > { %v2067_v26 = vpack.c.bf16 %v2035_v40, %v2035_v40  ;;  %v1347_v35 = vadd.f32 %v1307_v34, %v1033_v38  ;;  %v1764_v59 = vmax.f32 %v1732_v49, 0.0 }
 0x1fa   : > { %v1897_v5 = vpop.f32.mrf.mxu1 }
 0x1fb   : > { %2100 = vst.msk [vmem:[%s3239_s27 + $0x20] sm:$0xf] %vm2091_vm1, %v2067_v26  ;;  %v1661_v42 = vadd.f32 %v1621_v9, %v1347_v35  ;;  %v1968_v43 = vmul.f32 %v3224_v51, %v1897_v5 }
 0x1fd   : > { %v1697_v22 = vmul.f32 %v3111_v45, %v1661_v42  ;;  %v2004_v50 = vadd.f32 %v3229_v20, %v1968_v43 }
 0x1fe   : > { %v996_v52 = vpop.f32.mrf.mxu2 }
 0x1ff   : > { %v1310_v46 = vpop.f32.mrf.mxu3  ;;  %v1733_v56 = vadd.f32 %v3120_v0, %v1697_v22  ;;  %v2036_v53 = vmax.f32 %v2004_v50, 0.0  ;;  %v1034_v57 = vadd.f32 %v996_v52, %v3080_v60 }
 0x200   : > { %v1626_v47 = vpop.f32.mrf.mxu0 }
 0x201   : > { %v1765_v27 = vmax.f32 %v1733_v56, 0.0  ;;  %v2068_v44 = vpack.c.bf16 %v2036_v53, %v2036_v53  ;;  %v1348_v30 = vadd.f32 %v1310_v46, %v1034_v57 }
 0x202   : > { %v1900_v6 = vpop.f32.mrf.mxu1 }
 0x203   : > { %2101 = vst.msk [vmem:[%s3239_s27 + $0x24] sm:$0xf] %vm2091_vm1, %v2068_v44  ;;  %v1969_v54 = vmul.f32 %v3224_v51, %v1900_v6  ;;  %v1783_v14 = vpack.c.bf16 %v1765_v27, %v1764_v59  ;;  %v1662_v36 = vadd.f32 %v1624_v16, %v1348_v30 }
 0x205   : > { %v2005_v48 = vadd.f32 %v3229_v20, %v1969_v54  ;;  %2681 = vmatmul.msk.bf16.gmra.mxu1 %vm441_vm0, %v1783_v14  ;;  %v1698_v8 = vmul.f32 %v3111_v45, %v1662_v36 }
 0x206   : > { %v998_v29 = vpop.f32.mrf.mxu2 }
 0x207   : > { %v1312_v62 = vpop.f32.mrf.mxu3  ;;  %v2037_v60 = vmax.f32 %v2005_v48, 0.0  ;;  %v1035_v1 = vadd.f32 %v998_v29, %v3084_v2  ;;  %v1734_v3 = vadd.f32 %v3120_v0, %v1698_v8 }
 0x208   : > { %v1629_v23 = vpop.f32.mrf.mxu0 }
 0x209   : > { %v2069_v61 = vpack.c.bf16 %v2037_v60, %v2037_v60  ;;  %v1349_v11 = vadd.f32 %v1312_v62, %v1035_v1  ;;  %v1766_v24 = vmax.f32 %v1734_v3, 0.0 }
 0x20a   : > { %v1902_v12 = vpop.f32.mrf.mxu1 }
 0x20b   : > { %2102 = vst.msk [vmem:[%s3239_s27 + $0x28] sm:$0xf] %vm2091_vm1, %v2069_v61  ;;  %v1663_v19 = vadd.f32 %v1626_v47, %v1349_v11  ;;  %v1970_v10 = vmul.f32 %v3224_v51, %v1902_v12 }
 0x20d   : > { %v1699_v37 = vmul.f32 %v3111_v45, %v1663_v19  ;;  %v2006_v39 = vadd.f32 %v3229_v20, %v1970_v10 }
 0x20e   : > { %v1001_v18 = vpop.f32.mrf.mxu2 }
 0x20f   : > { %v1315_v33 = vpop.f32.mrf.mxu3  ;;  %v1735_v2 = vadd.f32 %v3120_v0, %v1699_v37  ;;  %v2038_v58 = vmax.f32 %v2006_v39, 0.0  ;;  %v1036_v4 = vadd.f32 %v1001_v18, %v3094_v15 }
 0x210   : > { %v1631_v26 = vpop.f32.mrf.mxu0 }
 0x211   : > { %v1767_v25 = vmax.f32 %v1735_v2, 0.0  ;;  %v2070_v28 = vpack.c.bf16 %v2038_v58, %v2038_v58  ;;  %v1350_v31 = vadd.f32 %v1315_v33, %v1036_v4 }
 0x212   : > { %v1905_v9 = vpop.f32.mrf.mxu1 }
 0x213   : > { %2103 = vst.msk [vmem:[%s3239_s27 + $0x2c] sm:$0xf] %vm2091_vm1, %v2070_v28  ;;  %v1971_v32 = vmul.f32 %v3224_v51, %v1905_v9  ;;  %v1784_v55 = vpack.c.bf16 %v1767_v25, %v1766_v24  ;;  %v1664_v13 = vadd.f32 %v1629_v23, %v1350_v31 }
 0x215   : > { %v2007_v17 = vadd.f32 %v3229_v20, %v1971_v32  ;;  %2682 = vmatmul.msk.bf16.gmra.mxu1 %vm441_vm0, %v1784_v55  ;;  %v1700_v40 = vmul.f32 %v3111_v45, %v1664_v13 }
 0x216   : > { %v1003_v41 = vpop.f32.mrf.mxu2 }
 0x217   : > { %v2039_v63 = vmax.f32 %v2007_v17, 0.0  ;;  %v1037_v15 = vadd.f32 %v1003_v41, %v3098_v21  ;;  %v1317_v34 = vpop.f32.mrf.mxu3  ;;  %v1736_v16 = vadd.f32 %v3120_v0, %v1700_v40 }
 0x219   : > { %v2071_v38 = vpack.c.bf16 %v2039_v63, %v2039_v63  ;;  %v1351_v7 = vadd.f32 %v1317_v34, %v1037_v15  ;;  %v1768_v50 = vmax.f32 %v1736_v16, 0.0 }
 0x21a   : > { %v1907_v35 = vpop.f32.mrf.mxu1 }
 0x21b   : > { %2104 = vst.msk [vmem:[%s3239_s27 + $0x30] sm:$0xf] %vm2091_vm1, %v2071_v38  ;;  %v1665_v5 = vadd.f32 %v1631_v26, %v1351_v7  ;;  %v1972_v42 = vmul.f32 %v3224_v51, %v1907_v35 }
 0x21d   : > { %v1701_v43 = vmul.f32 %v3111_v45, %v1665_v5  ;;  %v2008_v21 = vadd.f32 %v3229_v20, %v1972_v42 }
 0x21f   : > { %v1737_v49 = vadd.f32 %v3120_v0, %v1701_v43  ;;  %v2040_v22 = vmax.f32 %v2008_v21, 0.0 }
 0x221   : > { %v1769_v52 = vmax.f32 %v1737_v49, 0.0  ;;  %v2072_v46 = vpack.c.bf16 %v2040_v22, %v2040_v22 }
 0x222   : > { %v1910_v56 = vpop.f32.mrf.mxu1 }
 0x223   : > { %2105 = vst.msk [vmem:[%s3239_s27 + $0x34] sm:$0xf] %vm2091_vm1, %v2072_v46  ;;  %v1973_v53 = vmul.f32 %v3224_v51, %v1910_v56  ;;  %v1785_v57 = vpack.c.bf16 %v1769_v52, %v1768_v50 }
 0x225   : > { %v2009_v59 = vadd.f32 %v3229_v20, %v1973_v53  ;;  %2683 = vmatmul.msk.bf16.gmra.mxu1 %vm441_vm0, %v1785_v57 }
 0x227   : > { %v2041_v45 = vmax.f32 %v2009_v59, 0.0 }
 0x229   : > { %v2073_v27 = vpack.c.bf16 %v2041_v45, %v2041_v45 }
 0x22a   : > { %v1912_v44 = vpop.f32.mrf.mxu1 }
 0x22b   : > { %2106 = vst.msk [vmem:[%s3239_s27 + $0x38] sm:$0xf] %vm2091_vm1, %v2073_v27  ;;  %v1974_v0 = vmul.f32 %v3224_v51, %v1912_v44 }
 0x22d   : > { %v2010_v30 = vadd.f32 %v3229_v20, %v1974_v0 }
 0x22f   : > { %v2042_v6 = vmax.f32 %v2010_v30, 0.0 }
 0x231   : > { %v2074_v54 = vpack.c.bf16 %v2042_v6, %v2042_v6 }
 0x232   : > { %v1915_v14 = vpop.f32.mrf.mxu1 }
 0x233   : > { %2107 = vst.msk [vmem:[%s3239_s27 + $0x3c] sm:$0xf] %vm2091_vm1, %v2074_v54  ;;  %v1975_v36 = vmul.f32 %v3224_v51, %v1915_v14 }
 0x235   : > { %v2011_v47 = vadd.f32 %v3229_v20, %v1975_v36 }
 0x237   : > { %v2043_v48 = vmax.f32 %v2011_v47, 0.0 }
 0x239   : > { %v2075_v29 = vpack.c.bf16 %v2043_v48, %v2043_v48 }
 0x23a   : > { %v1917_v62 = vpop.f32.mrf.mxu1 }
 0x23b   : > { %2108 = vst.msk [vmem:[%s3239_s27 + $0x40] sm:$0xf] %vm2091_vm1, %v2075_v29  ;;  %v1976_v60 = vmul.f32 %v3224_v51, %v1917_v62 }
 0x23d   : > { %v2012_v1 = vadd.f32 %v3229_v20, %v1976_v60 }
 0x23f   : > { %v2044_v8 = vmax.f32 %v2012_v1, 0.0 }
 0x241   : > { %v2076_v61 = vpack.c.bf16 %v2044_v8, %v2044_v8 }
 0x242   : > { %v1920_v11 = vpop.f32.mrf.mxu1 }
 0x243   : > { %2109 = vst.msk [vmem:[%s3239_s27 + $0x44] sm:$0xf] %vm2091_vm1, %v2076_v61  ;;  %v1977_v12 = vmul.f32 %v3224_v51, %v1920_v11 }
 0x245   : > { %v2013_v19 = vadd.f32 %v3229_v20, %v1977_v12 }
 0x247   : > { %v2045_v10 = vmax.f32 %v2013_v19, 0.0 }
 0x249   : > { %v2077_v3 = vpack.c.bf16 %v2045_v10, %v2045_v10 }
 0x24a   : > { %v1922_v37 = vpop.f32.mrf.mxu1 }
 0x24b   : > { %2110 = vst.msk [vmem:[%s3239_s27 + $0x48] sm:$0xf] %vm2091_vm1, %v2077_v3  ;;  %v1978_v39 = vmul.f32 %v3224_v51, %v1922_v37 }
 0x24d   : > { %v2014_v18 = vadd.f32 %v3229_v20, %v1978_v39 }
 0x24f   : > { %v2046_v33 = vmax.f32 %v2014_v18, 0.0 }
 0x251   : > { %v2078_v2 = vpack.c.bf16 %v2046_v33, %v2046_v33 }
 0x252   : > { %v1925_v58 = vpop.f32.mrf.mxu1 }
 0x253   : > { %2111 = vst.msk [vmem:[%s3239_s27 + $0x4c] sm:$0xf] %vm2091_vm1, %v2078_v2  ;;  %v1979_v4 = vmul.f32 %v3224_v51, %v1925_v58 }
 0x255   : > { %v2015_v23 = vadd.f32 %v3229_v20, %v1979_v4 }
 0x257   : > { %v2047_v24 = vmax.f32 %v2015_v23, 0.0 }
 0x259   : > { %v2079_v25 = vpack.c.bf16 %v2047_v24, %v2047_v24 }
 0x25a   : > { %v1927_v28 = vpop.f32.mrf.mxu1 }
 0x25b   : > { %2112 = vst.msk [vmem:[%s3239_s27 + $0x50] sm:$0xf] %vm2091_vm1, %v2079_v25  ;;  %v1980_v31 = vmul.f32 %v3224_v51, %v1927_v28 }
 0x25d   : > { %v2016_v9 = vadd.f32 %v3229_v20, %v1980_v31 }
 0x25f   : > { %v2048_v32 = vmax.f32 %v2016_v9, 0.0 }
 0x261   : > { %v2080_v55 = vpack.c.bf16 %v2048_v32, %v2048_v32 }
 0x262   : > { %v1930_v13 = vpop.f32.mrf.mxu1 }
 0x263   : > { %2113 = vst.msk [vmem:[%s3239_s27 + $0x54] sm:$0xf] %vm2091_vm1, %v2080_v55  ;;  %v1981_v17 = vmul.f32 %v3224_v51, %v1930_v13 }
 0x265   : > { %v2017_v41 = vadd.f32 %v3229_v20, %v1981_v17 }
 0x267   : > { %v2049_v63 = vmax.f32 %v2017_v41, 0.0 }
 0x269   : > { %v2081_v15 = vpack.c.bf16 %v2049_v63, %v2049_v63 }
 0x26a   : > { %v1932_v34 = vpop.f32.mrf.mxu1 }
 0x26b   : > { %2114 = vst.msk [vmem:[%s3239_s27 + $0x58] sm:$0xf] %vm2091_vm1, %v2081_v15  ;;  %v1982_v40 = vmul.f32 %v3224_v51, %v1932_v34 }
 0x26d   : > { %v2018_v38 = vadd.f32 %v3229_v20, %v1982_v40 }
 0x26f   : > { %v2050_v7 = vmax.f32 %v2018_v38, 0.0 }
 0x271   : > { %v2082_v26 = vpack.c.bf16 %v2050_v7, %v2050_v7 }
 0x272   : > { %v1935_v35 = vpop.f32.mrf.mxu1 }
 0x273   : > { %2115 = vst.msk [vmem:[%s3239_s27 + $0x5c] sm:$0xf] %vm2091_vm1, %v2082_v26  ;;  %v1983_v5 = vmul.f32 %v3224_v51, %v1935_v35 }
 0x275   : > { %v2019_v42 = vadd.f32 %v3229_v20, %v1983_v5 }
 0x277   : > { %v2051_v16 = vmax.f32 %v2019_v42, 0.0 }
 0x279   : > { %v2083_v43 = vpack.c.bf16 %v2051_v16, %v2051_v16 }
 0x27a   : > { %v1937_v21 = vpop.f32.mrf.mxu1 }
 0x27b   : > { %2116 = vst.msk [vmem:[%s3239_s27 + $0x60] sm:$0xf] %vm2091_vm1, %v2083_v43  ;;  %v1984_v49 = vmul.f32 %v3224_v51, %v1937_v21 }
 0x27d   : > { %v2020_v22 = vadd.f32 %v3229_v20, %v1984_v49 }
 0x27f   : > { %v2052_v50 = vmax.f32 %v2020_v22, 0.0 }
 0x281   : > { %v2084_v52 = vpack.c.bf16 %v2052_v50, %v2052_v50 }
 0x282   : > { %v1940_v46 = vpop.f32.mrf.mxu1 }
 0x283   : > { %2117 = vst.msk [vmem:[%s3239_s27 + $0x64] sm:$0xf] %vm2091_vm1, %v2084_v52  ;;  %v1985_v56 = vmul.f32 %v3224_v51, %v1940_v46 }
 0x285   : > { %v2021_v53 = vadd.f32 %v3229_v20, %v1985_v56 }
 0x287   : > { %v2053_v57 = vmax.f32 %v2021_v53, 0.0 }
 0x289   : > { %v2085_v59 = vpack.c.bf16 %v2053_v57, %v2053_v57 }
 0x28a   : > { %v1942_v45 = vpop.f32.mrf.mxu1 }
 0x28b   : > { %2118 = vst.msk [vmem:[%s3239_s27 + $0x68] sm:$0xf] %vm2091_vm1, %v2085_v59  ;;  %v1986_v27 = vmul.f32 %v3224_v51, %v1942_v45 }
 0x28d   : > { %v2022_v44 = vadd.f32 %v3229_v20, %v1986_v27 }
 0x28f   : > { %v2054_v0 = vmax.f32 %v2022_v44, 0.0 }
 0x291   : > { %v2086_v30 = vpack.c.bf16 %v2054_v0, %v2054_v0 }
 0x292   : > { %v1945_v6 = vpop.f32.mrf.mxu1 }
 0x293   : > { %2119 = vst.msk [vmem:[%s3239_s27 + $0x6c] sm:$0xf] %vm2091_vm1, %v2086_v30  ;;  %v1987_v54 = vmul.f32 %v3224_v51, %v1945_v6 }
 0x295   : > { %v2023_v14 = vadd.f32 %v3229_v20, %v1987_v54 }
 0x297   : > { %v2055_v36 = vmax.f32 %v2023_v14, 0.0 }
 0x299   : > { %v2087_v47 = vpack.c.bf16 %v2055_v36, %v2055_v36 }
 0x29a   : > { %v1947_v48 = vpop.f32.mrf.mxu1 }
 0x29b   : > { %2120 = vst.msk [vmem:[%s3239_s27 + $0x70] sm:$0xf] %vm2091_vm1, %v2087_v47  ;;  %v1988_v29 = vmul.f32 %v3224_v51, %v1947_v48 }
 0x29d   : > { %v2024_v62 = vadd.f32 %v3229_v20, %v1988_v29 }
 0x29f   : > { %v2056_v60 = vmax.f32 %v2024_v62, 0.0 }
 0x2a1   : > { %v2088_v1 = vpack.c.bf16 %v2056_v60, %v2056_v60 }
 0x2a2   : > { %v1950_v8 = vpop.f32.mrf.mxu1 }
 0x2a3   : > { %2121 = vst.msk [vmem:[%s3239_s27 + $0x74] sm:$0xf] %vm2091_vm1, %v2088_v1  ;;  %v1989_v61 = vmul.f32 %v3224_v51, %v1950_v8 }
 0x2a5   : > { %v2025_v11 = vadd.f32 %v3229_v20, %v1989_v61 }
 0x2a7   : > { %v2057_v12 = vmax.f32 %v2025_v11, 0.0 }
 0x2a9   : > { %v2089_v19 = vpack.c.bf16 %v2057_v12, %v2057_v12 }
 0x2aa   : > { %v1952_v10 = vpop.f32.mrf.mxu1 }
 0x2ab   : > { %2122 = vst.msk [vmem:[%s3239_s27 + $0x78] sm:$0xf] %vm2091_vm1, %v2089_v19  ;;  %v1990_v3 = vmul.f32 %v3224_v51, %v1952_v10 }
 0x2ad   : > { %v2026_v37 = vadd.f32 %v3229_v20, %v1990_v3 }
 0x2af   : > { %v2058_v39 = vmax.f32 %v2026_v37, 0.0 }
 0x2b1   : > { %v2090_v18 = vpack.c.bf16 %v2058_v39, %v2058_v39 }
 0x2b3   : > { %2123 = vst.msk [vmem:[%s3239_s27 + $0x7c] sm:$0xf] %vm2091_vm1, %v2090_v18 }
 0x2b4 PF: > { %s17_s24 = sadd.s32 1, %s2806_s24  }
 0x2b5   : > { %p14_p4 = scmp.ge.s32.totalorder %s17_s24, 4  }
 0x2b7   :  { %16 = sbr.rel (!%p14_p4) target bundleno = 1 (0x1), region = 82 }

// kernel: visual_encoder_forward.9
= control target key start
LH: loop header
LB: loop body
LE: loop exit
PB: predicated region body
PF: predicated region fallthrough
CT: control target
= control target key end

     0   :  { %s1619_s24 = smov 0   ;;  %s1875_s0 = inlined_call_operand.vmem [shape: bf16[2,128,128], index: 0, kind: input, shape index: {}]   ;;  %s1876_s1 = inlined_call_operand.vmem [shape: bf16[5,128,128], index: 1, kind: input, shape index: {}]   ;;  %s1877_s2 = inlined_call_operand.vmem [shape: f32[1,128], index: 2, kind: input, shape index: {}]   ;;  %s1878_s3 = inlined_call_operand.vmem [shape: f32[1,128], index: 3, kind: input, shape index: {}]   ;;  %s1879_s4 = inlined_call_operand.vmem [shape: bf16[1,128,64], index: 4, kind: input, shape index: {}]   ;;  %s1880_s5 = inlined_call_operand.vmem [shape: f32[1,64], index: 5, kind: input, shape index: {}]   ;;  %s1881_s6 = inlined_call_operand.vmem [shape: f32[1,64], index: 6, kind: input, shape index: {}]   ;;  %s1882_s7 = inlined_call_operand.vmem [shape: bf16[2,64,64], index: 7, kind: output, shape index: {}]  }
   0x1 LB: > { %s1141_s25 = sadd.s32 4294967295, %s1577_s24   ;;  %p1145_p0 = scmp.ge.s32.totalorder %s1577_s24, 1  ;;  %s1577_s24 = sphi %s1619_s24, %s17_s24  }
   0x2   : > { %p237_p1 = scmp.lt.s32.totalorder %s1577_s24, 3 }
   0x4   : > { %p238_p2 = pnand %p1145_p0, %p237_p1 }
   0x5   : > { %p269_p3 = scmp.lt.s32.totalorder (!%p238_p2), %s1141_s25, 1 }
   0x6   : > { %241 = sbr.rel (%p238_p2) target bundleno = 420 (0x1a4), region = 48 }
   0xb   : > { %v1498_v0 = vld [vmem:[%s1876_s1 + $0x78] sm:$0xff]  ;;  %v1497_v2 = vld [vmem:[%s1876_s1 + $0x70] sm:$0xff]  ;;  %v1496_v4 = vld [vmem:[%s1876_s1 + $0x68] sm:$0xff]  ;;  %s1884_s25 = smov (!%p269_p3, %s1141_s25), 1  ;;  %vm1077_vm0 = vcmask 519168  }
   0xc   : > { %v1489_v1 = vld [vmem:[%s1876_s1 + $0x38] sm:$0xff]  ;;  %1543 = vmatpush.bf16.msra.mxu2 %v1498_v0  ;;  %v1488_v3 = vld [vmem:[%s1876_s1 + $0x30] sm:$0xff]  ;;  %394 = vmatpush.bf16.msra.mxu0 %v1498_v0  ;;  %v1487_v5 = vld [vmem:[%s1876_s1 + $0x28] sm:$0xff]  ;;  %s1476_s10 = sshll.u32 %s1884_s25, 6  ;;  %s1477_s8 = sshll.u32 %s1884_s25, 5 }
   0xd   : > { %1551 = vmatpush.bf16.msra.mxu3 %v1489_v1  ;;  %477 = vmatpush.bf16.msra.mxu1 %v1489_v1  ;;  %v1495_v6 = vld [vmem:[%s1876_s1 + $0x60] sm:$0xff]  ;;  %v1494_v8 = vld [vmem:[%s1876_s1 + $0x58] sm:$0xff]  ;;  %v1493_v10 = vld [vmem:[%s1876_s1 + $0x50] sm:$0xff]  ;;  %s1685_s17 = scalar_lea.vmem %s1875_s0, %s1476_s10 }
   0xe   : > { %v1486_v7 = vld [vmem:[%s1876_s1 + $0x20] sm:$0xff]  ;;  %v1485_v9 = vld [vmem:[%s1876_s1 + $0x18] sm:$0xff]  ;;  %v1484_v11 = vld [vmem:[%s1876_s1 + $0x10] sm:$0xff] }
   0xf   : > { %v1492_v12 = vld [vmem:[%s1876_s1 + $0x48] sm:$0xff]  ;;  %v1491_v14 = vld [vmem:[%s1876_s1 + $0x40] sm:$0xff]  ;;  %v1510_v16 = vld [vmem:[%s1876_s1 + $0xb8] sm:$0xff] }
  0x10   : > { %1544 = vmatpush.bf16.msra.mxu2 %v1497_v2  ;;  %395 = vmatpush.bf16.msra.mxu0 %v1497_v2  ;;  %v1483_v13 = vld [vmem:[%s1876_s1 + $0x8] sm:$0xff]  ;;  %v1482_v15 = vld [vmem:[%s1876_s1] sm:$0xff]  ;;  %v1522_v17 = vld [vmem:[%s1876_s1 + $0xf8] sm:$0xff] }
  0x11   : > { %1552 = vmatpush.bf16.msra.mxu3 %v1488_v3  ;;  %478 = vmatpush.bf16.msra.mxu1 %v1488_v3  ;;  %v1481_v18 = vld [vmem:[%s1685_s17 + $0x18] sm:$0xff]  ;;  %v1480_v19 = vld [vmem:[%s1685_s17 + $0x10] sm:$0xff]  ;;  %v1479_v20 = vld [vmem:[%s1685_s17 + $0x8] sm:$0xff] }
  0x12   : > { %v1478_v21 = vld [vmem:[%s1685_s17] sm:$0xff]  ;;  %v1534_v22 = vld [vmem:[%s1876_s1 + $0x138] sm:$0xff]  ;;  %v1509_v23 = vld [vmem:[%s1876_s1 + $0xb0] sm:$0xff] }
  0x13   : > { %v1521_v24 = vld [vmem:[%s1876_s1 + $0xf0] sm:$0xff]  ;;  %v1508_v26 = vld [vmem:[%s1876_s1 + $0xa8] sm:$0xff]  ;;  %v1507_v29 = vld [vmem:[%s1876_s1 + $0xa0] sm:$0xff] }
  0x14   : > { %1545 = vmatpush.bf16.msra.mxu2 %v1496_v4  ;;  %396 = vmatpush.bf16.msra.mxu0 %v1496_v4  ;;  %v1533_v25 = vld [vmem:[%s1876_s1 + $0x130] sm:$0xff]  ;;  %v1520_v27 = vld [vmem:[%s1876_s1 + $0xe8] sm:$0xff]  ;;  %v1519_v30 = vld [vmem:[%s1876_s1 + $0xe0] sm:$0xff] }
  0x15   : > { %1553 = vmatpush.bf16.msra.mxu3 %v1487_v5  ;;  %479 = vmatpush.bf16.msra.mxu1 %v1487_v5  ;;  %v1532_v28 = vld [vmem:[%s1876_s1 + $0x128] sm:$0xff]  ;;  %v1531_v31 = vld [vmem:[%s1876_s1 + $0x120] sm:$0xff]  ;;  %v1506_v32 = vld [vmem:[%s1876_s1 + $0x98] sm:$0xff] }
  0x16   : > { %v1518_v33 = vld [vmem:[%s1876_s1 + $0xd8] sm:$0xff]  ;;  %v1490_v34 = vld [vmem:[%s1685_s17 + $0x20] sm:$0xff]  ;;  %v1505_v36 = vld [vmem:[%s1876_s1 + $0x90] sm:$0xff] }
  0x17   : > { %v1530_v35 = vld [vmem:[%s1876_s1 + $0x118] sm:$0xff]  ;;  %v1517_v37 = vld [vmem:[%s1876_s1 + $0xd0] sm:$0xff]  ;;  %v1504_v39 = vld [vmem:[%s1876_s1 + $0x88] sm:$0xff] }
  0x18   : > { %1546 = vmatpush.bf16.msra.mxu2 %v1495_v6  ;;  %397 = vmatpush.bf16.msra.mxu0 %v1495_v6  ;;  %v1529_v38 = vld [vmem:[%s1876_s1 + $0x110] sm:$0xff]  ;;  %v1516_v40 = vld [vmem:[%s1876_s1 + $0xc8] sm:$0xff]  ;;  %v1503_v42 = vld [vmem:[%s1876_s1 + $0x80] sm:$0xff] }
  0x19   : > { %1554 = vmatpush.bf16.msra.mxu3 %v1486_v7  ;;  %480 = vmatpush.bf16.msra.mxu1 %v1486_v7  ;;  %v1528_v41 = vld [vmem:[%s1876_s1 + $0x108] sm:$0xff]  ;;  %v1515_v43 = vld [vmem:[%s1876_s1 + $0xc0] sm:$0xff]  ;;  %v1499_v45 = vld [vmem:[%s1685_s17 + $0x10] sm:$0xff] }
  0x1a   : > { %v1527_v44 = vld [vmem:[%s1876_s1 + $0x100] sm:$0xff]  ;;  %v1511_v46 = vld [vmem:[%s1685_s17 + $0x18] sm:$0xff]  ;;  %v1524_v50 = vld [vmem:[%s1685_s17 + $0x28] sm:$0xff] }
  0x1b   : > { %v1523_v47 = vld [vmem:[%s1685_s17 + $0x20] sm:$0xff]  ;;  %v1500_v48 = vld [vmem:[%s1685_s17 + $0x18] sm:$0xff]  ;;  %v1513_v52 = vld [vmem:[%s1685_s17 + $0x28] sm:$0xff] }
  0x1c   : > { %1547 = vmatpush.bf16.msra.mxu2 %v1494_v8  ;;  %398 = vmatpush.bf16.msra.mxu0 %v1494_v8  ;;  %v1512_v49 = vld [vmem:[%s1685_s17 + $0x20] sm:$0xff]  ;;  %v1525_v53 = vld [vmem:[%s1685_s17 + $0x30] sm:$0xff]  ;;  %v1502_v54 = vld [vmem:[%s1685_s17 + $0x28] sm:$0xff] }
  0x1d   : > { %1555 = vmatpush.bf16.msra.mxu3 %v1485_v9  ;;  %481 = vmatpush.bf16.msra.mxu1 %v1485_v9  ;;  %v1501_v51 = vld [vmem:[%s1685_s17 + $0x20] sm:$0xff]  ;;  %v1514_v55 = vld [vmem:[%s1685_s17 + $0x30] sm:$0xff]  ;;  %v1526_v56 = vld [vmem:[%s1685_s17 + $0x38] sm:$0xff]  ;;  %s1854_s17 = scalar_lea.vmem %s1882_s7, %s1477_s8 }
  0x1e   : > { %v1542_v57 = vld [vmem:[%s1879_s4 + $0x38] sm:$0xff]  ;;  %v1541_v58 = vld [vmem:[%s1879_s4 + $0x30] sm:$0xff]  ;;  %v1540_v60 = vld [vmem:[%s1879_s4 + $0x28] sm:$0xff] }
  0x1f   : > { %v1539_v0 = vld [vmem:[%s1879_s4 + $0x20] sm:$0xff]  ;;  %v1538_v2 = vld [vmem:[%s1879_s4 + $0x18] sm:$0xff]  ;;  %v1537_v5 = vld [vmem:[%s1879_s4 + $0x10] sm:$0xff] }
  0x20   : > { %1548 = vmatpush.bf16.msra.mxu2 %v1493_v10  ;;  %399 = vmatpush.bf16.msra.mxu0 %v1493_v10  ;;  %v1536_v7 = vld [vmem:[%s1879_s4 + $0x8] sm:$0xff] }
  0x21   : > { %1556 = vmatpush.bf16.msra.mxu3 %v1484_v11  ;;  %482 = vmatpush.bf16.msra.mxu1 %v1484_v11  ;;  %v1535_v11 = vld [vmem:[%s1879_s4] sm:$0xff] }
  0x24   : > { %1549 = vmatpush.bf16.msra.mxu2 %v1492_v12  ;;  %400 = vmatpush.bf16.msra.mxu0 %v1492_v12 }
  0x25   : > { %1557 = vmatpush.bf16.msra.mxu3 %v1483_v13  ;;  %483 = vmatpush.bf16.msra.mxu1 %v1483_v13 }
  0x28   : > { %1550 = vmatpush.bf16.msra.mxu2 %v1491_v14  ;;  %401 = vmatpush.bf16.msra.mxu0 %v1491_v14 }
  0x29   : > { %1558 = vmatpush.bf16.msra.mxu3 %v1482_v15  ;;  %484 = vmatpush.bf16.msra.mxu1 %v1482_v15 }
  0x2b   : > { %412 = vmatmul.bf16.vlgmr.msra.gmra.mxu2 %v1481_v18  ;;  %402 = vmatmul.bf16.vlgmr.msra.gmra.mxu0 %v1479_v20 }
  0x2c   : > { %603 = vmatpush.bf16.msrb.mxu2 %v1510_v16  ;;  %495 = vmatmul.bf16.vlgmr.msra.gmra.mxu3 %v1480_v19 }
  0x2d   : > { %737 = vmatpush.bf16.msrb.mxu3 %v1522_v17  ;;  %485 = vmatmul.bf16.vlgmr.msra.gmra.mxu1 %v1478_v21 }
  0x2e   : > { %871 = vmatpush.bf16.msrb.mxu0 %v1534_v22  ;;  %1008 = vmatpush.bf16.msrb.mxu1 %v1542_v57 }
  0x30   : > { %604 = vmatpush.bf16.msrb.mxu2 %v1509_v23 }
  0x31   : > { %738 = vmatpush.bf16.msrb.mxu3 %v1521_v24 }
  0x32   : > { %872 = vmatpush.bf16.msrb.mxu0 %v1533_v25  ;;  %1009 = vmatpush.bf16.msrb.mxu1 %v1541_v58 }
  0x34   : > { %605 = vmatpush.bf16.msrb.mxu2 %v1508_v26  ;;  %v1815_v26 = vld [vmem:[%s1877_s2] ss:$0 sm:$0xff] }
  0x35   : > { %739 = vmatpush.bf16.msrb.mxu3 %v1520_v27 }
  0x36   : > { %873 = vmatpush.bf16.msrb.mxu0 %v1532_v28  ;;  %1010 = vmatpush.bf16.msrb.mxu1 %v1540_v60 }
  0x38   : > { %606 = vmatpush.bf16.msrb.mxu2 %v1507_v29 }
  0x39   : > { %740 = vmatpush.bf16.msrb.mxu3 %v1519_v30 }
  0x3a   : > { %874 = vmatpush.bf16.msrb.mxu0 %v1531_v31  ;;  %1011 = vmatpush.bf16.msrb.mxu1 %v1539_v0 }
  0x3b   : > { %417 = vmatmul.bf16.gmra.mxu2 %v1490_v34  ;;  %407 = vmatmul.bf16.gmra.mxu0 %v1480_v19  ;;  %v1821_v34 = vld [vmem:[%s1878_s3] ss:$0 sm:$0xff] }
  0x3c   : > { %607 = vmatpush.bf16.msrb.mxu2 %v1506_v32  ;;  %500 = vmatmul.bf16.gmra.mxu3 %v1481_v18 }
  0x3d   : > { %741 = vmatpush.bf16.msrb.mxu3 %v1518_v33  ;;  %490 = vmatmul.bf16.gmra.mxu1 %v1479_v20 }
  0x3e   : > { %875 = vmatpush.bf16.msrb.mxu0 %v1530_v35  ;;  %1012 = vmatpush.bf16.msrb.mxu1 %v1538_v2 }
  0x40   : > { %608 = vmatpush.bf16.msrb.mxu2 %v1505_v36 }
  0x41   : > { %742 = vmatpush.bf16.msrb.mxu3 %v1517_v37 }
  0x42   : > { %876 = vmatpush.bf16.msrb.mxu0 %v1529_v38  ;;  %1013 = vmatpush.bf16.msrb.mxu1 %v1537_v5 }
  0x44   : > { %609 = vmatpush.bf16.msrb.mxu2 %v1504_v39 }
  0x45   : > { %743 = vmatpush.bf16.msrb.mxu3 %v1516_v40 }
  0x46   : > { %877 = vmatpush.bf16.msrb.mxu0 %v1528_v41  ;;  %1014 = vmatpush.bf16.msrb.mxu1 %v1536_v7 }
  0x48   : > { %610 = vmatpush.bf16.msrb.mxu2 %v1503_v42 }
  0x49   : > { %744 = vmatpush.bf16.msrb.mxu3 %v1515_v43 }
  0x4a   : > { %878 = vmatpush.bf16.msrb.mxu0 %v1527_v44  ;;  %1015 = vmatpush.bf16.msrb.mxu1 %v1535_v11 }
  0x4b   : > { %611 = vmatmul.bf16.vlgmr.msrb.gmra.mxu2 %v1499_v45 }
  0x4c   : > { %745 = vmatmul.bf16.vlgmr.msrb.gmra.mxu3 %v1511_v46 }
  0x4d   : > { %879 = vmatmul.bf16.vlgmr.msrb.gmra.mxu0 %v1523_v47 }
  0x5b   : > { %616 = vmatmul.bf16.gmra.mxu2 %v1500_v48 }
  0x5c   : > { %750 = vmatmul.bf16.gmra.mxu3 %v1512_v49 }
  0x5d   : > { %884 = vmatmul.bf16.gmra.mxu0 %v1524_v50 }
  0x6b   : > { %621 = vmatmul.bf16.gmra.mxu2 %v1501_v51 }
  0x6c   : > { %755 = vmatmul.bf16.gmra.mxu3 %v1513_v52 }
  0x6d   : > { %889 = vmatmul.bf16.gmra.mxu0 %v1525_v53 }
  0x7b   : > { %626 = vmatmul.bf16.gmra.mxu2 %v1502_v54 }
  0x7c   : > { %760 = vmatmul.bf16.gmra.mxu3 %v1514_v55 }
  0x7d   : > { %894 = vmatmul.bf16.gmra.mxu0 %v1526_v56 }
  0xa8   : > { %v403_v59 = vpop.f32.mrf.mxu0 }
  0xaa   : > { %v486_v13 = vpop.f32.mrf.mxu1 }
  0xab   : > { %v487_v17 = vadd.f32 %v486_v13, %v403_v59 }
  0xae   : > { %v413_v61 = vpop.f32.mrf.mxu2 }
  0xaf   : > { %v496_v62 = vpop.f32.mrf.mxu3 }
  0xb0   : > { %v1785_v63 = vadd.f32 %v496_v62, %v413_v61  ;;  %v405_v1 = vpop.f32.mrf.mxu0 }
  0xb2   : > { %v488_v18 = vpop.f32.mrf.mxu1 }
  0xb3   : > { %v489_v24 = vadd.f32 %v488_v18, %v405_v1 }
  0xb6   : > { %v1793_v3 = vpop.f32.mrf.mxu2 }
  0xb7   : > { %v1795_v4 = vpop.f32.mrf.mxu3 }
  0xb8   : > { %v408_v6 = vpop.f32.mrf.mxu0  ;;  %v499_v7 = vadd.f32 %v1795_v4, %v1793_v3 }
  0xba   : > { %v491_v30 = vpop.f32.mrf.mxu1 }
  0xbb   : > { %v492_v36 = vadd.f32 %v491_v30, %v408_v6 }
  0xbe   : > { %v418_v8 = vpop.f32.mrf.mxu2 }
  0xbf   : > { %v501_v9 = vpop.f32.mrf.mxu3 }
  0xc0   : > { %v1803_v10 = vadd.f32 %v501_v9, %v418_v8  ;;  %v410_v12 = vpop.f32.mrf.mxu0 }
  0xc2   : > { %v493_v47 = vpop.f32.mrf.mxu1 }
  0xc3   : > { %v494_v49 = vadd.f32 %v493_v47, %v410_v12 }
  0xc6   : > { %v1808_v14 = vpop.f32.mrf.mxu2 }
  0xc7   : > { %v1810_v15 = vpop.f32.mrf.mxu3 }
  0xca   : > { %v880_v16 = vpop.f32.mrf.mxu0 }
  0xce   : > { %v612_v19 = vpop.f32.mrf.mxu2 }
  0xcf   : > { %v746_v20 = vpop.f32.mrf.mxu3  ;;  %v632_v21 = vadd.f32 %v612_v19, %v487_v17 }
  0xd1   : > { %v766_v22 = vadd.f32 %v746_v20, %v632_v21 }
  0xd2   : > { %v882_v23 = vpop.f32.mrf.mxu0 }
  0xd3   : > { %v900_v25 = vadd.f32 %v880_v16, %v766_v22 }
  0xd5   : > { %v912_v31 = vmul.f32 %v1815_v26, %v900_v25 }
  0xd6   : > { %v614_v27 = vpop.f32.mrf.mxu2 }
  0xd7   : > { %v748_v28 = vpop.f32.mrf.mxu3  ;;  %v633_v29 = vadd.f32 %v614_v27, %v489_v24  ;;  %v924_v38 = vadd.f32 %v1821_v34, %v912_v31 }
  0xd9   : > { %v767_v32 = vadd.f32 %v748_v28, %v633_v29  ;;  %v932_v45 = vmax.f32 %v924_v38, 0.0  ;;  %v504_v28 = vadd.f32 %v1810_v15, %v1808_v14  ;;  %v1569_v15 = vld [vmem:[%s1880_s5] ss:$0 sm:$0xff] }
  0xda   : > { %v885_v33 = vpop.f32.mrf.mxu0 }
  0xdb   : > { %v901_v35 = vadd.f32 %v882_v23, %v767_v32 }
  0xdd   : > { %v913_v37 = vmul.f32 %v1815_v26, %v901_v35 }
  0xde   : > { %v617_v39 = vpop.f32.mrf.mxu2 }
  0xdf   : > { %v751_v40 = vpop.f32.mrf.mxu3  ;;  %v634_v41 = vadd.f32 %v617_v39, %v492_v36  ;;  %v925_v42 = vadd.f32 %v1821_v34, %v913_v37 }
  0xe1   : > { %v768_v43 = vadd.f32 %v751_v40, %v634_v41  ;;  %v933_v46 = vmax.f32 %v925_v42, 0.0  ;;  %v1570_v42 = vld [vmem:[%s1881_s6] ss:$0 sm:$0xff] }
  0xe2   : > { %v887_v44 = vpop.f32.mrf.mxu0 }
  0xe3   : > { %v940_v48 = vpack.c.bf16 %v933_v46, %v932_v45  ;;  %v902_v50 = vadd.f32 %v885_v33, %v768_v43 }
  0xe5   : > { %1016 = vmatmul.bf16.vlgmr.msrb.gmra.mxu1 %v940_v48  ;;  %v914_v54 = vmul.f32 %v1815_v26, %v902_v50 }
  0xe6   : > { %v619_v51 = vpop.f32.mrf.mxu2 }
  0xe7   : > { %v753_v52 = vpop.f32.mrf.mxu3  ;;  %v635_v53 = vadd.f32 %v619_v51, %v494_v49  ;;  %v926_v59 = vadd.f32 %v1821_v34, %v914_v54 }
  0xe9   : > { %v769_v55 = vadd.f32 %v753_v52, %v635_v53  ;;  %v934_v2 = vmax.f32 %v926_v59, 0.0 }
  0xea   : > { %v890_v57 = vpop.f32.mrf.mxu0 }
  0xeb   : > { %v903_v56 = vadd.f32 %v887_v44, %v769_v55 }
  0xed   : > { %v915_v58 = vmul.f32 %v1815_v26, %v903_v56 }
  0xee   : > { %v622_v60 = vpop.f32.mrf.mxu2 }
  0xef   : > { %v756_v61 = vpop.f32.mrf.mxu3  ;;  %v636_v62 = vadd.f32 %v622_v60, %v1785_v63  ;;  %v927_v0 = vadd.f32 %v1821_v34, %v915_v58 }
  0xf1   : > { %v770_v1 = vadd.f32 %v756_v61, %v636_v62  ;;  %v935_v5 = vmax.f32 %v927_v0, 0.0 }
  0xf2   : > { %v892_v9 = vpop.f32.mrf.mxu0 }
  0xf3   : > { %v941_v6 = vpack.c.bf16 %v935_v5, %v934_v2  ;;  %v904_v8 = vadd.f32 %v890_v57, %v770_v1 }
  0xf5   : > { %1021 = vmatmul.bf16.gmra.mxu1 %v941_v6  ;;  %v916_v16 = vmul.f32 %v1815_v26, %v904_v8 }
  0xf6   : > { %v624_v11 = vpop.f32.mrf.mxu2 }
  0xf7   : > { %v758_v12 = vpop.f32.mrf.mxu3  ;;  %v637_v13 = vadd.f32 %v624_v11, %v499_v7  ;;  %v928_v19 = vadd.f32 %v1821_v34, %v916_v16 }
  0xf9   : > { %v771_v17 = vadd.f32 %v758_v12, %v637_v13  ;;  %v936_v24 = vmax.f32 %v928_v19, 0.0 }
  0xfa   : > { %v895_v4 = vpop.f32.mrf.mxu0 }
  0xfb   : > { %v905_v18 = vadd.f32 %v892_v9, %v771_v17 }
  0xfd   : > { %v917_v63 = vmul.f32 %v1815_v26, %v905_v18 }
  0xfe   : > { %v627_v20 = vpop.f32.mrf.mxu2 }
  0xff   : > { %v761_v21 = vpop.f32.mrf.mxu3  ;;  %v638_v22 = vadd.f32 %v627_v20, %v1803_v10  ;;  %v929_v3 = vadd.f32 %v1821_v34, %v917_v63 }
 0x101   : > { %v772_v23 = vadd.f32 %v761_v21, %v638_v22  ;;  %v937_v25 = vmax.f32 %v929_v3, 0.0 }
 0x102   : > { %v897_v10 = vpop.f32.mrf.mxu0 }
 0x103   : > { %v942_v27 = vpack.c.bf16 %v937_v25, %v936_v24  ;;  %v906_v29 = vadd.f32 %v895_v4, %v772_v23 }
 0x105   : > { %1026 = vmatmul.bf16.gmra.mxu1 %v942_v27  ;;  %v918_v33 = vmul.f32 %v1815_v26, %v906_v29 }
 0x106   : > { %v629_v30 = vpop.f32.mrf.mxu2 }
 0x107   : > { %v639_v31 = vadd.f32 %v629_v30, %v504_v28  ;;  %v763_v32 = vpop.f32.mrf.mxu3  ;;  %v930_v38 = vadd.f32 %v1821_v34, %v918_v33 }
 0x109   : > { %v773_v35 = vadd.f32 %v763_v32, %v639_v31  ;;  %v938_v40 = vmax.f32 %v930_v38, 0.0 }
 0x10b   : > { %v907_v36 = vadd.f32 %v897_v10, %v773_v35 }
 0x10d   : > { %v919_v37 = vmul.f32 %v1815_v26, %v907_v36 }
 0x10f   : > { %v931_v39 = vadd.f32 %v1821_v34, %v919_v37 }
 0x111   : > { %v939_v41 = vmax.f32 %v931_v39, 0.0 }
 0x113   : > { %v943_v14 = vpack.c.bf16 %v939_v41, %v938_v40 }
 0x115   : > { %1031 = vmatmul.bf16.gmra.mxu1 %v943_v14 }
 0x162   : > { %v1017_v43 = vpop.f32.mrf.mxu1 }
 0x163   : > { %v1041_v44 = vmul.f32 %v1569_v15, %v1017_v43 }
 0x165   : > { %v1053_v26 = vadd.f32 %v1570_v42, %v1041_v44 }
 0x167   : > { %v1061_v45 = vmax.f32 %v1053_v26, 0.0 }
 0x169   : > { %v1069_v34 = vpack.c.bf16 %v1061_v45, %v1061_v45 }
 0x16a   : > { %v1019_v46 = vpop.f32.mrf.mxu1 }
 0x16b   : > { %1078 = vst.msk [vmem:[%s1854_s17] sm:$0xf] %vm1077_vm0, %v1069_v34  ;;  %v1042_v47 = vmul.f32 %v1569_v15, %v1019_v46 }
 0x16d   : > { %v1054_v48 = vadd.f32 %v1570_v42, %v1042_v47 }
 0x16f   : > { %v1062_v49 = vmax.f32 %v1054_v48, 0.0 }
 0x171   : > { %v1070_v50 = vpack.c.bf16 %v1062_v49, %v1062_v49 }
 0x172   : > { %v1022_v51 = vpop.f32.mrf.mxu1 }
 0x173   : > { %1079 = vst.msk [vmem:[%s1854_s17 + $0x4] sm:$0xf] %vm1077_vm0, %v1070_v50  ;;  %v1043_v52 = vmul.f32 %v1569_v15, %v1022_v51 }
 0x175   : > { %v1055_v53 = vadd.f32 %v1570_v42, %v1043_v52 }
 0x177   : > { %v1063_v54 = vmax.f32 %v1055_v53, 0.0 }
 0x179   : > { %v1071_v55 = vpack.c.bf16 %v1063_v54, %v1063_v54 }
 0x17a   : > { %v1024_v56 = vpop.f32.mrf.mxu1 }
 0x17b   : > { %1080 = vst.msk [vmem:[%s1854_s17 + $0x8] sm:$0xf] %vm1077_vm0, %v1071_v55  ;;  %v1044_v57 = vmul.f32 %v1569_v15, %v1024_v56 }
 0x17d   : > { %v1056_v58 = vadd.f32 %v1570_v42, %v1044_v57 }
 0x17f   : > { %v1064_v59 = vmax.f32 %v1056_v58, 0.0 }
 0x181   : > { %v1072_v60 = vpack.c.bf16 %v1064_v59, %v1064_v59 }
 0x182   : > { %v1027_v61 = vpop.f32.mrf.mxu1 }
 0x183   : > { %1081 = vst.msk [vmem:[%s1854_s17 + $0xc] sm:$0xf] %vm1077_vm0, %v1072_v60  ;;  %v1045_v62 = vmul.f32 %v1569_v15, %v1027_v61 }
 0x185   : > { %v1057_v0 = vadd.f32 %v1570_v42, %v1045_v62 }
 0x187   : > { %v1065_v1 = vmax.f32 %v1057_v0, 0.0 }
 0x189   : > { %v1073_v2 = vpack.c.bf16 %v1065_v1, %v1065_v1 }
 0x18a   : > { %v1029_v5 = vpop.f32.mrf.mxu1 }
 0x18b   : > { %1082 = vst.msk [vmem:[%s1854_s17 + $0x10] sm:$0xf] %vm1077_vm0, %v1073_v2  ;;  %v1046_v6 = vmul.f32 %v1569_v15, %v1029_v5 }
 0x18d   : > { %v1058_v7 = vadd.f32 %v1570_v42, %v1046_v6 }
 0x18f   : > { %v1066_v8 = vmax.f32 %v1058_v7, 0.0 }
 0x191   : > { %v1074_v9 = vpack.c.bf16 %v1066_v8, %v1066_v8 }
 0x192   : > { %v1032_v11 = vpop.f32.mrf.mxu1 }
 0x193   : > { %1083 = vst.msk [vmem:[%s1854_s17 + $0x14] sm:$0xf] %vm1077_vm0, %v1074_v9  ;;  %v1047_v12 = vmul.f32 %v1569_v15, %v1032_v11 }
 0x195   : > { %v1059_v13 = vadd.f32 %v1570_v42, %v1047_v12 }
 0x197   : > { %v1067_v16 = vmax.f32 %v1059_v13, 0.0 }
 0x199   : > { %v1075_v17 = vpack.c.bf16 %v1067_v16, %v1067_v16 }
 0x19a   : > { %v1034_v18 = vpop.f32.mrf.mxu1 }
 0x19b   : > { %1084 = vst.msk [vmem:[%s1854_s17 + $0x18] sm:$0xf] %vm1077_vm0, %v1075_v17  ;;  %v1048_v63 = vmul.f32 %v1569_v15, %v1034_v18 }
 0x19d   : > { %v1060_v19 = vadd.f32 %v1570_v42, %v1048_v63 }
 0x19f   : > { %v1068_v20 = vmax.f32 %v1060_v19, 0.0 }
 0x1a1   : > { %v1076_v21 = vpack.c.bf16 %v1068_v20, %v1068_v20 }
 0x1a3   : > { %1085 = vst.msk [vmem:[%s1854_s17 + $0x1c] sm:$0xf] %vm1077_vm0, %v1076_v21 }
 0x1a4 PF: > { %s17_s24 = sadd.s32 1, %s1577_s24  }
 0x1a5   : > { %p14_p4 = scmp.ge.s32.totalorder %s17_s24, 4  }
 0x1a7   :  { %16 = sbr.rel (!%p14_p4) target bundleno = 1 (0x1), region = 82 }

// kernel: visual_encoder_forward.8
= control target key start
LH: loop header
LB: loop body
LE: loop exit
PB: predicated region body
PF: predicated region fallthrough
CT: control target
= control target key end

     0   :  { %s2368_s15 = smov 0   ;;  %s2794_s0 = inlined_call_operand.vmem [shape: bf16[8,72,32], index: 0, kind: input, shape index: {}]   ;;  %s2795_s1 = inlined_call_operand.vmem [shape: bf16[25,32,128], index: 1, kind: input, shape index: {}]   ;;  %s2796_s2 = inlined_call_operand.vmem [shape: f32[1,128], index: 2, kind: input, shape index: {}]   ;;  %s2797_s3 = inlined_call_operand.vmem [shape: f32[1,128], index: 3, kind: input, shape index: {}]   ;;  %s2798_s4 = inlined_call_operand.vmem [shape: bf16[8,32,128], index: 4, kind: output, shape index: {}]  }
   0x1 LB: > { %s1851_s16 = sadd.s32 4294967295, %s2341_s15   ;;  %p1855_p0 = scmp.ge.s32.totalorder %s2341_s15, 1  ;;  %s2341_s15 = sphi %s2368_s15, %s14_s15  }
   0x2   : > { %p162_p1 = scmp.lt.s32.totalorder %s2341_s15, 9 }
   0x4   : > { %p163_p2 = pnand %p1855_p0, %p162_p1 }
   0x5   : > { %p188_p3 = scmp.lt.s32.totalorder (!%p163_p2), %s1851_s16, 7 }
   0x6   : > { %166 = sbr.rel (%p163_p2) target bundleno = 368 (0x170), region = 36 }
   0xb   : > { %v2215_v0 = vld [vmem:[%s2795_s1 + $0x18] sm:$0xff]  ;;  %v2217_v1 = vld [vmem:[%s2795_s1 + $0x28] sm:$0xff]  ;;  %v2214_v3 = vld [vmem:[%s2795_s1 + $0x10] sm:$0xff]  ;;  %s2800_s16 = smov (!%p188_p3, %s1851_s16), 7  ;;  %vm226_vm0 = vsmask.f32 7424 }
   0xc   : > { %v2219_v2 = vld [vmem:[%s2795_s1 + $0x38] sm:$0xff]  ;;  %272 = vmatpush.bf16.msra.mxu0 %v2215_v0  ;;  %2322 = vmatpush.bf16.msra.mxu1 %v2215_v0  ;;  %v2213_v4 = vld [vmem:[%s2795_s1 + $0x8] sm:$0xff]  ;;  %v2216_v5 = vld [vmem:[%s2795_s1 + $0x20] sm:$0xff]  ;;  %s2324_s29 = smul.u32 36, %s2800_s16  ;;  %vm259_vm1 = vcmask 261120   ;;  %vm329_vm2 = vcmask 1046528  }
   0xd   : > { %359 = vmatpush.bf16.msra.mxu2 %v2217_v1  ;;  %431 = vmatpush.bf16.msra.mxu3 %v2219_v2  ;;  %v2218_v6 = vld [vmem:[%s2795_s1 + $0x30] sm:$0xff]  ;;  %v2221_v7 = vld [vmem:[%s2795_s1 + $0x48] sm:$0xff]  ;;  %v2227_v9 = vld [vmem:[%s2795_s1 + $0x78] sm:$0xff]  ;;  %vm385_vm3 = vsmask.f32 6400  ;;  %vm457_vm4 = vcmask 1045504  }
   0xe   : > { %v2225_v8 = vld [vmem:[%s2795_s1 + $0x68] sm:$0xff]  ;;  %s2412_s14 = scalar_lea.vmem %s2794_s0, %s2324_s29  ;;  %v2212_v10 = vld [vmem:[%s2795_s1] sm:$0xff]  ;;  %v2223_v43 = vld [vmem:[%s2795_s1 + $0x58] sm:$0xff]  ;;  %s2211_s5 = sshll.u32 %s2800_s16, 4 }
   0xf   : > { %v2418_v11 = vld [vmem:[%s2412_s14] sm:$0xff]   ;;  %v2421_v12 = vld [vmem:[%s2412_s14 + $0x8] sm:$0xff]   ;;  %v207_v13 = vld [vmem:[%s2412_s14 + $0x10] sm:$0x1]  ;;  %s197_s8 = scalar_lea.vmem %s2798_s4, %s2211_s5 }
  0x10   : > { %273 = vmatpush.bf16.msra.mxu0 %v2214_v3  ;;  %2323 = vmatpush.bf16.msra.mxu1 %v2214_v3  ;;  %v228_v14 = vshrl.u32 %v2418_v11, 16  ;;  %v230_v15 = vshll.u32 %v2418_v11, 16  ;;  %v235_v16 = vshll.u32 %v2421_v12, 16  ;;  %v222_v17 = vunpack.c.l.b16 %v207_v13  ;;  %v320_v18 = vld [vmem:[%s2412_s14] sm:$0xe]  ;;  %v2229_v35 = vld [vmem:[%s2795_s1 + $0x88] sm:$0xff] }
  0x11   : > { %360 = vmatpush.bf16.msra.mxu2 %v2216_v5  ;;  %432 = vmatpush.bf16.msra.mxu3 %v2218_v6  ;;  %v2220_v19 = vld [vmem:[%s2795_s1 + $0x40] sm:$0xff]  ;;  %v239_v20 = vshrl.u32 %v2421_v12, 16  ;;  %v2433_v21 = vunpack.c.h.b16 %v2418_v11  ;;  %v327_v22 = vunpack.c.l.b16 %v320_v18  ;;  %v331_v29 = vrot.slane %v2421_v12, 1  ;;  %v376_v34 = vld [vmem:[%s2412_s14 + $0x10] sm:$0x3]  ;;  %v2233_v57 = vld [vmem:[%s2795_s1 + $0xa8] sm:$0xff] }
  0x12   : > { %v2224_v23 = vld [vmem:[%s2795_s1 + $0x60] sm:$0xff]  ;;  %v232_v24 = vrot.slane %v230_v15, 1  ;;  %v237_v25 = vrot.slane %v235_v16, 1  ;;  %v2438_v26 = vpack.c.b16 %v222_v17, %v222_v17  ;;  %v395_v27 = vrot.slane %v235_v16, 2  ;;  %v2226_v48 = vld [vmem:[%s2795_s1 + $0x70] sm:$0xff]  ;;  %v2235_v13 = vld [vmem:[%s2795_s1 + $0xb8] sm:$0xff] }
  0x13   : > { %v328_v28 = vpack.c.b16 %v2433_v21, %v327_v22  ;;  %v394_v30 = vrot.slane %v239_v20, 1  ;;  %v448_v39 = vld [vmem:[%s2412_s14] sm:$0xc]  ;;  %v383_v47 = vunpack.c.l.b16 %v376_v34  ;;  %v2222_v53 = vld [vmem:[%s2795_s1 + $0x50] sm:$0xff]  ;;  %v555_v60 = vld [vmem:[%s2412_s14 + $0x4] sm:$0xf]  ;;  %v2479_v2 = vunpack.c.l.b16 %v2421_v12 }
  0x14   : > { %307 = vmatpush.bf16.msrb.mxu1 %v2213_v4  ;;  %487 = vmatpush.bf16.msrb.mxu0 %v2221_v7  ;;  %v233_v31 = vor.u32 %v232_v24, %v228_v14  ;;  %v2442_v32 = vor.u32 %v239_v20, %v237_v25  ;;  %v243_v33 = vshll.u32 %v2438_v26, 16  ;;  %v455_v50 = vunpack.c.l.b16 %v448_v39  ;;  %v2228_v56 = vld [vmem:[%s2795_s1 + $0x80] sm:$0xff]  ;;  %v2482_v4 = vld [vmem:[%s2412_s14 + $0x10] sm:$0xff]   ;;  %v2231_v17 = vld [vmem:[%s2795_s1 + $0x98] sm:$0xff] }
  0x15   : > { %622 = vmatpush.bf16.msrb.mxu2 %v2225_v8  ;;  %677 = vmatpush.bf16.msrb.mxu3 %v2227_v9  ;;  %v330_v36 = vrot.slane %v328_v28, 1  ;;  %v387_v37 = vshrl.u32 %v328_v28, 16  ;;  %v390_v38 = vshll.u32 %v328_v28, 16  ;;  %v396_v42 = vor.u32 %v395_v27, %v394_v30  ;;  %v639_v18 = vld [vmem:[%s2412_s14 + $0x4] sm:$0xe] }
  0x16   : > { %v238_v40 = vsel %vm226_vm0, %v233_v31, %v237_v25  ;;  %v245_v41 = vrot.slane %v243_v33, 1  ;;  %v384_v52 = vpack.c.b16 %v383_v47, %v383_v47  ;;  %v456_v55 = vpack.c.b16 %v2433_v21, %v455_v50  ;;  %v2236_v47 = vld [vmem:[%s2795_s1 + $0xc0] sm:$0xff]  ;;  %v694_v50 = vld [vmem:[%s2412_s14 + $0x14] sm:$0x3] }
  0x17   : > { %1871 = vmatmul.msk.bf16.vlgmr.msra.gmra.mxu0 %vm259_vm1, %v238_v40  ;;  %v332_v44 = vsel %vm329_vm2, %v330_v36, %v331_v29  ;;  %v389_v45 = vrot.slane %v387_v37, 1  ;;  %v392_v46 = vrot.slane %v390_v38, 2  ;;  %v459_v62 = vrot.slane %v2421_v12, 2  ;;  %v2234_v36 = vld [vmem:[%s2795_s1 + $0xb0] sm:$0xff] }
  0x18   : > { %308 = vmatpush.bf16.msrb.mxu1 %v2212_v10  ;;  %488 = vmatpush.bf16.msrb.mxu0 %v2220_v19  ;;  %v246_v49 = vsel %vm226_vm0, %v2442_v32, %v245_v41  ;;  %v399_v58 = vshrl.u32 %v384_v52, 16  ;;  %v402_v59 = vshll.u32 %v384_v52, 16  ;;  %v458_v61 = vrot.slane %v456_v55, 2  ;;  %v2232_v19 = vld [vmem:[%s2795_s1 + $0xa0] sm:$0xff] }
  0x19   : > { %623 = vmatpush.bf16.msrb.mxu2 %v2224_v23  ;;  %1872 = vmatmul.msk.bf16.vlgmr.msra.gmra.mxu1 %vm259_vm1, %v246_v49  ;;  %v393_v51 = vor.u32 %v392_v46, %v389_v45  ;;  %v333_v63 = vrot.slane %v2438_v26, 1  ;;  %v570_v3 = vunpack.c.l.b16 %v555_v60  ;;  %v2487_v8 = vunpack.c.h.b16 %v2421_v12 }
  0x1a   : > { %1895 = vmatmul.msk.bf16.vlgmr.msra.gmra.mxu2 %vm259_vm1, %v332_v44  ;;  %678 = vmatpush.bf16.msrb.mxu3 %v2226_v48  ;;  %v401_v0 = vrot.slane %v399_v58, 1  ;;  %v404_v1 = vrot.slane %v402_v59, 2  ;;  %v460_v5 = vsel %vm457_vm4, %v458_v61, %v459_v62  ;;  %v573_v9 = vunpack.c.l.b16 %v2482_v4  ;;  %v2241_v48 = vld [vmem:[%s2795_s1 + $0xe8] sm:$0xff]  ;;  %v2243_v61 = vld [vmem:[%s2795_s1 + $0xf8] sm:$0xff] }
  0x1b   : > { %v397_v54 = vsel %vm385_vm3, %v393_v51, %v396_v42  ;;  %v334_v6 = vsel %vm329_vm2, %v331_v29, %v333_v63  ;;  %v575_v10 = vpack.c.b16 %v2479_v2, %v570_v3  ;;  %v646_v24 = vunpack.c.l.b16 %v639_v18  ;;  %v559_v29 = vld [vmem:[%s2412_s14 + $0x14] sm:$0x1]  ;;  %v875_v18 = vld [vmem:[%s2412_s14 + $0x18] sm:$0x1] }
  0x1c   : > { %748 = vmatpush.bf16.msra.mxu0 %v2229_v35  ;;  %538 = vmatpush.bf16.msra.mxu1 %v2223_v43  ;;  %v405_v7 = vor.u32 %v404_v1, %v401_v0  ;;  %v2500_v15 = vpack.c.b16 %v573_v9, %v2487_v8  ;;  %v461_v25 = vrot.slane %v384_v52, 2  ;;  %v574_v35 = vunpack.c.l.b16 %v559_v29  ;;  %v2239_v0 = vld [vmem:[%s2795_s1 + $0xd8] sm:$0xff] }
  0x1d   : > { %1909 = vmatmul.msk.bf16.vlgmr.msra.gmra.mxu3 %vm259_vm1, %v397_v54  ;;  %854 = vmatpush.bf16.msra.mxu2 %v2233_v57  ;;  %v581_v16 = vshll.u32 %v575_v10, 16  ;;  %v579_v20 = vshrl.u32 %v575_v10, 16  ;;  %v647_v28 = vpack.c.b16 %v2479_v2, %v646_v24  ;;  %v512_v58 = vpack.c.b16 %v2479_v2, %v2433_v21  ;;  %v2238_v24 = vld [vmem:[%s2795_s1 + $0xd0] sm:$0xff] }
  0x1e   : > { %v406_v14 = vsel %vm385_vm3, %v396_v42, %v405_v7  ;;  %938 = vmatpush.bf16.msra.mxu3 %v2235_v13  ;;  %v586_v23 = vshll.u32 %v2500_v15, 16  ;;  %v462_v30 = vsel %vm457_vm4, %v459_v62, %v461_v25  ;;  %v649_v34 = vrot.slane %v2500_v15, 1  ;;  %v2230_v42 = vld [vmem:[%s2795_s1 + $0x90] sm:$0xff] }
  0x1f   : > { %v583_v22 = vrot.slane %v581_v16, 1  ;;  %v648_v33 = vrot.slane %v647_v28, 1  ;;  %v590_v37 = vshrl.u32 %v2500_v15, 16  ;;  %v704_v38 = vshrl.u32 %v647_v28, 16  ;;  %v2565_v7 = vld [vmem:[%s2412_s14 + $0x10] sm:$0xff]  }
  0x20   : > { %539 = vmatpush.bf16.msra.mxu1 %v2222_v53  ;;  %749 = vmatpush.bf16.msra.mxu0 %v2228_v56  ;;  %v588_v27 = vrot.slane %v586_v23, 1  ;;  %v707_v39 = vshll.u32 %v647_v28, 16  ;;  %v577_v41 = vpack.c.b16 %v574_v35, %v574_v35  ;;  %v712_v43 = vrot.slane %v586_v23, 2 }
  0x21   : > { %855 = vmatpush.bf16.msra.mxu2 %v2232_v19  ;;  %v584_v26 = vor.u32 %v583_v22, %v579_v20  ;;  %v650_v40 = vsel %vm329_vm2, %v648_v33, %v649_v34  ;;  %v706_v44 = vrot.slane %v704_v38, 1  ;;  %v711_v46 = vrot.slane %v590_v37, 1  ;;  %v2242_v19 = vld [vmem:[%s2795_s1 + $0xf0] sm:$0xff] }
  0x22   : > { %939 = vmatpush.bf16.msra.mxu3 %v2234_v36  ;;  %v709_v45 = vrot.slane %v707_v39, 2  ;;  %v594_v49 = vshll.u32 %v577_v41, 16  ;;  %v701_v53 = vunpack.c.l.b16 %v694_v50  ;;  %v592_v54 = vor.u32 %v590_v37, %v588_v27  ;;  %v1081_v39 = vld [vmem:[%s2412_s14 + $0x8] sm:$0xc]  ;;  %v2630_v50 = vld [vmem:[%s2412_s14 + $0x18] sm:$0xff]  }
  0x23   : > { %v589_v31 = vsel %vm226_vm0, %v584_v26, %v588_v27  ;;  %v713_v52 = vor.u32 %v712_v43, %v711_v46  ;;  %v651_v60 = vrot.slane %v577_v41, 1  ;;  %v902_v10 = vshll.u32 %v2565_v7, 16  ;;  %v2253_v43 = vld [vmem:[%s2795_s1 + $0x148] sm:$0xff] }
  0x24   : > { %v710_v51 = vor.u32 %v709_v45, %v706_v44  ;;  %v596_v55 = vrot.slane %v594_v49, 1  ;;  %v2540_v57 = vpack.c.b16 %v701_v53, %v701_v53  ;;  %v890_v23 = vunpack.c.l.b16 %v875_v18  ;;  %v1187_v44 = vld [vmem:[%s2412_s14 + $0xc] sm:$0xf] }
  0x25   : > { %v652_v21 = vsel %vm329_vm2, %v649_v34, %v651_v60  ;;  %v904_v16 = vrot.slane %v902_v10, 1  ;;  %v775_v35 = vrot.slane %v2500_v15, 2  ;;  %v1088_v41 = vunpack.c.l.b16 %v1081_v39  ;;  %v1010_v60 = vld [vmem:[%s2412_s14 + $0x18] sm:$0x3]  ;;  %v1271_v18 = vld [vmem:[%s2412_s14 + $0xc] sm:$0xe] }
  0x26   : > { %v714_v56 = vsel %vm385_vm3, %v710_v51, %v713_v52  ;;  %v597_v59 = vsel %vm226_vm0, %v592_v54, %v596_v55  ;;  %v716_v62 = vshrl.u32 %v2540_v57, 16  ;;  %v719_v63 = vshll.u32 %v2540_v57, 16 }
  0x27   : > { %1923 = vmatmul.msk.bf16.vlgmr.msrb.gmra.mxu0 %vm259_vm1, %v460_v5  ;;  %v2245_v5 = vld [vmem:[%s2795_s1 + $0x108] sm:$0xff]  ;;  %v905_v22 = vsel %vm226_vm0, %v2442_v32, %v904_v16  ;;  %v893_v27 = vpack.c.b16 %v890_v23, %v890_v23  ;;  %v2626_v46 = vunpack.c.l.b16 %v2565_v7  ;;  %v1091_v49 = vrot.slane %v2565_v7, 2  ;;  %v1191_v23 = vld [vmem:[%s2412_s14 + $0x1c] sm:$0x1] }
  0x28   : > { %v718_v1 = vrot.slane %v716_v62, 1  ;;  %v721_v3 = vrot.slane %v719_v63, 2  ;;  %v2249_v32 = vld [vmem:[%s2795_s1 + $0x128] sm:$0xff]  ;;  %v777_v51 = vrot.slane %v2540_v57, 2  ;;  %v2635_v53 = vunpack.c.h.b16 %v2565_v7  ;;  %v2250_v57 = vld [vmem:[%s2795_s1 + $0x130] sm:$0xff] }
  0x29   : > { %1881 = vmatmul.msk.bf16.vlgmr.msrb.gmra.mxu1 %vm259_vm1, %v2418_v11  ;;  %v2237_v11 = vld [vmem:[%s2795_s1 + $0xc8] sm:$0xff]  ;;  %v910_v33 = vshll.u32 %v893_v27, 16  ;;  %v967_v45 = vrot.slane %v893_v27, 1  ;;  %v1205_v54 = vunpack.c.l.b16 %v2630_v50 }
  0x2a   : > { %1896 = vmatmul.msk.bf16.gmra.mxu2 %vm259_vm1, %v334_v6  ;;  %803 = vmatpush.bf16.msrb.mxu1 %v2231_v17  ;;  %v2240_v6 = vld [vmem:[%s2795_s1 + $0xe0] sm:$0xff]  ;;  %v722_v9 = vor.u32 %v721_v3, %v718_v1  ;;  %v955_v17 = vld [vmem:[%s2412_s14 + $0x8] sm:$0xe] }
  0x2b   : > { %993 = vmatpush.bf16.msrb.mxu0 %v2237_v11  ;;  %v765_v11 = vld [vmem:[%s2412_s14 + $0x4] sm:$0xc]  ;;  %v962_v20 = vunpack.c.l.b16 %v955_v17  ;;  %v912_v38 = vrot.slane %v910_v33, 1  ;;  %v2653_v62 = vpack.c.b16 %v1205_v54, %v2635_v53  ;;  %v1028_v17 = vrot.slane %v902_v10, 2  ;;  %v2258_v10 = vld [vmem:[%s2795_s1 + $0x168] sm:$0xff] }
  0x2c   : > { %v723_v13 = vsel %vm385_vm3, %v713_v52, %v722_v9  ;;  %v772_v25 = vunpack.c.l.b16 %v765_v11  ;;  %v2252_v11 = vld [vmem:[%s2795_s1 + $0x140] sm:$0xff] }
  0x2d   : > { %1910 = vmatmul.msk.bf16.gmra.mxu3 %vm259_vm1, %v406_v14  ;;  %v2319_v14 = vld [vmem:[%s2412_s14 + $0xc] sm:$0xff]  ;;  %v2589_v26 = vpack.c.b16 %v2487_v8, %v962_v20 }
  0x2e   : > { %804 = vmatpush.bf16.msrb.mxu1 %v2230_v42  ;;  %v773_v28 = vpack.c.b16 %v2479_v2, %v772_v25  ;;  %v2247_v42 = vld [vmem:[%s2795_s1 + $0x118] sm:$0xff] }
  0x2f   : > { %994 = vmatpush.bf16.msrb.mxu0 %v2236_v47  ;;  %v964_v29 = vrot.slane %v2589_v26, 1  ;;  %v1202_v47 = vunpack.c.l.b16 %v1187_v44  ;;  %v1020_v1 = vshrl.u32 %v2589_v26, 16  ;;  %v1023_v3 = vshll.u32 %v2589_v26, 16 }
  0x30   : > { %v774_v34 = vrot.slane %v773_v28, 2 }
  0x31   : > { %v1207_v55 = vpack.c.b16 %v2626_v46, %v1202_v47 }
  0x32   : > { %v776_v2 = vsel %vm457_vm4, %v774_v34, %v775_v35 }
  0x33   : > { %v1213_v63 = vshll.u32 %v1207_v55, 16 }
  0x37   : > { %1924 = vmatmul.msk.bf16.gmra.mxu0 %vm259_vm1, %v462_v30  ;;  %v965_v30 = vrot.slane %v2565_v7, 1 }
  0x39   : > { %1882 = vmatmul.msk.bf16.gmra.mxu1 %vm259_vm1, %v2421_v12  ;;  %v966_v36 = vsel %vm329_vm2, %v964_v29, %v965_v30  ;;  %v968_v52 = vsel %vm329_vm2, %v965_v30, %v967_v45  ;;  %v2321_v30 = vld [vmem:[%s2412_s14 + $0x14] sm:$0xff] }
  0x3a   : > { %1951 = vmatmul.msk.bf16.vlgmr.msrb.gmra.mxu2 %vm259_vm1, %v589_v31  ;;  %v906_v31 = vshrl.u32 %v2565_v7, 16 }
  0x3b   : > { %1119 = vmatpush.bf16.msrb.mxu2 %v2241_v48 }
  0x3c   : > { %v2603_v37 = vor.u32 %v906_v31, %v904_v16  ;;  %v1027_v9 = vrot.slane %v906_v31, 1  ;;  %v1025_v16 = vrot.slane %v1023_v3, 2 }
  0x3d   : > { %1965 = vmatmul.msk.bf16.vlgmr.msrb.gmra.mxu3 %vm259_vm1, %v650_v40  ;;  %v2251_v40 = vld [vmem:[%s2795_s1 + $0x138] sm:$0xff] }
  0x3e   : > { %1170 = vmatpush.bf16.msrb.mxu3 %v2243_v61  ;;  %v913_v15 = vsel %vm226_vm0, %v2603_v37, %v912_v38  ;;  %v1144_v61 = vpack.c.b16 %v2626_v46, %v2487_v8  ;;  %v1029_v26 = vor.u32 %v1028_v17, %v1027_v9  ;;  %v1222_v38 = vshrl.u32 %v2653_v62, 16  ;;  %v2259_v9 = vld [vmem:[%s2795_s1 + $0x170] sm:$0xff] }
  0x3f   : > { %1120 = vmatpush.bf16.msrb.mxu2 %v2240_v6  ;;  %v1218_v6 = vshll.u32 %v2653_v62, 16 }
  0x41   : > { %v1220_v20 = vrot.slane %v1218_v6, 1 }
  0x42   : > { %1171 = vmatpush.bf16.msrb.mxu3 %v2242_v19 }
  0x47   : > { %1979 = vmatmul.msk.bf16.vlgmr.msra.gmra.mxu0 %vm259_vm1, %v714_v56  ;;  %v2248_v56 = vld [vmem:[%s2795_s1 + $0x120] sm:$0xff] }
  0x48   : > { %1254 = vmatpush.bf16.msra.mxu0 %v2245_v5  ;;  %v1215_v5 = vrot.slane %v1213_v63, 1 }
  0x49   : > { %1937 = vmatmul.msk.bf16.vlgmr.msra.gmra.mxu1 %vm259_vm1, %v512_v58 }
  0x4a   : > { %1952 = vmatmul.msk.bf16.gmra.mxu2 %vm259_vm1, %v597_v59  ;;  %1064 = vmatpush.bf16.msra.mxu1 %v2239_v0  ;;  %v778_v59 = vsel %vm457_vm4, %v775_v35, %v777_v51  ;;  %v2246_v0 = vld [vmem:[%s2795_s1 + $0x110] sm:$0xff]  ;;  %v2260_v35 = vld [vmem:[%s2795_s1 + $0x178] sm:$0xff] }
  0x4d   : > { %1966 = vmatmul.msk.bf16.gmra.mxu3 %vm259_vm1, %v652_v21  ;;  %v1017_v21 = vunpack.c.l.b16 %v1010_v60 }
  0x4e   : > { %1065 = vmatpush.bf16.msra.mxu1 %v2238_v24  ;;  %v1278_v24 = vunpack.c.l.b16 %v1271_v18 }
  0x50   : > { %v2676_v28 = vpack.c.b16 %v2626_v46, %v1278_v24 }
  0x52   : > { %v1336_v33 = vshrl.u32 %v2676_v28, 16  ;;  %v1339_v34 = vshll.u32 %v2676_v28, 16  ;;  %v1280_v24 = vrot.slane %v2676_v28, 1 }
  0x57   : > { %1980 = vmatmul.msk.bf16.gmra.mxu0 %vm259_vm1, %v723_v13  ;;  %v1018_v13 = vpack.c.b16 %v1017_v21, %v1017_v21 }
  0x59   : > { %1938 = vmatmul.msk.bf16.gmra.mxu1 %vm259_vm1, %v2319_v14  ;;  %v1022_v14 = vrot.slane %v1020_v1, 1  ;;  %v1035_v39 = vshll.u32 %v1018_v13, 16 }
  0x5a   : > { %2007 = vmatmul.msk.bf16.vlgmr.msra.gmra.mxu2 %vm259_vm1, %v2421_v12  ;;  %v2244_v12 = vld [vmem:[%s2795_s1 + $0x100] sm:$0xff] }
  0x5b   : > { %1255 = vmatpush.bf16.msra.mxu0 %v2244_v12  ;;  %1380 = vmatpush.bf16.msra.mxu2 %v2249_v32  ;;  %v1026_v25 = vor.u32 %v1025_v16, %v1022_v14  ;;  %v1206_v32 = vunpack.c.l.b16 %v1191_v23  ;;  %v1037_v47 = vrot.slane %v1035_v39, 2  ;;  %v2261_v23 = vld [vmem:[%s2795_s1 + $0x180] sm:$0xff] }
  0x5d   : > { %2021 = vmatmul.msk.bf16.vlgmr.msra.gmra.mxu3 %vm259_vm1, %v905_v22  ;;  %v1093_v22 = vrot.slane %v1018_v13, 2  ;;  %v1030_v29 = vsel %vm385_vm3, %v1026_v25, %v1029_v26  ;;  %v2682_v31 = vpack.c.b16 %v1206_v32, %v1206_v32  ;;  %v1281_v25 = vrot.slane %v2653_v62, 1 }
  0x5e   : > { %1435 = vmatpush.bf16.msra.mxu3 %v2251_v40  ;;  %v1397_v40 = vld [vmem:[%s2412_s14 + $0xc] sm:$0xc] }
  0x5f   : > { %1381 = vmatpush.bf16.msra.mxu2 %v2248_v56  ;;  %v1094_v27 = vsel %vm457_vm4, %v1091_v49, %v1093_v22  ;;  %v1404_v44 = vunpack.c.l.b16 %v1397_v40  ;;  %v1587_v22 = vld [vmem:[%s2412_s14 + $0x10] sm:$0xe] }
  0x60   : > { %v1594_v32 = vunpack.c.l.b16 %v1587_v22 }
  0x62   : > { %1436 = vmatpush.bf16.msra.mxu3 %v2250_v57 }
  0x67   : > { %2035 = vmatmul.msk.bf16.vlgmr.msrb.gmra.mxu0 %vm259_vm1, %v966_v36  ;;  %v2256_v36 = vld [vmem:[%s2795_s1 + $0x158] sm:$0xff] }
  0x68   : > { %1486 = vmatpush.bf16.msrb.mxu0 %v2253_v43  ;;  %v1341_v43 = vrot.slane %v1339_v34, 2 }
  0x69   : > { %1993 = vmatmul.msk.bf16.vlgmr.msrb.gmra.mxu1 %vm259_vm1, %v776_v2  ;;  %v1032_v2 = vshrl.u32 %v1018_v13, 16  ;;  %v2255_v13 = vld [vmem:[%s2795_s1 + $0x150] sm:$0xff] }
  0x6a   : > { %2008 = vmatmul.msk.bf16.gmra.mxu2 %vm259_vm1, %v2482_v4  ;;  %1309 = vmatpush.bf16.msrb.mxu1 %v2247_v42  ;;  %v1089_v4 = vpack.c.b16 %v2487_v8, %v1088_v41  ;;  %v1211_v8 = vshrl.u32 %v1207_v55, 16  ;;  %v1343_v41 = vrot.slane %v1222_v38, 1  ;;  %v1338_v42 = vrot.slane %v1336_v33, 1 }
  0x6b   : > { %v1034_v45 = vrot.slane %v1032_v2, 1  ;;  %v1405_v55 = vpack.c.b16 %v2626_v46, %v1404_v44 }
  0x6c   : > { %v1090_v48 = vrot.slane %v1089_v4, 2  ;;  %v1216_v19 = vor.u32 %v1215_v5, %v1211_v8  ;;  %1487 = vmatpush.bf16.msrb.mxu0 %v2252_v11  ;;  %v1344_v4 = vrot.slane %v1218_v6, 2 }
  0x6d   : > { %2022 = vmatmul.msk.bf16.gmra.mxu3 %vm259_vm1, %v913_v15  ;;  %v1226_v15 = vshll.u32 %v2682_v31, 16  ;;  %v1406_v21 = vrot.slane %v1405_v55, 2  ;;  %v1283_v55 = vrot.slane %v2682_v31, 1 }
  0x6e   : > { %v1092_v58 = vsel %vm457_vm4, %v1090_v48, %v1091_v49  ;;  %1310 = vmatpush.bf16.msrb.mxu1 %v2246_v0  ;;  %v1221_v12 = vsel %vm226_vm0, %v1216_v19, %v1220_v20  ;;  %v1326_v48 = vld [vmem:[%s2412_s14 + $0x1c] sm:$0x3]  ;;  %v1224_v49 = vor.u32 %v1222_v38, %v1220_v20  ;;  %v1345_v54 = vor.u32 %v1344_v4, %v1343_v41 }
  0x6f   : > { %v1228_v51 = vrot.slane %v1226_v15, 1  ;;  %v1333_v56 = vunpack.c.l.b16 %v1326_v48  ;;  %v1407_v0 = vrot.slane %v2653_v62, 2  ;;  %v1595_v62 = vpack.c.b16 %v2635_v53, %v1594_v32 }
  0x71   : > { %v1229_v57 = vsel %vm226_vm0, %v1224_v49, %v1228_v51  ;;  %v1334_v46 = vpack.c.b16 %v1333_v56, %v1333_v56  ;;  %v1408_v8 = vsel %vm457_vm4, %v1406_v21, %v1407_v0  ;;  %v1652_v40 = vshrl.u32 %v1595_v62, 16  ;;  %v1642_v56 = vld [vmem:[%s2412_s14 + $0x20] sm:$0x3]  ;;  %v1713_v21 = vld [vmem:[%s2412_s14 + $0x10] sm:$0xc] }
  0x72   : > { %v1655_v41 = vshll.u32 %v1595_v62, 16 }
  0x73   : > { %v1348_v5 = vshrl.u32 %v1334_v46, 16  ;;  %v1351_v6 = vshll.u32 %v1334_v46, 16  ;;  %v1654_v48 = vrot.slane %v1652_v40, 1 }
  0x74   : > { %v1657_v51 = vrot.slane %v1655_v41, 2 }
  0x75   : > { %v1350_v17 = vrot.slane %v1348_v5, 1  ;;  %v1353_v18 = vrot.slane %v1351_v6, 2  ;;  %v1507_v5 = vld [vmem:[%s2412_s14 + $0x20] sm:$0x1] }
  0x77   : > { %2036 = vmatmul.msk.bf16.gmra.mxu0 %vm259_vm1, %v968_v52  ;;  %v1342_v52 = vor.u32 %v1341_v43, %v1338_v42  ;;  %v1354_v20 = vor.u32 %v1353_v18, %v1350_v17 }
  0x79   : > { %1994 = vmatmul.msk.bf16.gmra.mxu1 %vm259_vm1, %v778_v59  ;;  %v1038_v59 = vor.u32 %v1037_v47, %v1034_v45  ;;  %v1346_v63 = vsel %vm385_vm3, %v1342_v52, %v1345_v54  ;;  %v1596_v45 = vrot.slane %v1595_v62, 1 }
  0x7a   : > { %2063 = vmatmul.msk.bf16.vlgmr.msrb.gmra.mxu2 %vm259_vm1, %v1092_v58  ;;  %v2262_v58 = vld [vmem:[%s2795_s1 + $0x188] sm:$0xff] }
  0x7b   : > { %1625 = vmatpush.bf16.msrb.mxu2 %v2258_v10  ;;  %v1039_v3 = vsel %vm385_vm3, %v1029_v26, %v1038_v59  ;;  %v1355_v10 = vsel %vm385_vm3, %v1345_v54, %v1354_v20 }
  0x7d   : > { %2077 = vmatmul.msk.bf16.vlgmr.msrb.gmra.mxu3 %vm259_vm1, %v1144_v61  ;;  %v2257_v61 = vld [vmem:[%s2795_s1 + $0x160] sm:$0xff] }
  0x7e   : > { %1696 = vmatpush.bf16.msrb.mxu3 %v2260_v35 }
  0x7f   : > { %1626 = vmatpush.bf16.msrb.mxu2 %v2257_v61  ;;  %v1658_v61 = vor.u32 %v1657_v51, %v1654_v48 }
  0x82   : > { %1697 = vmatpush.bf16.msrb.mxu3 %v2259_v9  ;;  %v1720_v9 = vunpack.c.l.b16 %v1713_v21 }
  0x87   : > { %2091 = vmatmul.msk.bf16.vlgmr.msra.gmra.mxu0 %vm259_vm1, %v1221_v12 }
  0x88   : > { %1751 = vmatpush.bf16.msra.mxu0 %v2262_v58 }
  0x89   : > { %2049 = vmatmul.msk.bf16.vlgmr.msra.gmra.mxu1 %vm259_vm1, %v1030_v29 }
  0x8a   : > { %2064 = vmatmul.msk.bf16.gmra.mxu2 %vm259_vm1, %v1094_v27  ;;  %1570 = vmatpush.bf16.msra.mxu1 %v2256_v36  ;;  %v1409_v27 = vrot.slane %v1334_v46, 2  ;;  %v2739_v36 = vld [vmem:[%s2412_s14 + $0x18] sm:$0xff]  ;;  %v1649_v46 = vunpack.c.l.b16 %v1642_v56 }
  0x8b   : > { %v1538_v15 = vshrl.u32 %v2739_v36, 16  ;;  %v1597_v47 = vrot.slane %v2739_v36, 1 }
  0x8c   : > { %1752 = vmatpush.bf16.msra.mxu0 %v2261_v23  ;;  %v1410_v35 = vsel %vm457_vm4, %v1407_v0, %v1409_v27  ;;  %v1650_v17 = vpack.c.b16 %v1649_v46, %v1649_v46 }
  0x8d   : > { %2078 = vmatmul.msk.bf16.gmra.mxu3 %vm259_vm1, %v2321_v30  ;;  %v1282_v30 = vsel %vm329_vm2, %v1280_v24, %v1281_v25  ;;  %v1659_v52 = vrot.slane %v1538_v15, 1 }
  0x8e   : > { %1571 = vmatpush.bf16.msra.mxu1 %v2255_v13  ;;  %v1667_v23 = vshll.u32 %v1650_v17, 16 }
  0x94   : > { %v275_v60 = vpop.f32.mrf.mxu0 }
  0x96   : > { %v2708_v1 = vpop.f32.mrf.mxu1 }
  0x97   : > { %2092 = vmatmul.msk.bf16.gmra.mxu0 %vm259_vm1, %v1229_v57  ;;  %v1598_v57 = vsel %vm329_vm2, %v1596_v45, %v1597_v47 }
  0x99   : > { %2050 = vmatmul.msk.bf16.gmra.mxu1 %vm259_vm1, %v1039_v3 }
  0x9a   : > { %2119 = vmatmul.msk.bf16.vlgmr.msra.gmra.mxu2 %vm259_vm1, %v1346_v63 }
  0x9c   : > { %v277_v16 = vpop.f32.mrf.mxu0 }
  0x9d   : > { %v362_v14 = vpop.f32.mrf.mxu2  ;;  %2133 = vmatmul.msk.bf16.vlgmr.msra.gmra.mxu3 %vm259_vm1, %v1408_v8  ;;  %v1284_v8 = vsel %vm329_vm2, %v1281_v25, %v1283_v55 }
  0x9e   : > { %v2722_v11 = vpop.f32.mrf.mxu1 }
  0xa0   : > { %v434_v19 = vpop.f32.mrf.mxu3 }
  0xa4   : > { %v490_v12 = vpop.f32.mrf.mxu0 }
  0xa5   : > { %v364_v26 = vpop.f32.mrf.mxu2 }
  0xa6   : > { %v310_v29 = vpop.f32.mrf.mxu1 }
  0xa7   : > { %v311_v33 = vadd.f32 %v310_v29, %v275_v60  ;;  %2147 = vmatmul.msk.bf16.vlgmr.msrb.gmra.mxu0 %vm259_vm1, %v2565_v7  ;;  %v1534_v7 = vshll.u32 %v2739_v36, 16 }
  0xa8   : > { %v436_v34 = vpop.f32.mrf.mxu3 }
  0xa9   : > { %v372_v28 = vadd.f32 %v362_v14, %v311_v33  ;;  %2105 = vmatmul.msk.bf16.vlgmr.msrb.gmra.mxu1 %vm259_vm1, %v1282_v30  ;;  %v1660_v54 = vrot.slane %v1534_v7, 2  ;;  %v1669_v33 = vrot.slane %v1667_v23, 2 }
  0xaa   : > { %2120 = vmatmul.msk.bf16.gmra.mxu2 %vm259_vm1, %v1355_v10  ;;  %v1723_v10 = vrot.slane %v2739_v36, 2 }
  0xab   : > { %v444_v2 = vadd.f32 %v434_v19, %v372_v28  ;;  %v1661_v63 = vor.u32 %v1660_v54, %v1659_v52  ;;  %v1725_v52 = vrot.slane %v1650_v17, 2 }
  0xac   : > { %v492_v39 = vpop.f32.mrf.mxu0 }
  0xad   : > { %v367_v38 = vpop.f32.mrf.mxu2  ;;  %2134 = vmatmul.msk.bf16.gmra.mxu3 %vm259_vm1, %v1410_v35  ;;  %v2744_v42 = vadd.f32 %v490_v12, %v444_v2  ;;  %v1662_v14 = vsel %vm385_vm3, %v1658_v61, %v1661_v63 }
  0xae   : > { %v312_v43 = vpop.f32.mrf.mxu1 }
  0xaf   : > { %v313_v4 = vadd.f32 %v312_v43, %v277_v16  ;;  %v1522_v16 = vunpack.c.l.b16 %v1507_v5 }
  0xb0   : > { %v439_v44 = vpop.f32.mrf.mxu3 }
  0xb1   : > { %v373_v49 = vadd.f32 %v364_v26, %v313_v4  ;;  %v1525_v22 = vpack.c.b16 %v1522_v16, %v1522_v16 }
  0xb3   : > { %v445_v59 = vadd.f32 %v436_v34, %v373_v49  ;;  %v1599_v29 = vrot.slane %v1525_v22, 1  ;;  %v1536_v34 = vrot.slane %v1534_v7, 1 }
  0xb4   : > { %v495_v60 = vpop.f32.mrf.mxu0 }
  0xb5   : > { %v369_v58 = vpop.f32.mrf.mxu2  ;;  %v501_v0 = vadd.f32 %v492_v39, %v445_v59  ;;  %v1540_v55 = vor.u32 %v1538_v15, %v1536_v34 }
  0xb6   : > { %v315_v3 = vpop.f32.mrf.mxu1 }
  0xb7   : > { %v316_v6 = vadd.f32 %v315_v3, %v2708_v1  ;;  %2148 = vmatmul.msk.bf16.gmra.mxu0 %vm259_vm1, %v2630_v50  ;;  %v1721_v1 = vpack.c.b16 %v2635_v53, %v1720_v9  ;;  %v1664_v50 = vshrl.u32 %v1650_v17, 16 }
  0xb8   : > { %v441_v31 = vpop.f32.mrf.mxu3 }
  0xb9   : > { %v374_v13 = vadd.f32 %v367_v38, %v316_v6  ;;  %2106 = vmatmul.msk.bf16.gmra.mxu1 %vm259_vm1, %v1284_v8  ;;  %v1722_v32 = vrot.slane %v1721_v1, 2  ;;  %v1666_v30 = vrot.slane %v1664_v50, 1  ;;  %v1600_v38 = vsel %vm329_vm2, %v1597_v47, %v1599_v29 }
  0xba   : > { %2179 = vmatmul.msk.bf16.vlgmr.msrb.gmra.mxu2 %vm259_vm1, %v1598_v57  ;;  %v1726_v57 = vsel %vm457_vm4, %v1723_v10, %v1725_v52 }
  0xbb   : > { %v446_v19 = vadd.f32 %v439_v44, %v374_v13  ;;  %v1724_v53 = vsel %vm457_vm4, %v1722_v32, %v1723_v10  ;;  %v1670_v2 = vor.u32 %v1669_v33, %v1666_v30 }
  0xbc   : > { %v497_v20 = vpop.f32.mrf.mxu0 }
  0xbd   : > { %v625_v18 = vpop.f32.mrf.mxu2  ;;  %2193 = vmatmul.msk.bf16.vlgmr.msrb.gmra.mxu3 %vm259_vm1, %v1662_v14  ;;  %v502_v24 = vadd.f32 %v495_v60, %v446_v19  ;;  %v1671_v4 = vsel %vm385_vm3, %v1661_v63, %v1670_v2 }
  0xbe   : > { %v317_v25 = vpop.f32.mrf.mxu1 }
  0xbf   : > { %v318_v26 = vadd.f32 %v317_v25, %v2722_v11  ;;  %v1537_v11 = vsel %vm226_vm0, %v2603_v37, %v1536_v34  ;;  %v1542_v37 = vshll.u32 %v1525_v22, 16 }
  0xc0   : > { %v680_v12 = vpop.f32.mrf.mxu3 }
  0xc1   : > { %v375_v27 = vadd.f32 %v369_v58, %v318_v26  ;;  %v1544_v56 = vrot.slane %v1542_v37, 1 }
  0xc3   : > { %v447_v28 = vadd.f32 %v441_v31, %v375_v27  ;;  %v1545_v21 = vsel %vm226_vm0, %v1540_v55, %v1544_v56 }
  0xc4   : > { %v751_v35 = vpop.f32.mrf.mxu0 }
  0xc5   : > { %v627_v62 = vpop.f32.mrf.mxu2  ;;  %v503_v39 = vadd.f32 %v497_v20, %v447_v28 }
  0xc6   : > { %v541_v40 = vpop.f32.mrf.mxu1 }
  0xc7   : > { %v551_v41 = vadd.f32 %v541_v40, %v2744_v42  ;;  %2207 = vmatmul.msk.bf16.vlgmr.msra.gmra.mxu0 %vm259_vm1, %v1724_v53 }
  0xc8   : > { %v682_v43 = vpop.f32.mrf.mxu3 }
  0xc9   : > { %v635_v7 = vadd.f32 %v625_v18, %v551_v41  ;;  %2165 = vmatmul.msk.bf16.vlgmr.msra.gmra.mxu1 %vm259_vm1, %v1537_v11 }
  0xca   : > { %2180 = vmatmul.msk.bf16.gmra.mxu2 %vm259_vm1, %v1600_v38 }
  0xcb   : > { %v690_v45 = vadd.f32 %v680_v12, %v635_v7 }
  0xcc   : > { %v753_v47 = vpop.f32.mrf.mxu0 }
  0xcd   : > { %v630_v44 = vpop.f32.mrf.mxu2  ;;  %2194 = vmatmul.msk.bf16.gmra.mxu3 %vm259_vm1, %v1671_v4  ;;  %v761_v48 = vadd.f32 %v751_v35, %v690_v45 }
  0xce   : > { %v543_v49 = vpop.f32.mrf.mxu1 }
  0xcf   : > { %v552_v51 = vadd.f32 %v543_v49, %v501_v0 }
  0xd0   : > { %v685_v42 = vpop.f32.mrf.mxu3 }
  0xd1   : > { %v636_v54 = vadd.f32 %v627_v62, %v552_v51 }
  0xd3   : > { %v691_v59 = vadd.f32 %v682_v43, %v636_v54 }
  0xd4   : > { %v756_v60 = vpop.f32.mrf.mxu0 }
  0xd5   : > { %v632_v58 = vpop.f32.mrf.mxu2  ;;  %v762_v61 = vadd.f32 %v753_v47, %v691_v59 }
  0xd6   : > { %v546_v63 = vpop.f32.mrf.mxu1 }
  0xd7   : > { %v553_v46 = vadd.f32 %v546_v63, %v502_v24  ;;  %2208 = vmatmul.msk.bf16.gmra.mxu0 %vm259_vm1, %v1726_v57 }
  0xd8   : > { %v687_v0 = vpop.f32.mrf.mxu3 }
  0xd9   : > { %v637_v3 = vadd.f32 %v630_v44, %v553_v46  ;;  %2166 = vmatmul.msk.bf16.gmra.mxu1 %vm259_vm1, %v1545_v21 }
  0xdb   : > { %v692_v36 = vadd.f32 %v685_v42, %v637_v3 }
  0xdc   : > { %v758_v15 = vpop.f32.mrf.mxu0 }
  0xdd   : > { %v857_v8 = vpop.f32.mrf.mxu2  ;;  %v763_v5 = vadd.f32 %v756_v60, %v692_v36 }
  0xde   : > { %v548_v6 = vpop.f32.mrf.mxu1 }
  0xdf   : > { %v554_v31 = vadd.f32 %v548_v6, %v503_v39 }
  0xe0   : > { %v941_v9 = vpop.f32.mrf.mxu3 }
  0xe1   : > { %v638_v13 = vadd.f32 %v632_v58, %v554_v31 }
  0xe3   : > { %v693_v16 = vadd.f32 %v687_v0, %v638_v13 }
  0xe4   : > { %v996_v17 = vpop.f32.mrf.mxu0 }
  0xe5   : > { %v859_v14 = vpop.f32.mrf.mxu2  ;;  %v764_v18 = vadd.f32 %v758_v15, %v693_v16 }
  0xe6   : > { %v806_v19 = vpop.f32.mrf.mxu1 }
  0xe7   : > { %v816_v20 = vadd.f32 %v806_v19, %v761_v48 }
  0xe8   : > { %v943_v1 = vpop.f32.mrf.mxu3 }
  0xe9   : > { %v867_v22 = vadd.f32 %v857_v8, %v816_v20 }
  0xeb   : > { %v951_v23 = vadd.f32 %v941_v9, %v867_v22 }
  0xec   : > { %v998_v24 = vpop.f32.mrf.mxu0 }
  0xed   : > { %v862_v50 = vpop.f32.mrf.mxu2  ;;  %v1006_v25 = vadd.f32 %v996_v17, %v951_v23 }
  0xee   : > { %v808_v26 = vpop.f32.mrf.mxu1 }
  0xef   : > { %v817_v12 = vadd.f32 %v808_v26, %v762_v61 }
  0xf0   : > { %v946_v32 = vpop.f32.mrf.mxu3 }
  0xf1   : > { %v868_v10 = vadd.f32 %v859_v14, %v817_v12 }
  0xf3   : > { %v952_v29 = vadd.f32 %v943_v1, %v868_v10 }
  0xf4   : > { %v1001_v30 = vpop.f32.mrf.mxu0 }
  0xf5   : > { %v864_v27 = vpop.f32.mrf.mxu2  ;;  %v1007_v33 = vadd.f32 %v998_v24, %v952_v29 }
  0xf6   : > { %v811_v34 = vpop.f32.mrf.mxu1 }
  0xf7   : > { %v818_v62 = vadd.f32 %v811_v34, %v763_v5 }
  0xf8   : > { %v948_v28 = vpop.f32.mrf.mxu3 }
  0xf9   : > { %v869_v35 = vadd.f32 %v862_v50, %v818_v62 }
  0xfb   : > { %v953_v38 = vadd.f32 %v946_v32, %v869_v35 }
  0xfc   : > { %v1003_v2 = vpop.f32.mrf.mxu0 }
  0xfd   : > { %v1122_v53 = vpop.f32.mrf.mxu2  ;;  %v1008_v39 = vadd.f32 %v1001_v30, %v953_v38 }
  0xfe   : > { %v813_v40 = vpop.f32.mrf.mxu1 }
  0xff   : > { %v819_v11 = vadd.f32 %v813_v40, %v764_v18 }
 0x100   : > { %v1173_v41 = vpop.f32.mrf.mxu3 }
 0x101   : > { %v870_v43 = vadd.f32 %v864_v27, %v819_v11 }
 0x103   : > { %v954_v4 = vadd.f32 %v948_v28, %v870_v43 }
 0x104   : > { %v1257_v44 = vpop.f32.mrf.mxu0 }
 0x105   : > { %v1124_v7 = vpop.f32.mrf.mxu2  ;;  %v1009_v45 = vadd.f32 %v1003_v2, %v954_v4 }
 0x106   : > { %v1067_v47 = vpop.f32.mrf.mxu1 }
 0x107   : > { %v1077_v0 = vadd.f32 %v1067_v47, %v1006_v25 }
 0x108   : > { %v1175_v48 = vpop.f32.mrf.mxu3 }
 0x109   : > { %v1132_v15 = vadd.f32 %v1122_v53, %v1077_v0 }
 0x10b   : > { %v1183_v31 = vadd.f32 %v1173_v41, %v1132_v15 }
 0x10c   : > { %v1259_v37 = vpop.f32.mrf.mxu0 }
 0x10d   : > { %v1127_v49 = vpop.f32.mrf.mxu2  ;;  %v1267_v16 = vadd.f32 %v1257_v44, %v1183_v31 }
 0x10e   : > { %v1069_v51 = vpop.f32.mrf.mxu1 }
 0x10f   : > { %v1078_v6 = vadd.f32 %v1069_v51, %v1007_v33 }
 0x110   : > { %v1178_v42 = vpop.f32.mrf.mxu3 }
 0x111   : > { %v1133_v14 = vadd.f32 %v1124_v7, %v1078_v6 }
 0x113   : > { %v1184_v1 = vadd.f32 %v1175_v48, %v1133_v14  ;;  %v2333_v48 = vld [vmem:[%s2796_s2] ss:$0 sm:$0xff] }
 0x114   : > { %v1262_v54 = vpop.f32.mrf.mxu0 }
 0x115   : > { %v1129_v52 = vpop.f32.mrf.mxu2  ;;  %v1268_v25 = vadd.f32 %v1259_v37, %v1184_v1 }
 0x116   : > { %v1072_v55 = vpop.f32.mrf.mxu1 }
 0x117   : > { %v1079_v20 = vadd.f32 %v1072_v55, %v1008_v39  ;;  %v2334_v55 = vld [vmem:[%s2797_s3] ss:$0 sm:$0xff] }
 0x118   : > { %v1180_v56 = vpop.f32.mrf.mxu3 }
 0x119   : > { %v1134_v24 = vadd.f32 %v1127_v49, %v1079_v20 }
 0x11b   : > { %v1185_v27 = vadd.f32 %v1178_v42, %v1134_v24 }
 0x11c   : > { %v1264_v59 = vpop.f32.mrf.mxu0 }
 0x11d   : > { %v1383_v58 = vpop.f32.mrf.mxu2  ;;  %v1269_v35 = vadd.f32 %v1262_v54, %v1185_v27 }
 0x11e   : > { %v1074_v60 = vpop.f32.mrf.mxu1 }
 0x11f   : > { %v1080_v10 = vadd.f32 %v1074_v60, %v1009_v45 }
 0x120   : > { %v1438_v57 = vpop.f32.mrf.mxu3 }
 0x121   : > { %v1135_v28 = vadd.f32 %v1129_v52, %v1080_v10 }
 0x123   : > { %v1186_v40 = vadd.f32 %v1180_v56, %v1135_v28 }
 0x124   : > { %v1489_v61 = vpop.f32.mrf.mxu0 }
 0x125   : > { %v1385_v63 = vpop.f32.mrf.mxu2  ;;  %v1270_v45 = vadd.f32 %v1264_v59, %v1186_v40 }
 0x126   : > { %v1312_v21 = vpop.f32.mrf.mxu1 }
 0x127   : > { %v1322_v18 = vadd.f32 %v1312_v21, %v1267_v16 }
 0x128   : > { %v1440_v46 = vpop.f32.mrf.mxu3 }
 0x129   : > { %v1393_v50 = vadd.f32 %v1383_v58, %v1322_v18 }
 0x12b   : > { %v1448_v12 = vadd.f32 %v1438_v57, %v1393_v50 }
 0x12c   : > { %v1491_v3 = vpop.f32.mrf.mxu0 }
 0x12d   : > { %v1388_v36 = vpop.f32.mrf.mxu2  ;;  %v1499_v33 = vadd.f32 %v1489_v61, %v1448_v12 }
 0x12e   : > { %v1314_v8 = vpop.f32.mrf.mxu1 }
 0x12f   : > { %v1323_v26 = vadd.f32 %v1314_v8, %v1268_v25 }
 0x130   : > { %v1443_v5 = vpop.f32.mrf.mxu3 }
 0x131   : > { %v1394_v30 = vadd.f32 %v1385_v63, %v1323_v26 }
 0x133   : > { %v1449_v39 = vadd.f32 %v1440_v46, %v1394_v30 }
 0x134   : > { %v1494_v9 = vpop.f32.mrf.mxu0 }
 0x135   : > { %v1390_v17 = vpop.f32.mrf.mxu2  ;;  %v1500_v7 = vadd.f32 %v1491_v3, %v1449_v39 }
 0x136   : > { %v1317_v13 = vpop.f32.mrf.mxu1 }
 0x137   : > { %v1324_v38 = vadd.f32 %v1317_v13, %v1269_v35 }
 0x138   : > { %v1445_v19 = vpop.f32.mrf.mxu3 }
 0x139   : > { %v1395_v43 = vadd.f32 %v1388_v36, %v1324_v38 }
 0x13b   : > { %v1450_v52 = vadd.f32 %v1443_v5, %v1395_v43 }
 0x13c   : > { %v1496_v22 = vpop.f32.mrf.mxu0 }
 0x13d   : > { %v1628_v32 = vpop.f32.mrf.mxu2  ;;  %v1501_v59 = vadd.f32 %v1494_v9, %v1450_v52 }
 0x13e   : > { %v1319_v23 = vpop.f32.mrf.mxu1 }
 0x13f   : > { %v1325_v51 = vadd.f32 %v1319_v23, %v1270_v45 }
 0x140   : > { %v1699_v29 = vpop.f32.mrf.mxu3 }
 0x141   : > { %v1396_v58 = vadd.f32 %v1390_v17, %v1325_v51 }
 0x143   : > { %v1451_v36 = vadd.f32 %v1445_v19, %v1396_v58 }
 0x144   : > { %v1754_v34 = vpop.f32.mrf.mxu0 }
 0x145   : > { %v1630_v41 = vpop.f32.mrf.mxu2  ;;  %v1502_v9 = vadd.f32 %v1496_v22, %v1451_v36 }
 0x146   : > { %v1573_v62 = vpop.f32.mrf.mxu1 }
 0x147   : > { %v1583_v53 = vadd.f32 %v1573_v62, %v1499_v33 }
 0x148   : > { %v1701_v4 = vpop.f32.mrf.mxu3 }
 0x149   : > { %v1638_v2 = vadd.f32 %v1628_v32, %v1583_v53 }
 0x14b   : > { %v1709_v11 = vadd.f32 %v1699_v29, %v1638_v2 }
 0x14c   : > { %v1756_v37 = vpop.f32.mrf.mxu0 }
 0x14d   : > { %v1764_v47 = vadd.f32 %v1754_v34, %v1709_v11  ;;  %v1633_v57 = vpop.f32.mrf.mxu2 }
 0x14e   : > { %v1575_v44 = vpop.f32.mrf.mxu1 }
 0x14f   : > { %v1584_v49 = vadd.f32 %v1575_v44, %v1500_v7  ;;  %v1772_v54 = vmul.f32 %v2333_v48, %v1764_v47 }
 0x150   : > { %v1704_v0 = vpop.f32.mrf.mxu3 }
 0x151   : > { %v1639_v42 = vadd.f32 %v1630_v41, %v1584_v49  ;;  %v1780_v63 = vadd.f32 %v2334_v55, %v1772_v54 }
 0x153   : > { %v1710_v56 = vadd.f32 %v1701_v4, %v1639_v42  ;;  %v1784_v5 = vmax.f32 %v1780_v63, 0.0 }
 0x154   : > { %v1759_v15 = vpop.f32.mrf.mxu0 }
 0x155   : > { %v1765_v60 = vadd.f32 %v1756_v37, %v1710_v56  ;;  %v1635_v18 = vpop.f32.mrf.mxu2 }
 0x156   : > { %v1578_v61 = vpop.f32.mrf.mxu1 }
 0x157   : > { %v1773_v21 = vmul.f32 %v2333_v48, %v1765_v60  ;;  %v1585_v46 = vadd.f32 %v1578_v61, %v1501_v59 }
 0x158   : > { %v1706_v1 = vpop.f32.mrf.mxu3 }
 0x159   : > { %v1781_v3 = vadd.f32 %v2334_v55, %v1773_v21  ;;  %v1640_v8 = vadd.f32 %v1633_v57, %v1585_v46 }
 0x15b   : > { %v1785_v6 = vmax.f32 %v1781_v3, 0.0  ;;  %v1711_v31 = vadd.f32 %v1704_v0, %v1640_v8 }
 0x15c   : > { %v1761_v19 = vpop.f32.mrf.mxu0 }
 0x15d   : > { %v2294_v13 = vpack.c.bf16 %v1785_v6, %v1784_v5  ;;  %v1766_v16 = vadd.f32 %v1759_v15, %v1711_v31 }
 0x15e   : > { %v1580_v14 = vpop.f32.mrf.mxu1 }
 0x15f   : > { %2295 = vst [vmem:[%s197_s8] sm:$0xff] %v2294_v13   ;;  %v1586_v17 = vadd.f32 %v1580_v14, %v1502_v9  ;;  %v1774_v50 = vmul.f32 %v2333_v48, %v1766_v16 }
 0x161   : > { %v1641_v20 = vadd.f32 %v1635_v18, %v1586_v17  ;;  %v1782_v25 = vadd.f32 %v2334_v55, %v1774_v50 }
 0x163   : > { %v1712_v23 = vadd.f32 %v1706_v1, %v1641_v20  ;;  %v1786_v32 = vmax.f32 %v1782_v25, 0.0 }
 0x165   : > { %v1767_v24 = vadd.f32 %v1761_v19, %v1712_v23 }
 0x167   : > { %v1775_v26 = vmul.f32 %v2333_v48, %v1767_v24 }
 0x169   : > { %v1783_v12 = vadd.f32 %v2334_v55, %v1775_v26 }
 0x16b   : > { %v1787_v10 = vmax.f32 %v1783_v12, 0.0 }
 0x16d   : > { %v2299_v27 = vpack.c.bf16 %v1787_v10, %v1786_v32 }
 0x16f   : > { %2317 = vst [vmem:[%s197_s8 + $0x8] sm:$0xff] %v2299_v27  }
 0x170 PF: > { %s14_s15 = sadd.s32 1, %s2341_s15  }
 0x171   : > { %p11_p4 = scmp.ge.s32.totalorder %s14_s15, 10  }
 0x173   :  { %13 = sbr.rel (!%p11_p4) target bundleno = 1 (0x1), region = 90 }

// kernel: visual_encoder_forward.11
= control target key start
LH: loop header
LB: loop body
LE: loop exit
PB: predicated region body
PF: predicated region fallthrough
CT: control target
= control target key end

     0   :  { %12 = vsyncpa [#allocation3], 0  ;;  %s4247_s0 = inlined_call_operand.vmem [shape: bf16[2,32,256], index: 0, kind: input, shape index: {}]   ;;  %s4248_s1 = inlined_call_operand.vmem [shape: bf16[5,256,256], index: 1, kind: input, shape index: {}]   ;;  %s4249_s2 = inlined_call_operand.vmem [shape: f32[1,256], index: 2, kind: input, shape index: {}]   ;;  %s4250_s3 = inlined_call_operand.vmem [shape: f32[1,256], index: 3, kind: input, shape index: {}]   ;;  %s4251_s4 = inlined_call_operand.vmem [shape: bf16[1,256,128], index: 4, kind: input, shape index: {}]   ;;  %s4252_s5 = inlined_call_operand.vmem [shape: f32[1,128], index: 5, kind: input, shape index: {}]   ;;  %s4253_s6 = inlined_call_operand.vmem [shape: f32[1,128], index: 6, kind: input, shape index: {}]   ;;  %s4254_s7 = inlined_call_operand.hbm [shape: f32[2,4,128], index: 7, kind: output, shape index: {}]  }
   0x1   :  { %14 = vsyncpa [#allocation3 + $0x1], 0  ;;  %s3076_s24 = smov 0   ;;  %s3078_s25 = smov 0  }
   0x2   :  { %s3080_s26 = smov 0   ;;  %s3082_s27 = smov 0  }
   0x3 LB: > { %s3097_s28 = sadd.s32 4294967295, %s3034_s27   ;;  %s1911_s29 = sadd.s32 4294967294, %s3034_s27   ;;  %s3034_s27 = sphi %s3082_s27, %s4260_s27   ;;  %s3030_s26 = sphi %s3080_s26, %s4259_s26   ;;  %s3026_s25 = sphi %s3078_s25, %s4258_s25   ;;  %s3022_s24 = sphi %s3076_s24, %s4257_s24  }
   0x4   : > { %s3101_s30 = sadd.s32 1, %s3034_s27   ;;  %s179_s8 = sadd.s32 1, %s3030_s26 }
   0x5   : > { %s176_s9 = ssub.s32 %s3034_s27, %s3101_s30  ;;  %p189_p0 = scmp.ne.s32.totalorder %s3030_s26, %s3026_s25 }
   0x6   : > { %p177_p1 = scmp.eq.s32.totalorder %s176_s9, 0  ;;  %p190_p2 = scmp.eq.s32.totalorder %s3097_s28, 1 }
   0x7   : > { %p195_p3 = scmp.ne.s32.totalorder %s3026_s25, %s3022_s24  ;;  %p196_p4 = scmp.eq.s32.totalorder %s1911_s29, 1 }
   0x8   : > { %s3112_s10 = scalar_select %p177_p1, %s3030_s26, %s179_s8  }
   0x9   : > { %p3114_p5 = por %p190_p2, %p189_p0  ;;  %p3118_p6 = por %p196_p4, %p195_p3 }
   0xa   : > { %p1914_p7 = scmp.ge.s32.totalorder %s3034_s27, 1  ;;  %p240_p8 = scmp.lt.s32.totalorder %s3034_s27, 3 }
   0xc   : > { %p241_p9 = pnand %p1914_p7, %p240_p8 }
   0xd   : > { %p272_p10 = scmp.lt.s32.totalorder (!%p241_p9), %s3097_s28, 1  ;;  %s269_s18 = sand.u32 (!%p241_p9), 1, %s3026_s25  }
   0xe   : > { %244 = sbr.rel (%p241_p9) target bundleno = 494 (0x1ee), region = 48  ;;  %s1915_s19 = sshll.u32 (!%p241_p9), %s269_s18, 2 }
   0xf   : > { %s271_s21 = scalar_lea.vmem (!%p241_p9), [#allocation2], %s1915_s19  ;;  %s2992_s17 = scalar_lea.hbm (!%p241_p9), %s4254_s7, 8 }
  0x13   : > { %v2008_v0 = vld [vmem:[%s4248_s1 + $0x170] sm:$0xf]  ;;  %v2802_v1 = vld [vmem:[%s4248_s1 + $0x174] sm:$0xf0]  ;;  %v2801_v5 = vld [vmem:[%s4248_s1 + $0x174] sm:$0xf] }
  0x14   : > { %v2072_v2 = vld [vmem:[%s4248_s1 + $0x1f0] sm:$0xf]  ;;  %v2009_v3 = vor.u32 %v2802_v1, %v2008_v0  ;;  %v2818_v4 = vld [vmem:[%s4248_s1 + $0x1f4] sm:$0xf0]  ;;  %v2010_v6 = vld [vmem:[%s4248_s1 + $0x178] sm:$0xf0] }
  0x15   : > { %v2073_v7 = vor.u32 %v2818_v4, %v2072_v2  ;;  %v2013_v8 = vor.u32 %v2801_v5, %v2010_v6  ;;  %v2817_v9 = vld [vmem:[%s4248_s1 + $0x1f4] sm:$0xf]  ;;  %v2074_v10 = vld [vmem:[%s4248_s1 + $0x1f8] sm:$0xf0]  ;;  %v2000_v11 = vld [vmem:[%s4248_s1 + $0x160] sm:$0xf] }
  0x16   : > { %528 = vmatpush.bf16.msra.mxu0 %v2009_v3  ;;  %v2077_v12 = vor.u32 %v2817_v9, %v2074_v10  ;;  %v2800_v13 = vld [vmem:[%s4248_s1 + $0x164] sm:$0xf0]  ;;  %v2064_v14 = vld [vmem:[%s4248_s1 + $0x1e0] sm:$0xf]  ;;  %v2799_v18 = vld [vmem:[%s4248_s1 + $0x164] sm:$0xf] }
  0x17   : > { %v2816_v15 = vld [vmem:[%s4248_s1 + $0x1e4] sm:$0xf0]  ;;  %542 = vmatpush.bf16.msra.mxu1 %v2073_v7  ;;  %556 = vmatpush.bf16.msra.mxu2 %v2013_v8  ;;  %v2001_v16 = vor.u32 %v2800_v13, %v2000_v11  ;;  %v2002_v19 = vld [vmem:[%s4248_s1 + $0x168] sm:$0xf0]  ;;  %v2815_v20 = vld [vmem:[%s4248_s1 + $0x1e4] sm:$0xf] }
  0x18   : > { %v2065_v17 = vor.u32 %v2816_v15, %v2064_v14  ;;  %570 = vmatpush.bf16.msra.mxu3 %v2077_v12  ;;  %v2005_v21 = vor.u32 %v2799_v18, %v2002_v19  ;;  %v2066_v22 = vld [vmem:[%s4248_s1 + $0x1e8] sm:$0xf0]  ;;  %v1992_v23 = vld [vmem:[%s4248_s1 + $0x150] sm:$0xf]  ;;  %v2798_v24 = vld [vmem:[%s4248_s1 + $0x154] sm:$0xf0] }
  0x19   : > { %v2069_v25 = vor.u32 %v2815_v20, %v2066_v22  ;;  %v2056_v26 = vld [vmem:[%s4248_s1 + $0x1d0] sm:$0xf]  ;;  %v2814_v27 = vld [vmem:[%s4248_s1 + $0x1d4] sm:$0xf0]  ;;  %v2797_v28 = vld [vmem:[%s4248_s1 + $0x154] sm:$0xf]  ;;  %v1993_v29 = vor.u32 %v2798_v24, %v1992_v23 }
  0x1a   : > { %529 = vmatpush.bf16.msra.mxu0 %v2001_v16  ;;  %v1994_v30 = vld [vmem:[%s4248_s1 + $0x158] sm:$0xf0]  ;;  %v2813_v31 = vld [vmem:[%s4248_s1 + $0x1d4] sm:$0xf]  ;;  %v2057_v33 = vor.u32 %v2814_v27, %v2056_v26  ;;  %v1984_v35 = vld [vmem:[%s4248_s1 + $0x140] sm:$0xf] }
  0x1b   : > { %v2058_v32 = vld [vmem:[%s4248_s1 + $0x1d8] sm:$0xf0]  ;;  %543 = vmatpush.bf16.msra.mxu1 %v2065_v17  ;;  %557 = vmatpush.bf16.msra.mxu2 %v2005_v21  ;;  %v1997_v34 = vor.u32 %v2797_v28, %v1994_v30  ;;  %v2796_v36 = vld [vmem:[%s4248_s1 + $0x144] sm:$0xf0]  ;;  %v2048_v37 = vld [vmem:[%s4248_s1 + $0x1c0] sm:$0xf] }
  0x1c   : > { %571 = vmatpush.bf16.msra.mxu3 %v2069_v25  ;;  %v2061_v38 = vor.u32 %v2813_v31, %v2058_v32  ;;  %v2812_v39 = vld [vmem:[%s4248_s1 + $0x1c4] sm:$0xf0]  ;;  %v2795_v40 = vld [vmem:[%s4248_s1 + $0x144] sm:$0xf]  ;;  %v1986_v41 = vld [vmem:[%s4248_s1 + $0x148] sm:$0xf0]  ;;  %v1985_v44 = vor.u32 %v2796_v36, %v1984_v35 }
  0x1d   : > { %v2811_v42 = vld [vmem:[%s4248_s1 + $0x1c4] sm:$0xf]  ;;  %v2050_v43 = vld [vmem:[%s4248_s1 + $0x1c8] sm:$0xf0]  ;;  %v2049_v45 = vor.u32 %v2812_v39, %v2048_v37  ;;  %v1989_v46 = vor.u32 %v2795_v40, %v1986_v41  ;;  %v1976_v47 = vld [vmem:[%s4248_s1 + $0x130] sm:$0xf] }
  0x1e   : > { %530 = vmatpush.bf16.msra.mxu0 %v1993_v29  ;;  %v2794_v48 = vld [vmem:[%s4248_s1 + $0x134] sm:$0xf0]  ;;  %v2040_v49 = vld [vmem:[%s4248_s1 + $0x1b0] sm:$0xf]  ;;  %v2053_v50 = vor.u32 %v2811_v42, %v2050_v43  ;;  %v2793_v52 = vld [vmem:[%s4248_s1 + $0x134] sm:$0xf] }
  0x1f   : > { %544 = vmatpush.bf16.msra.mxu1 %v2057_v33  ;;  %558 = vmatpush.bf16.msra.mxu2 %v1997_v34  ;;  %v2810_v51 = vld [vmem:[%s4248_s1 + $0x1b4] sm:$0xf0]  ;;  %v1978_v53 = vld [vmem:[%s4248_s1 + $0x138] sm:$0xf0]  ;;  %v2809_v54 = vld [vmem:[%s4248_s1 + $0x1b4] sm:$0xf]  ;;  %v1977_v56 = vor.u32 %v2794_v48, %v1976_v47 }
  0x20   : > { %572 = vmatpush.bf16.msra.mxu3 %v2061_v38  ;;  %v2042_v55 = vld [vmem:[%s4248_s1 + $0x1b8] sm:$0xf0]  ;;  %v2041_v57 = vor.u32 %v2810_v51, %v2040_v49  ;;  %v1981_v58 = vor.u32 %v2793_v52, %v1978_v53  ;;  %v1968_v59 = vld [vmem:[%s4248_s1 + $0x120] sm:$0xf]  ;;  %v2792_v60 = vld [vmem:[%s4248_s1 + $0x124] sm:$0xf0] }
  0x21   : > { %v2032_v61 = vld [vmem:[%s4248_s1 + $0x1a0] sm:$0xf]  ;;  %v2045_v62 = vor.u32 %v2809_v54, %v2042_v55  ;;  %v2808_v63 = vld [vmem:[%s4248_s1 + $0x1a4] sm:$0xf0]  ;;  %v2791_v0 = vld [vmem:[%s4248_s1 + $0x124] sm:$0xf]  ;;  %v1969_v4 = vor.u32 %v2792_v60, %v1968_v59 }
  0x22   : > { %531 = vmatpush.bf16.msra.mxu0 %v1985_v44  ;;  %v1970_v1 = vld [vmem:[%s4248_s1 + $0x128] sm:$0xf0]  ;;  %v2807_v2 = vld [vmem:[%s4248_s1 + $0x1a4] sm:$0xf]  ;;  %v2033_v5 = vor.u32 %v2808_v63, %v2032_v61  ;;  %v1960_v7 = vld [vmem:[%s4248_s1 + $0x110] sm:$0xf] }
  0x23   : > { %545 = vmatpush.bf16.msra.mxu1 %v2049_v45  ;;  %559 = vmatpush.bf16.msra.mxu2 %v1989_v46  ;;  %v2034_v3 = vld [vmem:[%s4248_s1 + $0x1a8] sm:$0xf0]  ;;  %v1973_v6 = vor.u32 %v2791_v0, %v1970_v1  ;;  %v2790_v8 = vld [vmem:[%s4248_s1 + $0x114] sm:$0xf0]  ;;  %v2024_v9 = vld [vmem:[%s4248_s1 + $0x190] sm:$0xf] }
  0x24   : > { %573 = vmatpush.bf16.msra.mxu3 %v2053_v50  ;;  %v2037_v10 = vor.u32 %v2807_v2, %v2034_v3  ;;  %v2806_v11 = vld [vmem:[%s4248_s1 + $0x194] sm:$0xf0]  ;;  %v2789_v12 = vld [vmem:[%s4248_s1 + $0x114] sm:$0xf]  ;;  %v1962_v13 = vld [vmem:[%s4248_s1 + $0x118] sm:$0xf0]  ;;  %v1961_v16 = vor.u32 %v2790_v8, %v1960_v7 }
  0x25   : > { %v2805_v14 = vld [vmem:[%s4248_s1 + $0x194] sm:$0xf]  ;;  %v2026_v15 = vld [vmem:[%s4248_s1 + $0x198] sm:$0xf0]  ;;  %v1952_v17 = vld [vmem:[%s4248_s1 + $0x100] sm:$0xf]  ;;  %v2025_v19 = vor.u32 %v2806_v11, %v2024_v9  ;;  %v1965_v20 = vor.u32 %v2789_v12, %v1962_v13 }
  0x26   : > { %532 = vmatpush.bf16.msra.mxu0 %v1977_v56  ;;  %v2788_v18 = vld [vmem:[%s4248_s1 + $0x104] sm:$0xf0]  ;;  %v2016_v21 = vld [vmem:[%s4248_s1 + $0x180] sm:$0xf]  ;;  %v2787_v23 = vld [vmem:[%s4248_s1 + $0x104] sm:$0xf]  ;;  %v2029_v24 = vor.u32 %v2805_v14, %v2026_v15 }
  0x27   : > { %546 = vmatpush.bf16.msra.mxu1 %v2041_v57  ;;  %560 = vmatpush.bf16.msra.mxu2 %v1981_v58  ;;  %v2804_v22 = vld [vmem:[%s4248_s1 + $0x184] sm:$0xf0]  ;;  %v1954_v25 = vld [vmem:[%s4248_s1 + $0x108] sm:$0xf0]  ;;  %v2803_v26 = vld [vmem:[%s4248_s1 + $0x184] sm:$0xf]  ;;  %v1953_v31 = vor.u32 %v2788_v18, %v1952_v17 }
  0x28   : > { %574 = vmatpush.bf16.msra.mxu3 %v2045_v62  ;;  %v2018_v27 = vld [vmem:[%s4248_s1 + $0x188] sm:$0xf0]  ;;  %v2136_v28 = vld [vmem:[%s4248_s1 + $0x70] sm:$0xf]  ;;  %v2770_v29 = vld [vmem:[%s4248_s1 + $0x74] sm:$0xf0]  ;;  %v2017_v35 = vor.u32 %v2804_v22, %v2016_v21  ;;  %v1957_v36 = vor.u32 %v2787_v23, %v1954_v25 }
  0x29   : > { %v2200_v30 = vld [vmem:[%s4248_s1 + $0xf0] sm:$0xf]  ;;  %v2786_v32 = vld [vmem:[%s4248_s1 + $0xf4] sm:$0xf0]  ;;  %v2769_v33 = vld [vmem:[%s4248_s1 + $0x74] sm:$0xf]  ;;  %v2021_v39 = vor.u32 %v2803_v26, %v2018_v27  ;;  %v2137_v40 = vor.u32 %v2770_v29, %v2136_v28 }
  0x2a   : > { %533 = vmatpush.bf16.msra.mxu0 %v1969_v4  ;;  %v2138_v34 = vld [vmem:[%s4248_s1 + $0x78] sm:$0xf0]  ;;  %v2785_v37 = vld [vmem:[%s4248_s1 + $0xf4] sm:$0xf]  ;;  %v2201_v41 = vor.u32 %v2786_v32, %v2200_v30  ;;  %v2128_v43 = vld [vmem:[%s4248_s1 + $0x60] sm:$0xf] }
  0x2b   : > { %547 = vmatpush.bf16.msra.mxu1 %v2033_v5  ;;  %561 = vmatpush.bf16.msra.mxu2 %v1973_v6  ;;  %v2202_v38 = vld [vmem:[%s4248_s1 + $0xf8] sm:$0xf0]  ;;  %v2141_v42 = vor.u32 %v2769_v33, %v2138_v34  ;;  %v2768_v44 = vld [vmem:[%s4248_s1 + $0x64] sm:$0xf0]  ;;  %v2192_v45 = vld [vmem:[%s4248_s1 + $0xe0] sm:$0xf] }
  0x2c   : > { %575 = vmatpush.bf16.msra.mxu3 %v2037_v10  ;;  %v2205_v46 = vor.u32 %v2785_v37, %v2202_v38  ;;  %v2784_v47 = vld [vmem:[%s4248_s1 + $0xe4] sm:$0xf0]  ;;  %v2767_v48 = vld [vmem:[%s4248_s1 + $0x64] sm:$0xf]  ;;  %v2130_v49 = vld [vmem:[%s4248_s1 + $0x68] sm:$0xf0]  ;;  %v2129_v52 = vor.u32 %v2768_v44, %v2128_v43 }
  0x2d   : > { %v2783_v50 = vld [vmem:[%s4248_s1 + $0xe4] sm:$0xf]  ;;  %v2194_v51 = vld [vmem:[%s4248_s1 + $0xe8] sm:$0xf0]  ;;  %v2120_v53 = vld [vmem:[%s4248_s1 + $0x50] sm:$0xf]  ;;  %v2193_v56 = vor.u32 %v2784_v47, %v2192_v45  ;;  %v2133_v57 = vor.u32 %v2767_v48, %v2130_v49 }
  0x2e   : > { %534 = vmatpush.bf16.msra.mxu0 %v1961_v16  ;;  %v2766_v54 = vld [vmem:[%s4248_s1 + $0x54] sm:$0xf0]  ;;  %v2184_v55 = vld [vmem:[%s4248_s1 + $0xd0] sm:$0xf]  ;;  %v2765_v59 = vld [vmem:[%s4248_s1 + $0x54] sm:$0xf]  ;;  %v2197_v60 = vor.u32 %v2783_v50, %v2194_v51 }
  0x2f   : > { %548 = vmatpush.bf16.msra.mxu1 %v2025_v19  ;;  %562 = vmatpush.bf16.msra.mxu2 %v1965_v20  ;;  %v2782_v58 = vld [vmem:[%s4248_s1 + $0xd4] sm:$0xf0]  ;;  %s273_s15 = scalar_select %p272_p10, %s3097_s28, 1  ;;  %v2122_v61 = vld [vmem:[%s4248_s1 + $0x58] sm:$0xf0]  ;;  %v2121_v1 = vor.u32 %v2766_v54, %v2120_v53  ;;  %vm359_vm0 = vcmask 1045504  }
  0x30   : > { %576 = vmatpush.bf16.msra.mxu3 %v2029_v24  ;;  %v2781_v62 = vld [vmem:[%s4248_s1 + $0xd4] sm:$0xf]  ;;  %v2186_v63 = vld [vmem:[%s4248_s1 + $0xd8] sm:$0xf0]  ;;  %v2112_v0 = vld [vmem:[%s4248_s1 + $0x40] sm:$0xf]  ;;  %v2185_v5 = vor.u32 %v2782_v58, %v2184_v55  ;;  %v2125_v6 = vor.u32 %v2765_v59, %v2122_v61 }
  0x31   : > { %s2754_s29 = sshll.u32 %s273_s15, 5  ;;  %v2764_v2 = vld [vmem:[%s4248_s1 + $0x44] sm:$0xf0]  ;;  %v2176_v3 = vld [vmem:[%s4248_s1 + $0xc0] sm:$0xf]  ;;  %v2189_v7 = vor.u32 %v2781_v62, %v2186_v63  ;;  %vm1802_vm1 = vcmask 1043456  }
  0x32   : > { %535 = vmatpush.bf16.msra.mxu0 %v1953_v31  ;;  %v2780_v4 = vld [vmem:[%s4248_s1 + $0xc4] sm:$0xf0]  ;;  %s3405_s20 = scalar_lea.vmem %s4247_s0, %s2754_s29  ;;  %v2763_v11 = vld [vmem:[%s4248_s1 + $0x44] sm:$0xf]  ;;  %v2114_v12 = vld [vmem:[%s4248_s1 + $0x48] sm:$0xf0]  ;;  %v2113_v17 = vor.u32 %v2764_v2, %v2112_v0 }
  0x33   : > { %549 = vmatpush.bf16.msra.mxu1 %v2017_v35  ;;  %563 = vmatpush.bf16.msra.mxu2 %v1957_v36  ;;  %v278_v8 = vld [vmem:[%s3405_s20 + $0x8] sm:$0xff]  ;;  %v311_v9 = vld [vmem:[%s3405_s20] sm:$0xcc]  ;;  %v312_v10 = vld [vmem:[%s3405_s20 + $0x10] sm:$0x33]  ;;  %v2177_v22 = vor.u32 %v2780_v4, %v2176_v3  ;;  %v2117_v26 = vor.u32 %v2763_v11, %v2114_v12  ;;  %vm1811_vm2 = vcmask 1047556  }
  0x34   : > { %577 = vmatpush.bf16.msra.mxu3 %v2021_v39  ;;  %v349_v13 = vunpack.c.l.b16 %v311_v9  ;;  %v3416_v14 = vunpack.c.l.b16 %v278_v8  ;;  %v353_v15 = vunpack.c.l.b16 %v312_v10  ;;  %v350_v16 = vunpack.c.h.b16 %v311_v9  ;;  %v2779_v18 = vld [vmem:[%s4248_s1 + $0xc4] sm:$0xf]  ;;  %v2178_v19 = vld [vmem:[%s4248_s1 + $0xc8] sm:$0xf0]  ;;  %v2104_v25 = vld [vmem:[%s4248_s1 + $0x30] sm:$0xf] }
  0x35   : > { %v3424_v20 = vunpack.c.h.b16 %v278_v8  ;;  %v354_v21 = vunpack.c.h.b16 %v312_v10  ;;  %v2762_v27 = vld [vmem:[%s4248_s1 + $0x34] sm:$0xf0]  ;;  %v2168_v28 = vld [vmem:[%s4248_s1 + $0xb0] sm:$0xf]  ;;  %v2181_v32 = vor.u32 %v2779_v18, %v2178_v19  ;;  %v2761_v35 = vld [vmem:[%s4248_s1 + $0x34] sm:$0xf] }
  0x36   : > { %751 = vmatpush.bf16.msrb.mxu0 %v2137_v40  ;;  %v355_v23 = vpack.c.b16 %v3416_v14, %v349_v13  ;;  %v357_v24 = vpack.c.b16 %v353_v15, %v353_v15  ;;  %v2778_v29 = vld [vmem:[%s4248_s1 + $0xb4] sm:$0xf0]  ;;  %v2106_v36 = vld [vmem:[%s4248_s1 + $0x38] sm:$0xf0]  ;;  %v2777_v37 = vld [vmem:[%s4248_s1 + $0xb4] sm:$0xf] }
  0x37   : > { %765 = vmatpush.bf16.msrb.mxu1 %v2201_v41  ;;  %779 = vmatpush.bf16.msrb.mxu2 %v2141_v42  ;;  %v356_v30 = vpack.c.b16 %v3424_v20, %v350_v16  ;;  %v358_v31 = vpack.c.b16 %v354_v21, %v354_v21  ;;  %v2170_v38 = vld [vmem:[%s4248_s1 + $0xb8] sm:$0xf0]  ;;  %v2105_v42 = vor.u32 %v2762_v27, %v2104_v25  ;;  %v2760_v47 = vld [vmem:[%s4248_s1 + $0x24] sm:$0xf0]  ;;  %v2160_v48 = vld [vmem:[%s4248_s1 + $0xa0] sm:$0xf] }
  0x38   : > { %793 = vmatpush.bf16.msrb.mxu3 %v2205_v46  ;;  %v360_v33 = vrot.slane %v355_v23, 2  ;;  %v361_v34 = vrot.slane %v357_v24, 2  ;;  %v2169_v43 = vor.u32 %v2778_v29, %v2168_v28  ;;  %v2109_v44 = vor.u32 %v2761_v35, %v2106_v36  ;;  %v2096_v46 = vld [vmem:[%s4248_s1 + $0x20] sm:$0xf]  ;;  %v2776_v50 = vld [vmem:[%s4248_s1 + $0xa4] sm:$0xf0] }
  0x39   : > { %v363_v39 = vrot.slane %v356_v30, 2  ;;  %v364_v40 = vrot.slane %v358_v31, 2  ;;  %v2173_v49 = vor.u32 %v2777_v37, %v2170_v38  ;;  %v2759_v51 = vld [vmem:[%s4248_s1 + $0x24] sm:$0xf]  ;;  %v2162_v54 = vld [vmem:[%s4248_s1 + $0xa8] sm:$0xf0]  ;;  %v2097_v55 = vor.u32 %v2760_v47, %v2096_v46 }
  0x3a   : > { %752 = vmatpush.bf16.msrb.mxu0 %v2129_v52  ;;  %v362_v41 = vsel %vm359_vm0, %v360_v33, %v361_v34  ;;  %v2098_v52 = vld [vmem:[%s4248_s1 + $0x28] sm:$0xf0]  ;;  %v2775_v53 = vld [vmem:[%s4248_s1 + $0xa4] sm:$0xf]  ;;  %v2088_v58 = vld [vmem:[%s4248_s1 + $0x10] sm:$0xf] }
  0x3b   : > { %766 = vmatpush.bf16.msrb.mxu1 %v2193_v56  ;;  %780 = vmatpush.bf16.msrb.mxu2 %v2133_v57  ;;  %v365_v45 = vsel %vm359_vm0, %v363_v39, %v364_v40  ;;  %v2161_v56 = vor.u32 %v2776_v50, %v2160_v48  ;;  %v2101_v57 = vor.u32 %v2759_v51, %v2098_v52  ;;  %v2758_v59 = vld [vmem:[%s4248_s1 + $0x14] sm:$0xf0]  ;;  %v2757_v63 = vld [vmem:[%s4248_s1 + $0x14] sm:$0xf]  ;;  %v2090_v0 = vld [vmem:[%s4248_s1 + $0x18] sm:$0xf0] }
  0x3c   : > { %794 = vmatpush.bf16.msrb.mxu3 %v2197_v60  ;;  %536 = vmatmul.bf16.vlgmr.msra.gmra.mxu0 %v362_v41  ;;  %v2152_v60 = vld [vmem:[%s4248_s1 + $0x90] sm:$0xf]  ;;  %v2165_v61 = vor.u32 %v2775_v53, %v2162_v54  ;;  %v2774_v62 = vld [vmem:[%s4248_s1 + $0x94] sm:$0xf0]  ;;  %v2154_v2 = vld [vmem:[%s4248_s1 + $0x98] sm:$0xf0]  ;;  %v2089_v3 = vor.u32 %v2758_v59, %v2088_v58  ;;  %v2093_v8 = vor.u32 %v2757_v63, %v2090_v0 }
  0x3d   : > { %564 = vmatmul.bf16.vlgmr.msra.gmra.mxu2 %v362_v41  ;;  %550 = vmatmul.bf16.vlgmr.msra.gmra.mxu1 %v365_v45  ;;  %v2080_v4 = vld [vmem:[%s4248_s1] sm:$0xf]  ;;  %v2772_v9 = vld [vmem:[%s4248_s1 + $0x84] sm:$0xf0]  ;;  %v2755_v10 = vld [vmem:[%s4248_s1 + $0x4] sm:$0xf] }
  0x3e   : > { %753 = vmatpush.bf16.msrb.mxu0 %v2121_v1  ;;  %578 = vmatmul.bf16.vlgmr.msra.gmra.mxu3 %v365_v45  ;;  %v2773_v1 = vld [vmem:[%s4248_s1 + $0x94] sm:$0xf]  ;;  %v277_v11 = vld [vmem:[%s3405_s20] sm:$0xff]  ;;  %v2082_v13 = vld [vmem:[%s4248_s1 + $0x8] sm:$0xf0]  ;;  %s2751_s15 = sshll.u32 %s3097_s28, 2 }
  0x3f   : > { %767 = vmatpush.bf16.msrb.mxu1 %v2185_v5  ;;  %781 = vmatpush.bf16.msrb.mxu2 %v2125_v6  ;;  %v2756_v5 = vld [vmem:[%s4248_s1 + $0x4] sm:$0xf0]  ;;  %v2144_v6 = vld [vmem:[%s4248_s1 + $0x80] sm:$0xf]  ;;  %v2157_v12 = vor.u32 %v2773_v1, %v2154_v2  ;;  %v2771_v15 = vld [vmem:[%s4248_s1 + $0x84] sm:$0xf]  ;;  %v585_v25 = vunpack.c.l.b16 %v277_v11  ;;  %v2085_v27 = vor.u32 %v2755_v10, %v2082_v13  ;;  %v586_v30 = vunpack.c.h.b16 %v277_v11  ;;  %s1847_s29 = scalar_lea.hbm %s4254_s7, %s2751_s15 }
  0x40   : > { %795 = vmatpush.bf16.msrb.mxu3 %v2189_v7  ;;  %v2153_v7 = vor.u32 %v2774_v62, %v2152_v60  ;;  %v2146_v16 = vld [vmem:[%s4248_s1 + $0x88] sm:$0xf0]  ;;  %v2834_v18 = vld [vmem:[%s4248_s1 + $0x274] sm:$0xf0]  ;;  %v2360_v19 = vld [vmem:[%s4248_s1 + $0x2f0] sm:$0xf]  ;;  %v2081_v21 = vor.u32 %v2756_v5, %v2080_v4 }
  0x41   : > { %v2833_v23 = vld [vmem:[%s4248_s1 + $0x274] sm:$0xf]  ;;  %v2298_v24 = vld [vmem:[%s4248_s1 + $0x278] sm:$0xf0]  ;;  %v2149_v31 = vor.u32 %v2771_v15, %v2146_v16  ;;  %v2288_v35 = vld [vmem:[%s4248_s1 + $0x260] sm:$0xf]  ;;  %v587_v39 = vpack.c.b16 %v3416_v14, %v585_v25 }
  0x42   : > { %754 = vmatpush.bf16.msrb.mxu0 %v2113_v17  ;;  %v2296_v17 = vld [vmem:[%s4248_s1 + $0x270] sm:$0xf]  ;;  %v2849_v28 = vld [vmem:[%s4248_s1 + $0x2f4] sm:$0xf]  ;;  %v2362_v29 = vld [vmem:[%s4248_s1 + $0x2f8] sm:$0xf0]  ;;  %v2301_v34 = vor.u32 %v2833_v23, %v2298_v24 }
  0x43   : > { %768 = vmatpush.bf16.msrb.mxu1 %v2177_v22  ;;  %782 = vmatpush.bf16.msrb.mxu2 %v2117_v26  ;;  %v2850_v22 = vld [vmem:[%s4248_s1 + $0x2f4] sm:$0xf0]  ;;  %v2145_v26 = vor.u32 %v2772_v9, %v2144_v6  ;;  %v2832_v36 = vld [vmem:[%s4248_s1 + $0x264] sm:$0xf0]  ;;  %v2352_v37 = vld [vmem:[%s4248_s1 + $0x2e0] sm:$0xf]  ;;  %v2365_v38 = vor.u32 %v2849_v28, %v2362_v29 }
  0x44   : > { %796 = vmatpush.bf16.msrb.mxu3 %v2181_v32  ;;  %v2297_v32 = vor.u32 %v2834_v18, %v2296_v17  ;;  %v2361_v33 = vor.u32 %v2850_v22, %v2360_v19  ;;  %v2848_v40 = vld [vmem:[%s4248_s1 + $0x2e4] sm:$0xf0]  ;;  %v2831_v41 = vld [vmem:[%s4248_s1 + $0x264] sm:$0xf]  ;;  %v2354_v45 = vld [vmem:[%s4248_s1 + $0x2e8] sm:$0xf0]  ;;  %v2289_v46 = vor.u32 %v2832_v36, %v2288_v35 }
  0x45   : > { %v2353_v47 = vor.u32 %v2848_v40, %v2352_v37  ;;  %v2830_v50 = vld [vmem:[%s4248_s1 + $0x254] sm:$0xf0]  ;;  %v2344_v51 = vld [vmem:[%s4248_s1 + $0x2d0] sm:$0xf]  ;;  %v2829_v54 = vld [vmem:[%s4248_s1 + $0x254] sm:$0xf] }
  0x46   : > { %755 = vmatpush.bf16.msrb.mxu0 %v2105_v42  ;;  %v2290_v42 = vld [vmem:[%s4248_s1 + $0x268] sm:$0xf0]  ;;  %v2846_v53 = vld [vmem:[%s4248_s1 + $0x2d4] sm:$0xf0]  ;;  %v2828_v62 = vld [vmem:[%s4248_s1 + $0x244] sm:$0xf0] }
  0x47   : > { %769 = vmatpush.bf16.msrb.mxu1 %v2169_v43  ;;  %783 = vmatpush.bf16.msrb.mxu2 %v2109_v44  ;;  %v588_v43 = vpack.c.b16 %v3424_v20, %v586_v30  ;;  %v2847_v44 = vld [vmem:[%s4248_s1 + $0x2e4] sm:$0xf]  ;;  %v2293_v48 = vor.u32 %v2831_v41, %v2290_v42  ;;  %v2345_v59 = vor.u32 %v2846_v53, %v2344_v51  ;;  %v2336_v63 = vld [vmem:[%s4248_s1 + $0x2c0] sm:$0xf]  ;;  %v2844_v1 = vld [vmem:[%s4248_s1 + $0x2c4] sm:$0xf0] }
  0x48   : > { %797 = vmatpush.bf16.msrb.mxu3 %v2173_v49  ;;  %v2280_v49 = vld [vmem:[%s4248_s1 + $0x250] sm:$0xf]  ;;  %v2357_v52 = vor.u32 %v2847_v44, %v2354_v45  ;;  %v2827_v2 = vld [vmem:[%s4248_s1 + $0x244] sm:$0xf]  ;;  %v2338_v5 = vld [vmem:[%s4248_s1 + $0x2c8] sm:$0xf0] }
  0x49   : > { %v2281_v58 = vor.u32 %v2830_v50, %v2280_v49  ;;  %v2843_v4 = vld [vmem:[%s4248_s1 + $0x2c4] sm:$0xf]  ;;  %v2264_v9 = vld [vmem:[%s4248_s1 + $0x230] sm:$0xf]  ;;  %v2826_v10 = vld [vmem:[%s4248_s1 + $0x234] sm:$0xf0] }
  0x4a   : > { %756 = vmatpush.bf16.msrb.mxu0 %v2097_v55  ;;  %v2282_v55 = vld [vmem:[%s4248_s1 + $0x258] sm:$0xf0]  ;;  %v2328_v11 = vld [vmem:[%s4248_s1 + $0x2b0] sm:$0xf]  ;;  %v2842_v13 = vld [vmem:[%s4248_s1 + $0x2b4] sm:$0xf0]  ;;  %v2265_v19 = vor.u32 %v2826_v10, %v2264_v9 }
  0x4b   : > { %770 = vmatpush.bf16.msrb.mxu1 %v2161_v56  ;;  %784 = vmatpush.bf16.msrb.mxu2 %v2101_v57  ;;  %v2845_v56 = vld [vmem:[%s4248_s1 + $0x2d4] sm:$0xf]  ;;  %v2346_v57 = vld [vmem:[%s4248_s1 + $0x2d8] sm:$0xf0]  ;;  %v2285_v60 = vor.u32 %v2829_v54, %v2282_v55  ;;  %v2256_v23 = vld [vmem:[%s4248_s1 + $0x220] sm:$0xf] }
  0x4c   : > { %798 = vmatpush.bf16.msrb.mxu3 %v2165_v61  ;;  %v2272_v61 = vld [vmem:[%s4248_s1 + $0x240] sm:$0xf]  ;;  %v2349_v0 = vor.u32 %v2845_v56, %v2346_v57  ;;  %v2825_v15 = vld [vmem:[%s4248_s1 + $0x234] sm:$0xf]  ;;  %v2266_v16 = vld [vmem:[%s4248_s1 + $0x238] sm:$0xf0] }
  0x4d   : > { %v2273_v6 = vor.u32 %v2828_v62, %v2272_v61  ;;  %v2841_v17 = vld [vmem:[%s4248_s1 + $0x2b4] sm:$0xf]  ;;  %v2330_v18 = vld [vmem:[%s4248_s1 + $0x2b8] sm:$0xf0]  ;;  %v2269_v22 = vor.u32 %v2825_v15, %v2266_v16  ;;  %v2824_v24 = vld [vmem:[%s4248_s1 + $0x224] sm:$0xf0] }
  0x4e   : > { %757 = vmatpush.bf16.msrb.mxu0 %v2089_v3  ;;  %v2274_v3 = vld [vmem:[%s4248_s1 + $0x248] sm:$0xf0]  ;;  %v2320_v25 = vld [vmem:[%s4248_s1 + $0x2a0] sm:$0xf]  ;;  %v2823_v28 = vld [vmem:[%s4248_s1 + $0x224] sm:$0xf] }
  0x4f   : > { %771 = vmatpush.bf16.msrb.mxu1 %v2153_v7  ;;  %785 = vmatpush.bf16.msrb.mxu2 %v2093_v8  ;;  %v2337_v7 = vor.u32 %v2844_v1, %v2336_v63  ;;  %v2277_v8 = vor.u32 %v2827_v2, %v2274_v3  ;;  %v2258_v29 = vld [vmem:[%s4248_s1 + $0x228] sm:$0xf0]  ;;  %v2839_v30 = vld [vmem:[%s4248_s1 + $0x2a4] sm:$0xf]  ;;  %v2822_v36 = vld [vmem:[%s4248_s1 + $0x214] sm:$0xf0] }
  0x50   : > { %799 = vmatpush.bf16.msrb.mxu3 %v2157_v12  ;;  %v2341_v12 = vor.u32 %v2843_v4, %v2338_v5  ;;  %v2261_v35 = vor.u32 %v2823_v28, %v2258_v29  ;;  %v2312_v37 = vld [vmem:[%s4248_s1 + $0x290] sm:$0xf]  ;;  %v2821_v40 = vld [vmem:[%s4248_s1 + $0x214] sm:$0xf]  ;;  %v2250_v41 = vld [vmem:[%s4248_s1 + $0x218] sm:$0xf0] }
  0x51   : > { %v2837_v42 = vld [vmem:[%s4248_s1 + $0x294] sm:$0xf]  ;;  %v2240_v44 = vld [vmem:[%s4248_s1 + $0x200] sm:$0xf]  ;;  %v2820_v45 = vld [vmem:[%s4248_s1 + $0x204] sm:$0xf0]  ;;  %v2253_v51 = vor.u32 %v2821_v40, %v2250_v41 }
  0x52   : > { %758 = vmatpush.bf16.msrb.mxu0 %v2081_v21  ;;  %v2329_v21 = vor.u32 %v2842_v13, %v2328_v11  ;;  %v2819_v49 = vld [vmem:[%s4248_s1 + $0x204] sm:$0xf]  ;;  %v807_v54 = vld [vmem:[%s3405_s20 + $0x10] sm:$0xff]  ;;  %v2306_v56 = vld [vmem:[%s4248_s1 + $0x288] sm:$0xf0]  ;;  %s1851_s8 = sshll.u32 %s1847_s29, 4  ;;  %s1852_s8 = int_to_ptr.hbm [resolvable:$true] %s1851_s8 }
  0x53   : > { %772 = vmatpush.bf16.msrb.mxu1 %v2145_v26  ;;  %786 = vmatpush.bf16.msrb.mxu2 %v2085_v27  ;;  %v2333_v26 = vor.u32 %v2841_v17, %v2330_v18  ;;  %v2840_v27 = vld [vmem:[%s4248_s1 + $0x2a4] sm:$0xf0]  ;;  %v2835_v53 = vld [vmem:[%s4248_s1 + $0x284] sm:$0xf]  ;;  %v2456_v57 = vld [vmem:[%s4248_s1 + $0x370] sm:$0xf]  ;;  %v3748_v5 = vunpack.c.h.b16 %v807_v54 }
  0x54   : > { %800 = vmatpush.bf16.msrb.mxu3 %v2149_v31  ;;  %v2322_v31 = vld [vmem:[%s4248_s1 + $0x2a8] sm:$0xf0]  ;;  %v2882_v61 = vld [vmem:[%s4248_s1 + $0x3f4] sm:$0xf0]  ;;  %v2865_v62 = vld [vmem:[%s4248_s1 + $0x374] sm:$0xf] }
  0x55   : > { %759 = vmatmul.bf16.vlgmr.msrb.gmra.mxu0 %v587_v39  ;;  %v2458_v63 = vld [vmem:[%s4248_s1 + $0x378] sm:$0xf0]  ;;  %v2881_v3 = vld [vmem:[%s4248_s1 + $0x3f4] sm:$0xf]  ;;  %v2448_v10 = vld [vmem:[%s4248_s1 + $0x360] sm:$0xf] }
  0x56   : > { %1008 = vmatpush.bf16.msra.mxu0 %v2297_v32  ;;  %787 = vmatmul.bf16.vlgmr.msrb.gmra.mxu2 %v587_v39  ;;  %v2257_v32 = vor.u32 %v2824_v24, %v2256_v23  ;;  %v2325_v39 = vor.u32 %v2839_v30, %v2322_v31  ;;  %v2522_v4 = vld [vmem:[%s4248_s1 + $0x3f8] sm:$0xf0]  ;;  %v2461_v9 = vor.u32 %v2865_v62, %v2458_v63  ;;  %v2864_v11 = vld [vmem:[%s4248_s1 + $0x364] sm:$0xf0]  ;;  %v2863_v17 = vld [vmem:[%s4248_s1 + $0x364] sm:$0xf] }
  0x57   : > { %1022 = vmatpush.bf16.msra.mxu1 %v2361_v33  ;;  %1036 = vmatpush.bf16.msra.mxu2 %v2301_v34  ;;  %v2248_v33 = vld [vmem:[%s4248_s1 + $0x210] sm:$0xf]  ;;  %v2321_v34 = vor.u32 %v2840_v27, %v2320_v25  ;;  %v2525_v13 = vor.u32 %v2881_v3, %v2522_v4  ;;  %v2880_v16 = vld [vmem:[%s4248_s1 + $0x3e4] sm:$0xf0]  ;;  %v2450_v18 = vld [vmem:[%s4248_s1 + $0x368] sm:$0xf0] }
  0x58   : > { %1050 = vmatpush.bf16.msra.mxu3 %v2365_v38  ;;  %773 = vmatmul.bf16.vlgmr.msrb.gmra.mxu1 %v588_v43  ;;  %v2838_v38 = vld [vmem:[%s4248_s1 + $0x294] sm:$0xf0]  ;;  %v2453_v24 = vor.u32 %v2863_v17, %v2450_v18  ;;  %v2440_v25 = vld [vmem:[%s4248_s1 + $0x350] sm:$0xf]  ;;  %v2861_v29 = vld [vmem:[%s4248_s1 + $0x354] sm:$0xf] }
  0x59   : > { %801 = vmatmul.bf16.vlgmr.msrb.gmra.mxu3 %v588_v43  ;;  %v2314_v43 = vld [vmem:[%s4248_s1 + $0x298] sm:$0xf0]  ;;  %v2313_v50 = vor.u32 %v2838_v38, %v2312_v37  ;;  %v2878_v28 = vld [vmem:[%s4248_s1 + $0x3d4] sm:$0xf0]  ;;  %v2877_v31 = vld [vmem:[%s4248_s1 + $0x3d4] sm:$0xf] }
  0x5a   : > { %1009 = vmatpush.bf16.msra.mxu0 %v2289_v46  ;;  %v2249_v46 = vor.u32 %v2822_v36, %v2248_v33  ;;  %v2317_v55 = vor.u32 %v2837_v42, %v2314_v43  ;;  %v2442_v30 = vld [vmem:[%s4248_s1 + $0x358] sm:$0xf0]  ;;  %v2432_v36 = vld [vmem:[%s4248_s1 + $0x340] sm:$0xf]  ;;  %v2860_v37 = vld [vmem:[%s4248_s1 + $0x344] sm:$0xf0] }
  0x5b   : > { %1023 = vmatpush.bf16.msra.mxu1 %v2353_v47  ;;  %1037 = vmatpush.bf16.msra.mxu2 %v2293_v48  ;;  %v2304_v47 = vld [vmem:[%s4248_s1 + $0x280] sm:$0xf]  ;;  %v2836_v48 = vld [vmem:[%s4248_s1 + $0x284] sm:$0xf0]  ;;  %v2859_v41 = vld [vmem:[%s4248_s1 + $0x344] sm:$0xf] }
  0x5c   : > { %1051 = vmatpush.bf16.msra.mxu3 %v2357_v52  ;;  %v2242_v52 = vld [vmem:[%s4248_s1 + $0x208] sm:$0xf0]  ;;  %v2305_v1 = vor.u32 %v2836_v48, %v2304_v47  ;;  %v2496_v38 = vld [vmem:[%s4248_s1 + $0x3c0] sm:$0xf]  ;;  %v2876_v40 = vld [vmem:[%s4248_s1 + $0x3c4] sm:$0xf0] }
  0x5d   : > { %v2245_v2 = vor.u32 %v2819_v49, %v2242_v52  ;;  %v2434_v42 = vld [vmem:[%s4248_s1 + $0x348] sm:$0xf0]  ;;  %v2875_v43 = vld [vmem:[%s4248_s1 + $0x3c4] sm:$0xf]  ;;  %v2424_v48 = vld [vmem:[%s4248_s1 + $0x330] sm:$0xf] }
  0x5e   : > { %1010 = vmatpush.bf16.msra.mxu0 %v2281_v58  ;;  %v2866_v58 = vld [vmem:[%s4248_s1 + $0x374] sm:$0xf0]  ;;  %v2437_v47 = vor.u32 %v2859_v41, %v2434_v42  ;;  %v2480_v62 = vld [vmem:[%s4248_s1 + $0x3a0] sm:$0xf]  ;;  %v2872_v63 = vld [vmem:[%s4248_s1 + $0x3a4] sm:$0xf0] }
  0x5f   : > { %1024 = vmatpush.bf16.msra.mxu1 %v2345_v59  ;;  %1038 = vmatpush.bf16.msra.mxu2 %v2285_v60  ;;  %v2520_v59 = vld [vmem:[%s4248_s1 + $0x3f0] sm:$0xf]  ;;  %v2241_v60 = vor.u32 %v2820_v45, %v2240_v44  ;;  %v2498_v44 = vld [vmem:[%s4248_s1 + $0x3c8] sm:$0xf0]  ;;  %v2433_v45 = vor.u32 %v2860_v37, %v2432_v36  ;;  %v2858_v49 = vld [vmem:[%s4248_s1 + $0x334] sm:$0xf0] }
  0x60   : > { %1052 = vmatpush.bf16.msra.mxu3 %v2349_v0  ;;  %v3740_v0 = vunpack.c.l.b16 %v807_v54  ;;  %v2874_v52 = vld [vmem:[%s4248_s1 + $0x3b4] sm:$0xf0]  ;;  %v2426_v54 = vld [vmem:[%s4248_s1 + $0x338] sm:$0xf0]  ;;  %v2418_v3 = vld [vmem:[%s4248_s1 + $0x328] sm:$0xf0] }
  0x61   : > { %v1068_v4 = vld [vmem:[%s3405_s20 + $0x8] sm:$0xcc]  ;;  %v2867_v37 = vld [vmem:[%s4248_s1 + $0x384] sm:$0xf]  ;;  %v2616_v41 = vld [vmem:[%s4248_s1 + $0x470] sm:$0xf] }
  0x62   : > { %1011 = vmatpush.bf16.msra.mxu0 %v2273_v6  ;;  %v2309_v6 = vor.u32 %v2835_v53, %v2306_v56  ;;  %v844_v15 = vpack.c.b16 %v3740_v0, %v3416_v14  ;;  %v2879_v14 = vld [vmem:[%s4248_s1 + $0x3e4] sm:$0xf]  ;;  %v2857_v53 = vld [vmem:[%s4248_s1 + $0x334] sm:$0xf]  ;;  %v2490_v56 = vld [vmem:[%s4248_s1 + $0x3b8] sm:$0xf0]  ;;  %v1107_v17 = vunpack.c.l.b16 %v1068_v4 }
  0x63   : > { %1025 = vmatpush.bf16.msra.mxu1 %v2337_v7  ;;  %1039 = vmatpush.bf16.msra.mxu2 %v2277_v8  ;;  %v2457_v7 = vor.u32 %v2866_v58, %v2456_v57  ;;  %v2521_v8 = vor.u32 %v2882_v61, %v2520_v59  ;;  %v2425_v57 = vor.u32 %v2858_v49, %v2424_v48  ;;  %v2416_v58 = vld [vmem:[%s4248_s1 + $0x320] sm:$0xf]  ;;  %v2856_v59 = vld [vmem:[%s4248_s1 + $0x324] sm:$0xf0]  ;;  %v2402_v36 = vld [vmem:[%s4248_s1 + $0x308] sm:$0xf0] }
  0x64   : > { %1053 = vmatpush.bf16.msra.mxu3 %v2341_v12  ;;  %v2512_v12 = vld [vmem:[%s4248_s1 + $0x3e0] sm:$0xf]  ;;  %v2429_v61 = vor.u32 %v2857_v53, %v2426_v54  ;;  %v2898_v42 = vld [vmem:[%s4248_s1 + $0x474] sm:$0xf0]  ;;  %s1837_s28 = scalar_lea.sflag [#allocation3], %s269_s18  ;;  %s2986_s9 = sshra.s32 %s1852_s8, 4  ;;  %s2987_s9 = int_to_ptr.hbm [resolvable:$true] %s2986_s9 }
  0x65   : > { %v2513_v23 = vor.u32 %v2880_v16, %v2512_v12  ;;  %v2870_v16 = vld [vmem:[%s4248_s1 + $0x394] sm:$0xf0]  ;;  %s2988_s13 = scalar_lea.hbm %s2987_s9, 4  ;;  %p2993_p0 = scmp.lt.s32.totalorder %s2987_s9, %s4254_s7 }
  0x66   : > { %1012 = vmatpush.bf16.msra.mxu0 %v2265_v19  ;;  %v845_v19 = vpack.c.b16 %v3748_v5, %v3424_v20  ;;  %v2862_v20 = vld [vmem:[%s4248_s1 + $0x354] sm:$0xf0]  ;;  %p2989_p11 = scmp.ne.s32.totalorder %s2987_s9, %s2988_s13  ;;  %p2994_p1 = scmp.lt.s32.totalorder %s2992_s17, %s2988_s13 }
  0x67   : > { %1026 = vmatpush.bf16.msra.mxu1 %v2329_v21  ;;  %1040 = vmatpush.bf16.msra.mxu2 %v2269_v22  ;;  %v2514_v21 = vld [vmem:[%s4248_s1 + $0x3e8] sm:$0xf0]  ;;  %v2449_v22 = vor.u32 %v2864_v11, %v2448_v10  ;;  %v2441_v33 = vor.u32 %v2862_v20, %v2440_v25  ;;  %v2408_v10 = vld [vmem:[%s4248_s1 + $0x310] sm:$0xf]  ;;  %v2481_v11 = vor.u32 %v2872_v63, %v2480_v62  ;;  %v2474_v25 = vld [vmem:[%s4248_s1 + $0x398] sm:$0xf0] }
  0x68   : > { %1054 = vmatpush.bf16.msra.mxu3 %v2333_v26  ;;  %v2504_v26 = vld [vmem:[%s4248_s1 + $0x3d0] sm:$0xf]  ;;  %v2517_v27 = vor.u32 %v2879_v14, %v2514_v21  ;;  %v2853_v14 = vld [vmem:[%s4248_s1 + $0x314] sm:$0xf]  ;;  %v2410_v21 = vld [vmem:[%s4248_s1 + $0x318] sm:$0xf0]  ;;  %p2990_p12 = pnand %p2989_p11, %p3114_p5  ;;  %p2995_p2 = por %p2994_p1, %p2993_p0 }
  0x69   : > { %v2672_v62 = vld [vmem:[%s4248_s1 + $0x4e0] sm:$0xf] }
  0x6a   : > { %1013 = vmatpush.bf16.msra.mxu0 %v2257_v32  ;;  %v2506_v32 = vld [vmem:[%s4248_s1 + $0x3d8] sm:$0xf0]  ;;  %p2991_p13 = pneg %p2990_p12 }
  0x6b   : > { %1027 = vmatpush.bf16.msra.mxu1 %v2321_v34  ;;  %1041 = vmatpush.bf16.msra.mxu2 %v2261_v35  ;;  %v2505_v34 = vor.u32 %v2878_v28, %v2504_v26  ;;  %v2445_v35 = vor.u32 %v2861_v29, %v2442_v30  ;;  %v2852_v28 = vld [vmem:[%s4248_s1 + $0x304] sm:$0xf0]  ;;  %v2413_v29 = vor.u32 %v2853_v14, %v2410_v21  ;;  %v2464_v30 = vld [vmem:[%s4248_s1 + $0x380] sm:$0xf]  ;;  %v2909_v14 = vld [vmem:[%s4248_s1 + $0x4d4] sm:$0xf] }
  0x6c   : > { %1055 = vmatpush.bf16.msra.mxu3 %v2325_v39  ;;  %v2509_v39 = vor.u32 %v2877_v31, %v2506_v32  ;;  %v2868_v31 = vld [vmem:[%s4248_s1 + $0x384] sm:$0xf0]  ;;  %v2851_v32 = vld [vmem:[%s4248_s1 + $0x304] sm:$0xf]  ;;  %v2666_v21 = vld [vmem:[%s4248_s1 + $0x4d8] sm:$0xf0]  ;;  %p2996_p3 = pnand %p2995_p2, %p2991_p13 }
  0x6d   : > { %v2465_v48 = vor.u32 %v2868_v31, %v2464_v30  ;;  %v2405_v49 = vor.u32 %v2851_v32, %v2402_v36  ;;  %v2594_v30 = vld [vmem:[%s4248_s1 + $0x448] sm:$0xf0]  ;;  %v2907_v31 = vld [vmem:[%s4248_s1 + $0x4c4] sm:$0xf]  ;;  %v2584_v36 = vld [vmem:[%s4248_s1 + $0x430] sm:$0xf] }
  0x6e   : > { %1014 = vmatpush.bf16.msra.mxu0 %v2249_v46  ;;  %v2497_v46 = vor.u32 %v2876_v40, %v2496_v38  ;;  %v2466_v38 = vld [vmem:[%s4248_s1 + $0x388] sm:$0xf0] }
  0x6f   : > { %1028 = vmatpush.bf16.msra.mxu1 %v2313_v50  ;;  %1042 = vmatpush.bf16.msra.mxu2 %v2253_v51  ;;  %v2488_v50 = vld [vmem:[%s4248_s1 + $0x3b0] sm:$0xf]  ;;  %v2501_v51 = vor.u32 %v2875_v43, %v2498_v44  ;;  %v2469_v54 = vor.u32 %v2867_v37, %v2466_v38  ;;  %v2658_v32 = vld [vmem:[%s4248_s1 + $0x4c8] sm:$0xf0]  ;;  %v2890_v37 = vld [vmem:[%s4248_s1 + $0x434] sm:$0xf0] }
  0x70   : > { %1056 = vmatpush.bf16.msra.mxu3 %v2317_v55  ;;  %v2873_v55 = vld [vmem:[%s4248_s1 + $0x3b4] sm:$0xf]  ;;  %v2680_v43 = vld [vmem:[%s4248_s1 + $0x4f0] sm:$0xf] }
  0x71   : > { %v2648_v38 = vld [vmem:[%s4248_s1 + $0x4b0] sm:$0xf] }
  0x72   : > { %1015 = vmatpush.bf16.msra.mxu0 %v2241_v60  ;;  %v2489_v60 = vor.u32 %v2874_v52, %v2488_v50  ;;  %v2913_v50 = vld [vmem:[%s4248_s1 + $0x4f4] sm:$0xf] }
  0x73   : > { %1029 = vmatpush.bf16.msra.mxu1 %v2305_v1  ;;  %1043 = vmatpush.bf16.msra.mxu2 %v2245_v2  ;;  %v2855_v1 = vld [vmem:[%s4248_s1 + $0x324] sm:$0xf]  ;;  %v2493_v2 = vor.u32 %v2873_v55, %v2490_v56  ;;  %v2617_v55 = vor.u32 %v2898_v42, %v2616_v41  ;;  %v2889_v41 = vld [vmem:[%s4248_s1 + $0x434] sm:$0xf]  ;;  %v2586_v42 = vld [vmem:[%s4248_s1 + $0x438] sm:$0xf0] }
  0x74   : > { %1057 = vmatpush.bf16.msra.mxu3 %v2309_v6  ;;  %v1070_v6 = vld [vmem:[%s3405_s20 + $0x18] sm:$0x33]  ;;  %v2421_v12 = vor.u32 %v2855_v1, %v2418_v3  ;;  %v2912_v1 = vld [vmem:[%s4248_s1 + $0x4e4] sm:$0xf0]  ;;  %v2610_v3 = vld [vmem:[%s4248_s1 + $0x468] sm:$0xf0] }
  0x75   : > { %1016 = vmatmul.bf16.vlgmr.msra.gmra.mxu0 %v844_v15  ;;  %v1111_v18 = vunpack.c.l.b16 %v1070_v6 }
  0x76   : > { %1285 = vmatpush.bf16.msrb.mxu0 %v2457_v7  ;;  %1030 = vmatmul.bf16.vlgmr.msra.gmra.mxu1 %v845_v19  ;;  %v2871_v7 = vld [vmem:[%s4248_s1 + $0x3a4] sm:$0xf] }
  0x77   : > { %1299 = vmatpush.bf16.msrb.mxu1 %v2521_v8  ;;  %1313 = vmatpush.bf16.msrb.mxu2 %v2461_v9  ;;  %v2482_v8 = vld [vmem:[%s4248_s1 + $0x3a8] sm:$0xf0]  ;;  %v2417_v9 = vor.u32 %v2856_v59, %v2416_v58 }
  0x78   : > { %1327 = vmatpush.bf16.msrb.mxu3 %v2525_v13  ;;  %1044 = vmatmul.bf16.vlgmr.msra.gmra.mxu2 %v844_v15  ;;  %v2854_v13 = vld [vmem:[%s4248_s1 + $0x314] sm:$0xf0]  ;;  %v2472_v15 = vld [vmem:[%s4248_s1 + $0x390] sm:$0xf] }
  0x79   : > { %1058 = vmatmul.bf16.vlgmr.msra.gmra.mxu3 %v845_v19  ;;  %v2485_v19 = vor.u32 %v2871_v7, %v2482_v8  ;;  %v2409_v20 = vor.u32 %v2854_v13, %v2408_v10  ;;  %v2473_v26 = vor.u32 %v2870_v16, %v2472_v15  ;;  %v2674_v7 = vld [vmem:[%s4248_s1 + $0x4e8] sm:$0xf0]  ;;  %v2673_v10 = vor.u32 %v2912_v1, %v2672_v62  ;;  %v2894_v13 = vld [vmem:[%s4248_s1 + $0x454] sm:$0xf0]  ;;  %v2664_v15 = vld [vmem:[%s4248_s1 + $0x4d0] sm:$0xf] }
  0x7a   : > { %1286 = vmatpush.bf16.msrb.mxu0 %v2449_v22  ;;  %v1108_v22 = vunpack.c.h.b16 %v1068_v4  ;;  %v2632_v62 = vld [vmem:[%s4248_s1 + $0x490] sm:$0xf]  ;;  %v2902_v1 = vld [vmem:[%s4248_s1 + $0x494] sm:$0xf0] }
  0x7b   : > { %1300 = vmatpush.bf16.msrb.mxu1 %v2513_v23  ;;  %1314 = vmatpush.bf16.msrb.mxu2 %v2453_v24  ;;  %v1112_v23 = vunpack.c.h.b16 %v1070_v6  ;;  %v2869_v24 = vld [vmem:[%s4248_s1 + $0x394] sm:$0xf]  ;;  %v2911_v6 = vld [vmem:[%s4248_s1 + $0x4e4] sm:$0xf] }
  0x7c   : > { %1328 = vmatpush.bf16.msrb.mxu3 %v2517_v27  ;;  %v2400_v27 = vld [vmem:[%s4248_s1 + $0x300] sm:$0xf]  ;;  %v2677_v16 = vor.u32 %v2911_v6, %v2674_v7  ;;  %v2634_v6 = vld [vmem:[%s4248_s1 + $0x498] sm:$0xf0] }
  0x7d   : > { %v1116_v40 = vpack.c.b16 %v1112_v23, %v1112_v23  ;;  %v2401_v44 = vor.u32 %v2852_v28, %v2400_v27  ;;  %v2669_v27 = vor.u32 %v2909_v14, %v2666_v21  ;;  %v2908_v28 = vld [vmem:[%s4248_s1 + $0x4c4] sm:$0xf0]  ;;  %v2626_v14 = vld [vmem:[%s4248_s1 + $0x488] sm:$0xf0] }
  0x7e   : > { %1287 = vmatpush.bf16.msrb.mxu0 %v2441_v33  ;;  %v1113_v33 = vpack.c.b16 %v3740_v0, %v1107_v17  ;;  %v2910_v17 = vld [vmem:[%s4248_s1 + $0x4d4] sm:$0xf0] }
  0x7f   : > { %1301 = vmatpush.bf16.msrb.mxu1 %v2505_v34  ;;  %1315 = vmatpush.bf16.msrb.mxu2 %v2445_v35  ;;  %v1115_v34 = vpack.c.b16 %v1111_v18, %v1111_v18  ;;  %v2477_v35 = vor.u32 %v2869_v24, %v2474_v25  ;;  %v2893_v18 = vld [vmem:[%s4248_s1 + $0x454] sm:$0xf]  ;;  %v2665_v23 = vor.u32 %v2910_v17, %v2664_v15  ;;  %v2592_v25 = vld [vmem:[%s4248_s1 + $0x440] sm:$0xf]  ;;  %v2883_v17 = vld [vmem:[%s4248_s1 + $0x404] sm:$0xf] }
  0x80   : > { %1329 = vmatpush.bf16.msrb.mxu3 %v2509_v39  ;;  %v1114_v39 = vpack.c.b16 %v3748_v5, %v1108_v22  ;;  %v1117_v52 = vrot.slane %v1113_v33, 2 }
  0x81   : > { %v1118_v53 = vrot.slane %v1115_v34, 2 }
  0x82   : > { %1288 = vmatpush.bf16.msrb.mxu0 %v2433_v45  ;;  %v2914_v45 = vld [vmem:[%s4248_s1 + $0x4f4] sm:$0xf0]  ;;  %v1120_v56 = vrot.slane %v1114_v39, 2  ;;  %v2661_v39 = vor.u32 %v2907_v31, %v2658_v32 }
  0x83   : > { %1302 = vmatpush.bf16.msrb.mxu1 %v2497_v46  ;;  %1316 = vmatpush.bf16.msrb.mxu2 %v2437_v47  ;;  %v2897_v46 = vld [vmem:[%s4248_s1 + $0x474] sm:$0xf]  ;;  %v2618_v47 = vld [vmem:[%s4248_s1 + $0x478] sm:$0xf0]  ;;  %v2681_v58 = vor.u32 %v2914_v45, %v2680_v43  ;;  %v1119_v4 = vsel %vm359_vm0, %v1117_v52, %v1118_v53  ;;  %v2585_v45 = vor.u32 %v2890_v37, %v2584_v36  ;;  %v2904_v52 = vld [vmem:[%s4248_s1 + $0x4a4] sm:$0xf0] }
  0x84   : > { %1330 = vmatpush.bf16.msrb.mxu3 %v2501_v51  ;;  %v2682_v51 = vld [vmem:[%s4248_s1 + $0x4f8] sm:$0xf0]  ;;  %v2621_v59 = vor.u32 %v2897_v46, %v2618_v47  ;;  %v2905_v43 = vld [vmem:[%s4248_s1 + $0x4b4] sm:$0xf]  ;;  %v2589_v47 = vor.u32 %v2889_v41, %v2586_v42  ;;  %v2887_v53 = vld [vmem:[%s4248_s1 + $0x424] sm:$0xf] }
  0x85   : > { %v2685_v63 = vor.u32 %v2913_v50, %v2682_v51  ;;  %v2640_v50 = vld [vmem:[%s4248_s1 + $0x4a0] sm:$0xf]  ;;  %v2922_v42 = vld [vmem:[%s4251_s4 + $0x38] sm:$0xff] }
  0x86   : > { %1289 = vmatpush.bf16.msrb.mxu0 %v2425_v57  ;;  %v1121_v57 = vrot.slane %v1116_v40, 2  ;;  %v2906_v40 = vld [vmem:[%s4248_s1 + $0x4b4] sm:$0xf0] }
  0x87   : > { %1303 = vmatpush.bf16.msrb.mxu1 %v2489_v60  ;;  %1317 = vmatpush.bf16.msrb.mxu2 %v2429_v61  ;;  %v2608_v60 = vld [vmem:[%s4248_s1 + $0x460] sm:$0xf]  ;;  %v2896_v61 = vld [vmem:[%s4248_s1 + $0x464] sm:$0xf0]  ;;  %v2649_v46 = vor.u32 %v2906_v40, %v2648_v38 }
  0x88   : > { %1331 = vmatpush.bf16.msrb.mxu3 %v2493_v2  ;;  %v2895_v2 = vld [vmem:[%s4248_s1 + $0x464] sm:$0xf]  ;;  %v1122_v8 = vsel %vm359_vm0, %v1120_v56, %v1121_v57  ;;  %v2642_v56 = vld [vmem:[%s4248_s1 + $0x4a8] sm:$0xf0] }
  0x8a   : > { %1290 = vmatpush.bf16.msrb.mxu0 %v2417_v9  ;;  %v2609_v9 = vor.u32 %v2896_v61, %v2608_v60  ;;  %v2568_v60 = vld [vmem:[%s4248_s1 + $0x410] sm:$0xf]  ;;  %v2886_v61 = vld [vmem:[%s4248_s1 + $0x414] sm:$0xf0] }
  0x8b   : > { %1304 = vmatpush.bf16.msrb.mxu1 %v2481_v11  ;;  %1318 = vmatpush.bf16.msrb.mxu2 %v2421_v12  ;;  %v2613_v11 = vor.u32 %v2895_v2, %v2610_v3  ;;  %v2600_v12 = vld [vmem:[%s4248_s1 + $0x450] sm:$0xf]  ;;  %v2885_v2 = vld [vmem:[%s4248_s1 + $0x414] sm:$0xf]  ;;  %v2570_v3 = vld [vmem:[%s4248_s1 + $0x418] sm:$0xf0]  ;;  %v2569_v7 = vor.u32 %v2886_v61, %v2568_v60 }
  0x8c   : > { %1332 = vmatpush.bf16.msrb.mxu3 %v2485_v19  ;;  %v2602_v19 = vld [vmem:[%s4248_s1 + $0x458] sm:$0xf0]  ;;  %v2601_v22 = vor.u32 %v2894_v13, %v2600_v12  ;;  %v2884_v12 = vld [vmem:[%s4248_s1 + $0x404] sm:$0xf0]  ;;  %v2624_v13 = vld [vmem:[%s4248_s1 + $0x480] sm:$0xf] }
  0x8d   : > { %v2605_v24 = vor.u32 %v2893_v18, %v2602_v19  ;;  %v2562_v18 = vld [vmem:[%s4248_s1 + $0x408] sm:$0xf0]  ;;  %v2899_v19 = vld [vmem:[%s4248_s1 + $0x484] sm:$0xf]  ;;  %v2926_v60 = vld [vmem:[%s4251_s4 + $0x58] sm:$0xff] }
  0x8e   : > { %1291 = vmatpush.bf16.msrb.mxu0 %v2409_v20  ;;  %v2892_v20 = vld [vmem:[%s4248_s1 + $0x444] sm:$0xf0] }
  0x8f   : > { %1305 = vmatpush.bf16.msrb.mxu1 %v2473_v26  ;;  %1319 = vmatpush.bf16.msrb.mxu2 %v2413_v29  ;;  %v2656_v26 = vld [vmem:[%s4248_s1 + $0x4c0] sm:$0xf]  ;;  %v2891_v29 = vld [vmem:[%s4248_s1 + $0x444] sm:$0xf]  ;;  %v2593_v33 = vor.u32 %v2892_v20, %v2592_v25  ;;  %v2565_v25 = vor.u32 %v2883_v17, %v2562_v18  ;;  %v2629_v20 = vor.u32 %v2899_v19, %v2626_v14 }
  0x90   : > { %1333 = vmatpush.bf16.msrb.mxu3 %v2477_v35  ;;  %v2657_v34 = vor.u32 %v2908_v28, %v2656_v26  ;;  %v2597_v35 = vor.u32 %v2891_v29, %v2594_v30 }
  0x92   : > { %1292 = vmatpush.bf16.msrb.mxu0 %v2401_v44  ;;  %v2650_v44 = vld [vmem:[%s4248_s1 + $0x4b8] sm:$0xf0] }
  0x93   : > { %1306 = vmatpush.bf16.msrb.mxu1 %v2465_v48  ;;  %1320 = vmatpush.bf16.msrb.mxu2 %v2405_v49  ;;  %v2576_v48 = vld [vmem:[%s4248_s1 + $0x420] sm:$0xf]  ;;  %v2888_v49 = vld [vmem:[%s4248_s1 + $0x424] sm:$0xf0]  ;;  %v2653_v51 = vor.u32 %v2905_v43, %v2650_v44  ;;  %v2930_v43 = vld [vmem:[%s4251_s4 + $0x78] sm:$0xff] }
  0x94   : > { %1334 = vmatpush.bf16.msrb.mxu3 %v2469_v54  ;;  %v2578_v54 = vld [vmem:[%s4248_s1 + $0x428] sm:$0xf0]  ;;  %v2577_v57 = vor.u32 %v2888_v49, %v2576_v48  ;;  %v2921_v44 = vld [vmem:[%s4251_s4 + $0x30] sm:$0xff] }
  0x95   : > { %1293 = vmatmul.bf16.vlgmr.msrb.gmra.mxu0 %v1119_v4  ;;  %v2920_v48 = vld [vmem:[%s4251_s4 + $0x28] sm:$0xff] }
  0x96   : > { %1546 = vmatpush.bf16.msra.mxu0 %v2617_v55  ;;  %1307 = vmatmul.bf16.vlgmr.msrb.gmra.mxu1 %v1122_v8  ;;  %v2903_v55 = vld [vmem:[%s4248_s1 + $0x4a4] sm:$0xf] }
  0x97   : > { %1560 = vmatpush.bf16.msra.mxu1 %v2681_v58  ;;  %1574 = vmatpush.bf16.msra.mxu2 %v2621_v59  ;;  %v2641_v58 = vor.u32 %v2904_v52, %v2640_v50  ;;  %v2581_v59 = vor.u32 %v2887_v53, %v2578_v54  ;;  %v2929_v50 = vld [vmem:[%s4251_s4 + $0x70] sm:$0xff]  ;;  %v2928_v54 = vld [vmem:[%s4251_s4 + $0x68] sm:$0xff] }
  0x98   : > { %1588 = vmatpush.bf16.msra.mxu3 %v2685_v63  ;;  %1321 = vmatmul.bf16.vlgmr.msrb.gmra.mxu2 %v1119_v4  ;;  %v2645_v63 = vor.u32 %v2903_v55, %v2642_v56  ;;  %v2901_v4 = vld [vmem:[%s4248_s1 + $0x494] sm:$0xf]  ;;  %v2918_v56 = vld [vmem:[%s4251_s4 + $0x18] sm:$0xff] }
  0x99   : > { %1335 = vmatmul.bf16.vlgmr.msrb.gmra.mxu3 %v1122_v8  ;;  %v1345_v8 = vld [vmem:[%s3405_s20 + $0x18] sm:$0xff]  ;;  %v2637_v15 = vor.u32 %v2901_v4, %v2634_v6  ;;  %v2915_v4 = vld [vmem:[%s4251_s4] sm:$0xff]  ;;  %v2924_v6 = vld [vmem:[%s4251_s4 + $0x48] sm:$0xff]  ;;  %s1849_s20 = sshll.u32 %s271_s21, 4  ;;  %s1850_s20 = int_to_ptr.vmem [resolvable:$true] %s1849_s20 }
  0x9a   : > { %1547 = vmatpush.bf16.msra.mxu0 %v2609_v9  ;;  %v2633_v9 = vor.u32 %v2902_v1, %v2632_v62  ;;  %v1380_v21 = vunpack.c.l.b16 %v1345_v8  ;;  %v2916_v1 = vld [vmem:[%s4251_s4 + $0x8] sm:$0xff] }
  0x9b   : > { %1561 = vmatpush.bf16.msra.mxu1 %v2673_v10  ;;  %1575 = vmatpush.bf16.msra.mxu2 %v2613_v11  ;;  %v2573_v10 = vor.u32 %v2885_v2, %v2570_v3  ;;  %v2560_v11 = vld [vmem:[%s4248_s1 + $0x400] sm:$0xf]  ;;  %v2925_v3 = vld [vmem:[%s4251_s4 + $0x50] sm:$0xff] }
  0x9c   : > { %1589 = vmatpush.bf16.msra.mxu3 %v2677_v16  ;;  %v2900_v16 = vld [vmem:[%s4248_s1 + $0x484] sm:$0xf0]  ;;  %v1382_v26 = vpack.c.b16 %v1380_v21, %v3740_v0 }
  0x9e   : > { %1548 = vmatpush.bf16.msra.mxu0 %v2601_v22  ;;  %v2561_v22 = vor.u32 %v2884_v12, %v2560_v11 }
  0x9f   : > { %1562 = vmatpush.bf16.msra.mxu1 %v2665_v23  ;;  %1576 = vmatpush.bf16.msra.mxu2 %v2605_v24  ;;  %v1381_v23 = vunpack.c.h.b16 %v1345_v8  ;;  %v2625_v24 = vor.u32 %v2900_v16, %v2624_v13 }
  0xa0   : > { %1590 = vmatpush.bf16.msra.mxu3 %v2669_v27 }
  0xa1   : > { %v1383_v27 = vpack.c.b16 %v1381_v23, %v3748_v5 }
  0xa2   : > { %1549 = vmatpush.bf16.msra.mxu0 %v2593_v33 }
  0xa3   : > { %1563 = vmatpush.bf16.msra.mxu1 %v2657_v34  ;;  %1577 = vmatpush.bf16.msra.mxu2 %v2597_v35 }
  0xa4   : > { %1591 = vmatpush.bf16.msra.mxu3 %v2661_v39 }
  0xa6   : > { %1550 = vmatpush.bf16.msra.mxu0 %v2585_v45 }
  0xa7   : > { %1564 = vmatpush.bf16.msra.mxu1 %v2649_v46  ;;  %1578 = vmatpush.bf16.msra.mxu2 %v2589_v47 }
  0xa8   : > { %1592 = vmatpush.bf16.msra.mxu3 %v2653_v51  ;;  %v2919_v51 = vld [vmem:[%s4251_s4 + $0x20] sm:$0xff] }
  0xaa   : > { %1551 = vmatpush.bf16.msra.mxu0 %v2577_v57 }
  0xab   : > { %1565 = vmatpush.bf16.msra.mxu1 %v2641_v58  ;;  %1579 = vmatpush.bf16.msra.mxu2 %v2581_v59  ;;  %v2927_v58 = vld [vmem:[%s4251_s4 + $0x60] sm:$0xff]  ;;  %v2917_v59 = vld [vmem:[%s4251_s4 + $0x10] sm:$0xff] }
  0xac   : > { %1593 = vmatpush.bf16.msra.mxu3 %v2645_v63 }
  0xae   : > { %1552 = vmatpush.bf16.msra.mxu0 %v2569_v7 }
  0xaf   : > { %1566 = vmatpush.bf16.msra.mxu1 %v2633_v9  ;;  %1580 = vmatpush.bf16.msra.mxu2 %v2573_v10  ;;  %v2923_v10 = vld [vmem:[%s4251_s4 + $0x40] sm:$0xff] }
  0xb0   : > { %1594 = vmatpush.bf16.msra.mxu3 %v2637_v15 }
  0xb2   : > { %1553 = vmatpush.bf16.msra.mxu0 %v2561_v22 }
  0xb3   : > { %1567 = vmatpush.bf16.msra.mxu1 %v2625_v24  ;;  %1581 = vmatpush.bf16.msra.mxu2 %v2565_v25 }
  0xb4   : > { %1595 = vmatpush.bf16.msra.mxu3 %v2629_v20  ;;  %v1606_v20 = vld [vmem:[%s4249_s2] sm:$0x3] }
  0xb5   : > { %1554 = vmatmul.bf16.vlgmr.msra.gmra.mxu0 %v1382_v26 }
  0xb6   : > { %1568 = vmatmul.bf16.vlgmr.msra.gmra.mxu1 %v1383_v27  ;;  %1582 = vmatmul.bf16.vlgmr.msra.gmra.mxu2 %v1382_v26 }
  0xb7   : > { %1596 = vmatmul.bf16.vlgmr.msra.gmra.mxu3 %v1383_v27  ;;  %1760 = vmatpush.bf16.msrb.mxu0 %v2922_v42 }
  0xb8   : > { %1774 = vmatpush.bf16.msrb.mxu1 %v2930_v43 }
  0xb9   : > { %v537_v28 = vpop.f32.mrf.mxu0 }
  0xba   : > { %v551_v29 = vpop.f32.mrf.mxu1 }
  0xbb   : > { %v552_v30 = vadd.f32 %v551_v29, %v537_v28  ;;  %1761 = vmatpush.bf16.msrb.mxu0 %v2921_v44 }
  0xbc   : > { %1775 = vmatpush.bf16.msrb.mxu1 %v2929_v50 }
  0xbf   : > { %1762 = vmatpush.bf16.msrb.mxu0 %v2920_v48 }
  0xc0   : > { %v565_v31 = vpop.f32.mrf.mxu2  ;;  %1776 = vmatpush.bf16.msrb.mxu1 %v2928_v54 }
  0xc1   : > { %v579_v32 = vpop.f32.mrf.mxu3  ;;  %v539_v34 = vpop.f32.mrf.mxu0 }
  0xc2   : > { %v4123_v33 = vadd.f32 %v579_v32, %v565_v31  ;;  %v553_v35 = vpop.f32.mrf.mxu1  ;;  %v1608_v32 = vperm.slane %v1606_v20, 0 }
  0xc3   : > { %1763 = vmatpush.bf16.msrb.mxu0 %v2919_v51  ;;  %v554_v16 = vadd.f32 %v553_v35, %v539_v34 }
  0xc4   : > { %1777 = vmatpush.bf16.msrb.mxu1 %v2927_v58 }
  0xc7   : > { %1764 = vmatpush.bf16.msrb.mxu0 %v2918_v56 }
  0xc8   : > { %v4125_v0 = vpop.f32.mrf.mxu2  ;;  %1778 = vmatpush.bf16.msrb.mxu1 %v2926_v60 }
  0xc9   : > { %v4127_v36 = vpop.f32.mrf.mxu3 }
  0xca   : > { %v582_v34 = vadd.f32 %v4127_v36, %v4125_v0 }
  0xcb   : > { %1765 = vmatpush.bf16.msrb.mxu0 %v2917_v59 }
  0xcc   : > { %1779 = vmatpush.bf16.msrb.mxu1 %v2925_v3 }
  0xcf   : > { %1766 = vmatpush.bf16.msrb.mxu0 %v2916_v1 }
  0xd0   : > { %1780 = vmatpush.bf16.msrb.mxu1 %v2924_v6 }
  0xd2   : > { %v760_v5 = vpop.f32.mrf.mxu0 }
  0xd3   : > { %1767 = vmatpush.bf16.msrb.mxu0 %v2915_v4  ;;  %v761_v12 = vadd.f32 %v760_v5, %v552_v30 }
  0xd4   : > { %1781 = vmatpush.bf16.msrb.mxu1 %v2923_v10 }
  0xd5   : > { %v774_v37 = vpop.f32.mrf.mxu1 }
  0xd6   : > { %v775_v17 = vadd.f32 %v774_v37, %v761_v12 }
  0xd9   : > { %v4129_v38 = vpop.f32.mrf.mxu2 }
  0xda   : > { %v762_v40 = vpop.f32.mrf.mxu0  ;;  %v789_v25 = vadd.f32 %v4129_v38, %v4123_v33  ;;  %v1616_v33 = vld [vmem:[%s4250_s3] sm:$0x3] }
  0xdb   : > { %v763_v22 = vadd.f32 %v762_v40, %v554_v16  ;;  %v1618_v50 = vperm.slane %v1616_v33, 0 }
  0xdc   : > { %v4131_v39 = vpop.f32.mrf.mxu3 }
  0xdd   : > { %v4133_v41 = vpop.f32.mrf.mxu1  ;;  %v803_v35 = vadd.f32 %v4131_v39, %v789_v25 }
  0xde   : > { %v777_v29 = vadd.f32 %v4133_v41, %v763_v22 }
  0xe1   : > { %v4144_v45 = vpop.f32.mrf.mxu2 }
  0xe2   : > { %v791_v43 = vadd.f32 %v4144_v45, %v582_v34 }
  0xe4   : > { %v4146_v46 = vpop.f32.mrf.mxu3 }
  0xf2   : > { %v1017_v47 = vpop.f32.mrf.mxu0 }
  0xf3   : > { %v1031_v49 = vpop.f32.mrf.mxu1 }
  0xf4   : > { %v1032_v13 = vadd.f32 %v1031_v49, %v1017_v47 }
  0xf6   : > { %v1064_v23 = vadd.f32 %v1032_v13, %v775_v17  ;;  %v2970_v13 = vld [vmem:[%s4252_s5] ss:$0 sm:$0xff] }
  0xf7   : > { %v2971_v17 = vld [vmem:[%s4253_s6] ss:$0 sm:$0xff] }
  0xfa   : > { %v1019_v55 = vpop.f32.mrf.mxu0 }
  0xfb   : > { %v1045_v52 = vpop.f32.mrf.mxu2  ;;  %v1033_v57 = vpop.f32.mrf.mxu1 }
  0xfc   : > { %v1059_v53 = vpop.f32.mrf.mxu3  ;;  %v1034_v26 = vadd.f32 %v1033_v57, %v1019_v55  ;;  %v1609_v55 = vperm.slane %v1606_v20, 1 }
  0xfd   : > { %v1060_v28 = vadd.f32 %v1059_v53, %v1045_v52  ;;  %v805_v52 = vadd.f32 %v4146_v46, %v791_v43 }
  0xfe   : > { %v1066_v38 = vadd.f32 %v1034_v26, %v777_v29 }
  0xff   : > { %v1065_v41 = vadd.f32 %v1060_v28, %v803_v35 }
 0x103   : > { %v1047_v61 = vpop.f32.mrf.mxu2 }
 0x104   : > { %v1061_v62 = vpop.f32.mrf.mxu3 }
 0x105   : > { %v1062_v36 = vadd.f32 %v1061_v62, %v1047_v61 }
 0x107   : > { %v1067_v58 = vadd.f32 %v1062_v36, %v805_v52 }
 0x112   : > { %v1294_v63 = vpop.f32.mrf.mxu0 }
 0x113   : > { %v1308_v2 = vpop.f32.mrf.mxu1 }
 0x114   : > { %v1309_v18 = vadd.f32 %v1308_v2, %v1294_v63  ;;  %v1619_v2 = vperm.slane %v1616_v33, 1 }
 0x116   : > { %v1341_v27 = vadd.f32 %v1309_v18, %v1064_v23 }
 0x11a   : > { %v1296_v9 = vpop.f32.mrf.mxu0 }
 0x11b   : > { %v1322_v7 = vpop.f32.mrf.mxu2  ;;  %v1310_v11 = vpop.f32.mrf.mxu1 }
 0x11c   : > { %v1336_v8 = vpop.f32.mrf.mxu3  ;;  %v1311_v30 = vadd.f32 %v1310_v11, %v1296_v9 }
 0x11d   : > { %v1337_v5 = vadd.f32 %v1336_v8, %v1322_v7 }
 0x11e   : > { %v1343_v48 = vadd.f32 %v1311_v30, %v1066_v38 }
 0x11f   : > { %v1342_v39 = vadd.f32 %v1337_v5, %v1065_v41 }
 0x123   : > { %v1324_v15 = vpop.f32.mrf.mxu2 }
 0x124   : > { %v1338_v19 = vpop.f32.mrf.mxu3 }
 0x125   : > { %v1339_v53 = vadd.f32 %v1338_v19, %v1324_v15 }
 0x127   : > { %v1344_v63 = vadd.f32 %v1339_v53, %v1067_v58 }
 0x132   : > { %v1555_v14 = vpop.f32.mrf.mxu0 }
 0x133   : > { %v1569_v21 = vpop.f32.mrf.mxu1 }
 0x134   : > { %v1570_v24 = vadd.f32 %v1569_v21, %v1555_v14 }
 0x136   : > { %v1602_v31 = vadd.f32 %v1570_v24, %v1341_v27 }
 0x138   : > { %v1612_v49 = vmul.f32 %v1608_v32, %v1602_v31 }
 0x139   : > { %v1583_v37 = vpop.f32.mrf.mxu2 }
 0x13a   : > { %v1597_v40 = vpop.f32.mrf.mxu3  ;;  %v1557_v42 = vpop.f32.mrf.mxu0  ;;  %v1622_v56 = vadd.f32 %v1618_v50, %v1612_v49 }
 0x13b   : > { %v1598_v44 = vadd.f32 %v1597_v40, %v1583_v37  ;;  %v1571_v47 = vpop.f32.mrf.mxu1 }
 0x13c   : > { %v1572_v0 = vadd.f32 %v1571_v47, %v1557_v42  ;;  %v1626_v4 = vmax.f32 %v1622_v56, 0.0 }
 0x13d   : > { %v1603_v54 = vadd.f32 %v1598_v44, %v1342_v39 }
 0x13e   : > { %v1604_v51 = vadd.f32 %v1572_v0, %v1343_v48 }
 0x13f   : > { %v1613_v1 = vmul.f32 %v1609_v55, %v1603_v54 }
 0x140   : > { %v1614_v57 = vmul.f32 %v1608_v32, %v1604_v51 }
 0x141   : > { %v1585_v59 = vpop.f32.mrf.mxu2  ;;  %v1623_v7 = vadd.f32 %v1619_v2, %v1613_v1 }
 0x142   : > { %v1624_v45 = vadd.f32 %v1618_v50, %v1614_v57  ;;  %v1599_v60 = vpop.f32.mrf.mxu3 }
 0x143   : > { %v1600_v3 = vadd.f32 %v1599_v60, %v1585_v59  ;;  %v1627_v9 = vmax.f32 %v1623_v7, 0.0 }
 0x144   : > { %v1628_v6 = vmax.f32 %v1624_v45, 0.0 }
 0x145   : > { %v1605_v61 = vadd.f32 %v1600_v3, %v1344_v63 }
 0x146   : > { %v1630_v62 = vpack.c.bf16 %v1628_v6, %v1626_v4 }
 0x147   : > { %v1615_v8 = vmul.f32 %v1609_v55, %v1605_v61 }
 0x148   : > { %1768 = vmatmul.bf16.vlgmr.msrb.gmra.mxu0 %v1630_v62 }
 0x149   : > { %v1625_v46 = vadd.f32 %v1619_v2, %v1615_v8 }
 0x14b   : > { %v1629_v10 = vmax.f32 %v1625_v46, 0.0 }
 0x14d   : > { %v1631_v11 = vpack.c.bf16 %v1629_v10, %v1627_v9 }
 0x14f   : > { %1782 = vmatmul.bf16.vlgmr.msrb.gmra.mxu1 %v1631_v11 }
 0x1c5   : > { %v1769_v12 = vpop.f32.mrf.mxu0 }
 0x1cc   : > { %v1783_v15 = vpop.f32.mrf.mxu1 }
 0x1cd   : > { %v1784_v16 = vadd.f32 %v1783_v15, %v1769_v12  ;;  %v1771_v21 = vpop.f32.mrf.mxu0 }
 0x1cf   : > { %v1792_v18 = vmul.f32 %v2970_v13, %v1784_v16 }
 0x1d1   : > { %v1798_v19 = vadd.f32 %v2971_v17, %v1792_v18 }
 0x1d3   : > { %v1800_v14 = vmax.f32 %v1798_v19, 0.0 }
 0x1d4   : > { %v1785_v22 = vpop.f32.mrf.mxu1 }
 0x1d5   : > { %v1803_v23 = vsel %vm1802_vm1, %v1800_v14, -inf  ;;  %v1812_v24 = vsel %vm1811_vm2, %v1800_v14, -inf  ;;  %v1786_v25 = vadd.f32 %v1785_v22, %v1771_v21 }
 0x1d6   : > { %v1804_v20 = vrot.slane %v1803_v23, 4  ;;  %v1813_v26 = vrot.slane %v1812_v24, 4 }
 0x1d7   : > { %v1793_v27 = vmul.f32 %v2970_v13, %v1786_v25 }
 0x1d8   : > { %v1805_v28 = vmax.f32 %v1803_v23, %v1804_v20  ;;  %v1814_v29 = vmax.f32 %v1812_v24, %v1813_v26 }
 0x1d9   : > { %v1799_v30 = vadd.f32 %v2971_v17, %v1793_v27 }
 0x1da   : > { %v1806_v31 = vrot.slane %v1805_v28, 2  ;;  %v1815_v32 = vrot.slane %v1814_v29, 2 }
 0x1db   : > { %v1801_v34 = vmax.f32 %v1799_v30, 0.0 }
 0x1dc   : > { %v1807_v35 = vmax.f32 %v1805_v28, %v1806_v31  ;;  %v1816_v5 = vmax.f32 %v1814_v29, %v1815_v32 }
 0x1dd   : > { %v1820_v33 = vsel %vm1802_vm1, %v1801_v34, -inf  ;;  %v1828_v37 = vsel %vm1811_vm2, %v1801_v34, -inf }
 0x1de   : > { %v1808_v38 = vrot.slane %v1807_v35, 1  ;;  %v1817_v40 = vrot.slane %v1816_v5, 1  ;;  %v1821_v42 = vrot.slane %v1820_v33, 4  ;;  %v1829_v43 = vrot.slane %v1828_v37, 4 }
 0x1e0   : > { %v1809_v41 = vmax.f32 %v1807_v35, %v1808_v38  ;;  %v1818_v44 = vmax.f32 %v1816_v5, %v1817_v40  ;;  %v1822_v47 = vmax.f32 %v1820_v33, %v1821_v42  ;;  %v1830_v48 = vmax.f32 %v1828_v37, %v1829_v43 }
 0x1e2   : > { %v1823_v49 = vrot.slane %v1822_v47, 2  ;;  %v1831_v50 = vrot.slane %v1830_v48, 2  ;;  %1810 = vst [vmem:[%s271_s21] sm:$0x1] %v1809_v41 }
 0x1e3   : > { %1819 = vst [vmem:[%s271_s21 + $0x1] sm:$0x1] %v1818_v44 }
 0x1e4   : > { %v1824_v0 = vmax.f32 %v1822_v47, %v1823_v49  ;;  %v1832_v36 = vmax.f32 %v1830_v48, %v1831_v50 }
 0x1e6   : > { %v1825_v39 = vrot.slane %v1824_v0, 1  ;;  %v1833_v51 = vrot.slane %v1832_v36, 1 }
 0x1e8   : > { %v1826_v52 = vmax.f32 %v1824_v0, %v1825_v39  ;;  %v1834_v53 = vmax.f32 %v1832_v36, %v1833_v51 }
 0x1ea   : > { %1827 = vst [vmem:[%s271_s21 + $0x2] sm:$0x1] %v1826_v52 }
 0x1eb   : > { %1835 = vst [vmem:[%s271_s21 + $0x3] sm:$0x1] %v1834_v53 }
 0x1ec   : > { %2999 = shalt.err (!%p2996_p3)
}
 0x1ed   : > { %2931 = dma.vmem_to_hbm [thread:$0]  (%p3114_p5), %s1850_s20, 64, %s1852_s8, %s1837_s28  }
 0x1ee PF: > { %p2937_p4 = scmp.ge.s32.totalorder %s3034_s27, 2  ;;  %s1863_s18 = sand.u32 1, %s3022_s24  }
 0x1ef   : > { %s1864_s21 = scalar_lea.sflag [#allocation3], %s1863_s18 }
 0x1f0   : > { %p2934_p7 = pnand %p2937_p4, %p3118_p6 }
 0x1f2   : > { %p2935_p8 = pneg %p2934_p7 }
 0x1f4   : > { %3017 = dma.done.wait (%p2935_p8), %s1864_s21, 64  }
 0x1f5   : > { %3019 = vsyncadd (%p2935_p8), %s1864_s21, 4294967232  ;;  %p17_p9 = scmp.ge.s32.totalorder %s3101_s30, 4   ;;  %s4257_s24 = smov %s3026_s25 }
 0x1f6   : > { %s4258_s25 = smov %s3030_s26  ;;  %s4259_s26 = smov %s3112_s10 }
 0x1f7   : > { %s4260_s27 = smov %s3101_s30  ;;  %19 = sbr.rel (!%p17_p9) target bundleno = 3 (0x3), region = 87 }
 0x1fc   :  { %1870 = vsyncpa [#allocation3], 1 }
 0x1fd   :  { %1872 = vsyncpa [#allocation3 + $0x1], 1 }

// kernel: visual_encoder_forward.10
= control target key start
LH: loop header
LB: loop body
LE: loop exit
PB: predicated region body
PF: predicated region fallthrough
CT: control target
= control target key end

     0   :  { %s3923_s15 = smov 0   ;;  %s5365_s0 = inlined_call_operand.vmem [shape: bf16[8,42,64], index: 0, kind: input, shape index: {}]   ;;  %s5366_s1 = inlined_call_operand.vmem [shape: bf16[25,64,256], index: 1, kind: input, shape index: {}]   ;;  %s5367_s2 = inlined_call_operand.vmem [shape: f32[1,256], index: 2, kind: input, shape index: {}]   ;;  %s5368_s3 = inlined_call_operand.vmem [shape: f32[1,256], index: 3, kind: input, shape index: {}]   ;;  %s5369_s4 = inlined_call_operand.vmem [shape: bf16[8,12,256], index: 4, kind: output, shape index: {}]  }
   0x1 LB: > { %s2623_s16 = sadd.s32 4294967295, %s3896_s15   ;;  %p2627_p0 = scmp.ge.s32.totalorder %s3896_s15, 1  ;;  %s3896_s15 = sphi %s3923_s15, %s14_s15  }
   0x2   : > { %p162_p1 = scmp.lt.s32.totalorder %s3896_s15, 9 }
   0x4   : > { %p163_p2 = pnand %p2627_p0, %p162_p1 }
   0x5   : > { %p188_p3 = scmp.lt.s32.totalorder (!%p163_p2), %s2623_s16, 7 }
   0x6   : > { %166 = sbr.rel (%p163_p2) target bundleno = 378 (0x17a), region = 36 }
   0xb   : > { %v2665_v0 = vld [vmem:[%s5366_s1 + $0x70] sm:$0xf]  ;;  %v3695_v1 = vld [vmem:[%s5366_s1 + $0x74] sm:$0xf0]  ;;  %v3694_v2 = vld [vmem:[%s5366_s1 + $0x74] sm:$0xf] }
   0xc   : > { %v2666_v3 = vor.u32 %v3695_v1, %v2665_v0  ;;  %v2667_v4 = vld [vmem:[%s5366_s1 + $0x78] sm:$0xf0]  ;;  %v2699_v5 = vld [vmem:[%s5366_s1 + $0x30] sm:$0xf]  ;;  %v3687_v6 = vld [vmem:[%s5366_s1 + $0x34] sm:$0xf0] }
   0xd   : > { %v2670_v7 = vor.u32 %v3694_v2, %v2667_v4  ;;  %v2700_v8 = vor.u32 %v3687_v6, %v2699_v5  ;;  %v3686_v9 = vld [vmem:[%s5366_s1 + $0x34] sm:$0xf]  ;;  %v2701_v10 = vld [vmem:[%s5366_s1 + $0x38] sm:$0xf0]  ;;  %v2657_v11 = vld [vmem:[%s5366_s1 + $0x60] sm:$0xf] }
   0xe   : > { %279 = vmatpush.bf16.msra.mxu0 %v2666_v3  ;;  %v2704_v12 = vor.u32 %v3686_v9, %v2701_v10  ;;  %v3693_v13 = vld [vmem:[%s5366_s1 + $0x64] sm:$0xf0]  ;;  %v3692_v14 = vld [vmem:[%s5366_s1 + $0x64] sm:$0xf]  ;;  %v2659_v15 = vld [vmem:[%s5366_s1 + $0x68] sm:$0xf0] }
   0xf   : > { %293 = vmatpush.bf16.msra.mxu1 %v2670_v7  ;;  %353 = vmatpush.bf16.msra.mxu2 %v2700_v8  ;;  %v2658_v16 = vor.u32 %v3693_v13, %v2657_v11  ;;  %v2662_v17 = vor.u32 %v3692_v14, %v2659_v15  ;;  %v2691_v18 = vld [vmem:[%s5366_s1 + $0x20] sm:$0xf]  ;;  %v3685_v19 = vld [vmem:[%s5366_s1 + $0x24] sm:$0xf0]  ;;  %v3684_v20 = vld [vmem:[%s5366_s1 + $0x24] sm:$0xf] }
  0x10   : > { %367 = vmatpush.bf16.msra.mxu3 %v2704_v12  ;;  %v2692_v21 = vor.u32 %v3685_v19, %v2691_v18  ;;  %v2693_v22 = vld [vmem:[%s5366_s1 + $0x28] sm:$0xf0]  ;;  %v2649_v23 = vld [vmem:[%s5366_s1 + $0x50] sm:$0xf]  ;;  %v3691_v24 = vld [vmem:[%s5366_s1 + $0x54] sm:$0xf0] }
  0x11   : > { %v2696_v25 = vor.u32 %v3684_v20, %v2693_v22  ;;  %v3690_v26 = vld [vmem:[%s5366_s1 + $0x54] sm:$0xf]  ;;  %v2651_v27 = vld [vmem:[%s5366_s1 + $0x58] sm:$0xf0]  ;;  %v2683_v28 = vld [vmem:[%s5366_s1 + $0x10] sm:$0xf]  ;;  %v2650_v29 = vor.u32 %v3691_v24, %v2649_v23 }
  0x12   : > { %280 = vmatpush.bf16.msra.mxu0 %v2658_v16  ;;  %v3683_v30 = vld [vmem:[%s5366_s1 + $0x14] sm:$0xf0]  ;;  %v3682_v31 = vld [vmem:[%s5366_s1 + $0x14] sm:$0xf]  ;;  %v2685_v32 = vld [vmem:[%s5366_s1 + $0x18] sm:$0xf0]  ;;  %v2654_v33 = vor.u32 %v3690_v26, %v2651_v27 }
  0x13   : > { %294 = vmatpush.bf16.msra.mxu1 %v2662_v17  ;;  %354 = vmatpush.bf16.msra.mxu2 %v2692_v21  ;;  %v2684_v34 = vor.u32 %v3683_v30, %v2683_v28  ;;  %v2641_v35 = vld [vmem:[%s5366_s1 + $0x40] sm:$0xf]  ;;  %v3689_v36 = vld [vmem:[%s5366_s1 + $0x44] sm:$0xf0]  ;;  %v3688_v37 = vld [vmem:[%s5366_s1 + $0x44] sm:$0xf]  ;;  %v2688_v38 = vor.u32 %v3682_v31, %v2685_v32 }
  0x14   : > { %368 = vmatpush.bf16.msra.mxu3 %v2696_v25  ;;  %v2643_v39 = vld [vmem:[%s5366_s1 + $0x48] sm:$0xf0]  ;;  %v2675_v40 = vld [vmem:[%s5366_s1] sm:$0xf]  ;;  %v3681_v41 = vld [vmem:[%s5366_s1 + $0x4] sm:$0xf0]  ;;  %v2642_v44 = vor.u32 %v3689_v36, %v2641_v35 }
  0x15   : > { %v3680_v42 = vld [vmem:[%s5366_s1 + $0x4] sm:$0xf]  ;;  %v2677_v43 = vld [vmem:[%s5366_s1 + $0x8] sm:$0xf0]  ;;  %v2741_v45 = vld [vmem:[%s5366_s1 + $0xb0] sm:$0xf]  ;;  %v2646_v48 = vor.u32 %v3688_v37, %v2643_v39  ;;  %v2676_v49 = vor.u32 %v3681_v41, %v2675_v40 }
  0x16   : > { %281 = vmatpush.bf16.msra.mxu0 %v2650_v29  ;;  %v3703_v46 = vld [vmem:[%s5366_s1 + $0xb4] sm:$0xf0]  ;;  %v3702_v47 = vld [vmem:[%s5366_s1 + $0xb4] sm:$0xf]  ;;  %s5371_s16 = smov (!%p188_p3, %s2623_s16), 7  ;;  %v2680_v52 = vor.u32 %v3680_v42, %v2677_v43  ;;  %vm271_vm0 = vcmask 523264  }
  0x17   : > { %295 = vmatpush.bf16.msra.mxu1 %v2654_v33  ;;  %355 = vmatpush.bf16.msra.mxu2 %v2684_v34  ;;  %v2743_v50 = vld [vmem:[%s5366_s1 + $0xb8] sm:$0xf0]  ;;  %v2783_v51 = vld [vmem:[%s5366_s1 + $0xf0] sm:$0xf]  ;;  %v2742_v53 = vor.u32 %v3703_v46, %v2741_v45  ;;  %v3711_v54 = vld [vmem:[%s5366_s1 + $0xf4] sm:$0xf0] }
  0x18   : > { %369 = vmatpush.bf16.msra.mxu3 %v2688_v38  ;;  %v3710_v55 = vld [vmem:[%s5366_s1 + $0xf4] sm:$0xf]  ;;  %v2785_v56 = vld [vmem:[%s5366_s1 + $0xf8] sm:$0xf0]  ;;  %s3881_s25 = smul.u32 24, %s5371_s16  ;;  %v2746_v57 = vor.u32 %v3702_v47, %v2743_v50  ;;  %v2784_v58 = vor.u32 %v3711_v54, %v2783_v51  ;;  %vm671_vm1 = vcmask 1044480  }
  0x19   : > { %v2733_v59 = vld [vmem:[%s5366_s1 + $0xa0] sm:$0xf]  ;;  %v3701_v60 = vld [vmem:[%s5366_s1 + $0xa4] sm:$0xf0]  ;;  %v2788_v61 = vor.u32 %v3710_v55, %v2785_v56  ;;  %v3700_v62 = vld [vmem:[%s5366_s1 + $0xa4] sm:$0xf] }
  0x1a   : > { %282 = vmatpush.bf16.msra.mxu0 %v2642_v44  ;;  %v2735_v63 = vld [vmem:[%s5366_s1 + $0xa8] sm:$0xf0]  ;;  %v2775_v0 = vld [vmem:[%s5366_s1 + $0xe0] sm:$0xf]  ;;  %s4076_s12 = scalar_lea.vmem %s5365_s0, %s3881_s25  ;;  %v3709_v1 = vld [vmem:[%s5366_s1 + $0xe4] sm:$0xf0]  ;;  %v2734_v7 = vor.u32 %v3701_v60, %v2733_v59 }
  0x1b   : > { %296 = vmatpush.bf16.msra.mxu1 %v2646_v48  ;;  %356 = vmatpush.bf16.msra.mxu2 %v2676_v49  ;;  %v3708_v2 = vld [vmem:[%s5366_s1 + $0xe4] sm:$0xf]  ;;  %v2777_v3 = vld [vmem:[%s5366_s1 + $0xe8] sm:$0xf0]  ;;  %v2725_v11 = vld [vmem:[%s5366_s1 + $0x90] sm:$0xf]  ;;  %v2738_v13 = vor.u32 %v3700_v62, %v2735_v63  ;;  %v2776_v14 = vor.u32 %v3709_v1, %v2775_v0 }
  0x1c   : > { %370 = vmatpush.bf16.msra.mxu3 %v2680_v52  ;;  %v4088_v4 = vld [vmem:[%s4076_s12] sm:$0xff]   ;;  %v3699_v12 = vld [vmem:[%s5366_s1 + $0x94] sm:$0xf0]  ;;  %v3698_v15 = vld [vmem:[%s5366_s1 + $0x94] sm:$0xf]  ;;  %v2780_v19 = vor.u32 %v3708_v2, %v2777_v3  ;;  %s3679_s13 = sshll.u32 %s5371_s16, 4 }
  0x1d   : > { %v4091_v5 = vld [vmem:[%s4076_s12 + $0x4] sm:$0x7]  ;;  %v221_v8 = vunpack.c.l.b16 %v4088_v4  ;;  %v2727_v16 = vld [vmem:[%s5366_s1 + $0x98] sm:$0xf0]  ;;  %v2767_v20 = vld [vmem:[%s5366_s1 + $0xd0] sm:$0xf]  ;;  %v2726_v23 = vor.u32 %v3699_v12, %v2725_v11  ;;  %v477_v31 = vunpack.c.h.b16 %v4088_v4  ;;  %s197_s18 = scalar_lea.vmem %s5369_s4, %s3679_s13 }
  0x1e   : > { %v200_v6 = vld [vmem:[%s4076_s12 + $0x4] sm:$0x3]  ;;  %438 = vmatpush.bf16.msrb.mxu0 %v2742_v53  ;;  %v222_v9 = vunpack.c.l.b16 %v4091_v5  ;;  %v3707_v21 = vld [vmem:[%s5366_s1 + $0xd4] sm:$0xf0]  ;;  %v3706_v22 = vld [vmem:[%s5366_s1 + $0xd4] sm:$0xf]  ;;  %v2730_v32 = vor.u32 %v3698_v15, %v2727_v16 }
  0x1f   : > { %v304_v10 = vunpack.c.l.b16 %v200_v6  ;;  %452 = vmatpush.bf16.msrb.mxu1 %v2746_v57  ;;  %534 = vmatpush.bf16.msrb.mxu2 %v2784_v58  ;;  %v2769_v24 = vld [vmem:[%s5366_s1 + $0xd8] sm:$0xf0]  ;;  %v2717_v25 = vld [vmem:[%s5366_s1 + $0x80] sm:$0xf]  ;;  %v3697_v26 = vld [vmem:[%s5366_s1 + $0x84] sm:$0xf0]  ;;  %v2768_v33 = vor.u32 %v3707_v21, %v2767_v20 }
  0x20   : > { %548 = vmatpush.bf16.msrb.mxu3 %v2788_v61  ;;  %v223_v17 = vpack.c.b16 %v222_v9, %v221_v8  ;;  %v3696_v29 = vld [vmem:[%s5366_s1 + $0x84] sm:$0xf]  ;;  %v2719_v30 = vld [vmem:[%s5366_s1 + $0x88] sm:$0xf0]  ;;  %v2759_v34 = vld [vmem:[%s5366_s1 + $0xc0] sm:$0xf]  ;;  %v2772_v42 = vor.u32 %v3706_v22, %v2769_v24  ;;  %v2718_v43 = vor.u32 %v3697_v26, %v2717_v25 }
  0x21   : > { %v305_v18 = vpack.c.b16 %v304_v10, %v221_v8  ;;  %v3705_v35 = vld [vmem:[%s5366_s1 + $0xc4] sm:$0xf0]  ;;  %v377_v36 = vld [vmem:[%s4076_s12] sm:$0xe]  ;;  %v3704_v38 = vld [vmem:[%s5366_s1 + $0xc4] sm:$0xf]  ;;  %v2722_v53 = vor.u32 %v3696_v29, %v2719_v30 }
  0x22   : > { %439 = vmatpush.bf16.msrb.mxu0 %v2734_v7  ;;  %v225_v27 = vshrl.u32 %v223_v17, 16  ;;  %v227_v28 = vshll.u32 %v223_v17, 16  ;;  %v388_v39 = vunpack.c.l.b16 %v377_v36  ;;  %v2825_v40 = vld [vmem:[%s5366_s1 + $0x130] sm:$0xf]  ;;  %v3719_v41 = vld [vmem:[%s5366_s1 + $0x134] sm:$0xf0]  ;;  %v2760_v54 = vor.u32 %v3705_v35, %v2759_v34 }
  0x23   : > { %2705 = vmatmul.msk.bf16.vlgmr.msra.gmra.mxu2 %vm271_vm0, %v305_v18  ;;  %2706 = vmatmul.msk.bf16.vlgmr.msra.gmra.mxu3 %vm271_vm0, %v305_v18  ;;  %v3718_v44 = vld [vmem:[%s5366_s1 + $0x134] sm:$0xf]  ;;  %v2827_v45 = vld [vmem:[%s5366_s1 + $0x138] sm:$0xf0]  ;;  %v2867_v46 = vld [vmem:[%s5366_s1 + $0x170] sm:$0xf]  ;;  %v2826_v50 = vor.u32 %v3719_v41, %v2825_v40 }
  0x24   : > { %453 = vmatpush.bf16.msrb.mxu1 %v2738_v13  ;;  %535 = vmatpush.bf16.msrb.mxu2 %v2776_v14  ;;  %v229_v37 = vrot.slane %v227_v28, 1  ;;  %v2761_v48 = vld [vmem:[%s5366_s1 + $0xc8] sm:$0xf0]  ;;  %v478_v49 = vpack.c.b16 %v477_v31, %v388_v39  ;;  %v3727_v51 = vld [vmem:[%s5366_s1 + $0x174] sm:$0xf0]  ;;  %v2830_v60 = vor.u32 %v3718_v44, %v2827_v45  ;;  %v4189_v0 = vpack.c.b16 %v222_v9, %v388_v39  ;;  %v4229_v22 = vld [vmem:[%s4076_s12 + $0x4] sm:$0xff]  }
  0x25   : > { %549 = vmatpush.bf16.msrb.mxu3 %v2780_v19  ;;  %v3726_v52 = vld [vmem:[%s5366_s1 + $0x174] sm:$0xf]  ;;  %v2869_v55 = vld [vmem:[%s5366_s1 + $0x178] sm:$0xf0]  ;;  %v2817_v56 = vld [vmem:[%s5366_s1 + $0x120] sm:$0xf]  ;;  %v2868_v61 = vor.u32 %v3727_v51, %v2867_v46  ;;  %v2764_v63 = vor.u32 %v3704_v38, %v2761_v48  ;;  %v4263_v40 = vunpack.c.l.b16 %v4229_v22 }
  0x26   : > { %440 = vmatpush.bf16.msrb.mxu0 %v2726_v23  ;;  %v230_v47 = vor.u32 %v229_v37, %v225_v27  ;;  %v3717_v57 = vld [vmem:[%s5366_s1 + $0x124] sm:$0xf0]  ;;  %v480_v58 = vshrl.u32 %v478_v49, 16  ;;  %v483_v59 = vshll.u32 %v478_v49, 16  ;;  %v3716_v62 = vld [vmem:[%s5366_s1 + $0x124] sm:$0xf]  ;;  %v2872_v8 = vor.u32 %v3726_v52, %v2869_v55 }
  0x27   : > { %v2819_v1 = vld [vmem:[%s5366_s1 + $0x128] sm:$0xf0]  ;;  %v2859_v2 = vld [vmem:[%s5366_s1 + $0x160] sm:$0xf]  ;;  %v3725_v3 = vld [vmem:[%s5366_s1 + $0x164] sm:$0xf0]  ;;  %v2818_v10 = vor.u32 %v3717_v57, %v2817_v56 }
  0x28   : > { %454 = vmatpush.bf16.msrb.mxu1 %v2730_v32  ;;  %536 = vmatpush.bf16.msrb.mxu2 %v2768_v33  ;;  %v482_v6 = vrot.slane %v480_v58, 1  ;;  %v485_v7 = vrot.slane %v483_v59, 2  ;;  %v3724_v5 = vld [vmem:[%s5366_s1 + $0x164] sm:$0xf]  ;;  %v2861_v9 = vld [vmem:[%s5366_s1 + $0x168] sm:$0xf0]  ;;  %v2822_v11 = vor.u32 %v3716_v62, %v2819_v1  ;;  %v2860_v12 = vor.u32 %v3725_v3, %v2859_v2 }
  0x29   : > { %2671 = vmatmul.msk.bf16.vlgmr.msra.gmra.mxu0 %vm271_vm0, %v230_v47  ;;  %2672 = vmatmul.msk.bf16.vlgmr.msra.gmra.mxu1 %vm271_vm0, %v230_v47  ;;  %v2809_v13 = vld [vmem:[%s5366_s1 + $0x110] sm:$0xf]  ;;  %v3715_v14 = vld [vmem:[%s5366_s1 + $0x114] sm:$0xf0]  ;;  %v3714_v15 = vld [vmem:[%s5366_s1 + $0x114] sm:$0xf]  ;;  %v2864_v23 = vor.u32 %v3724_v5, %v2861_v9 }
  0x2a   : > { %550 = vmatpush.bf16.msrb.mxu3 %v2772_v42  ;;  %441 = vmatpush.bf16.msrb.mxu0 %v2718_v43  ;;  %v2811_v16 = vld [vmem:[%s5366_s1 + $0x118] sm:$0xf0]  ;;  %v2851_v17 = vld [vmem:[%s5366_s1 + $0x150] sm:$0xf]  ;;  %v3723_v18 = vld [vmem:[%s5366_s1 + $0x154] sm:$0xf0]  ;;  %v486_v20 = vor.u32 %v485_v7, %v482_v6  ;;  %v2810_v24 = vor.u32 %v3715_v14, %v2809_v13 }
  0x2b   : > { %v390_v19 = vrot.slane %v4189_v0, 1  ;;  %v3722_v21 = vld [vmem:[%s5366_s1 + $0x154] sm:$0xf]  ;;  %v2853_v25 = vld [vmem:[%s5366_s1 + $0x158] sm:$0xf0]  ;;  %v2814_v28 = vor.u32 %v3714_v15, %v2811_v16  ;;  %v2852_v29 = vor.u32 %v3723_v18, %v2851_v17 }
  0x2c   : > { %455 = vmatpush.bf16.msrb.mxu1 %v2722_v53  ;;  %537 = vmatpush.bf16.msrb.mxu2 %v2760_v54  ;;  %v2801_v26 = vld [vmem:[%s5366_s1 + $0x100] sm:$0xf]  ;;  %v3713_v27 = vld [vmem:[%s5366_s1 + $0x104] sm:$0xf0]  ;;  %v3712_v30 = vld [vmem:[%s5366_s1 + $0x104] sm:$0xf]  ;;  %v2856_v43 = vor.u32 %v3722_v21, %v2853_v25 }
  0x2d   : > { %v651_v32 = vld [vmem:[%s4076_s12] sm:$0x8]  ;;  %v653_v33 = vld [vmem:[%s4076_s12 + $0x8] sm:$0x1]  ;;  %v2803_v34 = vld [vmem:[%s5366_s1 + $0x108] sm:$0xf0]  ;;  %v2802_v44 = vor.u32 %v3713_v27, %v2801_v26 }
  0x2e   : > { %623 = vmatpush.bf16.msra.mxu0 %v2826_v50  ;;  %551 = vmatpush.bf16.msrb.mxu3 %v2764_v63  ;;  %v2843_v35 = vld [vmem:[%s5366_s1 + $0x140] sm:$0xf]  ;;  %v3721_v36 = vld [vmem:[%s5366_s1 + $0x144] sm:$0xf0]  ;;  %v3720_v37 = vld [vmem:[%s5366_s1 + $0x144] sm:$0xf]  ;;  %v666_v39 = vunpack.c.l.b16 %v651_v32  ;;  %v668_v41 = vunpack.c.l.b16 %v653_v33  ;;  %v2806_v51 = vor.u32 %v3712_v30, %v2803_v34 }
  0x2f   : > { %v2845_v38 = vld [vmem:[%s5366_s1 + $0x148] sm:$0xf0]  ;;  %v2909_v42 = vld [vmem:[%s5366_s1 + $0x1b0] sm:$0xf]  ;;  %v3735_v45 = vld [vmem:[%s5366_s1 + $0x1b4] sm:$0xf0]  ;;  %v2844_v52 = vor.u32 %v3721_v36, %v2843_v35 }
  0x30   : > { %637 = vmatpush.bf16.msra.mxu1 %v2830_v60  ;;  %722 = vmatpush.bf16.msra.mxu2 %v2868_v61  ;;  %v3734_v46 = vld [vmem:[%s5366_s1 + $0x1b4] sm:$0xf]  ;;  %v2911_v47 = vld [vmem:[%s5366_s1 + $0x1b8] sm:$0xf0]  ;;  %v562_v48 = vld [vmem:[%s4076_s12] sm:$0xc]  ;;  %v4291_v55 = vpack.c.b16 %v4263_v40, %v666_v39  ;;  %v670_v56 = vpack.c.b16 %v668_v41, %v668_v41  ;;  %v2910_v57 = vor.u32 %v3735_v45, %v2909_v42 }
  0x31   : > { %v2951_v49 = vld [vmem:[%s5366_s1 + $0x1f0] sm:$0xf]  ;;  %v3743_v50 = vld [vmem:[%s5366_s1 + $0x1f4] sm:$0xf0]  ;;  %v3742_v53 = vld [vmem:[%s5366_s1 + $0x1f4] sm:$0xf]  ;;  %v2914_v58 = vor.u32 %v3734_v46, %v2911_v47  ;;  %v2848_v60 = vor.u32 %v3720_v37, %v2845_v38  ;;  %v573_v61 = vunpack.c.l.b16 %v562_v48 }
  0x32   : > { %736 = vmatpush.bf16.msra.mxu3 %v2872_v8  ;;  %624 = vmatpush.bf16.msra.mxu0 %v2818_v10  ;;  %v2953_v54 = vld [vmem:[%s5366_s1 + $0x1f8] sm:$0xf0]  ;;  %v2901_v59 = vld [vmem:[%s5366_s1 + $0x1a0] sm:$0xf]  ;;  %v2952_v62 = vor.u32 %v3743_v50, %v2951_v49  ;;  %v3733_v63 = vld [vmem:[%s5366_s1 + $0x1a4] sm:$0xf0] }
  0x33   : > { %2789 = vmatmul.msk.bf16.vlgmr.msrb.gmra.mxu2 %vm271_vm0, %v486_v20  ;;  %2790 = vmatmul.msk.bf16.vlgmr.msrb.gmra.mxu3 %vm271_vm0, %v486_v20  ;;  %v3732_v0 = vld [vmem:[%s5366_s1 + $0x1a4] sm:$0xf]  ;;  %v2903_v1 = vld [vmem:[%s5366_s1 + $0x1a8] sm:$0xf0]  ;;  %v2956_v2 = vor.u32 %v3742_v53, %v2953_v54  ;;  %v2943_v3 = vld [vmem:[%s5366_s1 + $0x1e0] sm:$0xf]  ;;  %v2902_v9 = vor.u32 %v3733_v63, %v2901_v59 }
  0x34   : > { %638 = vmatpush.bf16.msra.mxu1 %v2822_v11  ;;  %723 = vmatpush.bf16.msra.mxu2 %v2860_v12  ;;  %v3741_v6 = vld [vmem:[%s5366_s1 + $0x1e4] sm:$0xf0]  ;;  %v3740_v7 = vld [vmem:[%s5366_s1 + $0x1e4] sm:$0xf]  ;;  %v2945_v8 = vld [vmem:[%s5366_s1 + $0x1e8] sm:$0xf0]  ;;  %v2906_v11 = vor.u32 %v3732_v0, %v2903_v1  ;;  %v4322_v12 = vpack.c.b16 %v477_v31, %v573_v61 }
  0x35   : > { %v672_v10 = vrot.slane %v4291_v55, 3  ;;  %v673_v5 = vrot.slane %v670_v56, 3  ;;  %v2944_v13 = vor.u32 %v3741_v6, %v2943_v3  ;;  %v2893_v14 = vld [vmem:[%s5366_s1 + $0x190] sm:$0xf]  ;;  %v3731_v15 = vld [vmem:[%s5366_s1 + $0x194] sm:$0xf0]  ;;  %v2948_v17 = vor.u32 %v3740_v7, %v2945_v8 }
  0x36   : > { %737 = vmatpush.bf16.msra.mxu3 %v2864_v23  ;;  %625 = vmatpush.bf16.msra.mxu0 %v2810_v24  ;;  %v3730_v16 = vld [vmem:[%s5366_s1 + $0x194] sm:$0xf]  ;;  %v2895_v4 = vld [vmem:[%s5366_s1 + $0x198] sm:$0xf0]  ;;  %v2935_v31 = vld [vmem:[%s5366_s1 + $0x1d0] sm:$0xf]  ;;  %v2894_v26 = vor.u32 %v3731_v15, %v2893_v14 }
  0x37   : > { %v750_v18 = vld [vmem:[%s4076_s12 + $0x8] sm:$0x3]  ;;  %v3738_v20 = vld [vmem:[%s5366_s1 + $0x1d4] sm:$0xf]  ;;  %v2937_v21 = vld [vmem:[%s5366_s1 + $0x1d8] sm:$0xf0]  ;;  %v674_v25 = vsel %vm671_vm1, %v672_v10, %v673_v5  ;;  %v2898_v27 = vor.u32 %v3730_v16, %v2895_v4 }
  0x38   : > { %639 = vmatpush.bf16.msra.mxu1 %v2814_v28  ;;  %724 = vmatpush.bf16.msra.mxu2 %v2852_v29  ;;  %v4349_v23 = vunpack.c.l.b16 %v750_v18  ;;  %v575_v24 = vrot.slane %v4322_v12, 2  ;;  %v2885_v28 = vld [vmem:[%s5366_s1 + $0x180] sm:$0xf]  ;;  %v2940_v30 = vor.u32 %v3738_v20, %v2937_v21  ;;  %v3729_v32 = vld [vmem:[%s5366_s1 + $0x184] sm:$0xf0]  ;;  %v765_v53 = vshrl.u32 %v4291_v55, 16 }
  0x39   : > { %2747 = vmatmul.msk.bf16.vlgmr.msrb.gmra.mxu0 %vm271_vm0, %v390_v19  ;;  %2748 = vmatmul.msk.bf16.vlgmr.msrb.gmra.mxu1 %vm271_vm0, %v390_v19  ;;  %v3739_v19 = vld [vmem:[%s5366_s1 + $0x1d4] sm:$0xf0]  ;;  %v3728_v33 = vld [vmem:[%s5366_s1 + $0x184] sm:$0xf]  ;;  %v2887_v34 = vld [vmem:[%s5366_s1 + $0x188] sm:$0xf0] }
  0x3a   : > { %738 = vmatpush.bf16.msra.mxu3 %v2856_v43  ;;  %626 = vmatpush.bf16.msra.mxu0 %v2802_v44  ;;  %v2936_v29 = vor.u32 %v3739_v19, %v2935_v31  ;;  %v2927_v35 = vld [vmem:[%s5366_s1 + $0x1c0] sm:$0xf]  ;;  %v3737_v36 = vld [vmem:[%s5366_s1 + $0x1c4] sm:$0xf0]  ;;  %v3736_v37 = vld [vmem:[%s5366_s1 + $0x1c4] sm:$0xf]  ;;  %v762_v39 = vpack.c.b16 %v4349_v23, %v4349_v23  ;;  %v2886_v43 = vor.u32 %v3729_v32, %v2885_v28 }
  0x3b   : > { %v2929_v38 = vld [vmem:[%s5366_s1 + $0x1c8] sm:$0xf0]  ;;  %v2993_v41 = vld [vmem:[%s5366_s1 + $0x230] sm:$0xf]  ;;  %v3751_v42 = vld [vmem:[%s5366_s1 + $0x234] sm:$0xf0]  ;;  %v2890_v44 = vor.u32 %v3728_v33, %v2887_v34  ;;  %v865_v20 = vpack.c.b16 %v4349_v23, %v4263_v40 }
  0x3c   : > { %640 = vmatpush.bf16.msra.mxu1 %v2806_v51  ;;  %725 = vmatpush.bf16.msra.mxu2 %v2844_v52  ;;  %v3750_v45 = vld [vmem:[%s5366_s1 + $0x234] sm:$0xf]  ;;  %v2995_v46 = vld [vmem:[%s5366_s1 + $0x238] sm:$0xf0]  ;;  %v3035_v47 = vld [vmem:[%s5366_s1 + $0x270] sm:$0xf]  ;;  %v2928_v51 = vor.u32 %v3737_v36, %v2927_v35  ;;  %v2932_v52 = vor.u32 %v3736_v37, %v2929_v38 }
  0x3d   : > { %v3759_v48 = vld [vmem:[%s5366_s1 + $0x274] sm:$0xf0]  ;;  %v3758_v49 = vld [vmem:[%s5366_s1 + $0x274] sm:$0xf]  ;;  %v3037_v50 = vld [vmem:[%s5366_s1 + $0x278] sm:$0xf0]  ;;  %v2998_v59 = vor.u32 %v3750_v45, %v2995_v46 }
  0x3e   : > { %828 = vmatpush.bf16.msrb.mxu0 %v2910_v57  ;;  %739 = vmatpush.bf16.msra.mxu3 %v2848_v60  ;;  %v768_v54 = vshll.u32 %v4291_v55, 16  ;;  %v773_v56 = vshrl.u32 %v762_v39, 16  ;;  %v776_v57 = vshll.u32 %v762_v39, 16  ;;  %v2985_v60 = vld [vmem:[%s5366_s1 + $0x220] sm:$0xf]  ;;  %v3040_v63 = vor.u32 %v3758_v49, %v3037_v50 }
  0x3f   : > { %v3749_v61 = vld [vmem:[%s5366_s1 + $0x224] sm:$0xf0]  ;;  %v3748_v55 = vld [vmem:[%s5366_s1 + $0x224] sm:$0xf]  ;;  %v2987_v0 = vld [vmem:[%s5366_s1 + $0x228] sm:$0xf0] }
  0x40   : > { %842 = vmatpush.bf16.msrb.mxu1 %v2914_v58  ;;  %913 = vmatpush.bf16.msrb.mxu2 %v2952_v62  ;;  %v2994_v58 = vor.u32 %v3751_v42, %v2993_v41  ;;  %v3036_v62 = vor.u32 %v3759_v48, %v3035_v47  ;;  %v3027_v1 = vld [vmem:[%s5366_s1 + $0x260] sm:$0xf]  ;;  %v3756_v3 = vld [vmem:[%s5366_s1 + $0x264] sm:$0xf]  ;;  %v3029_v6 = vld [vmem:[%s5366_s1 + $0x268] sm:$0xf0]  ;;  %v2986_v10 = vor.u32 %v3749_v61, %v2985_v60 }
  0x41   : > { %v767_v7 = vrot.slane %v765_v53, 3  ;;  %v770_v8 = vrot.slane %v768_v54, 4  ;;  %v2990_v5 = vor.u32 %v3748_v55, %v2987_v0  ;;  %v2977_v14 = vld [vmem:[%s5366_s1 + $0x210] sm:$0xf]  ;;  %v3747_v15 = vld [vmem:[%s5366_s1 + $0x214] sm:$0xf0] }
  0x42   : > { %927 = vmatpush.bf16.msrb.mxu3 %v2956_v2  ;;  %829 = vmatpush.bf16.msrb.mxu0 %v2902_v9  ;;  %v3757_v2 = vld [vmem:[%s5366_s1 + $0x264] sm:$0xf0]  ;;  %v775_v9 = vrot.slane %v773_v56, 3  ;;  %v3746_v16 = vld [vmem:[%s5366_s1 + $0x214] sm:$0xf]  ;;  %v2978_v21 = vor.u32 %v3747_v15, %v2977_v14  ;;  %v4551_v15 = vunpack.c.h.b16 %v4229_v22 }
  0x43   : > { %2873 = vmatmul.msk.bf16.vlgmr.msra.gmra.mxu2 %vm271_vm0, %v674_v25  ;;  %2874 = vmatmul.msk.bf16.vlgmr.msra.gmra.mxu3 %vm271_vm0, %v674_v25  ;;  %v3028_v12 = vor.u32 %v3757_v2, %v3027_v1  ;;  %v3019_v4 = vld [vmem:[%s5366_s1 + $0x250] sm:$0xf]  ;;  %v3755_v31 = vld [vmem:[%s5366_s1 + $0x254] sm:$0xf0]  ;;  %v3754_v18 = vld [vmem:[%s5366_s1 + $0x254] sm:$0xf]  ;;  %v771_v33 = vor.u32 %v770_v8, %v767_v7 }
  0x44   : > { %843 = vmatpush.bf16.msrb.mxu1 %v2906_v11  ;;  %914 = vmatpush.bf16.msrb.mxu2 %v2944_v13  ;;  %v778_v11 = vrot.slane %v776_v57, 4  ;;  %v3032_v13 = vor.u32 %v3756_v3, %v3029_v6  ;;  %v3021_v19 = vld [vmem:[%s5366_s1 + $0x258] sm:$0xf0]  ;;  %vm763_vm2 = vsmask.f32 4352  ;;  %v3020_v28 = vor.u32 %v3755_v31, %v3019_v4 }
  0x45   : > { %v2969_v25 = vld [vmem:[%s5366_s1 + $0x200] sm:$0xf]  ;;  %v3744_v23 = vld [vmem:[%s5366_s1 + $0x204] sm:$0xf]  ;;  %v3753_v35 = vld [vmem:[%s5366_s1 + $0x244] sm:$0xf0] }
  0x46   : > { %928 = vmatpush.bf16.msrb.mxu3 %v2948_v17  ;;  %830 = vmatpush.bf16.msrb.mxu0 %v2894_v26  ;;  %v2979_v17 = vld [vmem:[%s5366_s1 + $0x218] sm:$0xf0]  ;;  %v3745_v26 = vld [vmem:[%s5366_s1 + $0x204] sm:$0xf0]  ;;  %v3011_v32 = vld [vmem:[%s5366_s1 + $0x240] sm:$0xf]  ;;  %v779_v34 = vor.u32 %v778_v11, %v775_v9 }
  0x47   : > { %v3752_v36 = vld [vmem:[%s5366_s1 + $0x244] sm:$0xf]  ;;  %v3013_v37 = vld [vmem:[%s5366_s1 + $0x248] sm:$0xf0]  ;;  %v3081_v41 = vld [vmem:[%s5366_s1 + $0x2b0] sm:$0xf] }
  0x48   : > { %844 = vmatpush.bf16.msrb.mxu1 %v2898_v27  ;;  %915 = vmatpush.bf16.msrb.mxu2 %v2936_v29  ;;  %v941_v27 = vld [vmem:[%s4076_s12 + $0x8] sm:$0x7]  ;;  %v3024_v29 = vor.u32 %v3754_v18, %v3021_v19  ;;  %v1036_v39 = vld [vmem:[%s4076_s12 + $0x4] sm:$0xe]  ;;  %v3768_v42 = vld [vmem:[%s5366_s1 + $0x2b4] sm:$0xf0]  ;;  %v3016_v53 = vor.u32 %v3752_v36, %v3013_v37 }
  0x49   : > { %2831 = vmatmul.msk.bf16.vlgmr.msra.gmra.mxu0 %vm271_vm0, %v575_v24  ;;  %2832 = vmatmul.msk.bf16.vlgmr.msra.gmra.mxu1 %vm271_vm0, %v575_v24  ;;  %v2982_v24 = vor.u32 %v3746_v16, %v2979_v17  ;;  %v952_v38 = vunpack.c.l.b16 %v941_v27  ;;  %v3767_v45 = vld [vmem:[%s5366_s1 + $0x2b4] sm:$0xf]  ;;  %v3083_v46 = vld [vmem:[%s5366_s1 + $0x2b8] sm:$0xf0]  ;;  %v3123_v47 = vld [vmem:[%s5366_s1 + $0x2f0] sm:$0xf]  ;;  %v1047_v56 = vunpack.c.l.b16 %v1036_v39  ;;  %v3082_v57 = vor.u32 %v3768_v42, %v3081_v41 }
  0x4a   : > { %929 = vmatpush.bf16.msrb.mxu3 %v2940_v30  ;;  %831 = vmatpush.bf16.msrb.mxu0 %v2886_v43  ;;  %v2971_v30 = vld [vmem:[%s5366_s1 + $0x208] sm:$0xf0]  ;;  %v2970_v43 = vor.u32 %v3745_v26, %v2969_v25  ;;  %v3776_v48 = vld [vmem:[%s5366_s1 + $0x2f4] sm:$0xf0]  ;;  %v3775_v49 = vld [vmem:[%s5366_s1 + $0x2f4] sm:$0xf] }
  0x4b   : > { %v3125_v50 = vld [vmem:[%s5366_s1 + $0x2f8] sm:$0xf0]  ;;  %v4513_v54 = vpack.c.b16 %v952_v38, %v4263_v40  ;;  %v3766_v60 = vld [vmem:[%s5366_s1 + $0x2a4] sm:$0xf0]  ;;  %v3765_v61 = vld [vmem:[%s5366_s1 + $0x2a4] sm:$0xf]  ;;  %v3124_v40 = vor.u32 %v3776_v48, %v3123_v47  ;;  %v1048_v7 = vpack.c.b16 %v952_v38, %v1047_v56 }
  0x4c   : > { %845 = vmatpush.bf16.msrb.mxu1 %v2890_v44  ;;  %916 = vmatpush.bf16.msrb.mxu2 %v2928_v51  ;;  %v2974_v44 = vor.u32 %v3744_v23, %v2971_v30  ;;  %v780_v51 = vsel %vm763_vm2, %v771_v33, %v779_v34  ;;  %v3115_v55 = vld [vmem:[%s5366_s1 + $0x2e0] sm:$0xf]  ;;  %v3774_v0 = vld [vmem:[%s5366_s1 + $0x2e4] sm:$0xf0]  ;;  %v3773_v1 = vld [vmem:[%s5366_s1 + $0x2e4] sm:$0xf] }
  0x4d   : > { %v3117_v2 = vld [vmem:[%s5366_s1 + $0x2e8] sm:$0xf0]  ;;  %v1217_v3 = vld [vmem:[%s4076_s12 + $0x4] sm:$0xc]  ;;  %v957_v6 = vshll.u32 %v4513_v54, 16  ;;  %v955_v19 = vshrl.u32 %v4513_v54, 16 }
  0x4e   : > { %930 = vmatpush.bf16.msrb.mxu3 %v2932_v52  ;;  %1008 = vmatpush.bf16.msra.mxu0 %v2994_v58  ;;  %v3012_v52 = vor.u32 %v3753_v35, %v3011_v32  ;;  %v3086_v58 = vor.u32 %v3767_v45, %v3083_v46  ;;  %v3120_v9 = vor.u32 %v3773_v1, %v3117_v2  ;;  %v3065_v11 = vld [vmem:[%s5366_s1 + $0x290] sm:$0xf]  ;;  %v1232_v14 = vunpack.c.l.b16 %v1217_v3  ;;  %v3763_v16 = vld [vmem:[%s5366_s1 + $0x294] sm:$0xf]  ;;  %v3067_v17 = vld [vmem:[%s5366_s1 + $0x298] sm:$0xf0] }
  0x4f   : > { %v3107_v4 = vld [vmem:[%s5366_s1 + $0x2d0] sm:$0xf]  ;;  %v3772_v31 = vld [vmem:[%s5366_s1 + $0x2d4] sm:$0xf0]  ;;  %v3771_v22 = vld [vmem:[%s5366_s1 + $0x2d4] sm:$0xf]  ;;  %v3070_v26 = vor.u32 %v3763_v16, %v3067_v17 }
  0x50   : > { %1022 = vmatpush.bf16.msra.mxu1 %v2998_v59  ;;  %1097 = vmatpush.bf16.msra.mxu2 %v3036_v62  ;;  %v3073_v59 = vld [vmem:[%s5366_s1 + $0x2a0] sm:$0xf]  ;;  %v3128_v62 = vor.u32 %v3775_v49, %v3125_v50  ;;  %v3109_v18 = vld [vmem:[%s5366_s1 + $0x2d8] sm:$0xf0]  ;;  %v3108_v23 = vor.u32 %v3772_v31, %v3107_v4  ;;  %v3761_v32 = vld [vmem:[%s5366_s1 + $0x284] sm:$0xf] }
  0x51   : > { %v3074_v8 = vor.u32 %v3766_v60, %v3073_v59  ;;  %v3057_v27 = vld [vmem:[%s5366_s1 + $0x280] sm:$0xf]  ;;  %v3112_v30 = vor.u32 %v3771_v22, %v3109_v18  ;;  %v3059_v33 = vld [vmem:[%s5366_s1 + $0x288] sm:$0xf0]  ;;  %v3770_v35 = vld [vmem:[%s5366_s1 + $0x2c4] sm:$0xf0] }
  0x52   : > { %1111 = vmatpush.bf16.msra.mxu3 %v3040_v63  ;;  %1009 = vmatpush.bf16.msra.mxu0 %v2986_v10  ;;  %v3075_v63 = vld [vmem:[%s5366_s1 + $0x2a8] sm:$0xf0]  ;;  %v3099_v34 = vld [vmem:[%s5366_s1 + $0x2c0] sm:$0xf]  ;;  %v3769_v36 = vld [vmem:[%s5366_s1 + $0x2c4] sm:$0xf] }
  0x53   : > { %2957 = vmatmul.msk.bf16.vlgmr.msrb.gmra.mxu2 %vm271_vm0, %v865_v20  ;;  %2958 = vmatmul.msk.bf16.vlgmr.msrb.gmra.mxu3 %vm271_vm0, %v865_v20  ;;  %v3078_v10 = vor.u32 %v3765_v61, %v3075_v63  ;;  %v1049_v20 = vrot.slane %v1048_v7, 1  ;;  %v3101_v37 = vld [vmem:[%s5366_s1 + $0x2c8] sm:$0xf0]  ;;  %v3165_v39 = vld [vmem:[%s5366_s1 + $0x330] sm:$0xf]  ;;  %v3100_v56 = vor.u32 %v3770_v35, %v3099_v34 }
  0x54   : > { %1023 = vmatpush.bf16.msra.mxu1 %v2990_v5  ;;  %1098 = vmatpush.bf16.msra.mxu2 %v3028_v12  ;;  %v3116_v5 = vor.u32 %v3774_v0, %v3115_v55  ;;  %v3764_v12 = vld [vmem:[%s5366_s1 + $0x294] sm:$0xf0]  ;;  %v3783_v42 = vld [vmem:[%s5366_s1 + $0x334] sm:$0xf]  ;;  %v3167_v47 = vld [vmem:[%s5366_s1 + $0x338] sm:$0xf0] }
  0x55   : > { %v3066_v25 = vor.u32 %v3764_v12, %v3065_v11  ;;  %v3784_v41 = vld [vmem:[%s5366_s1 + $0x334] sm:$0xf0]  ;;  %v3207_v48 = vld [vmem:[%s5366_s1 + $0x370] sm:$0xf]  ;;  %v3053_v50 = vld [vmem:[%s4076_s12 + $0x4] sm:$0xc] }
  0x56   : > { %1112 = vmatpush.bf16.msra.mxu3 %v3032_v13  ;;  %1010 = vmatpush.bf16.msra.mxu0 %v2978_v21  ;;  %v1219_v13 = vld [vmem:[%s4076_s12 + $0xc] sm:$0x1]  ;;  %v3209_v54 = vld [vmem:[%s5366_s1 + $0x378] sm:$0xf0]  ;;  %v3782_v59 = vld [vmem:[%s5366_s1 + $0x324] sm:$0xf0] }
  0x57   : > { %v1234_v21 = vunpack.c.l.b16 %v1219_v13  ;;  %v3781_v60 = vld [vmem:[%s5366_s1 + $0x324] sm:$0xf]  ;;  %v3159_v63 = vld [vmem:[%s5366_s1 + $0x328] sm:$0xf0]  ;;  %v3199_v55 = vld [vmem:[%s5366_s1 + $0x360] sm:$0xf] }
  0x58   : > { %1024 = vmatpush.bf16.msra.mxu1 %v2982_v24  ;;  %1099 = vmatpush.bf16.msra.mxu2 %v3020_v28  ;;  %v959_v24 = vrot.slane %v957_v6, 1  ;;  %v3762_v28 = vld [vmem:[%s5366_s1 + $0x284] sm:$0xf0]  ;;  %v1326_v7 = vld [vmem:[%s4076_s12 + $0x4] sm:$0x8]  ;;  %v3162_v13 = vor.u32 %v3781_v60, %v3159_v63 }
  0x59   : > { %2915 = vmatmul.msk.bf16.vlgmr.msrb.gmra.mxu0 %vm271_vm0, %v780_v51  ;;  %2916 = vmatmul.msk.bf16.vlgmr.msrb.gmra.mxu1 %vm271_vm0, %v780_v51  ;;  %v4599_v38 = vpack.c.b16 %v1234_v21, %v1234_v21  ;;  %v3760_v51 = vld [vmem:[%s4076_s12 + $0x4] sm:$0xf0]  ;;  %vm1237_vm3 = vsmask.f32 5376  ;;  %v3149_v31 = vld [vmem:[%s5366_s1 + $0x310] sm:$0xf] }
  0x5a   : > { %1113 = vmatpush.bf16.msra.mxu3 %v3024_v29  ;;  %1011 = vmatpush.bf16.msra.mxu0 %v2970_v43  ;;  %v1235_v29 = vpack.c.b16 %v4551_v15, %v1232_v14  ;;  %v3058_v43 = vor.u32 %v3762_v28, %v3057_v27  ;;  %v960_v49 = vor.u32 %v959_v24, %v955_v19  ;;  %v3790_v6 = vld [vmem:[%s5366_s1 + $0x364] sm:$0xf0]  ;;  %v1337_v14 = vunpack.c.l.b16 %v1326_v7  ;;  %v3780_v22 = vld [vmem:[%s5366_s1 + $0x314] sm:$0xf0]  ;;  %v3779_v19 = vld [vmem:[%s5366_s1 + $0x314] sm:$0xf] }
  0x5b   : > { %v1247_v61 = vshll.u32 %v4599_v38, 16  ;;  %v3200_v17 = vor.u32 %v3790_v6, %v3199_v55  ;;  %v3191_v21 = vld [vmem:[%s5366_s1 + $0x350] sm:$0xf]  ;;  %v3788_v24 = vld [vmem:[%s5366_s1 + $0x354] sm:$0xf0]  ;;  %v3150_v28 = vor.u32 %v3780_v22, %v3149_v31 }
  0x5c   : > { %1025 = vmatpush.bf16.msra.mxu1 %v2974_v44  ;;  %1100 = vmatpush.bf16.msra.mxu2 %v3012_v52  ;;  %v3062_v44 = vor.u32 %v3761_v32, %v3059_v33  ;;  %v1239_v45 = vshrl.u32 %v1235_v29, 16  ;;  %v1242_v46 = vshll.u32 %v1235_v29, 16  ;;  %v3792_v52 = vld [vmem:[%s5366_s1 + $0x374] sm:$0xf0]  ;;  %v4683_v29 = vpack.c.b16 %v4551_v15, %v1337_v14  ;;  %v3141_v32 = vld [vmem:[%s5366_s1 + $0x300] sm:$0xf] }
  0x5d   : > { %v3208_v2 = vor.u32 %v3792_v52, %v3207_v48  ;;  %v1249_v11 = vrot.slane %v1247_v61, 3  ;;  %v3778_v33 = vld [vmem:[%s5366_s1 + $0x304] sm:$0xf0]  ;;  %v3777_v34 = vld [vmem:[%s5366_s1 + $0x304] sm:$0xf] }
  0x5e   : > { %1114 = vmatpush.bf16.msra.mxu3 %v3016_v53  ;;  %1189 = vmatpush.bf16.msrb.mxu0 %v3082_v57  ;;  %v3791_v53 = vld [vmem:[%s5366_s1 + $0x374] sm:$0xf]  ;;  %v3104_v57 = vor.u32 %v3769_v36, %v3101_v37  ;;  %v1241_v0 = vrot.slane %v1239_v45, 2  ;;  %v1244_v1 = vrot.slane %v1242_v46, 3  ;;  %v3192_v36 = vor.u32 %v3788_v24, %v3191_v21  ;;  %v3249_v45 = vld [vmem:[%s5366_s1 + $0x3b0] sm:$0xf] }
  0x5f   : > { %v3212_v3 = vor.u32 %v3791_v53, %v3209_v54  ;;  %v1431_v46 = vshrl.u32 %v4683_v29, 16  ;;  %v3800_v48 = vld [vmem:[%s5366_s1 + $0x3b4] sm:$0xf0]  ;;  %v3251_v54 = vld [vmem:[%s5366_s1 + $0x3b8] sm:$0xf0] }
  0x60   : > { %1203 = vmatpush.bf16.msrb.mxu1 %v3086_v58  ;;  %1298 = vmatpush.bf16.msrb.mxu2 %v3124_v40  ;;  %v3157_v58 = vld [vmem:[%s5366_s1 + $0x320] sm:$0xf]  ;;  %v3166_v40 = vor.u32 %v3784_v41, %v3165_v39  ;;  %v1245_v16 = vor.u32 %v1244_v1, %v1241_v0  ;;  %v3143_v39 = vld [vmem:[%s5366_s1 + $0x308] sm:$0xf0]  ;;  %v3250_v0 = vor.u32 %v3800_v48, %v3249_v45  ;;  %v3233_v22 = vld [vmem:[%s5366_s1 + $0x390] sm:$0xf] }
  0x61   : > { %v3158_v12 = vor.u32 %v3782_v59, %v3157_v58  ;;  %v3183_v41 = vld [vmem:[%s5366_s1 + $0x340] sm:$0xf]  ;;  %v3807_v58 = vld [vmem:[%s5366_s1 + $0x3f4] sm:$0xf]  ;;  %v3293_v59 = vld [vmem:[%s5366_s1 + $0x3f8] sm:$0xf0] }
  0x62   : > { %1312 = vmatpush.bf16.msrb.mxu3 %v3128_v62  ;;  %1190 = vmatpush.bf16.msrb.mxu0 %v3074_v8  ;;  %v3170_v62 = vor.u32 %v3783_v42, %v3167_v47  ;;  %v3789_v8 = vld [vmem:[%s5366_s1 + $0x364] sm:$0xf]  ;;  %v3786_v42 = vld [vmem:[%s5366_s1 + $0x344] sm:$0xf0]  ;;  %v1434_v47 = vshll.u32 %v4683_v29, 16  ;;  %v1433_v63 = vrot.slane %v1431_v46, 3 }
  0x63   : > { %3041 = vmatmul.msk.bf16.vlgmr.msra.gmra.mxu2 %vm271_vm0, %v1049_v20  ;;  %3042 = vmatmul.msk.bf16.vlgmr.msra.gmra.mxu3 %vm271_vm0, %v1049_v20  ;;  %v3151_v20 = vld [vmem:[%s5366_s1 + $0x318] sm:$0xf0]  ;;  %v3184_v60 = vor.u32 %v3786_v42, %v3183_v41  ;;  %v3275_v24 = vld [vmem:[%s5366_s1 + $0x3d0] sm:$0xf]  ;;  %v3802_v41 = vld [vmem:[%s5366_s1 + $0x3c4] sm:$0xf0] }
  0x64   : > { %1204 = vmatpush.bf16.msrb.mxu1 %v3078_v10  ;;  %1299 = vmatpush.bf16.msrb.mxu2 %v3116_v5  ;;  %v3201_v10 = vld [vmem:[%s5366_s1 + $0x368] sm:$0xf0]  ;;  %v1436_v55 = vrot.slane %v1434_v47, 4  ;;  %v3235_v21 = vld [vmem:[%s5366_s1 + $0x398] sm:$0xf0] }
  0x65   : > { %v1417_v5 = vld [vmem:[%s4076_s12 + $0xc] sm:$0x3]  ;;  %v3204_v4 = vor.u32 %v3789_v8, %v3201_v10  ;;  %v3296_v10 = vor.u32 %v3807_v58, %v3293_v59  ;;  %v3801_v42 = vld [vmem:[%s5366_s1 + $0x3c4] sm:$0xf]  ;;  %v3333_v46 = vld [vmem:[%s5366_s1 + $0x430] sm:$0xf] }
  0x66   : > { %1313 = vmatpush.bf16.msrb.mxu3 %v3120_v9  ;;  %1191 = vmatpush.bf16.msrb.mxu0 %v3066_v25  ;;  %v3054_v9 = vor.u32 %v3760_v51, %v3053_v50  ;;  %v4662_v18 = vunpack.c.l.b16 %v1417_v5  ;;  %v3787_v25 = vld [vmem:[%s5366_s1 + $0x354] sm:$0xf]  ;;  %v3142_v50 = vor.u32 %v3778_v33, %v3141_v32  ;;  %v3146_v51 = vor.u32 %v3777_v34, %v3143_v39  ;;  %v3283_v5 = vld [vmem:[%s5366_s1 + $0x3e0] sm:$0xf]  ;;  %v1608_v45 = vld [vmem:[%s4076_s12 + $0xc] sm:$0x7] }
  0x67   : > { %v3225_v34 = vld [vmem:[%s5366_s1 + $0x380] sm:$0xf]  ;;  %v3816_v47 = vld [vmem:[%s5366_s1 + $0x434] sm:$0xf0] }
  0x68   : > { %1205 = vmatpush.bf16.msrb.mxu1 %v3070_v26  ;;  %1300 = vmatpush.bf16.msrb.mxu2 %v3108_v23  ;;  %v3193_v26 = vld [vmem:[%s5366_s1 + $0x358] sm:$0xf0]  ;;  %v1141_v27 = vrot.slane %v3054_v9, 2  ;;  %v1250_v23 = vsel %vm1237_vm3, %v1245_v16, %v1249_v11  ;;  %v1429_v35 = vpack.c.b16 %v4662_v18, %v4662_v18  ;;  %v3806_v9 = vld [vmem:[%s5366_s1 + $0x3e4] sm:$0xf0] }
  0x69   : > { %2999 = vmatmul.msk.bf16.vlgmr.msra.gmra.mxu0 %vm271_vm0, %v960_v49  ;;  %3000 = vmatmul.msk.bf16.vlgmr.msra.gmra.mxu1 %vm271_vm0, %v960_v49  ;;  %v3196_v37 = vor.u32 %v3787_v25, %v3193_v26  ;;  %v3799_v49 = vld [vmem:[%s5366_s1 + $0x3b4] sm:$0xf]  ;;  %v3805_v11 = vld [vmem:[%s5366_s1 + $0x3e4] sm:$0xf]  ;;  %v3284_v16 = vor.u32 %v3806_v9, %v3283_v5  ;;  %v3804_v25 = vld [vmem:[%s5366_s1 + $0x3d4] sm:$0xf0] }
  0x6a   : > { %1314 = vmatpush.bf16.msrb.mxu3 %v3112_v30  ;;  %1192 = vmatpush.bf16.msrb.mxu0 %v3058_v43  ;;  %v3154_v30 = vor.u32 %v3779_v19, %v3151_v20  ;;  %v3785_v43 = vld [vmem:[%s5366_s1 + $0x344] sm:$0xf]  ;;  %v1439_v52 = vshrl.u32 %v1429_v35, 16  ;;  %v1442_v53 = vshll.u32 %v1429_v35, 16  ;;  %v3254_v1 = vor.u32 %v3799_v49, %v3251_v54  ;;  %v3796_v19 = vld [vmem:[%s5366_s1 + $0x394] sm:$0xf0] }
  0x6b   : > { %v3795_v20 = vld [vmem:[%s5366_s1 + $0x394] sm:$0xf]  ;;  %v3234_v32 = vor.u32 %v3796_v19, %v3233_v22  ;;  %v3276_v35 = vor.u32 %v3804_v25, %v3275_v24  ;;  %v3267_v39 = vld [vmem:[%s5366_s1 + $0x3c0] sm:$0xf]  ;;  %v3820_v22 = vld [vmem:[%s5366_s1 + $0x454] sm:$0xf0] }
  0x6c   : > { %1206 = vmatpush.bf16.msrb.mxu1 %v3062_v44  ;;  %1301 = vmatpush.bf16.msrb.mxu2 %v3100_v56  ;;  %v3185_v44 = vld [vmem:[%s5366_s1 + $0x348] sm:$0xf0]  ;;  %v3291_v56 = vld [vmem:[%s5366_s1 + $0x3f0] sm:$0xf]  ;;  %v1441_v6 = vrot.slane %v1439_v52, 3  ;;  %v1444_v7 = vrot.slane %v1442_v53, 4  ;;  %v3238_v33 = vor.u32 %v3795_v20, %v3235_v21  ;;  %v3268_v58 = vor.u32 %v3802_v41, %v3267_v39 }
  0x6d   : > { %v3188_v61 = vor.u32 %v3785_v43, %v3185_v44  ;;  %v3803_v26 = vld [vmem:[%s5366_s1 + $0x3d4] sm:$0xf]  ;;  %v3269_v43 = vld [vmem:[%s5366_s1 + $0x3c8] sm:$0xf0]  ;;  %v4818_v44 = vld [vmem:[%s4076_s12 + $0x8] sm:$0xe] }
  0x6e   : > { %1315 = vmatpush.bf16.msrb.mxu3 %v3104_v57  ;;  %1389 = vmatpush.bf16.msra.mxu0 %v3166_v40  ;;  %v3808_v57 = vld [vmem:[%s5366_s1 + $0x3f4] sm:$0xf0]  ;;  %v3241_v40 = vld [vmem:[%s5366_s1 + $0x3a0] sm:$0xf]  ;;  %v3375_v52 = vld [vmem:[%s5366_s1 + $0x470] sm:$0xf]  ;;  %v3272_v59 = vor.u32 %v3801_v42, %v3269_v43 }
  0x6f   : > { %v3292_v8 = vor.u32 %v3808_v57, %v3291_v56  ;;  %v3824_v53 = vld [vmem:[%s5366_s1 + $0x474] sm:$0xf0]  ;;  %v3823_v54 = vld [vmem:[%s5366_s1 + $0x474] sm:$0xf]  ;;  %v3377_v56 = vld [vmem:[%s5366_s1 + $0x478] sm:$0xf0] }
  0x70   : > { %1403 = vmatpush.bf16.msra.mxu1 %v3170_v62  ;;  %1494 = vmatpush.bf16.msra.mxu2 %v3208_v2  ;;  %v3798_v62 = vld [vmem:[%s5366_s1 + $0x3a4] sm:$0xf0]  ;;  %v3797_v2 = vld [vmem:[%s5366_s1 + $0x3a4] sm:$0xf]  ;;  %v3819_v19 = vld [vmem:[%s5366_s1 + $0x454] sm:$0xf] }
  0x71   : > { %v3361_v20 = vld [vmem:[%s5366_s1 + $0x458] sm:$0xf0]  ;;  %v1699_v24 = vld [vmem:[%s4076_s12 + $0xc] sm:$0xf]  ;;  %v3417_v39 = vld [vmem:[%s5366_s1 + $0x4b0] sm:$0xf] }
  0x72   : > { %1508 = vmatpush.bf16.msra.mxu3 %v3212_v3  ;;  %1390 = vmatpush.bf16.msra.mxu0 %v3158_v12  ;;  %v3243_v3 = vld [vmem:[%s5366_s1 + $0x3a8] sm:$0xf0]  ;;  %v3832_v41 = vld [vmem:[%s5366_s1 + $0x4b4] sm:$0xf0] }
  0x73   : > { %3129 = vmatmul.msk.bf16.vlgmr.msrb.gmra.mxu2 %vm271_vm0, %v1250_v23  ;;  %3130 = vmatmul.msk.bf16.vlgmr.msrb.gmra.mxu3 %vm271_vm0, %v1250_v23  ;;  %v3285_v12 = vld [vmem:[%s5366_s1 + $0x3e8] sm:$0xf0]  ;;  %v3246_v14 = vor.u32 %v3797_v2, %v3243_v3  ;;  %v1340_v23 = vrot.slane %v4599_v38, 3  ;;  %v3793_v38 = vld [vmem:[%s5366_s1 + $0x384] sm:$0xf] }
  0x74   : > { %1404 = vmatpush.bf16.msra.mxu1 %v3162_v13  ;;  %1495 = vmatpush.bf16.msra.mxu2 %v3200_v17  ;;  %v3242_v13 = vor.u32 %v3798_v62, %v3241_v40  ;;  %v1437_v17 = vor.u32 %v1436_v55, %v1433_v63  ;;  %v3288_v31 = vor.u32 %v3805_v11, %v3285_v12  ;;  %v3325_v63 = vld [vmem:[%s5366_s1 + $0x420] sm:$0xf]  ;;  %v3814_v55 = vld [vmem:[%s5366_s1 + $0x424] sm:$0xf0]  ;;  %v3813_v2 = vld [vmem:[%s5366_s1 + $0x424] sm:$0xf] }
  0x75   : > { %v3334_v40 = vor.u32 %v3816_v47, %v3333_v46  ;;  %v3327_v3 = vld [vmem:[%s5366_s1 + $0x428] sm:$0xf0]  ;;  %v3326_v9 = vor.u32 %v3814_v55, %v3325_v63  ;;  %v3419_v46 = vld [vmem:[%s5366_s1 + $0x4b8] sm:$0xf0]  ;;  %v3459_v47 = vld [vmem:[%s5366_s1 + $0x4f0] sm:$0xf] }
  0x76   : > { %1509 = vmatpush.bf16.msra.mxu3 %v3204_v4  ;;  %1391 = vmatpush.bf16.msra.mxu0 %v3150_v28  ;;  %v1445_v4 = vor.u32 %v1444_v7, %v1441_v6  ;;  %v1339_v28 = vrot.slane %v4683_v29, 3  ;;  %v3794_v29 = vld [vmem:[%s5366_s1 + $0x384] sm:$0xf0]  ;;  %v3367_v6 = vld [vmem:[%s5366_s1 + $0x460] sm:$0xf]  ;;  %v3330_v11 = vor.u32 %v3813_v2, %v3327_v3  ;;  %v4985_v2 = vld [vmem:[%s4076_s12 + $0xc] sm:$0xff]  }
  0x77   : > { %v3226_v48 = vor.u32 %v3794_v29, %v3225_v34  ;;  %v3822_v7 = vld [vmem:[%s5366_s1 + $0x464] sm:$0xf0]  ;;  %v3351_v34 = vld [vmem:[%s5366_s1 + $0x440] sm:$0xf]  ;;  %v3837_v63 = vld [vmem:[%s5366_s1 + $0x4e4] sm:$0xf] }
  0x78   : > { %1405 = vmatpush.bf16.msra.mxu1 %v3154_v30  ;;  %1496 = vmatpush.bf16.msra.mxu2 %v3192_v36  ;;  %v1446_v30 = vsel %vm763_vm2, %v1437_v17, %v1445_v4  ;;  %v1341_v57 = vsel %vm671_vm1, %v1339_v28, %v1340_v23  ;;  %v3368_v12 = vor.u32 %v3822_v7, %v3367_v6  ;;  %v3811_v17 = vld [vmem:[%s5366_s1 + $0x414] sm:$0xf]  ;;  %v3319_v4 = vld [vmem:[%s5366_s1 + $0x418] sm:$0xf0]  ;;  %v3818_v29 = vld [vmem:[%s5366_s1 + $0x444] sm:$0xf0] }
  0x79   : > { %3087 = vmatmul.msk.bf16.vlgmr.msrb.gmra.mxu0 %vm271_vm0, %v1141_v27  ;;  %3088 = vmatmul.msk.bf16.vlgmr.msrb.gmra.mxu1 %vm271_vm0, %v1141_v27  ;;  %v3277_v27 = vld [vmem:[%s5366_s1 + $0x3d8] sm:$0xf0]  ;;  %v3364_v23 = vor.u32 %v3819_v19, %v3361_v20  ;;  %v3453_v55 = vld [vmem:[%s5366_s1 + $0x4e8] sm:$0xf0] }
  0x7a   : > { %1510 = vmatpush.bf16.msra.mxu3 %v3196_v37  ;;  %1392 = vmatpush.bf16.msra.mxu0 %v3142_v50  ;;  %v3280_v36 = vor.u32 %v3803_v26, %v3277_v27  ;;  %v3227_v37 = vld [vmem:[%s5366_s1 + $0x388] sm:$0xf0]  ;;  %v3815_v50 = vld [vmem:[%s5366_s1 + $0x434] sm:$0xf]  ;;  %v3322_v26 = vor.u32 %v3811_v17, %v3319_v4  ;;  %v3309_v27 = vld [vmem:[%s5366_s1 + $0x400] sm:$0xf]  ;;  %v5003_v17 = vunpack.c.l.b16 %v4985_v2 }
  0x7b   : > { %v3230_v49 = vor.u32 %v3793_v38, %v3227_v37  ;;  %v3817_v38 = vld [vmem:[%s5366_s1 + $0x444] sm:$0xf]  ;;  %v3353_v37 = vld [vmem:[%s5366_s1 + $0x448] sm:$0xf0]  ;;  %v3836_v4 = vld [vmem:[%s5366_s1 + $0x4d4] sm:$0xf0] }
  0x7c   : > { %1406 = vmatpush.bf16.msra.mxu1 %v3146_v51  ;;  %1497 = vmatpush.bf16.msra.mxu2 %v3184_v60  ;;  %v3335_v51 = vld [vmem:[%s5366_s1 + $0x438] sm:$0xf0]  ;;  %v1620_v60 = vunpack.c.l.b16 %v4818_v44  ;;  %v3829_v44 = vld [vmem:[%s5366_s1 + $0x4a4] sm:$0xf] }
  0x7d   : > { %v3338_v62 = vor.u32 %v3815_v50, %v3335_v51  ;;  %v3839_v50 = vld [vmem:[%s5366_s1 + $0x4f4] sm:$0xf]  ;;  %v3461_v51 = vld [vmem:[%s5366_s1 + $0x4f8] sm:$0xf0] }
  0x7e   : > { %1511 = vmatpush.bf16.msra.mxu3 %v3188_v61  ;;  %1579 = vmatpush.bf16.msrb.mxu0 %v3250_v0  ;;  %v1621_v61 = vunpack.c.l.b16 %v1608_v45  ;;  %v3376_v0 = vor.u32 %v3824_v53, %v3375_v52  ;;  %v3831_v45 = vld [vmem:[%s5366_s1 + $0x4b4] sm:$0xf]  ;;  %v3352_v52 = vor.u32 %v3818_v29, %v3351_v34  ;;  %v3356_v53 = vor.u32 %v3817_v38, %v3353_v37  ;;  %v3395_v34 = vld [vmem:[%s5366_s1 + $0x488] sm:$0xf0]  ;;  %v3435_v29 = vld [vmem:[%s5366_s1 + $0x4c0] sm:$0xf] }
  0x7f   : > { %v3437_v37 = vld [vmem:[%s5366_s1 + $0x4c8] sm:$0xf0] }
  0x80   : > { %1593 = vmatpush.bf16.msrb.mxu1 %v3254_v1  ;;  %1671 = vmatpush.bf16.msrb.mxu2 %v3292_v8  ;;  %v3380_v1 = vor.u32 %v3823_v54, %v3377_v56  ;;  %v3821_v8 = vld [vmem:[%s5366_s1 + $0x464] sm:$0xf]  ;;  %v1622_v5 = vpack.c.b16 %v1621_v61, %v1620_v60  ;;  %v3422_v56 = vor.u32 %v3831_v45, %v3419_v46  ;;  %v3847_v45 = vld [vmem:[%s5366_s1 + $0x534] sm:$0xf] }
  0x81   : > { %v3464_v61 = vor.u32 %v3839_v50, %v3461_v51  ;;  %v3856_v50 = vld [vmem:[%s5366_s1 + $0x574] sm:$0xf0] }
  0x82   : > { %1685 = vmatpush.bf16.msrb.mxu3 %v3296_v10  ;;  %1580 = vmatpush.bf16.msrb.mxu0 %v3242_v13  ;;  %v3369_v10 = vld [vmem:[%s5366_s1 + $0x468] sm:$0xf0]  ;;  %v1623_v21 = vrot.slane %v1622_v5, 1  ;;  %v3456_v5 = vor.u32 %v3837_v63, %v3453_v55  ;;  %v3493_v55 = vld [vmem:[%s5366_s1 + $0x520] sm:$0xf] }
  0x83   : > { %3213 = vmatmul.msk.bf16.vlgmr.msra.gmra.mxu2 %vm271_vm0, %v1446_v30  ;;  %3214 = vmatmul.msk.bf16.vlgmr.msra.gmra.mxu3 %vm271_vm0, %v1446_v30  ;;  %v3372_v13 = vor.u32 %v3821_v8, %v3369_v10  ;;  %v3810_v30 = vld [vmem:[%s5366_s1 + $0x404] sm:$0xf0] }
  0x84   : > { %1594 = vmatpush.bf16.msrb.mxu1 %v3246_v14  ;;  %1672 = vmatpush.bf16.msrb.mxu2 %v3284_v16  ;;  %v3317_v14 = vld [vmem:[%s5366_s1 + $0x410] sm:$0xf]  ;;  %v3812_v16 = vld [vmem:[%s5366_s1 + $0x414] sm:$0xf0]  ;;  %v3310_v42 = vor.u32 %v3810_v30, %v3309_v27  ;;  %v3393_v27 = vld [vmem:[%s5366_s1 + $0x480] sm:$0xf] }
  0x85   : > { %v3318_v25 = vor.u32 %v3812_v16, %v3317_v14  ;;  %v3443_v14 = vld [vmem:[%s5366_s1 + $0x4d0] sm:$0xf] }
  0x86   : > { %1686 = vmatpush.bf16.msrb.mxu3 %v3288_v31  ;;  %1581 = vmatpush.bf16.msrb.mxu0 %v3234_v32  ;;  %v3359_v31 = vld [vmem:[%s5366_s1 + $0x450] sm:$0xf]  ;;  %v3809_v32 = vld [vmem:[%s5366_s1 + $0x404] sm:$0xf]  ;;  %v3444_v30 = vor.u32 %v3836_v4, %v3443_v14 }
  0x87   : > { %v3360_v28 = vor.u32 %v3820_v22, %v3359_v31  ;;  %v3835_v31 = vld [vmem:[%s5366_s1 + $0x4d4] sm:$0xf]  ;;  %v3445_v22 = vld [vmem:[%s5366_s1 + $0x4d8] sm:$0xf0] }
  0x88   : > { %1595 = vmatpush.bf16.msrb.mxu1 %v3238_v33  ;;  %1673 = vmatpush.bf16.msrb.mxu2 %v3276_v35  ;;  %v3311_v33 = vld [vmem:[%s5366_s1 + $0x408] sm:$0xf0]  ;;  %v1710_v35 = vunpack.c.l.b16 %v1699_v24  ;;  %v1886_v24 = vld [vmem:[%s4076_s12 + $0x10] sm:$0x1] }
  0x89   : > { %3171 = vmatmul.msk.bf16.vlgmr.msra.gmra.mxu0 %vm271_vm0, %v1341_v57  ;;  %3172 = vmatmul.msk.bf16.vlgmr.msra.gmra.mxu1 %vm271_vm0, %v1341_v57  ;;  %v3314_v43 = vor.u32 %v3809_v32, %v3311_v33  ;;  %v3409_v57 = vld [vmem:[%s5366_s1 + $0x4a0] sm:$0xf]  ;;  %v3448_v32 = vor.u32 %v3835_v31, %v3445_v22  ;;  %v3825_v33 = vld [vmem:[%s5366_s1 + $0x484] sm:$0xf]  ;;  %v5101_v31 = vld [vmem:[%s4076_s12 + $0x10] sm:$0x7] }
  0x8a   : > { %1687 = vmatpush.bf16.msrb.mxu3 %v3280_v36  ;;  %1582 = vmatpush.bf16.msrb.mxu0 %v3226_v48  ;;  %v1795_v36 = vld [vmem:[%s4076_s12 + $0x8] sm:$0xc]  ;;  %v1531_v48 = vpack.c.b16 %v4662_v18, %v4551_v15  ;;  %v1711_v54 = vpack.c.b16 %v1710_v35, %v1620_v60  ;;  %v3418_v18 = vor.u32 %v3832_v41, %v3417_v39  ;;  %v3411_v60 = vld [vmem:[%s5366_s1 + $0x4a8] sm:$0xf0]  ;;  %v1901_v39 = vunpack.c.l.b16 %v1886_v24  ;;  %v3485_v24 = vld [vmem:[%s5366_s1 + $0x510] sm:$0xf] }
  0x8b   : > { %v1806_v15 = vunpack.c.l.b16 %v1795_v36  ;;  %v3414_v8 = vor.u32 %v3829_v44, %v3411_v60  ;;  %v3833_v36 = vld [vmem:[%s5366_s1 + $0x4c4] sm:$0xf] }
  0x8c   : > { %1596 = vmatpush.bf16.msrb.mxu1 %v3230_v49  ;;  %1674 = vmatpush.bf16.msrb.mxu2 %v3268_v58  ;;  %v3840_v49 = vld [vmem:[%s5366_s1 + $0x4f4] sm:$0xf0]  ;;  %v3830_v58 = vld [vmem:[%s5366_s1 + $0x4a4] sm:$0xf0]  ;;  %v1716_v3 = vshll.u32 %v1711_v54, 16 }
  0x8d   : > { %v1807_v6 = vpack.c.b16 %v1710_v35, %v1806_v15  ;;  %v3410_v7 = vor.u32 %v3830_v58, %v3409_v57  ;;  %v3834_v35 = vld [vmem:[%s5366_s1 + $0x4c4] sm:$0xf0]  ;;  %v3440_v57 = vor.u32 %v3833_v36, %v3437_v37  ;;  %v1903_v58 = vpack.c.b16 %v1901_v39, %v1901_v39 }
  0x8e   : > { %1688 = vmatpush.bf16.msrb.mxu3 %v3272_v59  ;;  %1767 = vmatpush.bf16.msra.mxu0 %v3334_v40  ;;  %v3460_v59 = vor.u32 %v3840_v49, %v3459_v47  ;;  %v3451_v40 = vld [vmem:[%s5366_s1 + $0x4e0] sm:$0xf]  ;;  %v1718_v20 = vrot.slane %v1716_v3, 2  ;;  %v3398_v47 = vor.u32 %v3825_v33, %v3395_v34  ;;  %v3543_v49 = vld [vmem:[%s5366_s1 + $0x570] sm:$0xf] }
  0x8f   : > { %v3544_v63 = vor.u32 %v3856_v50, %v3543_v49  ;;  %v2006_v14 = vrot.slane %v1903_v58, 3  ;;  %v3851_v33 = vld [vmem:[%s5366_s1 + $0x554] sm:$0xf]  ;;  %v3529_v34 = vld [vmem:[%s5366_s1 + $0x558] sm:$0xf0] }
  0x90   : > { %1781 = vmatpush.bf16.msra.mxu1 %v3338_v62  ;;  %1856 = vmatpush.bf16.msra.mxu2 %v3376_v0  ;;  %v3838_v62 = vld [vmem:[%s5366_s1 + $0x4e4] sm:$0xf0]  ;;  %v1713_v0 = vshrl.u32 %v1711_v54, 16  ;;  %v3545_v54 = vld [vmem:[%s5366_s1 + $0x578] sm:$0xf0] }
  0x91   : > { %v3452_v10 = vor.u32 %v3838_v62, %v3451_v40  ;;  %v3841_v49 = vld [vmem:[%s5366_s1 + $0x504] sm:$0xf]  ;;  %v3479_v50 = vld [vmem:[%s5366_s1 + $0x508] sm:$0xf0] }
  0x92   : > { %1870 = vmatpush.bf16.msra.mxu3 %v3380_v1  ;;  %1768 = vmatpush.bf16.msra.mxu0 %v3326_v9  ;;  %v1884_v1 = vld [vmem:[%s4076_s12 + $0x8] sm:$0xc]  ;;  %v3401_v9 = vld [vmem:[%s5366_s1 + $0x490] sm:$0xf]  ;;  %v1715_v19 = vrot.slane %v1713_v0, 1 }
  0x93   : > { %3297 = vmatmul.msk.bf16.vlgmr.msrb.gmra.mxu2 %vm271_vm0, %v1623_v21  ;;  %3298 = vmatmul.msk.bf16.vlgmr.msrb.gmra.mxu3 %vm271_vm0, %v1623_v21  ;;  %v1899_v16 = vunpack.c.l.b16 %v1884_v1  ;;  %v1808_v21 = vrot.slane %v1807_v6, 2  ;;  %v3846_v0 = vld [vmem:[%s5366_s1 + $0x524] sm:$0xf0] }
  0x94   : > { %1782 = vmatpush.bf16.msra.mxu1 %v3330_v11  ;;  %1857 = vmatpush.bf16.msra.mxu2 %v3368_v12  ;;  %v3828_v11 = vld [vmem:[%s5366_s1 + $0x494] sm:$0xf0]  ;;  %v3827_v12 = vld [vmem:[%s5366_s1 + $0x494] sm:$0xf]  ;;  %v1719_v51 = vor.u32 %v1718_v20, %v1715_v19  ;;  %v1913_v19 = vshll.u32 %v1903_v58, 16 }
  0x95   : > { %v1902_v38 = vpack.c.b16 %v5003_v17, %v1899_v16  ;;  %v3494_v16 = vor.u32 %v3846_v0, %v3493_v55 }
  0x96   : > { %1871 = vmatpush.bf16.msra.mxu3 %v3372_v13  ;;  %1769 = vmatpush.bf16.msra.mxu0 %v3318_v25  ;;  %v3403_v13 = vld [vmem:[%s5366_s1 + $0x498] sm:$0xf0]  ;;  %v3402_v25 = vor.u32 %v3828_v11, %v3401_v9  ;;  %v3853_v9 = vld [vmem:[%s5366_s1 + $0x564] sm:$0xf]  ;;  %v3537_v11 = vld [vmem:[%s5366_s1 + $0x568] sm:$0xf0] }
  0x98   : > { %1783 = vmatpush.bf16.msra.mxu1 %v3322_v26  ;;  %1858 = vmatpush.bf16.msra.mxu2 %v3360_v28  ;;  %v3406_v26 = vor.u32 %v3827_v12, %v3403_v13  ;;  %v3826_v28 = vld [vmem:[%s5366_s1 + $0x484] sm:$0xf0] }
  0x99   : > { %3255 = vmatmul.msk.bf16.vlgmr.msrb.gmra.mxu0 %vm271_vm0, %v1531_v48  ;;  %3256 = vmatmul.msk.bf16.vlgmr.msrb.gmra.mxu1 %vm271_vm0, %v1531_v48  ;;  %v3394_v46 = vor.u32 %v3826_v28, %v3393_v27  ;;  %v3503_v48 = vld [vmem:[%s5366_s1 + $0x538] sm:$0xf0]  ;;  %v3527_v28 = vld [vmem:[%s5366_s1 + $0x550] sm:$0xf] }
  0x9a   : > { %1872 = vmatpush.bf16.msra.mxu3 %v3364_v23  ;;  %1770 = vmatpush.bf16.msra.mxu0 %v3310_v42  ;;  %v1992_v23 = vld [vmem:[%s4076_s12 + $0x8] sm:$0x8]  ;;  %v3501_v42 = vld [vmem:[%s5366_s1 + $0x530] sm:$0xf]  ;;  %v3506_v62 = vor.u32 %v3847_v45, %v3503_v48  ;;  %v3487_v27 = vld [vmem:[%s5366_s1 + $0x518] sm:$0xf0] }
  0x9b   : > { %v2003_v41 = vunpack.c.l.b16 %v1992_v23  ;;  %v3477_v45 = vld [vmem:[%s5366_s1 + $0x500] sm:$0xf]  ;;  %v3842_v48 = vld [vmem:[%s5366_s1 + $0x504] sm:$0xf0] }
  0x9c   : > { %1784 = vmatpush.bf16.msra.mxu1 %v3314_v43  ;;  %1859 = vmatpush.bf16.msra.mxu2 %v3352_v52  ;;  %v3848_v43 = vld [vmem:[%s5366_s1 + $0x534] sm:$0xf0]  ;;  %v1905_v52 = vshrl.u32 %v1902_v38, 16  ;;  %v3478_v58 = vor.u32 %v3842_v48, %v3477_v45  ;;  %v3611_v45 = vld [vmem:[%s5366_s1 + $0x5d0] sm:$0xf] }
  0x9d   : > { %v2004_v60 = vpack.c.b16 %v5003_v17, %v2003_v41  ;;  %v3502_v40 = vor.u32 %v3848_v43, %v3501_v42  ;;  %v1915_v42 = vrot.slane %v1913_v19, 3  ;;  %v3868_v48 = vld [vmem:[%s5366_s1 + $0x5d4] sm:$0xf0] }
  0x9e   : > { %1873 = vmatpush.bf16.msra.mxu3 %v3356_v53  ;;  %1964 = vmatpush.bf16.msrb.mxu0 %v3418_v18  ;;  %v3855_v53 = vld [vmem:[%s5366_s1 + $0x574] sm:$0xf]  ;;  %v5098_v12 = vrot.slane %v1905_v52, 2  ;;  %v3519_v52 = vld [vmem:[%s5366_s1 + $0x540] sm:$0xf] }
  0x9f   : > { %v3548_v6 = vor.u32 %v3855_v53, %v3545_v54  ;;  %v2005_v13 = vrot.slane %v2004_v60, 3  ;;  %v3850_v53 = vld [vmem:[%s5366_s1 + $0x544] sm:$0xf0]  ;;  %v3849_v54 = vld [vmem:[%s5366_s1 + $0x544] sm:$0xf] }
  0xa0   : > { %1978 = vmatpush.bf16.msrb.mxu1 %v3422_v56  ;;  %2055 = vmatpush.bf16.msrb.mxu2 %v3460_v59  ;;  %v3436_v56 = vor.u32 %v3834_v35, %v3435_v29  ;;  %v1908_v59 = vshll.u32 %v1902_v38, 16  ;;  %v2182_v29 = vunpack.c.l.b16 %v5101_v31  ;;  %v3627_v60 = vld [vmem:[%s5366_s1 + $0x5f0] sm:$0xf] }
  0xa1   : > { %v2007_v36 = vsel %vm671_vm1, %v2005_v13, %v2006_v14 }
  0xa2   : > { %2069 = vmatpush.bf16.msrb.mxu3 %v3464_v61  ;;  %1965 = vmatpush.bf16.msrb.mxu0 %v3410_v7  ;;  %v3845_v7 = vld [vmem:[%s5366_s1 + $0x524] sm:$0xf]  ;;  %v1910_v22 = vrot.slane %v1908_v59, 3  ;;  %v3482_v59 = vor.u32 %v3841_v49, %v3479_v50  ;;  %v3867_v49 = vld [vmem:[%s5366_s1 + $0x5d4] sm:$0xf] }
  0xa3   : > { %3381 = vmatmul.msk.bf16.vlgmr.msra.gmra.mxu2 %vm271_vm0, %v1808_v21  ;;  %3382 = vmatmul.msk.bf16.vlgmr.msra.gmra.mxu3 %vm271_vm0, %v1808_v21  ;;  %v3540_v21 = vor.u32 %v3853_v9, %v3537_v11  ;;  %v3613_v50 = vld [vmem:[%s5366_s1 + $0x5d8] sm:$0xf0] }
  0xa4   : > { %1979 = vmatpush.bf16.msrb.mxu1 %v3414_v8  ;;  %2056 = vmatpush.bf16.msrb.mxu2 %v3452_v10  ;;  %v3495_v8 = vld [vmem:[%s5366_s1 + $0x528] sm:$0xf0]  ;;  %v3535_v10 = vld [vmem:[%s5366_s1 + $0x560] sm:$0xf] }
  0xa5   : > { %v3498_v4 = vor.u32 %v3845_v7, %v3495_v8  ;;  %v3520_v7 = vor.u32 %v3850_v53, %v3519_v52  ;;  %v2366_v52 = vunpack.c.h.b16 %v4985_v2 }
  0xa6   : > { %2070 = vmatpush.bf16.msrb.mxu3 %v3456_v5  ;;  %1966 = vmatpush.bf16.msrb.mxu0 %v3402_v25  ;;  %v284_v15 = vpop.f32.mrf.mxu0  ;;  %v298_v18 = vpop.f32.mrf.mxu1  ;;  %v3854_v5 = vld [vmem:[%s5366_s1 + $0x564] sm:$0xf0]  ;;  %v3844_v25 = vld [vmem:[%s5366_s1 + $0x514] sm:$0xf0] }
  0xa7   : > { %v358_v61 = vpop.f32.mrf.mxu2  ;;  %v372_v44 = vpop.f32.mrf.mxu3  ;;  %v3536_v20 = vor.u32 %v3854_v5, %v3535_v10  ;;  %v3486_v37 = vor.u32 %v3844_v25, %v3485_v24  ;;  %v3870_v25 = vld [vmem:[%s5366_s1 + $0x5e4] sm:$0xf0] }
  0xa8   : > { %1980 = vmatpush.bf16.msrb.mxu1 %v3406_v26  ;;  %2057 = vmatpush.bf16.msrb.mxu2 %v3444_v30  ;;  %v5074_v1 = vadd.f32 %v358_v61, %v284_v15  ;;  %v5076_v3 = vadd.f32 %v372_v44, %v298_v18  ;;  %v3843_v26 = vld [vmem:[%s5366_s1 + $0x514] sm:$0xf]  ;;  %v5158_v15 = vpack.c.b16 %v2182_v29, %v5003_v17  ;;  %v3521_v18 = vld [vmem:[%s5366_s1 + $0x548] sm:$0xf0]  ;;  %v3587_v44 = vld [vmem:[%s5366_s1 + $0x5b8] sm:$0xf0] }
  0xa9   : > { %3339 = vmatmul.msk.bf16.vlgmr.msra.gmra.mxu0 %vm271_vm0, %v1719_v51  ;;  %3340 = vmatmul.msk.bf16.vlgmr.msra.gmra.mxu1 %vm271_vm0, %v1719_v51  ;;  %v3490_v43 = vor.u32 %v3843_v26, %v3487_v27  ;;  %v1911_v51 = vor.u32 %v1910_v22, %v5098_v12  ;;  %v3863_v61 = vld [vmem:[%s5366_s1 + $0x5b4] sm:$0xf]  ;;  %v3524_v8 = vor.u32 %v3849_v54, %v3521_v18  ;;  %v3869_v26 = vld [vmem:[%s5366_s1 + $0x5e4] sm:$0xf]  ;;  %v3621_v27 = vld [vmem:[%s5366_s1 + $0x5e8] sm:$0xf0] }
  0xaa   : > { %2071 = vmatpush.bf16.msrb.mxu3 %v3448_v32  ;;  %1967 = vmatpush.bf16.msrb.mxu0 %v3394_v46  ;;  %v3852_v32 = vld [vmem:[%s5366_s1 + $0x554] sm:$0xf0]  ;;  %v2187_v10 = vshll.u32 %v5158_v15, 16  ;;  %v3590_v14 = vor.u32 %v3863_v61, %v3587_v44  ;;  %v3561_v61 = vld [vmem:[%s5366_s1 + $0x580] sm:$0xf] }
  0xab   : > { %v3528_v46 = vor.u32 %v3852_v32, %v3527_v28  ;;  %v2185_v28 = vshrl.u32 %v5158_v15, 16 }
  0xac   : > { %1981 = vmatpush.bf16.msrb.mxu1 %v3398_v47  ;;  %2058 = vmatpush.bf16.msrb.mxu2 %v3436_v56  ;;  %v3532_v47 = vor.u32 %v3851_v33, %v3529_v34  ;;  %v3585_v56 = vld [vmem:[%s5366_s1 + $0x5b0] sm:$0xf]  ;;  %v5225_v33 = vld [vmem:[%s4076_s12 + $0xc] sm:$0xe] }
  0xad   : > { %v2083_v34 = vld [vmem:[%s4076_s12 + $0x10] sm:$0x3] }
  0xae   : > { %2072 = vmatpush.bf16.msrb.mxu3 %v3440_v57  ;;  %2143 = vmatpush.bf16.msra.mxu0 %v3502_v40  ;;  %v286_v23 = vpop.f32.mrf.mxu0  ;;  %v300_v30 = vpop.f32.mrf.mxu1  ;;  %v3864_v57 = vld [vmem:[%s5366_s1 + $0x5b4] sm:$0xf0] }
  0xaf   : > { %v360_v38 = vpop.f32.mrf.mxu2  ;;  %v374_v35 = vpop.f32.mrf.mxu3  ;;  %v3872_v40 = vld [vmem:[%s5366_s1 + $0x5f4] sm:$0xf0]  ;;  %v3586_v13 = vor.u32 %v3864_v57, %v3585_v56  ;;  %v2094_v57 = vunpack.c.l.b16 %v2083_v34 }
  0xb0   : > { %2157 = vmatpush.bf16.msra.mxu1 %v3506_v62  ;;  %2238 = vmatpush.bf16.msra.mxu2 %v3544_v63  ;;  %v5129_v39 = vadd.f32 %v360_v38, %v286_v23  ;;  %v5131_v41 = vadd.f32 %v374_v35, %v300_v30  ;;  %v3871_v62 = vld [vmem:[%s5366_s1 + $0x5f4] sm:$0xf]  ;;  %v3629_v63 = vld [vmem:[%s5366_s1 + $0x5f8] sm:$0xf0]  ;;  %v3628_v22 = vor.u32 %v3872_v40, %v3627_v60  ;;  %v2189_v23 = vrot.slane %v2187_v10, 1 }
  0xb1   : > { %v3632_v19 = vor.u32 %v3871_v62, %v3629_v63  ;;  %v3624_v35 = vor.u32 %v3869_v26, %v3621_v27  ;;  %v3612_v40 = vor.u32 %v3868_v48, %v3611_v45  ;;  %v3857_v62 = vld [vmem:[%s5366_s1 + $0x584] sm:$0xf]  ;;  %v3563_v63 = vld [vmem:[%s5366_s1 + $0x588] sm:$0xf0]  ;;  %v3669_v10 = vld [vmem:[%s5366_s1 + $0x630] sm:$0xf] }
  0xb2   : > { %2252 = vmatpush.bf16.msra.mxu3 %v3548_v6  ;;  %2144 = vmatpush.bf16.msra.mxu0 %v3494_v16  ;;  %v1916_v6 = vsel %vm1237_vm3, %v1911_v51, %v1915_v42  ;;  %v3577_v16 = vld [vmem:[%s5366_s1 + $0x5a0] sm:$0xf]  ;;  %v3859_v42 = vld [vmem:[%s5366_s1 + $0x594] sm:$0xf]  ;;  %v2277_v51 = vunpack.c.l.b16 %v5225_v33  ;;  %v2190_v56 = vor.u32 %v2189_v23, %v2185_v28 }
  0xb3   : > { %3465 = vmatmul.msk.bf16.vlgmr.msrb.gmra.mxu2 %vm271_vm0, %v2007_v36  ;;  %3466 = vmatmul.msk.bf16.vlgmr.msrb.gmra.mxu3 %vm271_vm0, %v2007_v36  ;;  %v3569_v36 = vld [vmem:[%s5366_s1 + $0x590] sm:$0xf]  ;;  %v3875_v45 = vld [vmem:[%s5366_s1 + $0x614] sm:$0xf] }
  0xb4   : > { %2158 = vmatpush.bf16.msra.mxu1 %v3498_v4  ;;  %2239 = vmatpush.bf16.msra.mxu2 %v3536_v20  ;;  %v3862_v4 = vld [vmem:[%s5366_s1 + $0x5a4] sm:$0xf0]  ;;  %v3619_v20 = vld [vmem:[%s5366_s1 + $0x5e0] sm:$0xf] }
  0xb5   : > { %v3578_v30 = vor.u32 %v3862_v4, %v3577_v16  ;;  %v3620_v38 = vor.u32 %v3870_v25, %v3619_v20 }
  0xb6   : > { %2253 = vmatpush.bf16.msra.mxu3 %v3540_v21  ;;  %2145 = vmatpush.bf16.msra.mxu0 %v3486_v37  ;;  %v443_v55 = vpop.f32.mrf.mxu0  ;;  %v457_v0 = vpop.f32.mrf.mxu1  ;;  %v3860_v37 = vld [vmem:[%s5366_s1 + $0x594] sm:$0xf0] }
  0xb7   : > { %v462_v5 = vadd.f32 %v443_v55, %v5074_v1  ;;  %v463_v9 = vadd.f32 %v457_v0, %v5076_v3  ;;  %v539_v11 = vpop.f32.mrf.mxu2  ;;  %v553_v12 = vpop.f32.mrf.mxu3  ;;  %v3861_v1 = vld [vmem:[%s5366_s1 + $0x5a4] sm:$0xf]  ;;  %v3579_v3 = vld [vmem:[%s5366_s1 + $0x5a8] sm:$0xf0]  ;;  %v3603_v55 = vld [vmem:[%s5366_s1 + $0x5c0] sm:$0xf] }
  0xb8   : > { %2159 = vmatpush.bf16.msra.mxu1 %v3490_v43  ;;  %2240 = vmatpush.bf16.msra.mxu2 %v3528_v46  ;;  %v3582_v32 = vor.u32 %v3861_v1, %v3579_v3  ;;  %v3571_v43 = vld [vmem:[%s5366_s1 + $0x598] sm:$0xf0]  ;;  %v3866_v0 = vld [vmem:[%s5366_s1 + $0x5c4] sm:$0xf0] }
  0xb9   : > { %3423 = vmatmul.msk.bf16.vlgmr.msrb.gmra.mxu0 %vm271_vm0, %v1916_v6  ;;  %3424 = vmatmul.msk.bf16.vlgmr.msrb.gmra.mxu1 %vm271_vm0, %v1916_v6  ;;  %v5210_v21 = vadd.f32 %v539_v11, %v462_v5  ;;  %v5212_v24 = vadd.f32 %v553_v12, %v463_v9  ;;  %v2367_v6 = vpack.c.b16 %v2366_v52, %v2277_v51  ;;  %v3880_v11 = vld [vmem:[%s5366_s1 + $0x634] sm:$0xf0]  ;;  %v3879_v12 = vld [vmem:[%s5366_s1 + $0x634] sm:$0xf] }
  0xba   : > { %2254 = vmatpush.bf16.msra.mxu3 %v3532_v47  ;;  %2146 = vmatpush.bf16.msra.mxu0 %v3478_v58  ;;  %v3570_v58 = vor.u32 %v3860_v37, %v3569_v36  ;;  %v3566_v9 = vor.u32 %v3857_v62, %v3563_v63  ;;  %v3670_v28 = vor.u32 %v3880_v11, %v3669_v10 }
  0xbb   : > { %v2369_v1 = vshrl.u32 %v2367_v6, 16  ;;  %v2372_v3 = vshll.u32 %v2367_v6, 16 }
  0xbc   : > { %2160 = vmatpush.bf16.msra.mxu1 %v3482_v59  ;;  %2241 = vmatpush.bf16.msra.mxu2 %v3520_v7  ;;  %v3574_v59 = vor.u32 %v3859_v42, %v3571_v43  ;;  %v3865_v7 = vld [vmem:[%s5366_s1 + $0x5c4] sm:$0xf]  ;;  %v3653_v42 = vld [vmem:[%s5366_s1 + $0x610] sm:$0xf]  ;;  %v3876_v43 = vld [vmem:[%s5366_s1 + $0x614] sm:$0xf0] }
  0xbe   : > { %2255 = vmatpush.bf16.msra.mxu3 %v3524_v8  ;;  %2327 = vmatpush.bf16.msrb.mxu0 %v3586_v13  ;;  %v445_v46 = vpop.f32.mrf.mxu0  ;;  %v459_v47 = vpop.f32.mrf.mxu1  ;;  %v3605_v8 = vld [vmem:[%s5366_s1 + $0x5c8] sm:$0xf0]  ;;  %v3671_v13 = vld [vmem:[%s5366_s1 + $0x638] sm:$0xf0] }
  0xbf   : > { %v464_v53 = vadd.f32 %v445_v46, %v5129_v39  ;;  %v465_v54 = vadd.f32 %v459_v47, %v5131_v41  ;;  %v541_v15 = vpop.f32.mrf.mxu2  ;;  %v555_v18 = vpop.f32.mrf.mxu3  ;;  %v3616_v39 = vor.u32 %v3867_v49, %v3613_v50  ;;  %v3858_v41 = vld [vmem:[%s5366_s1 + $0x584] sm:$0xf0]  ;;  %v3674_v23 = vor.u32 %v3879_v12, %v3671_v13  ;;  %v3655_v46 = vld [vmem:[%s5366_s1 + $0x618] sm:$0xf0] }
  0xc0   : > { %2341 = vmatpush.bf16.msrb.mxu1 %v3590_v14  ;;  %2423 = vmatpush.bf16.msrb.mxu2 %v3628_v22  ;;  %v3562_v5 = vor.u32 %v3858_v41, %v3561_v61  ;;  %v2095_v14 = vpack.c.b16 %v2094_v57, %v5003_v17  ;;  %v3604_v22 = vor.u32 %v3866_v0, %v3603_v55  ;;  %v3661_v17 = vld [vmem:[%s5366_s1 + $0x620] sm:$0xf] }
  0xc1   : > { %v560_v44 = vadd.f32 %v541_v15, %v464_v53  ;;  %v561_v60 = vadd.f32 %v555_v18, %v465_v54  ;;  %v3654_v18 = vor.u32 %v3876_v43, %v3653_v42  ;;  %v3645_v57 = vld [vmem:[%s5366_s1 + $0x600] sm:$0xf]  ;;  %v2278_v61 = vpack.c.b16 %v2182_v29, %v2277_v51 }
  0xc2   : > { %2437 = vmatpush.bf16.msrb.mxu3 %v3632_v19  ;;  %2328 = vmatpush.bf16.msrb.mxu0 %v3578_v30  ;;  %v3608_v19 = vor.u32 %v3865_v7, %v3605_v8  ;;  %v3878_v30 = vld [vmem:[%s5366_s1 + $0x624] sm:$0xf0]  ;;  %v2451_v7 = vld [vmem:[%s4076_s12 + $0xc] sm:$0xc] }
  0xc3   : > { %3549 = vmatmul.msk.bf16.vlgmr.msra.gmra.mxu2 %vm271_vm0, %v2190_v56  ;;  %3550 = vmatmul.msk.bf16.vlgmr.msra.gmra.mxu3 %vm271_vm0, %v2190_v56  ;;  %v3662_v36 = vor.u32 %v3878_v30, %v3661_v17  ;;  %v3658_v56 = vor.u32 %v3875_v45, %v3655_v46  ;;  %v2279_v33 = vrot.slane %v2278_v61, 1  ;;  %v2462_v8 = vunpack.c.l.b16 %v2451_v7 }
  0xc4   : > { %2342 = vmatpush.bf16.msrb.mxu1 %v3582_v32  ;;  %2424 = vmatpush.bf16.msrb.mxu2 %v3620_v38  ;;  %v2371_v38 = vrot.slane %v2369_v1, 1 }
  0xc6   : > { %2438 = vmatpush.bf16.msrb.mxu3 %v3624_v35  ;;  %2329 = vmatpush.bf16.msrb.mxu0 %v3570_v58  ;;  %v628_v16 = vpop.f32.mrf.mxu0  ;;  %v642_v4 = vpop.f32.mrf.mxu1  ;;  %v2374_v35 = vrot.slane %v2372_v3, 2 }
  0xc7   : > { %v647_v20 = vadd.f32 %v628_v16, %v5210_v21  ;;  %v648_v25 = vadd.f32 %v642_v4, %v5212_v24  ;;  %v727_v26 = vpop.f32.mrf.mxu2  ;;  %v741_v27 = vpop.f32.mrf.mxu3  ;;  %v3877_v21 = vld [vmem:[%s5366_s1 + $0x624] sm:$0xf]  ;;  %v3663_v24 = vld [vmem:[%s5366_s1 + $0x628] sm:$0xf0]  ;;  %v2463_v4 = vpack.c.b16 %v2366_v52, %v2462_v8 }
  0xc8   : > { %2343 = vmatpush.bf16.msrb.mxu1 %v3574_v59  ;;  %2425 = vmatpush.bf16.msrb.mxu2 %v3612_v40  ;;  %v3666_v37 = vor.u32 %v3877_v21, %v3663_v24  ;;  %v2375_v15 = vor.u32 %v2374_v35, %v2371_v38  ;;  %v3647_v40 = vld [vmem:[%s5366_s1 + $0x608] sm:$0xf0] }
  0xc9   : > { %3507 = vmatmul.msk.bf16.vlgmr.msra.gmra.mxu0 %vm271_vm0, %v2095_v14  ;;  %3508 = vmatmul.msk.bf16.vlgmr.msra.gmra.mxu1 %vm271_vm0, %v2095_v14  ;;  %v746_v32 = vadd.f32 %v727_v26, %v647_v20  ;;  %v747_v34 = vadd.f32 %v741_v27, %v648_v25 }
  0xca   : > { %2439 = vmatpush.bf16.msrb.mxu3 %v3616_v39  ;;  %2330 = vmatpush.bf16.msrb.mxu0 %v3562_v5 }
  0xcc   : > { %2344 = vmatpush.bf16.msrb.mxu1 %v3566_v9  ;;  %2426 = vmatpush.bf16.msrb.mxu2 %v3604_v22  ;;  %v2464_v22 = vrot.slane %v2463_v4, 2 }
  0xce   : > { %2440 = vmatpush.bf16.msrb.mxu3 %v3608_v19  ;;  %2512 = vmatpush.bf16.msra.mxu0 %v3670_v28  ;;  %v630_v47 = vpop.f32.mrf.mxu0  ;;  %v644_v48 = vpop.f32.mrf.mxu1 }
  0xcf   : > { %v649_v49 = vadd.f32 %v630_v47, %v560_v44  ;;  %v650_v50 = vadd.f32 %v644_v48, %v561_v60  ;;  %v729_v53 = vpop.f32.mrf.mxu2  ;;  %v743_v54 = vpop.f32.mrf.mxu3  ;;  %v3874_v44 = vld [vmem:[%s5366_s1 + $0x604] sm:$0xf0]  ;;  %v3873_v60 = vld [vmem:[%s5366_s1 + $0x604] sm:$0xf] }
  0xd0   : > { %2526 = vmatpush.bf16.msra.mxu1 %v3674_v23  ;;  %v3646_v31 = vor.u32 %v3874_v44, %v3645_v57  ;;  %v3650_v29 = vor.u32 %v3873_v60, %v3647_v40 }
  0xd1   : > { %v748_v58 = vadd.f32 %v729_v53, %v649_v49  ;;  %v749_v59 = vadd.f32 %v743_v54, %v650_v50 }
  0xd2   : > { %2513 = vmatpush.bf16.msra.mxu0 %v3662_v36 }
  0xd3   : > { %3633 = vmatmul.msk.bf16.vlgmr.msrb.gmra.mxu2 %vm271_vm0, %v2375_v15  ;;  %3634 = vmatmul.msk.bf16.vlgmr.msrb.gmra.mxu3 %vm271_vm0, %v2375_v15 }
  0xd4   : > { %2527 = vmatpush.bf16.msra.mxu1 %v3666_v37 }
  0xd6   : > { %2514 = vmatpush.bf16.msra.mxu0 %v3654_v18  ;;  %v833_v51 = vpop.f32.mrf.mxu0  ;;  %v847_v39 = vpop.f32.mrf.mxu1 }
  0xd7   : > { %v852_v41 = vadd.f32 %v833_v51, %v746_v32  ;;  %v853_v62 = vadd.f32 %v847_v39, %v747_v34  ;;  %v918_v63 = vpop.f32.mrf.mxu2  ;;  %v932_v55 = vpop.f32.mrf.mxu3 }
  0xd8   : > { %2528 = vmatpush.bf16.msra.mxu1 %v3658_v56 }
  0xd9   : > { %3591 = vmatmul.msk.bf16.vlgmr.msrb.gmra.mxu0 %vm271_vm0, %v2279_v33  ;;  %3592 = vmatmul.msk.bf16.vlgmr.msrb.gmra.mxu1 %vm271_vm0, %v2279_v33  ;;  %v937_v0 = vadd.f32 %v918_v63, %v852_v41  ;;  %v938_v6 = vadd.f32 %v932_v55, %v853_v62 }
  0xda   : > { %2515 = vmatpush.bf16.msra.mxu0 %v3646_v31 }
  0xdc   : > { %2529 = vmatpush.bf16.msra.mxu1 %v3650_v29 }
  0xde   : > { %v835_v10 = vpop.f32.mrf.mxu0  ;;  %v849_v5 = vpop.f32.mrf.mxu1 }
  0xdf   : > { %v854_v9 = vadd.f32 %v835_v10, %v748_v58  ;;  %v855_v11 = vadd.f32 %v849_v5, %v749_v59  ;;  %v920_v12 = vpop.f32.mrf.mxu2  ;;  %v934_v13 = vpop.f32.mrf.mxu3 }
  0xe1   : > { %v939_v14 = vadd.f32 %v920_v12, %v854_v9  ;;  %v940_v16 = vadd.f32 %v934_v13, %v855_v11 }
  0xe6   : > { %v1013_v19 = vpop.f32.mrf.mxu0  ;;  %v1027_v1 = vpop.f32.mrf.mxu1 }
  0xe7   : > { %v1032_v3 = vadd.f32 %v1013_v19, %v937_v0  ;;  %v1033_v20 = vadd.f32 %v1027_v1, %v938_v6  ;;  %v1102_v25 = vpop.f32.mrf.mxu2  ;;  %v1116_v26 = vpop.f32.mrf.mxu3 }
  0xe9   : > { %3675 = vmatmul.msk.bf16.vlgmr.msra.gmra.mxu0 %vm271_vm0, %v2464_v22  ;;  %3676 = vmatmul.msk.bf16.vlgmr.msra.gmra.mxu1 %vm271_vm0, %v2464_v22  ;;  %v1121_v27 = vadd.f32 %v1102_v25, %v1032_v3  ;;  %v1122_v28 = vadd.f32 %v1116_v26, %v1033_v20 }
  0xee   : > { %v1015_v23 = vpop.f32.mrf.mxu0  ;;  %v1029_v17 = vpop.f32.mrf.mxu1 }
  0xef   : > { %v1034_v30 = vadd.f32 %v1015_v23, %v939_v14  ;;  %v1035_v21 = vadd.f32 %v1029_v17, %v940_v16  ;;  %v1104_v24 = vpop.f32.mrf.mxu2  ;;  %v1118_v2 = vpop.f32.mrf.mxu3 }
  0xf1   : > { %v1123_v52 = vadd.f32 %v1104_v24, %v1034_v30  ;;  %v1124_v32 = vadd.f32 %v1118_v2, %v1035_v21 }
  0xf6   : > { %v1194_v34 = vpop.f32.mrf.mxu0  ;;  %v1208_v38 = vpop.f32.mrf.mxu1 }
  0xf7   : > { %v1213_v35 = vadd.f32 %v1194_v34, %v1121_v27  ;;  %v1214_v36 = vadd.f32 %v1208_v38, %v1122_v28  ;;  %v1303_v37 = vpop.f32.mrf.mxu2  ;;  %v1317_v42 = vpop.f32.mrf.mxu3 }
  0xf9   : > { %v1322_v43 = vadd.f32 %v1303_v37, %v1213_v35  ;;  %v1323_v45 = vadd.f32 %v1317_v42, %v1214_v36 }
  0xfe   : > { %v1196_v46 = vpop.f32.mrf.mxu0  ;;  %v1210_v47 = vpop.f32.mrf.mxu1 }
  0xff   : > { %v1215_v48 = vadd.f32 %v1196_v46, %v1123_v52  ;;  %v1216_v49 = vadd.f32 %v1210_v47, %v1124_v32  ;;  %v1305_v50 = vpop.f32.mrf.mxu2  ;;  %v1319_v53 = vpop.f32.mrf.mxu3 }
 0x101   : > { %v1324_v54 = vadd.f32 %v1305_v50, %v1215_v48  ;;  %v1325_v15 = vadd.f32 %v1319_v53, %v1216_v49 }
 0x106   : > { %v1394_v18 = vpop.f32.mrf.mxu0  ;;  %v1408_v56 = vpop.f32.mrf.mxu1 }
 0x107   : > { %v1413_v57 = vadd.f32 %v1394_v18, %v1322_v43  ;;  %v1414_v58 = vadd.f32 %v1408_v56, %v1323_v45  ;;  %v1499_v59 = vpop.f32.mrf.mxu2  ;;  %v1513_v61 = vpop.f32.mrf.mxu3 }
 0x109   : > { %v1518_v30 = vadd.f32 %v1499_v59, %v1413_v57  ;;  %v1519_v21 = vadd.f32 %v1513_v61, %v1414_v58 }
 0x10e   : > { %v1396_v44 = vpop.f32.mrf.mxu0  ;;  %v1410_v60 = vpop.f32.mrf.mxu1 }
 0x10f   : > { %v1415_v40 = vadd.f32 %v1396_v44, %v1324_v54  ;;  %v1416_v31 = vadd.f32 %v1410_v60, %v1325_v15  ;;  %v1501_v29 = vpop.f32.mrf.mxu2  ;;  %v1515_v33 = vpop.f32.mrf.mxu3 }
 0x111   : > { %v1520_v43 = vadd.f32 %v1501_v29, %v1415_v40  ;;  %v1521_v45 = vadd.f32 %v1515_v33, %v1416_v31 }
 0x116   : > { %v1584_v51 = vpop.f32.mrf.mxu0  ;;  %v1598_v39 = vpop.f32.mrf.mxu1 }
 0x117   : > { %v1676_v41 = vpop.f32.mrf.mxu2  ;;  %v1690_v62 = vpop.f32.mrf.mxu3  ;;  %v1603_v24 = vadd.f32 %v1584_v51, %v1518_v30  ;;  %v1604_v2 = vadd.f32 %v1598_v39, %v1519_v21 }
 0x119   : > { %v1695_v52 = vadd.f32 %v1676_v41, %v1603_v24  ;;  %v1696_v32 = vadd.f32 %v1690_v62, %v1604_v2 }
 0x11e   : > { %v1586_v63 = vpop.f32.mrf.mxu0  ;;  %v1600_v55 = vpop.f32.mrf.mxu1 }
 0x11f   : > { %v1678_v0 = vpop.f32.mrf.mxu2  ;;  %v1692_v6 = vpop.f32.mrf.mxu3  ;;  %v1605_v48 = vadd.f32 %v1586_v63, %v1520_v43  ;;  %v1606_v49 = vadd.f32 %v1600_v55, %v1521_v45  ;;  %v2540_v63 = vld [vmem:[%s5367_s2] sm:$0x3] }
 0x121   : > { %v1697_v54 = vadd.f32 %v1678_v0, %v1605_v48  ;;  %v1698_v15 = vadd.f32 %v1692_v6, %v1606_v49  ;;  %v2550_v6 = vld [vmem:[%s5368_s3] sm:$0x3] }
 0x126   : > { %v1772_v7 = vpop.f32.mrf.mxu0  ;;  %v1786_v8 = vpop.f32.mrf.mxu1 }
 0x127   : > { %v1861_v10 = vpop.f32.mrf.mxu2  ;;  %v1875_v5 = vpop.f32.mrf.mxu3  ;;  %v1791_v37 = vadd.f32 %v1772_v7, %v1695_v52  ;;  %v1792_v42 = vadd.f32 %v1786_v8, %v1696_v32 }
 0x129   : > { %v1880_v46 = vadd.f32 %v1861_v10, %v1791_v37  ;;  %v1881_v47 = vadd.f32 %v1875_v5, %v1792_v42 }
 0x12e   : > { %v1774_v9 = vpop.f32.mrf.mxu0  ;;  %v1788_v11 = vpop.f32.mrf.mxu1 }
 0x12f   : > { %v1863_v12 = vpop.f32.mrf.mxu2  ;;  %v1877_v13 = vpop.f32.mrf.mxu3  ;;  %v1793_v57 = vadd.f32 %v1774_v9, %v1697_v54  ;;  %v1794_v58 = vadd.f32 %v1788_v11, %v1698_v15  ;;  %v2542_v9 = vperm.slane %v2540_v63, 0  ;;  %v2543_v11 = vperm.slane %v2540_v63, 1 }
 0x131   : > { %v1882_v51 = vadd.f32 %v1863_v12, %v1793_v57  ;;  %v1883_v39 = vadd.f32 %v1877_v13, %v1794_v58  ;;  %v2552_v13 = vperm.slane %v2550_v6, 0 }
 0x136   : > { %v1969_v14 = vpop.f32.mrf.mxu0  ;;  %v1983_v16 = vpop.f32.mrf.mxu1 }
 0x137   : > { %v2060_v4 = vpop.f32.mrf.mxu2  ;;  %v2074_v22 = vpop.f32.mrf.mxu3  ;;  %v1988_v50 = vadd.f32 %v1969_v14, %v1880_v46  ;;  %v1989_v53 = vadd.f32 %v1983_v16, %v1881_v47  ;;  %v2553_v16 = vperm.slane %v2550_v6, 1 }
 0x139   : > { %v2079_v18 = vadd.f32 %v2060_v4, %v1988_v50  ;;  %v2080_v56 = vadd.f32 %v2074_v22, %v1989_v53 }
 0x13e   : > { %v1971_v19 = vpop.f32.mrf.mxu0  ;;  %v1985_v1 = vpop.f32.mrf.mxu1 }
 0x13f   : > { %v2062_v3 = vpop.f32.mrf.mxu2  ;;  %v2076_v20 = vpop.f32.mrf.mxu3  ;;  %v1990_v41 = vadd.f32 %v1971_v19, %v1882_v51  ;;  %v1991_v62 = vadd.f32 %v1985_v1, %v1883_v39 }
 0x141   : > { %v2081_v7 = vadd.f32 %v2062_v3, %v1990_v41  ;;  %v2082_v8 = vadd.f32 %v2076_v20, %v1991_v62 }
 0x146   : > { %v2148_v25 = vpop.f32.mrf.mxu0  ;;  %v2162_v26 = vpop.f32.mrf.mxu1 }
 0x147   : > { %v2243_v27 = vpop.f32.mrf.mxu2  ;;  %v2257_v28 = vpop.f32.mrf.mxu3  ;;  %v2167_v44 = vadd.f32 %v2148_v25, %v2079_v18  ;;  %v2168_v60 = vadd.f32 %v2162_v26, %v2080_v56 }
 0x149   : > { %v2262_v29 = vadd.f32 %v2243_v27, %v2167_v44  ;;  %v2263_v33 = vadd.f32 %v2257_v28, %v2168_v60 }
 0x14e   : > { %v2150_v23 = vpop.f32.mrf.mxu0  ;;  %v2164_v17 = vpop.f32.mrf.mxu1 }
 0x14f   : > { %v2245_v34 = vpop.f32.mrf.mxu2  ;;  %v2259_v38 = vpop.f32.mrf.mxu3  ;;  %v2169_v4 = vadd.f32 %v2150_v23, %v2081_v7  ;;  %v2170_v22 = vadd.f32 %v2164_v17, %v2082_v8 }
 0x151   : > { %v2264_v25 = vadd.f32 %v2245_v34, %v2169_v4  ;;  %v2265_v26 = vadd.f32 %v2259_v38, %v2170_v22 }
 0x156   : > { %v2332_v35 = vpop.f32.mrf.mxu0  ;;  %v2346_v36 = vpop.f32.mrf.mxu1 }
 0x157   : > { %v2428_v40 = vpop.f32.mrf.mxu2  ;;  %v2442_v31 = vpop.f32.mrf.mxu3  ;;  %v2351_v55 = vadd.f32 %v2332_v35, %v2262_v29  ;;  %v2352_v0 = vadd.f32 %v2346_v36, %v2263_v33 }
 0x159   : > { %v2447_v10 = vadd.f32 %v2428_v40, %v2351_v55  ;;  %v2448_v5 = vadd.f32 %v2442_v31, %v2352_v0 }
 0x15e   : > { %v2334_v59 = vpop.f32.mrf.mxu0  ;;  %v2348_v61 = vpop.f32.mrf.mxu1 }
 0x15f   : > { %v2430_v30 = vpop.f32.mrf.mxu2  ;;  %v2444_v3 = vpop.f32.mrf.mxu3  ;;  %v2353_v20 = vadd.f32 %v2334_v59, %v2264_v25  ;;  %v2354_v21 = vadd.f32 %v2348_v61, %v2265_v26 }
 0x161   : > { %v2449_v52 = vadd.f32 %v2430_v30, %v2353_v20  ;;  %v2450_v32 = vadd.f32 %v2444_v3, %v2354_v21 }
 0x166   : > { %v2517_v12 = vpop.f32.mrf.mxu0  ;;  %v2531_v14 = vpop.f32.mrf.mxu1 }
 0x167   : > { %v2536_v19 = vadd.f32 %v2517_v12, %v2447_v10  ;;  %v2537_v1 = vadd.f32 %v2531_v14, %v2448_v5 }
 0x169   : > { %v2546_v27 = vmul.f32 %v2542_v9, %v2536_v19  ;;  %v2547_v28 = vmul.f32 %v2543_v11, %v2537_v1 }
 0x16b   : > { %v2556_v24 = vadd.f32 %v2552_v13, %v2546_v27  ;;  %v2557_v2 = vadd.f32 %v2553_v16, %v2547_v28 }
 0x16d   : > { %v2560_v35 = vmax.f32 %v2556_v24, 0.0  ;;  %v2561_v36 = vmax.f32 %v2557_v2, 0.0 }
 0x16e   : > { %v2519_v23 = vpop.f32.mrf.mxu0  ;;  %v2533_v17 = vpop.f32.mrf.mxu1 }
 0x16f   : > { %v2564_v34 = vpack.c.bf16 %v2561_v36, %v2560_v35  ;;  %v2538_v38 = vadd.f32 %v2519_v23, %v2449_v52  ;;  %v2539_v37 = vadd.f32 %v2533_v17, %v2450_v32 }
 0x171   : > { %2566 = vst [vmem:[%s197_s18] sm:$0xff] %v2564_v34  ;;  %v2548_v42 = vmul.f32 %v2542_v9, %v2538_v38  ;;  %v2549_v43 = vmul.f32 %v2543_v11, %v2539_v37 }
 0x173   : > { %v2558_v45 = vadd.f32 %v2552_v13, %v2548_v42  ;;  %v2559_v46 = vadd.f32 %v2553_v16, %v2549_v43 }
 0x175   : > { %v2562_v47 = vmax.f32 %v2558_v45, 0.0  ;;  %v2563_v48 = vmax.f32 %v2559_v46, 0.0 }
 0x177   : > { %v2565_v49 = vpack.c.bf16 %v2563_v48, %v2562_v47 }
 0x179   : > { %2567 = vst [vmem:[%s197_s18 + $0x8] sm:$0x33] %v2565_v49 }
 0x17a PF: > { %s14_s15 = sadd.s32 1, %s3896_s15  }
 0x17b   : > { %p11_p4 = scmp.ge.s32.totalorder %s14_s15, 10  }
 0x17d   :  { %13 = sbr.rel (!%p11_p4) target bundleno = 1 (0x1), region = 90 }

</bundles_post_ra>
